<compile_context>
chip_gen: v7x
topology: tpu7x:2x2x1
jax: 0.10.0
libtpu: 0.0.40
codegen_flags: <defaults>
</compile_context>

<pallas_src>
import functools

import jax
import jax.numpy as jnp
from jax import lax
from jax.experimental import pallas as pl
from jax.experimental.pallas import tpu as pltpu

_EPS = 1e-5
_K = 4                                   # kernel_size of every ConvTranspose2d
# (stride, padding) of the four ConvTranspose2d+BN+ReLU blocks, then the final layer.
_BLOCK_CFG = ((1, 0), (2, 1), (2, 1), (2, 1))
_FINAL_CFG = (2, 1)


# ---------------------------------------------------------------------------
# Fused per-layer Pallas kernels
# ---------------------------------------------------------------------------

def _convt_bn_relu_kernel(w_ref, a_ref, gamma_ref, beta_ref, o_ref):
    """w:(C,K) bf16, a:(K,M) bf16, gamma/beta:(C,1) f32 -> o:(C,M) bf16.

    y = W @ A (transposed conv as matmul over im2col patches), then
    training-mode BatchNorm over the M = N*H*W axis, then ReLU.
    """
    y = jnp.dot(w_ref[...], a_ref[...], preferred_element_type=jnp.float32)  # (C, M) f32
    inv_m = 1.0 / y.shape[1]
    mean = jnp.sum(y, axis=1, keepdims=True) * inv_m                         # (C, 1)
    var = jnp.sum(y * y, axis=1, keepdims=True) * inv_m - mean * mean
    var = jnp.maximum(var, 0.0)                      # guard f32 cancellation
    scale = gamma_ref[...] * lax.rsqrt(var + _EPS)   # (C, 1), broadcast along lanes
    shift = beta_ref[...] - mean * scale
    o_ref[...] = jnp.maximum(y * scale + shift, 0.0).astype(o_ref.dtype)


def _convt_bias_tanh_kernel(w_ref, a_ref, bias_ref, o_ref):
    """Final layer: y = W @ A + b, then Tanh."""
    y = jnp.dot(w_ref[...], a_ref[...], preferred_element_type=jnp.float32)
    o_ref[...] = jnp.tanh(y + bias_ref[...]).astype(o_ref.dtype)


def _vmem():
    return pl.BlockSpec(memory_space=pltpu.MemorySpace.VMEM)


def fused_convt_bn_relu(w_t, a_t, gamma, beta):
    C, _ = w_t.shape
    _, M = a_t.shape
    return pl.pallas_call(
        _convt_bn_relu_kernel,
        out_shape=jax.ShapeDtypeStruct((C, M), jnp.bfloat16),
        in_specs=[_vmem()] * 4,
        out_specs=_vmem(),
    )(w_t, a_t, gamma, beta)


def fused_convt_bias_tanh(w_t, a_t, bias):
    C, _ = w_t.shape
    _, M = a_t.shape
    return pl.pallas_call(
        _convt_bias_tanh_kernel,
        out_shape=jax.ShapeDtypeStruct((C, M), jnp.float32),
        in_specs=[_vmem()] * 3,
        out_specs=_vmem(),
    )(w_t, a_t, bias)


# ---------------------------------------------------------------------------
# Glue: im2col of the equivalent direct convolution (channel-major layout)
# ---------------------------------------------------------------------------

def _patches_cm(h_cnhw, stride, padding):
    """h_cnhw: (C_in, N, H, W).  Returns (K, M) bf16 with K = C_in*kH*kW ordered
    (c_in, a, b) and M = N*Ho*Wo ordered (n, oh, ow), Ho/Wo being the
    transposed-conv output sizes."""
    # TODO(synk): patch extraction stays as one fused XLA op; an in-kernel
    # pl.ds-window loop over the 16 filter taps would avoid materializing the
    # 16x-expanded patch matrix in HBM entirely.
    ph = _K - 1 - padding
    patches = lax.conv_general_dilated_patches(
        h_cnhw.astype(jnp.bfloat16),
        filter_shape=(_K, _K),
        window_strides=(1, 1),
        padding=[(ph, ph), (ph, ph)],
        lhs_dilation=(stride, stride),          # zero-insertion for stride > 1
        dimension_numbers=("CNHW", "OIHW", "CNHW"),
    )                                           # (C_in*kH*kW, N, Ho, Wo)
    K, N, Ho, Wo = patches.shape
    return patches.reshape(K, N * Ho * Wo), (N, Ho, Wo)


def _to_matrix(w):
    """PyTorch ConvTranspose2d weight (C_in, C_out, kH, kW) -> (C_out, C_in*kH*kW)
    bf16 matrix of the equivalent direct conv (spatially flipped, in/out channels
    swapped), with K ordered (c_in, a, b) to match _patches_cm."""
    c_in, c_out, kh, kw = w.shape
    w_flip = jnp.flip(w, axis=(2, 3)).transpose(1, 0, 2, 3)     # (C_out, C_in, kH, kW)
    return w_flip.reshape(c_out, c_in * kh * kw).astype(jnp.bfloat16)


# ---------------------------------------------------------------------------
# Generator forward
# ---------------------------------------------------------------------------

@functools.partial(jax.jit, static_argnums=(2,))
def generator_forward(x, params, channels_img):
    # x: (N, z_dim, 1, 1) NCHW -> channel-major (z_dim, N, 1, 1); activations stay
    # channel-major (C, N, H, W) bf16 until the single final transpose.
    h = x.transpose(1, 0, 2, 3)
    for (w_t, gamma, beta), (stride, padding) in zip(params["blocks"], _BLOCK_CFG):
        a_t, (N, Ho, Wo) = _patches_cm(h, stride, padding)
        y_t = fused_convt_bn_relu(w_t, a_t, gamma, beta)        # (C_out, N*Ho*Wo) bf16
        h = y_t.reshape(w_t.shape[0], N, Ho, Wo)

    w_t, bias = params["final"]
    stride, padding = _FINAL_CFG
    a_t, (N, Ho, Wo) = _patches_cm(h, stride, padding)
    y_t = fused_convt_bias_tanh(w_t, a_t, bias)                 # (C_pad, N*Ho*Wo) f32
    y_t = y_t[:channels_img]                                    # drop zero pad rows
    return y_t.reshape(channels_img, N, Ho, Wo).transpose(1, 0, 2, 3)   # NCHW


def init_params(key, z_dim, channels_img, dimen):
    layer_io = [(z_dim, dimen * 16), (dimen * 16, dimen * 8),
                (dimen * 8, dimen * 4), (dimen * 4, dimen * 2)]
    blocks = []
    for (cin, cout) in layer_io:
        key, wk = jax.random.split(key)
        w = 0.02 * jax.random.normal(wk, (cin, cout, _K, _K), jnp.float32)
        blocks.append((_to_matrix(w),
                       jnp.ones((cout, 1), jnp.float32),        # BN gamma
                       jnp.zeros((cout, 1), jnp.float32)))      # BN beta
    key, wk, bk = jax.random.split(key, 3)
    w_f = 0.02 * jax.random.normal(wk, (dimen * 2, channels_img, _K, _K), jnp.float32)
    b_f = 0.02 * jax.random.normal(bk, (channels_img,), jnp.float32)
    # Pad the final layer's output channels (3) up to a sublane multiple of 8;
    # padded rows compute tanh(0)=0 and are sliced off after the kernel.
    c_pad = ((channels_img + 7) // 8) * 8
    w_f_mat = jnp.pad(_to_matrix(w_f), ((0, c_pad - channels_img), (0, 0)))
    b_pad = jnp.pad(b_f.reshape(channels_img, 1), ((0, c_pad - channels_img), (0, 0)))
    return {"blocks": blocks, "final": (w_f_mat, b_pad)}


if __name__ == "__main__":
    Z_DIM, CHANNELS_IMG, DIMEN, BATCH = 32, 3, 4, 2

    key = jax.random.PRNGKey(0)
    key, xk = jax.random.split(key)
    x = jax.random.normal(xk, (BATCH, Z_DIM, 1, 1), jnp.float32)   # (N, z_dim, 1, 1)

    params = init_params(key, Z_DIM, CHANNELS_IMG, DIMEN)

    out = generator_forward(x, params, CHANNELS_IMG)
    out = jax.block_until_ready(out)

    assert out.shape == (BATCH, CHANNELS_IMG, 64, 64), out.shape
    assert bool(jnp.all(jnp.isfinite(out)))
    print("KERNEL_OK")
</pallas_src>

<mosaic_0001>
module attributes {stable_mosaic.version = 11 : i64} {
  func.func @_convt_bn_relu_kernel(%arg0: memref<64x512xbf16, #tpu.memory_space<vmem>>, %arg1: memref<512x32xbf16, #tpu.memory_space<vmem>>, %arg2: memref<64x1xf32, #tpu.memory_space<vmem>>, %arg3: memref<64x1xf32, #tpu.memory_space<vmem>>, %arg4: memref<64x32xbf16, #tpu.memory_space<vmem>>) attributes {dimension_semantics = [], scalar_prefetch = 0 : i64, scratch_operands = 0 : i64, tpu.core_type = #tpu.core_type<tc>} {
    %c0 = arith.constant 0 : index
    %c0_0 = arith.constant 0 : index
    %0 = vector.load %arg0[%c0, %c0_0] : memref<64x512xbf16, #tpu.memory_space<vmem>>, vector<64x512xbf16>
    %c0_1 = arith.constant 0 : index
    %c0_2 = arith.constant 0 : index
    %1 = vector.load %arg1[%c0_1, %c0_2] : memref<512x32xbf16, #tpu.memory_space<vmem>>, vector<512x32xbf16>
    %cst = arith.constant dense<0.000000e+00> : vector<64x32xf32>
    %2 = tpu.matmul %0, %1, %cst {dimension_numbers = #tpu.dot_dimension_numbers<[1], [0], [0], [1], [0, 0, 1, 1], [], []>} : vector<64x512xbf16>, vector<512x32xbf16>, vector<64x32xf32> -> vector<64x32xf32>
    %cst_3 = arith.constant dense<0.000000e+00> : vector<64xf32>
    %3 = vector.multi_reduction <add>, %2, %cst_3 [1] : vector<64x32xf32> to vector<64xf32>
    %4 = vector.shape_cast %3 : vector<64xf32> to vector<64x1xf32>
    %cst_4 = arith.constant 3.125000e-02 : f32
    %5 = vector.broadcast %cst_4 : f32 to vector<64x1xf32>
    %6 = arith.mulf %4, %5 : vector<64x1xf32>
    %7 = arith.mulf %2, %2 : vector<64x32xf32>
    %cst_5 = arith.constant dense<0.000000e+00> : vector<64xf32>
    %8 = vector.multi_reduction <add>, %7, %cst_5 [1] : vector<64x32xf32> to vector<64xf32>
    %9 = vector.shape_cast %8 : vector<64xf32> to vector<64x1xf32>
    %cst_6 = arith.constant 3.125000e-02 : f32
    %10 = vector.broadcast %cst_6 : f32 to vector<64x1xf32>
    %11 = arith.mulf %9, %10 : vector<64x1xf32>
    %12 = arith.mulf %6, %6 : vector<64x1xf32>
    %13 = arith.subf %11, %12 : vector<64x1xf32>
    %cst_7 = arith.constant 0.000000e+00 : f32
    %14 = vector.broadcast %cst_7 : f32 to vector<64x1xf32>
    %15 = arith.maximumf %13, %14 : vector<64x1xf32>
    %c0_8 = arith.constant 0 : index
    %c0_9 = arith.constant 0 : index
    %16 = vector.load %arg2[%c0_8, %c0_9] : memref<64x1xf32, #tpu.memory_space<vmem>>, vector<64x1xf32>
    %cst_10 = arith.constant 9.99999974E-6 : f32
    %17 = vector.broadcast %cst_10 : f32 to vector<64x1xf32>
    %18 = arith.addf %15, %17 : vector<64x1xf32>
    %19 = math.rsqrt %18 : vector<64x1xf32>
    %20 = arith.mulf %16, %19 : vector<64x1xf32>
    %c0_11 = arith.constant 0 : index
    %c0_12 = arith.constant 0 : index
    %21 = vector.load %arg3[%c0_11, %c0_12] : memref<64x1xf32, #tpu.memory_space<vmem>>, vector<64x1xf32>
    %22 = arith.mulf %6, %20 : vector<64x1xf32>
    %23 = arith.subf %21, %22 : vector<64x1xf32>
    %24 = vector.broadcast %20 : vector<64x1xf32> to vector<64x32xf32>
    %25 = arith.mulf %2, %24 : vector<64x32xf32>
    %26 = vector.broadcast %23 : vector<64x1xf32> to vector<64x32xf32>
    %27 = arith.addf %25, %26 : vector<64x32xf32>
    %cst_13 = arith.constant 0.000000e+00 : f32
    %28 = vector.broadcast %cst_13 : f32 to vector<64x32xf32>
    %29 = arith.maximumf %27, %28 : vector<64x32xf32>
    %30 = arith.truncf %29 : vector<64x32xf32> to vector<64x32xbf16>
    %c0_14 = arith.constant 0 : index
    %c0_15 = arith.constant 0 : index
    %31 = vector.load %arg4[%c0_14, %c0_15] : memref<64x32xbf16, #tpu.memory_space<vmem>>, vector<64x32xbf16>
    tpu.vector_store %arg4[%c0_14, %c0_15], %30 {strides = array<i32>} : memref<64x32xbf16, #tpu.memory_space<vmem>>, vector<64x32xbf16>,
    return
  }
}

module attributes {stable_mosaic.version = 11 : i64} {
  func.func @_convt_bn_relu_kernel(%arg0: memref<32x1024xbf16, #tpu.memory_space<vmem>>, %arg1: memref<1024x128xbf16, #tpu.memory_space<vmem>>, %arg2: memref<32x1xf32, #tpu.memory_space<vmem>>, %arg3: memref<32x1xf32, #tpu.memory_space<vmem>>, %arg4: memref<32x128xbf16, #tpu.memory_space<vmem>>) attributes {dimension_semantics = [], scalar_prefetch = 0 : i64, scratch_operands = 0 : i64, tpu.core_type = #tpu.core_type<tc>} {
    %c0 = arith.constant 0 : index
    %c0_0 = arith.constant 0 : index
    %0 = vector.load %arg0[%c0, %c0_0] : memref<32x1024xbf16, #tpu.memory_space<vmem>>, vector<32x1024xbf16>
    %c0_1 = arith.constant 0 : index
    %c0_2 = arith.constant 0 : index
    %1 = vector.load %arg1[%c0_1, %c0_2] : memref<1024x128xbf16, #tpu.memory_space<vmem>>, vector<1024x128xbf16>
    %cst = arith.constant dense<0.000000e+00> : vector<32x128xf32>
    %2 = tpu.matmul %0, %1, %cst {dimension_numbers = #tpu.dot_dimension_numbers<[1], [0], [0], [1], [0, 0, 1, 1], [], []>} : vector<32x1024xbf16>, vector<1024x128xbf16>, vector<32x128xf32> -> vector<32x128xf32>
    %cst_3 = arith.constant dense<0.000000e+00> : vector<32xf32>
    %3 = vector.multi_reduction <add>, %2, %cst_3 [1] : vector<32x128xf32> to vector<32xf32>
    %4 = vector.shape_cast %3 : vector<32xf32> to vector<32x1xf32>
    %cst_4 = arith.constant 7.812500e-03 : f32
    %5 = vector.broadcast %cst_4 : f32 to vector<32x1xf32>
    %6 = arith.mulf %4, %5 : vector<32x1xf32>
    %7 = arith.mulf %2, %2 : vector<32x128xf32>
    %cst_5 = arith.constant dense<0.000000e+00> : vector<32xf32>
    %8 = vector.multi_reduction <add>, %7, %cst_5 [1] : vector<32x128xf32> to vector<32xf32>
    %9 = vector.shape_cast %8 : vector<32xf32> to vector<32x1xf32>
    %cst_6 = arith.constant 7.812500e-03 : f32
    %10 = vector.broadcast %cst_6 : f32 to vector<32x1xf32>
    %11 = arith.mulf %9, %10 : vector<32x1xf32>
    %12 = arith.mulf %6, %6 : vector<32x1xf32>
    %13 = arith.subf %11, %12 : vector<32x1xf32>
    %cst_7 = arith.constant 0.000000e+00 : f32
    %14 = vector.broadcast %cst_7 : f32 to vector<32x1xf32>
    %15 = arith.maximumf %13, %14 : vector<32x1xf32>
    %c0_8 = arith.constant 0 : index
    %c0_9 = arith.constant 0 : index
    %16 = vector.load %arg2[%c0_8, %c0_9] : memref<32x1xf32, #tpu.memory_space<vmem>>, vector<32x1xf32>
    %cst_10 = arith.constant 9.99999974E-6 : f32
    %17 = vector.broadcast %cst_10 : f32 to vector<32x1xf32>
    %18 = arith.addf %15, %17 : vector<32x1xf32>
    %19 = math.rsqrt %18 : vector<32x1xf32>
    %20 = arith.mulf %16, %19 : vector<32x1xf32>
    %c0_11 = arith.constant 0 : index
    %c0_12 = arith.constant 0 : index
    %21 = vector.load %arg3[%c0_11, %c0_12] : memref<32x1xf32, #tpu.memory_space<vmem>>, vector<32x1xf32>
    %22 = arith.mulf %6, %20 : vector<32x1xf32>
    %23 = arith.subf %21, %22 : vector<32x1xf32>
    %24 = vector.broadcast %20 : vector<32x1xf32> to vector<32x128xf32>
    %25 = arith.mulf %2, %24 : vector<32x128xf32>
    %26 = vector.broadcast %23 : vector<32x1xf32> to vector<32x128xf32>
    %27 = arith.addf %25, %26 : vector<32x128xf32>
    %cst_13 = arith.constant 0.000000e+00 : f32
    %28 = vector.broadcast %cst_13 : f32 to vector<32x128xf32>
    %29 = arith.maximumf %27, %28 : vector<32x128xf32>
    %30 = arith.truncf %29 : vector<32x128xf32> to vector<32x128xbf16>
    %c0_14 = arith.constant 0 : index
    %c0_15 = arith.constant 0 : index
    %31 = vector.load %arg4[%c0_14, %c0_15] : memref<32x128xbf16, #tpu.memory_space<vmem>>, vector<32x128xbf16>
    tpu.vector_store %arg4[%c0_14, %c0_15], %30 {strides = array<i32>} : memref<32x128xbf16, #tpu.memory_space<vmem>>, vector<32x128xbf16>,
    return
  }
}

module attributes {stable_mosaic.version = 11 : i64} {
  func.func @_convt_bn_relu_kernel(%arg0: memref<16x512xbf16, #tpu.memory_space<vmem>>, %arg1: memref<512x512xbf16, #tpu.memory_space<vmem>>, %arg2: memref<16x1xf32, #tpu.memory_space<vmem>>, %arg3: memref<16x1xf32, #tpu.memory_space<vmem>>, %arg4: memref<16x512xbf16, #tpu.memory_space<vmem>>) attributes {dimension_semantics = [], scalar_prefetch = 0 : i64, scratch_operands = 0 : i64, tpu.core_type = #tpu.core_type<tc>} {
    %c0 = arith.constant 0 : index
    %c0_0 = arith.constant 0 : index
    %0 = vector.load %arg0[%c0, %c0_0] : memref<16x512xbf16, #tpu.memory_space<vmem>>, vector<16x512xbf16>
    %c0_1 = arith.constant 0 : index
    %c0_2 = arith.constant 0 : index
    %1 = vector.load %arg1[%c0_1, %c0_2] : memref<512x512xbf16, #tpu.memory_space<vmem>>, vector<512x512xbf16>
    %cst = arith.constant dense<0.000000e+00> : vector<16x512xf32>
    %2 = tpu.matmul %0, %1, %cst {dimension_numbers = #tpu.dot_dimension_numbers<[1], [0], [0], [1], [0, 0, 1, 1], [], []>} : vector<16x512xbf16>, vector<512x512xbf16>, vector<16x512xf32> -> vector<16x512xf32>
    %cst_3 = arith.constant dense<0.000000e+00> : vector<16xf32>
    %3 = vector.multi_reduction <add>, %2, %cst_3 [1] : vector<16x512xf32> to vector<16xf32>
    %4 = vector.shape_cast %3 : vector<16xf32> to vector<16x1xf32>
    %cst_4 = arith.constant 0.001953125 : f32
    %5 = vector.broadcast %cst_4 : f32 to vector<16x1xf32>
    %6 = arith.mulf %4, %5 : vector<16x1xf32>
    %7 = arith.mulf %2, %2 : vector<16x512xf32>
    %cst_5 = arith.constant dense<0.000000e+00> : vector<16xf32>
    %8 = vector.multi_reduction <add>, %7, %cst_5 [1] : vector<16x512xf32> to vector<16xf32>
    %9 = vector.shape_cast %8 : vector<16xf32> to vector<16x1xf32>
    %cst_6 = arith.constant 0.001953125 : f32
    %10 = vector.broadcast %cst_6 : f32 to vector<16x1xf32>
    %11 = arith.mulf %9, %10 : vector<16x1xf32>
    %12 = arith.mulf %6, %6 : vector<16x1xf32>
    %13 = arith.subf %11, %12 : vector<16x1xf32>
    %cst_7 = arith.constant 0.000000e+00 : f32
    %14 = vector.broadcast %cst_7 : f32 to vector<16x1xf32>
    %15 = arith.maximumf %13, %14 : vector<16x1xf32>
    %c0_8 = arith.constant 0 : index
    %c0_9 = arith.constant 0 : index
    %16 = vector.load %arg2[%c0_8, %c0_9] : memref<16x1xf32, #tpu.memory_space<vmem>>, vector<16x1xf32>
    %cst_10 = arith.constant 9.99999974E-6 : f32
    %17 = vector.broadcast %cst_10 : f32 to vector<16x1xf32>
    %18 = arith.addf %15, %17 : vector<16x1xf32>
    %19 = math.rsqrt %18 : vector<16x1xf32>
    %20 = arith.mulf %16, %19 : vector<16x1xf32>
    %c0_11 = arith.constant 0 : index
    %c0_12 = arith.constant 0 : index
    %21 = vector.load %arg3[%c0_11, %c0_12] : memref<16x1xf32, #tpu.memory_space<vmem>>, vector<16x1xf32>
    %22 = arith.mulf %6, %20 : vector<16x1xf32>
    %23 = arith.subf %21, %22 : vector<16x1xf32>
    %24 = vector.broadcast %20 : vector<16x1xf32> to vector<16x512xf32>
    %25 = arith.mulf %2, %24 : vector<16x512xf32>
    %26 = vector.broadcast %23 : vector<16x1xf32> to vector<16x512xf32>
    %27 = arith.addf %25, %26 : vector<16x512xf32>
    %cst_13 = arith.constant 0.000000e+00 : f32
    %28 = vector.broadcast %cst_13 : f32 to vector<16x512xf32>
    %29 = arith.maximumf %27, %28 : vector<16x512xf32>
    %30 = arith.truncf %29 : vector<16x512xf32> to vector<16x512xbf16>
    %c0_14 = arith.constant 0 : index
    %c0_15 = arith.constant 0 : index
    %31 = vector.load %arg4[%c0_14, %c0_15] : memref<16x512xbf16, #tpu.memory_space<vmem>>, vector<16x512xbf16>
    tpu.vector_store %arg4[%c0_14, %c0_15], %30 {strides = array<i32>} : memref<16x512xbf16, #tpu.memory_space<vmem>>, vector<16x512xbf16>,
    return
  }
}

module attributes {stable_mosaic.version = 11 : i64} {
  func.func @_convt_bn_relu_kernel(%arg0: memref<8x256xbf16, #tpu.memory_space<vmem>>, %arg1: memref<256x2048xbf16, #tpu.memory_space<vmem>>, %arg2: memref<8x1xf32, #tpu.memory_space<vmem>>, %arg3: memref<8x1xf32, #tpu.memory_space<vmem>>, %arg4: memref<8x2048xbf16, #tpu.memory_space<vmem>>) attributes {dimension_semantics = [], scalar_prefetch = 0 : i64, scratch_operands = 0 : i64, tpu.core_type = #tpu.core_type<tc>} {
    %c0 = arith.constant 0 : index
    %c0_0 = arith.constant 0 : index
    %0 = vector.load %arg0[%c0, %c0_0] : memref<8x256xbf16, #tpu.memory_space<vmem>>, vector<8x256xbf16>
    %c0_1 = arith.constant 0 : index
    %c0_2 = arith.constant 0 : index
    %1 = vector.load %arg1[%c0_1, %c0_2] : memref<256x2048xbf16, #tpu.memory_space<vmem>>, vector<256x2048xbf16>
    %cst = arith.constant dense<0.000000e+00> : vector<8x2048xf32>
    %2 = tpu.matmul %0, %1, %cst {dimension_numbers = #tpu.dot_dimension_numbers<[1], [0], [0], [1], [0, 0, 1, 1], [], []>} : vector<8x256xbf16>, vector<256x2048xbf16>, vector<8x2048xf32> -> vector<8x2048xf32>
    %cst_3 = arith.constant dense<0.000000e+00> : vector<8xf32>
    %3 = vector.multi_reduction <add>, %2, %cst_3 [1] : vector<8x2048xf32> to vector<8xf32>
    %4 = vector.shape_cast %3 : vector<8xf32> to vector<8x1xf32>
    %cst_4 = arith.constant 4.8828125E-4 : f32
    %5 = vector.broadcast %cst_4 : f32 to vector<8x1xf32>
    %6 = arith.mulf %4, %5 : vector<8x1xf32>
    %7 = arith.mulf %2, %2 : vector<8x2048xf32>
    %cst_5 = arith.constant dense<0.000000e+00> : vector<8xf32>
    %8 = vector.multi_reduction <add>, %7, %cst_5 [1] : vector<8x2048xf32> to vector<8xf32>
    %9 = vector.shape_cast %8 : vector<8xf32> to vector<8x1xf32>
    %cst_6 = arith.constant 4.8828125E-4 : f32
    %10 = vector.broadcast %cst_6 : f32 to vector<8x1xf32>
    %11 = arith.mulf %9, %10 : vector<8x1xf32>
    %12 = arith.mulf %6, %6 : vector<8x1xf32>
    %13 = arith.subf %11, %12 : vector<8x1xf32>
    %cst_7 = arith.constant 0.000000e+00 : f32
    %14 = vector.broadcast %cst_7 : f32 to vector<8x1xf32>
    %15 = arith.maximumf %13, %14 : vector<8x1xf32>
    %c0_8 = arith.constant 0 : index
    %c0_9 = arith.constant 0 : index
    %16 = vector.load %arg2[%c0_8, %c0_9] : memref<8x1xf32, #tpu.memory_space<vmem>>, vector<8x1xf32>
    %cst_10 = arith.constant 9.99999974E-6 : f32
    %17 = vector.broadcast %cst_10 : f32 to vector<8x1xf32>
    %18 = arith.addf %15, %17 : vector<8x1xf32>
    %19 = math.rsqrt %18 : vector<8x1xf32>
    %20 = arith.mulf %16, %19 : vector<8x1xf32>
    %c0_11 = arith.constant 0 : index
    %c0_12 = arith.constant 0 : index
    %21 = vector.load %arg3[%c0_11, %c0_12] : memref<8x1xf32, #tpu.memory_space<vmem>>, vector<8x1xf32>
    %22 = arith.mulf %6, %20 : vector<8x1xf32>
    %23 = arith.subf %21, %22 : vector<8x1xf32>
    %24 = vector.broadcast %20 : vector<8x1xf32> to vector<8x2048xf32>
    %25 = arith.mulf %2, %24 : vector<8x2048xf32>
    %26 = vector.broadcast %23 : vector<8x1xf32> to vector<8x2048xf32>
    %27 = arith.addf %25, %26 : vector<8x2048xf32>
    %cst_13 = arith.constant 0.000000e+00 : f32
    %28 = vector.broadcast %cst_13 : f32 to vector<8x2048xf32>
    %29 = arith.maximumf %27, %28 : vector<8x2048xf32>
    %30 = arith.truncf %29 : vector<8x2048xf32> to vector<8x2048xbf16>
    %c0_14 = arith.constant 0 : index
    %c0_15 = arith.constant 0 : index
    %31 = vector.load %arg4[%c0_14, %c0_15] : memref<8x2048xbf16, #tpu.memory_space<vmem>>, vector<8x2048xbf16>
    tpu.vector_store %arg4[%c0_14, %c0_15], %30 {strides = array<i32>} : memref<8x2048xbf16, #tpu.memory_space<vmem>>, vector<8x2048xbf16>,
    return
  }
}

module attributes {stable_mosaic.version = 11 : i64} {
  func.func @_convt_bias_tanh_kernel(%arg0: memref<8x128xbf16, #tpu.memory_space<vmem>>, %arg1: memref<128x8192xbf16, #tpu.memory_space<vmem>>, %arg2: memref<8x1xf32, #tpu.memory_space<vmem>>, %arg3: memref<8x8192xf32, #tpu.memory_space<vmem>>) attributes {dimension_semantics = [], scalar_prefetch = 0 : i64, scratch_operands = 0 : i64, tpu.core_type = #tpu.core_type<tc>} {
    %c0 = arith.constant 0 : index
    %c0_0 = arith.constant 0 : index
    %0 = vector.load %arg0[%c0, %c0_0] : memref<8x128xbf16, #tpu.memory_space<vmem>>, vector<8x128xbf16>
    %c0_1 = arith.constant 0 : index
    %c0_2 = arith.constant 0 : index
    %1 = vector.load %arg1[%c0_1, %c0_2] : memref<128x8192xbf16, #tpu.memory_space<vmem>>, vector<128x8192xbf16>
    %cst = arith.constant dense<0.000000e+00> : vector<8x8192xf32>
    %2 = tpu.matmul %0, %1, %cst {dimension_numbers = #tpu.dot_dimension_numbers<[1], [0], [0], [1], [0, 0, 1, 1], [], []>} : vector<8x128xbf16>, vector<128x8192xbf16>, vector<8x8192xf32> -> vector<8x8192xf32>
    %c0_3 = arith.constant 0 : index
    %c0_4 = arith.constant 0 : index
    %3 = vector.load %arg2[%c0_3, %c0_4] : memref<8x1xf32, #tpu.memory_space<vmem>>, vector<8x1xf32>
    %4 = vector.broadcast %3 : vector<8x1xf32> to vector<8x8192xf32>
    %5 = arith.addf %2, %4 : vector<8x8192xf32>
    %6 = math.tanh %5 : vector<8x8192xf32>
    %c0_5 = arith.constant 0 : index
    %c0_6 = arith.constant 0 : index
    %7 = vector.load %arg3[%c0_5, %c0_6] : memref<8x8192xf32, #tpu.memory_space<vmem>>, vector<8x8192xf32>
    tpu.vector_store %arg3[%c0_5, %c0_6], %6 {strides = array<i32>} : memref<8x8192xf32, #tpu.memory_space<vmem>>, vector<8x8192xf32>,
    return
  }
}

</mosaic_0001>

<bundles_post_ra>
// kernel: generator_forward.5
= control target key start
LH: loop header
LB: loop body
LE: loop exit
PB: predicated region body
PF: predicated region fallthrough
CT: control target
= control target key end

     0   :  { %9 = vsyncpa [#allocation3], 0  ;;  %s1063_s15 = smov [#allocation2]   ;;  %s1374_s0 = inlined_call_operand.hbm [shape: bf16[64,512], index: 0, kind: input, shape index: {}]   ;;  %s1375_s1 = inlined_call_operand.vmem [shape: bf16[512,32], index: 1, kind: input, shape index: {}]   ;;  %s1376_s2 = inlined_call_operand.vmem [shape: f32[64,1], index: 2, kind: input, shape index: {}]   ;;  %s1377_s3 = inlined_call_operand.vmem [shape: f32[64,1], index: 3, kind: input, shape index: {}]   ;;  %s1378_s4 = inlined_call_operand.vmem [shape: bf16[64,32], index: 4, kind: output, shape index: {}]  }
   0x1   :  { %s15_s16 = sshll.u32 %s1063_s15, 4  ;;  %s1039_s19 = scalar_lea.hbm %s1374_s0, 2048  ;;  %s16_s16 = int_to_ptr.vmem [resolvable:$true] %s15_s16 }
   0x2   :  { %p1040_p0 = scmp.ne.s32.totalorder %s1374_s0, %s1039_s19  ;;  %p1043_p1 = scmp.lt.u32.totalorder %s1039_s19, %s1374_s0 }
   0x4   :  { %p1045_p2 = pnand %p1043_p1, %p1040_p0 }
   0x6   :  { %1048 = shalt.err (!%p1045_p2)
}
   0x7   :  { %s1049_s24 = scalar_lea.vmem %s16_s16, 2048  ;;  %p1054_p4 = scmp.lt.s32.totalorder %s16_s16, %s16_s16 }
   0x8   :  { %p1050_p3 = scmp.ne.s32.totalorder %s16_s16, %s1049_s24  ;;  %p1055_p5 = scmp.lt.s32.totalorder %s1049_s24, %s1049_s24 }
   0xa   :  { %p1056_p6 = por %p1055_p5, %p1054_p4 }
   0xc   :  { %p1057_p7 = pnand %p1056_p6, %p1050_p3 }
   0xe   :  { %1060 = shalt.err (!%p1057_p7)
}
   0xf   :  { %s1064_s25 = smov 256   ;;  %s1065_s26 = smov 16  }
  0x10   :  { %21 = dma.hbm_to_vmem [thread:$0]  %s1374_s0, 2048, %s16_s16, [#allocation3], %s1064_s25, %s1064_s25, %s1065_s26  }
  0x11   :  { %1061 = dma.done.wait [#allocation3], 2048  }
  0x12   :  { %1062 = vsyncadd [#allocation3], 4294965248  ;;  %v967_v0 = vld [vmem:[%s1375_s1 + $0x40] sm:$0xff]   ;;  %v971_v4 = vld [vmem:[%s1375_s1 + $0x48] sm:$0xff]   ;;  %vm514_vm0 = vcmask 261120   ;;  %vm803_vm1 = vcmask 257024  }
  0x13   :  { %v968_v1 = vld [vmem:[%s1375_s1 + $0xc0] sm:$0xff]   ;;  %881 = vmatprep.subr.bf16.mxu0 %v967_v0  ;;  %v972_v5 = vld [vmem:[%s1375_s1 + $0xc8] sm:$0xff]   ;;  %v975_v8 = vld [vmem:[%s1375_s1 + $0x50] sm:$0xff]  }
  0x14   :  { %v969_v2 = vld [vmem:[%s1375_s1] sm:$0xff]   ;;  %921 = vmatprep.subr.bf16.mxu1 %v968_v1  ;;  %v973_v6 = vld [vmem:[%s1375_s1 + $0x8] sm:$0xff]   ;;  %v976_v9 = vld [vmem:[%s1375_s1 + $0xd0] sm:$0xff]  }
  0x15   :  { %v970_v3 = vld [vmem:[%s1375_s1 + $0x80] sm:$0xff]   ;;  %882 = vmatpush3.bf16.msra.mxu0 %v969_v2  ;;  %v974_v7 = vld [vmem:[%s1375_s1 + $0x88] sm:$0xff]   ;;  %v977_v10 = vld [vmem:[%s1375_s1 + $0x10] sm:$0xff]  }
  0x16   :  { %922 = vmatpush3.bf16.msra.mxu1 %v970_v3  ;;  %883 = vmatprep.subr.bf16.mxu0 %v971_v4  ;;  %v978_v11 = vld [vmem:[%s1375_s1 + $0x90] sm:$0xff]   ;;  %v979_v12 = vld [vmem:[%s1375_s1 + $0x58] sm:$0xff]   ;;  %v983_v16 = vld [vmem:[%s1375_s1 + $0x60] sm:$0xff]  }
  0x17   :  { %923 = vmatprep.subr.bf16.mxu1 %v972_v5  ;;  %v980_v13 = vld [vmem:[%s1375_s1 + $0xd8] sm:$0xff]   ;;  %v984_v17 = vld [vmem:[%s1375_s1 + $0xe0] sm:$0xff]   ;;  %v987_v20 = vld [vmem:[%s1375_s1 + $0x68] sm:$0xff]  }
  0x18   :  { %v981_v14 = vld [vmem:[%s1375_s1 + $0x18] sm:$0xff]   ;;  %v985_v18 = vld [vmem:[%s1375_s1 + $0x20] sm:$0xff]   ;;  %v988_v21 = vld [vmem:[%s1375_s1 + $0xe8] sm:$0xff]  }
  0x19   :  { %884 = vmatpush3.bf16.msra.mxu0 %v973_v6  ;;  %v982_v15 = vld [vmem:[%s1375_s1 + $0x98] sm:$0xff]   ;;  %v986_v19 = vld [vmem:[%s1375_s1 + $0xa0] sm:$0xff]   ;;  %v989_v22 = vld [vmem:[%s1375_s1 + $0x28] sm:$0xff]  }
  0x1a   :  { %924 = vmatpush3.bf16.msra.mxu1 %v974_v7  ;;  %885 = vmatprep.subr.bf16.mxu0 %v975_v8  ;;  %v990_v23 = vld [vmem:[%s1375_s1 + $0xa8] sm:$0xff]   ;;  %v991_v24 = vld [vmem:[%s1375_s1 + $0x70] sm:$0xff]   ;;  %v995_v28 = vld [vmem:[%s1375_s1 + $0x78] sm:$0xff]  }
  0x1b   :  { %925 = vmatprep.subr.bf16.mxu1 %v976_v9  ;;  %v992_v25 = vld [vmem:[%s1375_s1 + $0xf0] sm:$0xff]   ;;  %v996_v29 = vld [vmem:[%s1375_s1 + $0xf8] sm:$0xff]  }
  0x1c   :  { %v993_v26 = vld [vmem:[%s1375_s1 + $0x30] sm:$0xff]   ;;  %v997_v30 = vld [vmem:[%s1375_s1 + $0x38] sm:$0xff]  }
  0x1d   :  { %886 = vmatpush3.bf16.msra.mxu0 %v977_v10  ;;  %v994_v27 = vld [vmem:[%s1375_s1 + $0xb0] sm:$0xff]   ;;  %v998_v31 = vld [vmem:[%s1375_s1 + $0xb8] sm:$0xff]  }
  0x1e   :  { %926 = vmatpush3.bf16.msra.mxu1 %v978_v11  ;;  %887 = vmatprep.subr.bf16.mxu0 %v979_v12  ;;  %v999_v32 = vld [vmem:[#allocation2] ss:$16 sps:$4 sm:$0xff]   ;;  %v1001_v33 = vld [vmem:[#allocation2 + $0x4] ss:$16 sps:$4 sm:$0xff]   ;;  %v1002_v34 = vld [vmem:[#allocation2 + $0x8] ss:$16 sps:$4 sm:$0xff]  }
  0x1f   :  { %927 = vmatprep.subr.bf16.mxu1 %v980_v13  ;;  %v1004_v35 = vld [vmem:[#allocation2 + $0xc] ss:$16 sps:$4 sm:$0xff]   ;;  %416 = vmatprep.mubr.bf16.mxu0 %v1001_v33  ;;  %v1005_v36 = vld [vmem:[#allocation2 + $0x24] ss:$16 sps:$4 sm:$0xff]   ;;  %v1009_v38 = vld [vmem:[#allocation2 + $0x20] ss:$16 sps:$4 sm:$0xff]  }
  0x20   :  { %481 = vmatprep.mubr.bf16.mxu1 %v1004_v35  ;;  %v1007_v37 = vld [vmem:[#allocation2 + $0x2c] ss:$16 sps:$4 sm:$0xff]   ;;  %v1010_v39 = vld [vmem:[#allocation2 + $0x28] ss:$16 sps:$4 sm:$0xff]   ;;  %v1011_v40 = vld [vmem:[#allocation2 + $0x44] ss:$16 sps:$4 sm:$0xff]  }
  0x21   :  { %888 = vmatpush3.bf16.msra.mxu0 %v981_v14  ;;  %v1013_v41 = vld [vmem:[#allocation2 + $0x4c] ss:$16 sps:$4 sm:$0xff]   ;;  %v1015_v42 = vld [vmem:[#allocation2 + $0x40] ss:$16 sps:$4 sm:$0xff]   ;;  %v1016_v43 = vld [vmem:[#allocation2 + $0x48] ss:$16 sps:$4 sm:$0xff]  }
  0x22   :  { %928 = vmatpush3.bf16.msra.mxu1 %v982_v15  ;;  %889 = vmatprep.subr.bf16.mxu0 %v983_v16  ;;  %v1017_v44 = vld [vmem:[#allocation2 + $0x64] ss:$16 sps:$4 sm:$0xff]   ;;  %v1019_v45 = vld [vmem:[#allocation2 + $0x6c] ss:$16 sps:$4 sm:$0xff]   ;;  %v1021_v46 = vld [vmem:[#allocation2 + $0x60] ss:$16 sps:$4 sm:$0xff]  }
  0x23   :  { %929 = vmatprep.subr.bf16.mxu1 %v984_v17  ;;  %v1022_v47 = vld [vmem:[#allocation2 + $0x68] ss:$16 sps:$4 sm:$0xff]  }
  0x25   :  { %890 = vmatpush3.bf16.msra.mxu0 %v985_v18 }
  0x26   :  { %930 = vmatpush3.bf16.msra.mxu1 %v986_v19  ;;  %891 = vmatprep.subr.bf16.mxu0 %v987_v20 }
  0x27   :  { %931 = vmatprep.subr.bf16.mxu1 %v988_v21 }
  0x29   :  { %892 = vmatpush3.bf16.msra.mxu0 %v989_v22 }
  0x2a   :  { %932 = vmatpush3.bf16.msra.mxu1 %v990_v23  ;;  %893 = vmatprep.subr.bf16.mxu0 %v991_v24 }
  0x2b   :  { %933 = vmatprep.subr.bf16.mxu1 %v992_v25 }
  0x2d   :  { %894 = vmatpush3.bf16.msra.mxu0 %v993_v26 }
  0x2e   :  { %934 = vmatpush3.bf16.msra.mxu1 %v994_v27  ;;  %895 = vmatprep.subr.bf16.mxu0 %v995_v28 }
  0x2f   :  { %935 = vmatprep.subr.bf16.mxu1 %v996_v29 }
  0x31   :  { %896 = vmatpush3.bf16.msra.mxu0 %v997_v30 }
  0x32   :  { %936 = vmatpush3.bf16.msra.mxu1 %v998_v31 }
  0x34   :  { %417 = vmatmul.mubr.bf16.vlgmr.msra.gmra.mrb[0].mxu0 %v999_v32 }
  0x35   :  { %482 = vmatmul.mubr.bf16.vlgmr.msra.gmra.mrb[0].mxu1 %v1002_v34  ;;  %424 = vmatprep.mubr.bf16.mxu0 %v1005_v36 }
  0x36   :  { %489 = vmatprep.mubr.bf16.mxu1 %v1007_v37 }
  0x3c   :  { %425 = vmatmul.mubr.bf16.gmra.mrb[4].mxu0 %v1009_v38 }
  0x3d   :  { %490 = vmatmul.mubr.bf16.gmra.mrb[4].mxu1 %v1010_v39  ;;  %432 = vmatprep.mubr.bf16.mxu0 %v1011_v40 }
  0x3e   :  { %497 = vmatprep.mubr.bf16.mxu1 %v1013_v41 }
  0x44   :  { %433 = vmatmul.mubr.bf16.gmra.mrb[8].mxu0 %v1015_v42 }
  0x45   :  { %498 = vmatmul.mubr.bf16.gmra.mrb[8].mxu1 %v1016_v43  ;;  %440 = vmatprep.mubr.bf16.mxu0 %v1017_v44 }
  0x46   :  { %505 = vmatprep.mubr.bf16.mxu1 %v1019_v45 }
  0x4c   :  { %441 = vmatmul.mubr.bf16.gmra.mrb[12].mxu0 %v1021_v46 }
  0x4d   :  { %506 = vmatmul.mubr.bf16.gmra.mrb[12].mxu1 %v1022_v47 }
 0x107   :  { %v897_v48 = vpop.f32.mrb[0].mxu0 }
 0x108   :  { %v937_v49 = vpop.f32.mrb[0].mxu1  ;;  %v898_v50 = vpop.f32.mrb[1].mxu0 }
 0x109   :  { %v899_v51 = vadd.f32 %v898_v50, %v897_v48  ;;  %v938_v52 = vpop.f32.mrb[1].mxu1  ;;  %v900_v53 = vpop.f32.mrb[2].mxu0 }
 0x10a   :  { %v939_v54 = vadd.f32 %v938_v52, %v937_v49  ;;  %v940_v55 = vpop.f32.mrb[2].mxu1  ;;  %v901_v56 = vpop.f32.mrb[3].mxu0 }
 0x10b   :  { %v902_v57 = vadd.f32 %v901_v56, %v900_v53  ;;  %v941_v58 = vpop.f32.mrb[3].mxu1 }
 0x10c   :  { %v1200_v59 = vadd.f32 %v939_v54, %v899_v51  ;;  %v942_v60 = vadd.f32 %v941_v58, %v940_v55 }
 0x10e   :  { %v1202_v61 = vadd.f32 %v942_v60, %v902_v57  ;;  %v515_v62 = vsel %vm514_vm0, %v1200_v59, 0.0  ;;  %v547_v11 = vmul.f32 %v1200_v59, %v1200_v59 }
 0x10f   :  { %516 = vadd.xlane.f32.xlu0 %v515_v62  ;;  %v903_v63 = vpop.f32.mrb[4].mxu0 }
 0x110   :  { %v943_v0 = vpop.f32.mrb[4].mxu1  ;;  %v904_v1 = vpop.f32.mrb[5].mxu0  ;;  %v548_v2 = vmul.f32 %v1202_v61, %v1202_v61  ;;  %v518_v9 = vsel %vm514_vm0, %v1202_v61, 0.0  ;;  %v555_v18 = vsel %vm514_vm0, %v547_v11, 0.0 }
 0x111   :  { %v905_v3 = vadd.f32 %v904_v1, %v903_v63  ;;  %v944_v4 = vpop.f32.mrb[5].mxu1  ;;  %v906_v5 = vpop.f32.mrb[6].mxu0 }
 0x112   :  { %v945_v6 = vadd.f32 %v944_v4, %v943_v0  ;;  %v946_v7 = vpop.f32.mrb[6].mxu1  ;;  %v558_v8 = vsel %vm514_vm0, %v548_v2, 0.0  ;;  %v907_v10 = vpop.f32.mrb[7].mxu0  ;;  %v1066_v2 = vmov 0  }
 0x113   :  { %559 = vadd.xlane.f32.xlu1 %v558_v8  ;;  %519 = vadd.xlane.f32.xlu0 %v518_v9  ;;  %v908_v12 = vadd.f32 %v907_v10, %v906_v5  ;;  %v947_v13 = vpop.f32.mrb[7].mxu1 }
 0x114   :  { %v1213_v14 = vadd.f32 %v945_v6, %v905_v3  ;;  %v948_v15 = vadd.f32 %v947_v13, %v946_v7  ;;  %966 = vset.pattern.permute.xlu1 %v1066_v2  ;;  %965 = vset.pattern.permute.xlu0 %v1066_v2 }
 0x116   :  { %v1215_v16 = vadd.f32 %v948_v15, %v908_v12  ;;  %v521_v17 = vsel %vm514_vm0, %v1213_v14, 0.0  ;;  %v549_v19 = vmul.f32 %v1213_v14, %v1213_v14 }
 0x117   :  { %522 = vadd.xlane.f32.xlu1 %v521_v17  ;;  %556 = vadd.xlane.f32.xlu0 %v555_v18  ;;  %v909_v20 = vpop.f32.mrb[8].mxu0 }
 0x118   :  { %v949_v21 = vpop.f32.mrb[8].mxu1  ;;  %v910_v22 = vpop.f32.mrb[9].mxu0  ;;  %v524_v23 = vsel %vm514_vm0, %v1215_v16, 0.0  ;;  %v561_v24 = vsel %vm514_vm0, %v549_v19, 0.0  ;;  %v550_v31 = vmul.f32 %v1215_v16, %v1215_v16 }
 0x119   :  { %v911_v25 = vadd.f32 %v910_v22, %v909_v20  ;;  %v950_v26 = vpop.f32.mrb[9].mxu1  ;;  %v912_v27 = vpop.f32.mrb[10].mxu0 }
 0x11a   :  { %v951_v28 = vadd.f32 %v950_v26, %v949_v21  ;;  %v952_v29 = vpop.f32.mrb[10].mxu1  ;;  %v913_v30 = vpop.f32.mrb[11].mxu0  ;;  %v564_v37 = vsel %vm514_vm0, %v550_v31, 0.0 }
 0x11b   :  { %525 = vadd.xlane.f32.xlu1 %v524_v23  ;;  %562 = vadd.xlane.f32.xlu0 %v561_v24  ;;  %v914_v32 = vadd.f32 %v913_v30, %v912_v27  ;;  %v953_v33 = vpop.f32.mrb[11].mxu1 }
 0x11c   :  { %v1227_v34 = vadd.f32 %v951_v28, %v911_v25  ;;  %v954_v35 = vadd.f32 %v953_v33, %v952_v29 }
 0x11e   :  { %v1229_v36 = vadd.f32 %v954_v35, %v914_v32  ;;  %v527_v38 = vsel %vm514_vm0, %v1227_v34, 0.0  ;;  %v551_v39 = vmul.f32 %v1227_v34, %v1227_v34 }
 0x11f   :  { %565 = vadd.xlane.f32.xlu1 %v564_v37  ;;  %528 = vadd.xlane.f32.xlu0 %v527_v38  ;;  %v915_v40 = vpop.f32.mrb[12].mxu0 }
 0x120   :  { %v955_v41 = vpop.f32.mrb[12].mxu1  ;;  %v916_v42 = vpop.f32.mrb[13].mxu0  ;;  %v530_v43 = vsel %vm514_vm0, %v1229_v36, 0.0  ;;  %v567_v44 = vsel %vm514_vm0, %v551_v39, 0.0  ;;  %v552_v45 = vmul.f32 %v1229_v36, %v1229_v36 }
 0x121   :  { %v917_v46 = vadd.f32 %v916_v42, %v915_v40  ;;  %v956_v47 = vpop.f32.mrb[13].mxu1  ;;  %v918_v48 = vpop.f32.mrb[14].mxu0 }
 0x122   :  { %v957_v49 = vadd.f32 %v956_v47, %v955_v41  ;;  %v958_v50 = vpop.f32.mrb[14].mxu1  ;;  %v919_v51 = vpop.f32.mrb[15].mxu0  ;;  %v570_v56 = vsel %vm514_vm0, %v552_v45, 0.0  ;;  %v612_v45 = vld [vmem:[%s1376_s2 + $0x8] sm:$0xff] }
 0x123   :  { %531 = vadd.xlane.f32.xlu1 %v530_v43  ;;  %568 = vadd.xlane.f32.xlu0 %v567_v44  ;;  %v920_v52 = vadd.f32 %v919_v51, %v918_v48  ;;  %v959_v53 = vpop.f32.mrb[15].mxu1 }
 0x124   :  { %v1241_v54 = vadd.f32 %v957_v49, %v917_v46  ;;  %v960_v55 = vadd.f32 %v959_v53, %v958_v50  ;;  %v611_v53 = vld [vmem:[%s1376_s2] sm:$0xff] }
 0x126   :  { %v1244_v57 = vadd.f32 %v960_v55, %v920_v52  ;;  %v533_v58 = vsel %vm514_vm0, %v1241_v54, 0.0  ;;  %v553_v60 = vmul.f32 %v1241_v54, %v1241_v54 }
 0x127   :  { %571 = vadd.xlane.f32.xlu1 %v570_v56  ;;  %534 = vadd.xlane.f32.xlu0 %v533_v58 }
 0x128   :  { %v536_v62 = vsel %vm514_vm0, %v1244_v57, 0.0  ;;  %v573_v63 = vsel %vm514_vm0, %v553_v60, 0.0  ;;  %v554_v0 = vmul.f32 %v1244_v57, %v1244_v57 }
 0x12a   :  { %v576_v1 = vsel %vm514_vm0, %v554_v0, 0.0 }
 0x12b   :  { %537 = vadd.xlane.f32.xlu1 %v536_v62  ;;  %574 = vadd.xlane.f32.xlu0 %v573_v63 }
 0x12f   :  { %577 = vadd.xlane.f32.xlu1 %v576_v1 }
 0x19c   :  { %v517_v3 = vpop.xlane.xlu0 %516 }
 0x19d   :  { %v1256_v6 = vmul.f32 0.03125, %v517_v3 }
 0x19f   :  { %v587_v12 = vmul.f32 %v1256_v6, %v1256_v6 }
 0x1a0   :  { %v560_v4 = vpop.xlane.xlu1 %559  ;;  %v520_v5 = vpop.xlane.xlu0 %519 }
 0x1a1   :  { %v540_v7 = vmul.f32 0.03125, %v520_v5  ;;  %v580_v8 = vmul.f32 0.03125, %v560_v4  ;;  %v644_v5 = vld [vmem:[%s1377_s3 + $0x8] sm:$0xff] }
 0x1a3   :  { %v588_v9 = vmul.f32 %v540_v7, %v540_v7 }
 0x1a4   :  { %v523_v10 = vpop.xlane.xlu1 %522  ;;  %v557_v11 = vpop.xlane.xlu0 %556 }
 0x1a5   :  { %v596_v13 = vsub.f32 %v580_v8, %v588_v9  ;;  %v1260_v15 = vmul.f32 0.03125, %v523_v10  ;;  %v579_v17 = vmul.f32 0.03125, %v557_v11  ;;  %v643_v8 = vld [vmem:[%s1377_s3] sm:$0xff] }
 0x1a7   :  { %v604_v18 = vmax.f32 %v596_v13, 0.0  ;;  %v589_v19 = vmul.f32 %v1260_v15, %v1260_v15  ;;  %v595_v20 = vsub.f32 %v579_v17, %v587_v12 }
 0x1a8   :  { %v526_v21 = vpop.xlane.xlu1 %525  ;;  %v563_v22 = vpop.xlane.xlu0 %562 }
 0x1a9   :  { %v620_v23 = vadd.f32 1e-05, %v604_v18  ;;  %v603_v24 = vmax.f32 %v595_v20, 0.0  ;;  %v1264_v25 = vmul.f32 0.03125, %v526_v21  ;;  %v581_v26 = vmul.f32 0.03125, %v563_v22  ;;  %v613_v22 = vld [vmem:[%s1376_s2 + $0x10] sm:$0xff] }
 0x1ab   :  { %1023 = vrsqrt.f32 %v620_v23  ;;  %v619_v27 = vadd.f32 1e-05, %v603_v24  ;;  %v597_v28 = vsub.f32 %v581_v26, %v589_v19  ;;  %v590_v29 = vmul.f32 %v1264_v25, %v1264_v25 }
 0x1ac   :  { %v566_v30 = vpop.xlane.xlu1 %565  ;;  %v529_v31 = vpop.xlane.xlu0 %528 }
 0x1ad   :  { %1025 = vrsqrt.f32 %v619_v27  ;;  %v605_v32 = vmax.f32 %v597_v28, 0.0  ;;  %v582_v33 = vmul.f32 0.03125, %v566_v30  ;;  %v1268_v35 = vmul.f32 0.03125, %v529_v31  ;;  %v646_v30 = vld [vmem:[%s1377_s3 + $0x18] sm:$0xff] }
 0x1af   :  { %v621_v37 = vadd.f32 1e-05, %v605_v32  ;;  %v598_v38 = vsub.f32 %v582_v33, %v590_v29  ;;  %v591_v39 = vmul.f32 %v1268_v35, %v1268_v35 }
 0x1b0   :  { %v532_v40 = vpop.xlane.xlu1 %531  ;;  %v569_v41 = vpop.xlane.xlu0 %568 }
 0x1b1   :  { %v606_v42 = vmax.f32 %v598_v38, 0.0  ;;  %v1272_v43 = vmul.f32 0.03125, %v532_v40  ;;  %v583_v44 = vmul.f32 0.03125, %v569_v41  ;;  %1027 = vrsqrt.f32 %v621_v37  ;;  %v616_v40 = vld [vmem:[%s1376_s2 + $0x28] sm:$0xff] }
 0x1b3   :  { %v622_v46 = vadd.f32 1e-05, %v606_v42  ;;  %v592_v47 = vmul.f32 %v1272_v43, %v1272_v43  ;;  %v599_v48 = vsub.f32 %v583_v44, %v591_v39  ;;  %v645_v39 = vld [vmem:[%s1377_s3 + $0x10] sm:$0xff] }
 0x1b4   :  { %v572_v49 = vpop.xlane.xlu1 %571  ;;  %v535_v50 = vpop.xlane.xlu0 %534 }
 0x1b5   :  { %v1024_v51 = vpop.eup %1023  ;;  %1029 = vrsqrt.f32 %v622_v46  ;;  %v584_v52 = vmul.f32 0.03125, %v572_v49  ;;  %v607_v56 = vmax.f32 %v599_v48, 0.0  ;;  %v1282_v62 = vmul.f32 0.03125, %v535_v50  ;;  %v615_v46 = vld [vmem:[%s1376_s2 + $0x20] sm:$0xff]  ;;  %v618_v50 = vld [vmem:[%s1376_s2 + $0x38] sm:$0xff] }
 0x1b6   :  { %v636_v55 = vmul.f32 %v1024_v51, %v612_v45 }
 0x1b7   :  { %v1026_v58 = vpop.eup %1025  ;;  %v600_v60 = vsub.f32 %v584_v52, %v592_v47  ;;  %v623_v9 = vadd.f32 1e-05, %v607_v56 }
 0x1b8   :  { %v652_v63 = vmul.f32 %v636_v55, %v540_v7  ;;  %v538_v0 = vpop.xlane.xlu1 %537  ;;  %674 = vperm.xlu1 %966, %v636_v55   ;;  %v575_v1 = vpop.xlane.xlu0 %574  ;;  %v635_v2 = vmul.f32 %v1026_v58, %v611_v53  ;;  %v593_v7 = vmul.f32 %v1282_v62, %v1282_v62  ;;  %v650_v55 = vld [vmem:[%s1377_s3 + $0x38] sm:$0xff] }
 0x1b9   :  { %v608_v3 = vmax.f32 %v600_v60, 0.0  ;;  %v546_v4 = vmul.f32 0.03125, %v538_v0  ;;  %v585_v13 = vmul.f32 0.03125, %v575_v1  ;;  %v617_v0 = vld [vmem:[%s1376_s2 + $0x30] sm:$0xff] }
 0x1ba   :  { %669 = vperm.xlu0 %965, %v635_v2   ;;  %v651_v10 = vmul.f32 %v635_v2, %v1256_v6  ;;  %v660_v18 = vsub.f32 %v644_v5, %v652_v63  ;;  %v614_v6 = vld [vmem:[%s1376_s2 + $0x18] sm:$0xff]  ;;  %v649_v2 = vld [vmem:[%s1377_s3 + $0x30] sm:$0xff] }
 0x1bb   :  { %v624_v11 = vadd.f32 1e-05, %v608_v3  ;;  %v594_v12 = vmul.f32 %v546_v4, %v546_v4  ;;  %v1028_v20 = vpop.eup %1027  ;;  %v601_v24 = vsub.f32 %v585_v13, %v593_v7 }
 0x1bc   :  { %v578_v17 = vpop.xlane.xlu1 %577  ;;  %v659_v19 = vsub.f32 %v643_v8, %v651_v10  ;;  %v637_v27 = vmul.f32 %v1028_v20, %v613_v22 }
 0x1bd   :  { %1031 = vrsqrt.f32 %v624_v11  ;;  %v586_v21 = vmul.f32 0.03125, %v578_v17  ;;  %v609_v32 = vmax.f32 %v601_v24, 0.0 }
 0x1be   :  { %722 = vperm.xlu0 %965, %v660_v18   ;;  %717 = vperm.xlu1 %966, %v659_v19   ;;  %1033 = vrsqrt.f32 %v623_v9  ;;  %v653_v38 = vmul.f32 %v637_v27, %v1260_v15  ;;  %v648_v15 = vld [vmem:[%s1377_s3 + $0x28] sm:$0xff] }
 0x1bf   :  { %v1030_v23 = vpop.eup %1029  ;;  %v602_v26 = vsub.f32 %v586_v21, %v594_v12  ;;  %v625_v42 = vadd.f32 1e-05, %v609_v32 }
 0x1c0   :  { %v638_v28 = vmul.f32 %v1030_v23, %v614_v6  ;;  %v661_v44 = vsub.f32 %v645_v39, %v653_v38 }
 0x1c1   :  { %v610_v29 = vmax.f32 %v602_v26, 0.0 }
 0x1c2   :  { %679 = vperm.xlu1 %966, %v637_v27   ;;  %v654_v31 = vmul.f32 %v638_v28, %v1264_v25 }
 0x1c3   :  { %v626_v33 = vadd.f32 1e-05, %v610_v29 }
 0x1c4   :  { %v662_v37 = vsub.f32 %v646_v30, %v654_v31 }
 0x1c5   :  { %1035 = vrsqrt.f32 %v626_v33 }
 0x1c6   :  { %732 = vperm.xlu0 %965, %v662_v37   ;;  %684 = vperm.xlu1 %966, %v638_v28   ;;  %1037 = vrsqrt.f32 %v625_v42 }
 0x1c7   :  { %v1032_v41 = vpop.eup %1031 }
 0x1c8   :  { %v640_v25 = vmul.f32 %v1032_v41, %v616_v40  ;;  %v1034_v45 = vpop.eup %1033 }
 0x1c9   :  { %v639_v49 = vmul.f32 %v1034_v45, %v615_v46 }
 0x1ca   :  { %727 = vperm.xlu1 %966, %v661_v44   ;;  %v656_v47 = vmul.f32 %v640_v25, %v1272_v43  ;;  %v647_v43 = vld [vmem:[%s1377_s3 + $0x20] sm:$0xff] }
 0x1cb   :  { %v655_v53 = vmul.f32 %v639_v49, %v1268_v35 }
 0x1cc   :  { %v664_v48 = vsub.f32 %v648_v15, %v656_v47 }
 0x1cd   :  { %v663_v60 = vsub.f32 %v647_v43, %v655_v53 }
 0x1ce   :  { %742 = vperm.xlu0 %965, %v664_v48   ;;  %689 = vperm.xlu1 %966, %v639_v49  }
 0x1cf   :  { %v1036_v51 = vpop.eup %1035 }
 0x1d0   :  { %v642_v52 = vmul.f32 %v1036_v51, %v618_v50  ;;  %v1038_v63 = vpop.eup %1037 }
 0x1d1   :  { %v641_v35 = vmul.f32 %v1038_v63, %v617_v0 }
 0x1d2   :  { %694 = vperm.xlu1 %966, %v640_v25   ;;  %v658_v56 = vmul.f32 %v642_v52, %v546_v4 }
 0x1d3   :  { %v657_v1 = vmul.f32 %v641_v35, %v1282_v62 }
 0x1d4   :  { %v666_v58 = vsub.f32 %v650_v55, %v658_v56 }
 0x1d5   :  { %v665_v3 = vsub.f32 %v649_v2, %v657_v1 }
 0x1d6   :  { %752 = vperm.xlu0 %965, %v666_v58   ;;  %737 = vperm.xlu1 %966, %v663_v60  }
 0x1da   :  { %699 = vperm.xlu1 %966, %v641_v35  }
 0x1de   :  { %704 = vperm.xlu1 %966, %v642_v52  }
 0x1e2   :  { %747 = vperm.xlu1 %966, %v665_v3  }
 0x237   :  { %v675_v4 = vpop.permute.xlu1 %674 }
 0x238   :  { %v708_v8 = vmul.f32 %v675_v4, %v1202_v61 }
 0x239   :  { %v670_v5 = vpop.permute.xlu0 %669 }
 0x23a   :  { %v707_v9 = vmul.f32 %v670_v5, %v1200_v59 }
 0x23d   :  { %v718_v10 = vpop.permute.xlu1 %717  ;;  %v723_v11 = vpop.permute.xlu0 %722 }
 0x23e   :  { %v755_v7 = vadd.f32 %v718_v10, %v707_v9  ;;  %v756_v12 = vadd.f32 %v723_v11, %v708_v8 }
 0x240   :  { %v763_v13 = vmax.f32 %v755_v7, 0.0  ;;  %v764_v17 = vmax.f32 %v756_v12, 0.0 }
 0x241   :  { %v680_v62 = vpop.permute.xlu1 %679 }
 0x242   :  { %v873_v18 = vpack.c.bf16 %v763_v13, %v763_v13  ;;  %v874_v19 = vpack.c.bf16 %v764_v17, %v764_v17  ;;  %v709_v21 = vmul.f32 %v680_v62, %v1213_v14 }
 0x244   :  { %804 = vst.msk [vmem:[%s1378_s4] sm:$0xf] %vm803_vm1, %v873_v18  ;;  %805 = vst.msk [vmem:[%s1378_s4 + $0x4] sm:$0xf] %vm803_vm1, %v874_v19 }
 0x245   :  { %v685_v59 = vpop.permute.xlu1 %684  ;;  %v733_v20 = vpop.permute.xlu0 %732 }
 0x246   :  { %v710_v61 = vmul.f32 %v685_v59, %v1215_v16 }
 0x248   :  { %v758_v22 = vadd.f32 %v733_v20, %v710_v61 }
 0x249   :  { %v728_v6 = vpop.permute.xlu1 %727 }
 0x24a   :  { %v766_v23 = vmax.f32 %v758_v22, 0.0  ;;  %v757_v24 = vadd.f32 %v728_v6, %v709_v21 }
 0x24c   :  { %v876_v26 = vpack.c.bf16 %v766_v23, %v766_v23  ;;  %v765_v27 = vmax.f32 %v757_v24, 0.0 }
 0x24d   :  { %v690_v28 = vpop.permute.xlu1 %689  ;;  %v743_v30 = vpop.permute.xlu0 %742 }
 0x24e   :  { %807 = vst.msk [vmem:[%s1378_s4 + $0xc] sm:$0xf] %vm803_vm1, %v876_v26  ;;  %v875_v29 = vpack.c.bf16 %v765_v27, %v765_v27  ;;  %v711_v31 = vmul.f32 %v690_v28, %v1227_v34 }
 0x250   :  { %806 = vst.msk [vmem:[%s1378_s4 + $0x8] sm:$0xf] %vm803_vm1, %v875_v29 }
 0x251   :  { %v695_v16 = vpop.permute.xlu1 %694 }
 0x252   :  { %v712_v14 = vmul.f32 %v695_v16, %v1229_v36 }
 0x254   :  { %v760_v32 = vadd.f32 %v743_v30, %v712_v14 }
 0x255   :  { %v738_v33 = vpop.permute.xlu1 %737  ;;  %v753_v44 = vpop.permute.xlu0 %752 }
 0x256   :  { %v768_v37 = vmax.f32 %v760_v32, 0.0  ;;  %v759_v38 = vadd.f32 %v738_v33, %v711_v31 }
 0x258   :  { %v878_v39 = vpack.c.bf16 %v768_v37, %v768_v37  ;;  %v767_v40 = vmax.f32 %v759_v38, 0.0 }
 0x259   :  { %v700_v41 = vpop.permute.xlu1 %699 }
 0x25a   :  { %809 = vst.msk [vmem:[%s1378_s4 + $0x14] sm:$0xf] %vm803_vm1, %v878_v39  ;;  %v877_v42 = vpack.c.bf16 %v767_v40, %v767_v40  ;;  %v713_v25 = vmul.f32 %v700_v41, %v1241_v54 }
 0x25c   :  { %808 = vst.msk [vmem:[%s1378_s4 + $0x10] sm:$0xf] %vm803_vm1, %v877_v42 }
 0x25d   :  { %v705_v36 = vpop.permute.xlu1 %704 }
 0x25e   :  { %v714_v34 = vmul.f32 %v705_v36, %v1244_v57 }
 0x260   :  { %v762_v45 = vadd.f32 %v753_v44, %v714_v34 }
 0x261   :  { %v748_v15 = vpop.permute.xlu1 %747 }
 0x262   :  { %v770_v46 = vmax.f32 %v762_v45, 0.0  ;;  %v761_v47 = vadd.f32 %v748_v15, %v713_v25 }
 0x264   :  { %v880_v48 = vpack.c.bf16 %v770_v46, %v770_v46  ;;  %v769_v49 = vmax.f32 %v761_v47, 0.0 }
 0x266   :  { %811 = vst.msk [vmem:[%s1378_s4 + $0x1c] sm:$0xf] %vm803_vm1, %v880_v48  ;;  %v879_v50 = vpack.c.bf16 %v769_v49, %v769_v49 }
 0x268   :  { %810 = vst.msk [vmem:[%s1378_s4 + $0x18] sm:$0xf] %vm803_vm1, %v879_v50 }
 0x269   :  { %816 = vsyncpa [#allocation3], 1 }

// kernel: generator_forward.6
= control target key start
LH: loop header
LB: loop body
LE: loop exit
PB: predicated region body
PF: predicated region fallthrough
CT: control target
= control target key end

     0   :  { %s1572_s1 = inlined_call_operand.vmem [shape: bf16[1024,128], index: 1, kind: input, shape index: {}]   ;;  %s1573_s0 = inlined_call_operand.vmem [shape: bf16[32,1024], index: 0, kind: input, shape index: {}]   ;;  %s1574_s2 = inlined_call_operand.vmem [shape: f32[32,1], index: 2, kind: input, shape index: {}]   ;;  %s1575_s3 = inlined_call_operand.vmem [shape: f32[32,1], index: 3, kind: input, shape index: {}]   ;;  %s1576_s4 = inlined_call_operand.vmem [shape: bf16[32,128], index: 4, kind: output, shape index: {}]  }
   0x1   :  { %v1180_v0 = vld [vmem:[%s1572_s1 + $0x40] sm:$0xff]   ;;  %v1184_v4 = vld [vmem:[%s1572_s1 + $0x48] sm:$0xff]   ;;  %v1188_v8 = vld [vmem:[%s1572_s1 + $0x50] sm:$0xff]  }
   0x2   :  { %v1181_v1 = vld [vmem:[%s1572_s1 + $0xc0] sm:$0xff]   ;;  %1065 = vmatprep.subr.bf16.mxu0 %v1180_v0  ;;  %v1185_v5 = vld [vmem:[%s1572_s1 + $0xc8] sm:$0xff]   ;;  %v1189_v9 = vld [vmem:[%s1572_s1 + $0xd0] sm:$0xff]  }
   0x3   :  { %v1182_v2 = vld [vmem:[%s1572_s1] sm:$0xff]   ;;  %1093 = vmatprep.subr.bf16.mxu1 %v1181_v1  ;;  %v1186_v6 = vld [vmem:[%s1572_s1 + $0x8] sm:$0xff]   ;;  %v1190_v10 = vld [vmem:[%s1572_s1 + $0x10] sm:$0xff]  }
   0x4   :  { %v1183_v3 = vld [vmem:[%s1572_s1 + $0x80] sm:$0xff]   ;;  %1066 = vmatpush3.bf16.msra.mxu0 %v1182_v2  ;;  %v1187_v7 = vld [vmem:[%s1572_s1 + $0x88] sm:$0xff]   ;;  %v1191_v11 = vld [vmem:[%s1572_s1 + $0x90] sm:$0xff]  }
   0x5   :  { %1094 = vmatpush3.bf16.msra.mxu1 %v1183_v3  ;;  %1067 = vmatprep.subr.bf16.mxu0 %v1184_v4  ;;  %v1192_v12 = vld [vmem:[%s1572_s1 + $0x58] sm:$0xff]   ;;  %v1196_v16 = vld [vmem:[%s1572_s1 + $0x60] sm:$0xff]   ;;  %v1200_v20 = vld [vmem:[%s1572_s1 + $0x68] sm:$0xff]  }
   0x6   :  { %1095 = vmatprep.subr.bf16.mxu1 %v1185_v5  ;;  %v1193_v13 = vld [vmem:[%s1572_s1 + $0xd8] sm:$0xff]   ;;  %v1197_v17 = vld [vmem:[%s1572_s1 + $0xe0] sm:$0xff]   ;;  %v1201_v21 = vld [vmem:[%s1572_s1 + $0xe8] sm:$0xff]  }
   0x7   :  { %v1194_v14 = vld [vmem:[%s1572_s1 + $0x18] sm:$0xff]   ;;  %v1198_v18 = vld [vmem:[%s1572_s1 + $0x20] sm:$0xff]   ;;  %v1202_v22 = vld [vmem:[%s1572_s1 + $0x28] sm:$0xff]  }
   0x8   :  { %1068 = vmatpush3.bf16.msra.mxu0 %v1186_v6  ;;  %v1195_v15 = vld [vmem:[%s1572_s1 + $0x98] sm:$0xff]   ;;  %v1199_v19 = vld [vmem:[%s1572_s1 + $0xa0] sm:$0xff]   ;;  %v1203_v23 = vld [vmem:[%s1572_s1 + $0xa8] sm:$0xff]  }
   0x9   :  { %1096 = vmatpush3.bf16.msra.mxu1 %v1187_v7  ;;  %1069 = vmatprep.subr.bf16.mxu0 %v1188_v8  ;;  %v1204_v24 = vld [vmem:[%s1572_s1 + $0x70] sm:$0xff]   ;;  %v1208_v28 = vld [vmem:[%s1572_s1 + $0x78] sm:$0xff]   ;;  %v18_v32 = vld [vmem:[%s1573_s0] sm:$0xff] }
   0xa   :  { %1097 = vmatprep.subr.bf16.mxu1 %v1189_v9  ;;  %v1205_v25 = vld [vmem:[%s1572_s1 + $0xf0] sm:$0xff]   ;;  %v1209_v29 = vld [vmem:[%s1572_s1 + $0xf8] sm:$0xff]   ;;  %v22_v33 = vld [vmem:[%s1573_s0 + $0x20] sm:$0xff] }
   0xb   :  { %v1206_v26 = vld [vmem:[%s1572_s1 + $0x30] sm:$0xff]   ;;  %v1210_v30 = vld [vmem:[%s1572_s1 + $0x38] sm:$0xff]   ;;  %v19_v34 = vld [vmem:[%s1573_s0 + $0x8] sm:$0xff]  ;;  %v966_v35 = vcombine.low %v18_v32, %v22_v33  ;;  %v967_v36 = vcombine.high %v18_v32, %v22_v33 }
   0xc   :  { %1070 = vmatpush3.bf16.msra.mxu0 %v1190_v10  ;;  %v1207_v27 = vld [vmem:[%s1572_s1 + $0xb0] sm:$0xff]   ;;  %v1211_v31 = vld [vmem:[%s1572_s1 + $0xb8] sm:$0xff]   ;;  %v23_v37 = vld [vmem:[%s1573_s0 + $0x28] sm:$0xff] }
   0xd   :  { %1098 = vmatpush3.bf16.msra.mxu1 %v1191_v11  ;;  %1071 = vmatprep.subr.bf16.mxu0 %v1192_v12  ;;  %v968_v38 = vcombine.low %v19_v34, %v23_v37  ;;  %v969_v39 = vcombine.high %v19_v34, %v23_v37  ;;  %v1212_v40 = vld [vmem:[%s1572_s1 + $0x140] sm:$0xff]   ;;  %v1216_v44 = vld [vmem:[%s1572_s1 + $0x148] sm:$0xff]   ;;  %v1220_v48 = vld [vmem:[%s1572_s1 + $0x150] sm:$0xff]  }
   0xe   :  { %1099 = vmatprep.subr.bf16.mxu1 %v1193_v13  ;;  %658 = vmatprep.mubr.bf16.mxu0 %v967_v36  ;;  %v1213_v41 = vld [vmem:[%s1572_s1 + $0x1c0] sm:$0xff]   ;;  %v1217_v45 = vld [vmem:[%s1572_s1 + $0x1c8] sm:$0xff]   ;;  %v1221_v49 = vld [vmem:[%s1572_s1 + $0x1d0] sm:$0xff]  }
   0xf   :  { %707 = vmatprep.mubr.bf16.mxu1 %v969_v39  ;;  %v1214_v42 = vld [vmem:[%s1572_s1 + $0x100] sm:$0xff]   ;;  %v1218_v46 = vld [vmem:[%s1572_s1 + $0x108] sm:$0xff]   ;;  %v1222_v50 = vld [vmem:[%s1572_s1 + $0x110] sm:$0xff]  }
  0x10   :  { %1072 = vmatpush3.bf16.msra.mxu0 %v1194_v14  ;;  %v1215_v43 = vld [vmem:[%s1572_s1 + $0x180] sm:$0xff]   ;;  %v1219_v47 = vld [vmem:[%s1572_s1 + $0x188] sm:$0xff]   ;;  %v1223_v51 = vld [vmem:[%s1572_s1 + $0x190] sm:$0xff]  }
  0x11   :  { %1100 = vmatpush3.bf16.msra.mxu1 %v1195_v15  ;;  %1073 = vmatprep.subr.bf16.mxu0 %v1196_v16  ;;  %v1224_v52 = vld [vmem:[%s1572_s1 + $0x158] sm:$0xff]   ;;  %v1228_v56 = vld [vmem:[%s1572_s1 + $0x160] sm:$0xff]   ;;  %v27_v63 = vld [vmem:[%s1573_s0 + $0x48] sm:$0xff] }
  0x12   :  { %1101 = vmatprep.subr.bf16.mxu1 %v1197_v17  ;;  %v1225_v53 = vld [vmem:[%s1572_s1 + $0x1d8] sm:$0xff]   ;;  %v1229_v57 = vld [vmem:[%s1572_s1 + $0x1e0] sm:$0xff]   ;;  %v31_v0 = vld [vmem:[%s1573_s0 + $0x68] sm:$0xff] }
  0x13   :  { %v1226_v54 = vld [vmem:[%s1572_s1 + $0x118] sm:$0xff]   ;;  %v1230_v58 = vld [vmem:[%s1572_s1 + $0x120] sm:$0xff]   ;;  %v977_v2 = vcombine.high %v27_v63, %v31_v0  ;;  %v1232_v3 = vld [vmem:[%s1572_s1 + $0x168] sm:$0xff]   ;;  %v976_v4 = vcombine.low %v27_v63, %v31_v0 }
  0x14   :  { %1074 = vmatpush3.bf16.msra.mxu0 %v1198_v18  ;;  %v1227_v55 = vld [vmem:[%s1572_s1 + $0x198] sm:$0xff]   ;;  %v1231_v59 = vld [vmem:[%s1572_s1 + $0x1a0] sm:$0xff]   ;;  %v1233_v5 = vld [vmem:[%s1572_s1 + $0x1e8] sm:$0xff]  }
  0x15   :  { %1102 = vmatpush3.bf16.msra.mxu1 %v1199_v19  ;;  %1075 = vmatprep.subr.bf16.mxu0 %v1200_v20  ;;  %v26_v60 = vld [vmem:[%s1573_s0 + $0x40] sm:$0xff]  ;;  %v1234_v6 = vld [vmem:[%s1572_s1 + $0x128] sm:$0xff]   ;;  %v1236_v8 = vld [vmem:[%s1572_s1 + $0x170] sm:$0xff]  }
  0x16   :  { %1103 = vmatprep.subr.bf16.mxu1 %v1201_v21  ;;  %v30_v61 = vld [vmem:[%s1573_s0 + $0x60] sm:$0xff]  ;;  %v1235_v7 = vld [vmem:[%s1572_s1 + $0x1a8] sm:$0xff]   ;;  %v1237_v9 = vld [vmem:[%s1572_s1 + $0x1f0] sm:$0xff]  }
  0x17   :  { %v975_v62 = vcombine.high %v26_v60, %v30_v61  ;;  %v974_v1 = vcombine.low %v26_v60, %v30_v61  ;;  %v1238_v10 = vld [vmem:[%s1572_s1 + $0x130] sm:$0xff]   ;;  %v1240_v12 = vld [vmem:[%s1572_s1 + $0x178] sm:$0xff]  }
  0x18   :  { %1076 = vmatpush3.bf16.msra.mxu0 %v1202_v22  ;;  %v1239_v11 = vld [vmem:[%s1572_s1 + $0x1b0] sm:$0xff]   ;;  %v1241_v13 = vld [vmem:[%s1572_s1 + $0x1f8] sm:$0xff]  }
  0x19   :  { %1104 = vmatpush3.bf16.msra.mxu1 %v1203_v23  ;;  %1077 = vmatprep.subr.bf16.mxu0 %v1204_v24  ;;  %v1242_v14 = vld [vmem:[%s1572_s1 + $0x138] sm:$0xff]   ;;  %v20_v16 = vld [vmem:[%s1573_s0 + $0x10] sm:$0xff] }
  0x1a   :  { %1105 = vmatprep.subr.bf16.mxu1 %v1205_v25  ;;  %v1243_v15 = vld [vmem:[%s1572_s1 + $0x1b8] sm:$0xff]   ;;  %v24_v17 = vld [vmem:[%s1573_s0 + $0x30] sm:$0xff] }
  0x1b   :  { %v21_v18 = vld [vmem:[%s1573_s0 + $0x18] sm:$0xff]  ;;  %v970_v20 = vcombine.low %v20_v16, %v24_v17  ;;  %v971_v21 = vcombine.high %v20_v16, %v24_v17  ;;  %v28_v24 = vld [vmem:[%s1573_s0 + $0x50] sm:$0xff] }
  0x1c   :  { %1078 = vmatpush3.bf16.msra.mxu0 %v1206_v26  ;;  %v25_v19 = vld [vmem:[%s1573_s0 + $0x38] sm:$0xff]  ;;  %v32_v25 = vld [vmem:[%s1573_s0 + $0x70] sm:$0xff] }
  0x1d   :  { %1106 = vmatpush3.bf16.msra.mxu1 %v1207_v27  ;;  %1079 = vmatprep.subr.bf16.mxu0 %v1208_v28  ;;  %v972_v22 = vcombine.low %v21_v18, %v25_v19  ;;  %v973_v23 = vcombine.high %v21_v18, %v25_v19  ;;  %v29_v26 = vld [vmem:[%s1573_s0 + $0x58] sm:$0xff]  ;;  %v979_v27 = vcombine.high %v28_v24, %v32_v25 }
  0x1e   :  { %1107 = vmatprep.subr.bf16.mxu1 %v1209_v29  ;;  %v33_v28 = vld [vmem:[%s1573_s0 + $0x78] sm:$0xff] }
  0x1f   :  { %v981_v29 = vcombine.high %v29_v26, %v33_v28 }
  0x20   :  { %1080 = vmatpush3.bf16.msra.mxu0 %v1210_v30  ;;  %v978_v30 = vcombine.low %v28_v24, %v32_v25 }
  0x21   :  { %1108 = vmatpush3.bf16.msra.mxu1 %v1211_v31  ;;  %1121 = vmatprep.subr.bf16.mxu0 %v1212_v40  ;;  %v980_v31 = vcombine.low %v29_v26, %v33_v28 }
  0x22   :  { %1149 = vmatprep.subr.bf16.mxu1 %v1213_v41 }
  0x23   :  { %659 = vmatmul.mubr.bf16.vlgmr.msra.gmra.mrb[0].mxu0 %v966_v35 }
  0x24   :  { %708 = vmatmul.mubr.bf16.vlgmr.msra.gmra.mrb[0].mxu1 %v968_v38  ;;  %1122 = vmatpush3.bf16.msra.mxu0 %v1214_v42 }
  0x25   :  { %1150 = vmatpush3.bf16.msra.mxu1 %v1215_v43  ;;  %1123 = vmatprep.subr.bf16.mxu0 %v1216_v44 }
  0x26   :  { %1151 = vmatprep.subr.bf16.mxu1 %v1217_v45  ;;  %666 = vmatprep.mubr.bf16.mxu0 %v975_v62 }
  0x27   :  { %715 = vmatprep.mubr.bf16.mxu1 %v977_v2 }
  0x28   :  { %1124 = vmatpush3.bf16.msra.mxu0 %v1218_v46 }
  0x29   :  { %1152 = vmatpush3.bf16.msra.mxu1 %v1219_v47  ;;  %1125 = vmatprep.subr.bf16.mxu0 %v1220_v48 }
  0x2a   :  { %1153 = vmatprep.subr.bf16.mxu1 %v1221_v49 }
  0x2b   :  { %667 = vmatmul.mubr.bf16.gmra.mrb[4].mxu0 %v974_v1 }
  0x2c   :  { %1126 = vmatpush3.bf16.msra.mxu0 %v1222_v50  ;;  %716 = vmatmul.mubr.bf16.gmra.mrb[4].mxu1 %v976_v4 }
  0x2d   :  { %1154 = vmatpush3.bf16.msra.mxu1 %v1223_v51  ;;  %1127 = vmatprep.subr.bf16.mxu0 %v1224_v52 }
  0x2e   :  { %1155 = vmatprep.subr.bf16.mxu1 %v1225_v53  ;;  %756 = vmatprep.mubr.bf16.mxu0 %v971_v21 }
  0x2f   :  { %805 = vmatprep.mubr.bf16.mxu1 %v973_v23 }
  0x30   :  { %1128 = vmatpush3.bf16.msra.mxu0 %v1226_v54 }
  0x31   :  { %1156 = vmatpush3.bf16.msra.mxu1 %v1227_v55  ;;  %1129 = vmatprep.subr.bf16.mxu0 %v1228_v56 }
  0x32   :  { %1157 = vmatprep.subr.bf16.mxu1 %v1229_v57 }
  0x34   :  { %1130 = vmatpush3.bf16.msra.mxu0 %v1230_v58 }
  0x35   :  { %1158 = vmatpush3.bf16.msra.mxu1 %v1231_v59  ;;  %1131 = vmatprep.subr.bf16.mxu0 %v1232_v3 }
  0x36   :  { %1159 = vmatprep.subr.bf16.mxu1 %v1233_v5 }
  0x38   :  { %1132 = vmatpush3.bf16.msra.mxu0 %v1234_v6 }
  0x39   :  { %1160 = vmatpush3.bf16.msra.mxu1 %v1235_v7  ;;  %1133 = vmatprep.subr.bf16.mxu0 %v1236_v8 }
  0x3a   :  { %1161 = vmatprep.subr.bf16.mxu1 %v1237_v9 }
  0x3c   :  { %1134 = vmatpush3.bf16.msra.mxu0 %v1238_v10 }
  0x3d   :  { %1162 = vmatpush3.bf16.msra.mxu1 %v1239_v11  ;;  %1135 = vmatprep.subr.bf16.mxu0 %v1240_v12 }
  0x3e   :  { %1163 = vmatprep.subr.bf16.mxu1 %v1241_v13 }
  0x40   :  { %1136 = vmatpush3.bf16.msra.mxu0 %v1242_v14 }
  0x41   :  { %1164 = vmatpush3.bf16.msra.mxu1 %v1243_v15 }
  0x43   :  { %757 = vmatmul.mubr.bf16.vlgmr.msra.gmra.mrb[8].mxu0 %v970_v20 }
  0x44   :  { %806 = vmatmul.mubr.bf16.vlgmr.msra.gmra.mrb[8].mxu1 %v972_v22  ;;  %764 = vmatprep.mubr.bf16.mxu0 %v979_v27 }
  0x45   :  { %813 = vmatprep.mubr.bf16.mxu1 %v981_v29 }
  0x4b   :  { %765 = vmatmul.mubr.bf16.gmra.mrb[12].mxu0 %v978_v30 }
  0x4c   :  { %814 = vmatmul.mubr.bf16.gmra.mrb[12].mxu1 %v980_v31 }
  0xf6   :  { %v1081_v32 = vpop.f32.mrb[0].mxu0 }
  0xf7   :  { %v1109_v33 = vpop.f32.mrb[0].mxu1  ;;  %v1082_v34 = vpop.f32.mrb[1].mxu0 }
  0xf8   :  { %v1083_v35 = vadd.f32 %v1082_v34, %v1081_v32  ;;  %v1110_v36 = vpop.f32.mrb[1].mxu1  ;;  %v1084_v37 = vpop.f32.mrb[2].mxu0  ;;  %v1252_v32 = vmov 0  }
  0xf9   :  { %v1111_v38 = vadd.f32 %v1110_v36, %v1109_v33  ;;  %v1112_v39 = vpop.f32.mrb[2].mxu1  ;;  %v1085_v40 = vpop.f32.mrb[3].mxu0  ;;  %1179 = vset.pattern.permute.xlu1 %v1252_v32  ;;  %1178 = vset.pattern.permute.xlu0 %v1252_v32 }
  0xfa   :  { %v1086_v41 = vadd.f32 %v1085_v40, %v1084_v37  ;;  %v1113_v42 = vpop.f32.mrb[3].mxu1 }
  0xfb   :  { %v710_v43 = vadd.f32 %v1111_v38, %v1083_v35  ;;  %v1114_v44 = vadd.f32 %v1113_v42, %v1112_v39 }
  0xfd   :  { %v713_v45 = vadd.f32 %v1114_v44, %v1086_v41 }
  0xfe   :  { %v1087_v46 = vpop.f32.mrb[4].mxu0 }
  0xff   :  { %v1115_v47 = vpop.f32.mrb[4].mxu1  ;;  %v1088_v48 = vpop.f32.mrb[5].mxu0 }
 0x100   :  { %v1089_v49 = vadd.f32 %v1088_v48, %v1087_v46  ;;  %v1116_v50 = vpop.f32.mrb[5].mxu1  ;;  %v1090_v51 = vpop.f32.mrb[6].mxu0 }
 0x101   :  { %v1117_v52 = vadd.f32 %v1116_v50, %v1115_v47  ;;  %v1118_v53 = vpop.f32.mrb[6].mxu1  ;;  %v1091_v54 = vpop.f32.mrb[7].mxu0 }
 0x102   :  { %v1092_v55 = vadd.f32 %v1091_v54, %v1090_v51  ;;  %v1119_v56 = vpop.f32.mrb[7].mxu1 }
 0x103   :  { %v718_v57 = vadd.f32 %v1117_v52, %v1089_v49  ;;  %v1120_v58 = vadd.f32 %v1119_v56, %v1118_v53 }
 0x105   :  { %v721_v59 = vadd.f32 %v1120_v58, %v1092_v55 }
 0x116   :  { %v1137_v60 = vpop.f32.mrb[8].mxu0 }
 0x117   :  { %v1165_v61 = vpop.f32.mrb[8].mxu1  ;;  %v1138_v62 = vpop.f32.mrb[9].mxu0 }
 0x118   :  { %v1166_v63 = vpop.f32.mrb[9].mxu1  ;;  %v1139_v0 = vadd.f32 %v1138_v62, %v1137_v60  ;;  %v1140_v2 = vpop.f32.mrb[10].mxu0  ;;  %v863_v62 = vld [vmem:[%s1574_s2 + $0x8] sm:$0xff] }
 0x119   :  { %v1167_v1 = vadd.f32 %v1166_v63, %v1165_v61  ;;  %v1168_v3 = vpop.f32.mrb[10].mxu1  ;;  %v1141_v4 = vpop.f32.mrb[11].mxu0 }
 0x11a   :  { %v1169_v5 = vpop.f32.mrb[11].mxu1  ;;  %v759_v6 = vadd.f32 %v1139_v0, %v710_v43  ;;  %v1142_v7 = vadd.f32 %v1141_v4, %v1140_v2  ;;  %v862_v2 = vld [vmem:[%s1574_s2] sm:$0xff] }
 0x11b   :  { %v1170_v8 = vadd.f32 %v1169_v5, %v1168_v3 }
 0x11c   :  { %v1518_v9 = vadd.f32 %v1167_v1, %v759_v6  ;;  %v762_v10 = vadd.f32 %v1142_v7, %v713_v45  ;;  %v878_v7 = vld [vmem:[%s1575_s3] sm:$0xff] }
 0x11e   :  { %v1520_v11 = vadd.f32 %v1170_v8, %v762_v10  ;;  %v1143_v12 = vpop.f32.mrb[12].mxu0  ;;  %822 = vadd.xlane.f32.xlu0 %v1518_v9  ;;  %v834_v28 = vmul.f32 %v1518_v9, %v1518_v9 }
 0x11f   :  { %v1171_v13 = vpop.f32.mrb[12].mxu1  ;;  %v1144_v14 = vpop.f32.mrb[13].mxu0 }
 0x120   :  { %v1172_v15 = vpop.f32.mrb[13].mxu1  ;;  %v1145_v16 = vadd.f32 %v1144_v14, %v1143_v12  ;;  %v1146_v17 = vpop.f32.mrb[14].mxu0  ;;  %v835_v20 = vmul.f32 %v1520_v11, %v1520_v11 }
 0x121   :  { %v1173_v18 = vadd.f32 %v1172_v15, %v1171_v13  ;;  %v1174_v19 = vpop.f32.mrb[14].mxu1  ;;  %v1147_v21 = vpop.f32.mrb[15].mxu0  ;;  %v879_v13 = vld [vmem:[%s1575_s3 + $0x8] sm:$0xff] }
 0x122   :  { %v1175_v22 = vpop.f32.mrb[15].mxu1  ;;  %v767_v23 = vadd.f32 %v1145_v16, %v718_v57  ;;  %v1148_v24 = vadd.f32 %v1147_v21, %v1146_v17  ;;  %840 = vadd.xlane.f32.xlu1 %v835_v20  ;;  %824 = vadd.xlane.f32.xlu0 %v1520_v11  ;;  %v864_v16 = vld [vmem:[%s1574_s2 + $0x10] sm:$0xff] }
 0x123   :  { %v1176_v25 = vadd.f32 %v1175_v22, %v1174_v19  ;;  %v865_v19 = vld [vmem:[%s1574_s2 + $0x18] sm:$0xff]  ;;  %v880_v22 = vld [vmem:[%s1575_s3 + $0x10] sm:$0xff] }
 0x124   :  { %v770_v26 = vadd.f32 %v1148_v24, %v721_v59  ;;  %v1526_v27 = vadd.f32 %v1173_v18, %v767_v23 }
 0x126   :  { %v1530_v29 = vadd.f32 %v1176_v25, %v770_v26  ;;  %826 = vadd.xlane.f32.xlu1 %v1526_v27  ;;  %838 = vadd.xlane.f32.xlu0 %v834_v28  ;;  %v836_v30 = vmul.f32 %v1526_v27, %v1526_v27  ;;  %v881_v25 = vld [vmem:[%s1575_s3 + $0x18] sm:$0xff] }
 0x128   :  { %v837_v31 = vmul.f32 %v1530_v29, %v1530_v29 }
 0x12a   :  { %828 = vadd.xlane.f32.xlu1 %v1530_v29  ;;  %842 = vadd.xlane.f32.xlu0 %v836_v30 }
 0x12e   :  { %844 = vadd.xlane.f32.xlu1 %v837_v31 }
 0x1ab   :  { %v823_v33 = vpop.xlane.xlu0 %822 }
 0x1ac   :  { %v830_v36 = vmul.f32 0.0078125, %v823_v33 }
 0x1ae   :  { %v850_v42 = vmul.f32 %v830_v36, %v830_v36 }
 0x1af   :  { %v841_v34 = vpop.xlane.xlu1 %840  ;;  %v825_v35 = vpop.xlane.xlu0 %824 }
 0x1b0   :  { %v831_v37 = vmul.f32 0.0078125, %v825_v35  ;;  %v847_v38 = vmul.f32 0.0078125, %v841_v34 }
 0x1b2   :  { %v851_v39 = vmul.f32 %v831_v37, %v831_v37 }
 0x1b3   :  { %v827_v40 = vpop.xlane.xlu1 %826  ;;  %v839_v41 = vpop.xlane.xlu0 %838 }
 0x1b4   :  { %v855_v43 = vsub.f32 %v847_v38, %v851_v39  ;;  %v832_v44 = vmul.f32 0.0078125, %v827_v40  ;;  %v846_v45 = vmul.f32 0.0078125, %v839_v41 }
 0x1b6   :  { %v859_v46 = vmax.f32 %v855_v43, 0.0  ;;  %v854_v47 = vsub.f32 %v846_v45, %v850_v42  ;;  %v852_v48 = vmul.f32 %v832_v44, %v832_v44 }
 0x1b7   :  { %v829_v49 = vpop.xlane.xlu1 %828  ;;  %v843_v50 = vpop.xlane.xlu0 %842 }
 0x1b8   :  { %v867_v51 = vadd.f32 1e-05, %v859_v46  ;;  %v858_v52 = vmax.f32 %v854_v47, 0.0  ;;  %v833_v53 = vmul.f32 0.0078125, %v829_v49  ;;  %v848_v54 = vmul.f32 0.0078125, %v843_v50 }
 0x1ba   :  { %1244 = vrsqrt.f32 %v867_v51  ;;  %v866_v55 = vadd.f32 1e-05, %v858_v52  ;;  %v856_v56 = vsub.f32 %v848_v54, %v852_v48  ;;  %v853_v58 = vmul.f32 %v833_v53, %v833_v53 }
 0x1bb   :  { %v845_v57 = vpop.xlane.xlu1 %844 }
 0x1bc   :  { %1246 = vrsqrt.f32 %v866_v55  ;;  %v849_v59 = vmul.f32 0.0078125, %v845_v57  ;;  %v860_v60 = vmax.f32 %v856_v56, 0.0 }
 0x1be   :  { %v857_v61 = vsub.f32 %v849_v59, %v853_v58  ;;  %v868_v63 = vadd.f32 1e-05, %v860_v60 }
 0x1c0   :  { %v861_v0 = vmax.f32 %v857_v61, 0.0  ;;  %1248 = vrsqrt.f32 %v868_v63 }
 0x1c2   :  { %v869_v5 = vadd.f32 1e-05, %v861_v0 }
 0x1c4   :  { %v1245_v1 = vpop.eup %1244  ;;  %1250 = vrsqrt.f32 %v869_v5 }
 0x1c5   :  { %v875_v3 = vmul.f32 %v1245_v1, %v863_v62 }
 0x1c6   :  { %v1247_v4 = vpop.eup %1246 }
 0x1c7   :  { %897 = vperm.xlu1 %1179, %v875_v3   ;;  %v874_v6 = vmul.f32 %v1247_v4, %v862_v2  ;;  %v883_v10 = vmul.f32 %v875_v3, %v831_v37 }
 0x1c9   :  { %892 = vperm.xlu0 %1178, %v874_v6   ;;  %v882_v8 = vmul.f32 %v874_v6, %v830_v36  ;;  %v887_v14 = vsub.f32 %v879_v13, %v883_v10 }
 0x1ca   :  { %v1249_v15 = vpop.eup %1248 }
 0x1cb   :  { %v886_v12 = vsub.f32 %v878_v7, %v882_v8  ;;  %v876_v17 = vmul.f32 %v1249_v15, %v864_v16 }
 0x1cd   :  { %916 = vperm.xlu1 %1179, %v886_v12   ;;  %v884_v21 = vmul.f32 %v876_v17, %v832_v44 }
 0x1ce   :  { %v1251_v18 = vpop.eup %1250 }
 0x1cf   :  { %v877_v20 = vmul.f32 %v1251_v18, %v865_v19  ;;  %v888_v23 = vsub.f32 %v880_v22, %v884_v21 }
 0x1d1   :  { %921 = vperm.xlu1 %1179, %v887_v14   ;;  %v885_v24 = vmul.f32 %v877_v20, %v833_v53 }
 0x1d3   :  { %v889_v26 = vsub.f32 %v881_v25, %v885_v24 }
 0x1d5   :  { %902 = vperm.xlu1 %1179, %v876_v17  }
 0x1d9   :  { %907 = vperm.xlu1 %1179, %v877_v20  }
 0x1dd   :  { %926 = vperm.xlu1 %1179, %v888_v23  }
 0x1e1   :  { %931 = vperm.xlu1 %1179, %v889_v26  }
 0x246   :  { %v898_v28 = vpop.permute.xlu1 %897 }
 0x247   :  { %v911_v33 = vmul.f32 %v898_v28, %v1520_v11 }
 0x248   :  { %v893_v30 = vpop.permute.xlu0 %892 }
 0x249   :  { %v910_v32 = vmul.f32 %v893_v30, %v1518_v9 }
 0x24c   :  { %v917_v31 = vpop.permute.xlu1 %916 }
 0x24d   :  { %v934_v34 = vadd.f32 %v917_v31, %v910_v32 }
 0x24f   :  { %v938_v37 = vmax.f32 %v934_v34, 0.0 }
 0x250   :  { %v922_v35 = vpop.permute.xlu1 %921 }
 0x251   :  { %v935_v36 = vadd.f32 %v922_v35, %v911_v33 }
 0x253   :  { %v939_v38 = vmax.f32 %v935_v36, 0.0 }
 0x254   :  { %v903_v39 = vpop.permute.xlu1 %902 }
 0x255   :  { %v1057_v40 = vpack.c.bf16 %v939_v38, %v938_v37  ;;  %v912_v43 = vmul.f32 %v903_v39, %v1526_v27 }
 0x257   :  { %1058 = vst [vmem:[%s1576_s4] sm:$0xff] %v1057_v40  }
 0x258   :  { %v908_v41 = vpop.permute.xlu1 %907 }
 0x259   :  { %v913_v44 = vmul.f32 %v908_v41, %v1530_v29 }
 0x25c   :  { %v927_v42 = vpop.permute.xlu1 %926 }
 0x25d   :  { %v936_v9 = vadd.f32 %v927_v42, %v912_v43 }
 0x25f   :  { %v940_v46 = vmax.f32 %v936_v9, 0.0 }
 0x260   :  { %v932_v45 = vpop.permute.xlu1 %931 }
 0x261   :  { %v937_v11 = vadd.f32 %v932_v45, %v913_v44 }
 0x263   :  { %v941_v47 = vmax.f32 %v937_v11, 0.0 }
 0x265   :  { %v1062_v48 = vpack.c.bf16 %v941_v47, %v940_v46 }
 0x267   :  { %1064 = vst [vmem:[%s1576_s4 + $0x8] sm:$0xff] %v1062_v48  }

// kernel: generator_forward.7
= control target key start
LH: loop header
LB: loop body
LE: loop exit
PB: predicated region body
PF: predicated region fallthrough
CT: control target
= control target key end

     0   :  { %s1956_s1 = inlined_call_operand.vmem [shape: bf16[512,512], index: 1, kind: input, shape index: {}]   ;;  %s1957_s0 = inlined_call_operand.vmem [shape: bf16[16,512], index: 0, kind: input, shape index: {}]   ;;  %s1958_s2 = inlined_call_operand.vmem [shape: f32[16,1], index: 2, kind: input, shape index: {}]   ;;  %s1959_s3 = inlined_call_operand.vmem [shape: f32[16,1], index: 3, kind: input, shape index: {}]   ;;  %s1960_s4 = inlined_call_operand.vmem [shape: bf16[16,512], index: 4, kind: output, shape index: {}]  }
   0x1   :  { %v1260_v0 = vld [vmem:[%s1956_s1 + $0x4] ss:$16 sps:$4 sm:$0xff]   ;;  %v1262_v1 = vld [vmem:[%s1956_s1 + $0xc] ss:$16 sps:$4 sm:$0xff]   ;;  %v1264_v2 = vld [vmem:[%s1956_s1] ss:$16 sps:$4 sm:$0xff]  }
   0x2   :  { %809 = vmatprep.subr.bf16.mxu0 %v1260_v0  ;;  %v1265_v3 = vld [vmem:[%s1956_s1 + $0x8] ss:$16 sps:$4 sm:$0xff]   ;;  %895 = vmatprep.subr.bf16.mxu1 %v1262_v1  ;;  %v1266_v4 = vld [vmem:[%s1956_s1 + $0x24] ss:$16 sps:$4 sm:$0xff]   ;;  %v1268_v5 = vld [vmem:[%s1956_s1 + $0x2c] ss:$16 sps:$4 sm:$0xff]  }
   0x3   :  { %810 = vmatpush1.bf16.msra.mxu0 %v1264_v2  ;;  %896 = vmatpush1.bf16.msra.mxu1 %v1265_v3  ;;  %v1270_v6 = vld [vmem:[%s1956_s1 + $0x20] ss:$16 sps:$4 sm:$0xff]   ;;  %v1271_v7 = vld [vmem:[%s1956_s1 + $0x28] ss:$16 sps:$4 sm:$0xff]   ;;  %v1272_v8 = vld [vmem:[%s1956_s1 + $0x44] ss:$16 sps:$4 sm:$0xff]  }
   0x4   :  { %811 = vmatprep.subr.bf16.mxu0 %v1266_v4  ;;  %897 = vmatprep.subr.bf16.mxu1 %v1268_v5  ;;  %v1274_v9 = vld [vmem:[%s1956_s1 + $0x4c] ss:$16 sps:$4 sm:$0xff]   ;;  %v1276_v10 = vld [vmem:[%s1956_s1 + $0x40] ss:$16 sps:$4 sm:$0xff]   ;;  %v1277_v11 = vld [vmem:[%s1956_s1 + $0x48] ss:$16 sps:$4 sm:$0xff]  }
   0x5   :  { %v1278_v12 = vld [vmem:[%s1956_s1 + $0x64] ss:$16 sps:$4 sm:$0xff]   ;;  %v1280_v13 = vld [vmem:[%s1956_s1 + $0x6c] ss:$16 sps:$4 sm:$0xff]   ;;  %v1282_v14 = vld [vmem:[%s1956_s1 + $0x60] ss:$16 sps:$4 sm:$0xff]  }
   0x6   :  { %v1283_v15 = vld [vmem:[%s1956_s1 + $0x68] ss:$16 sps:$4 sm:$0xff]   ;;  %v1284_v16 = vld [vmem:[%s1956_s1 + $0x84] ss:$16 sps:$4 sm:$0xff]   ;;  %v1286_v17 = vld [vmem:[%s1956_s1 + $0x8c] ss:$16 sps:$4 sm:$0xff]  }
   0x7   :  { %812 = vmatpush1.bf16.msra.mxu0 %v1270_v6  ;;  %898 = vmatpush1.bf16.msra.mxu1 %v1271_v7  ;;  %v1288_v18 = vld [vmem:[%s1956_s1 + $0x80] ss:$16 sps:$4 sm:$0xff]   ;;  %v1289_v19 = vld [vmem:[%s1956_s1 + $0x88] ss:$16 sps:$4 sm:$0xff]   ;;  %v1290_v20 = vld [vmem:[%s1956_s1 + $0xa4] ss:$16 sps:$4 sm:$0xff]  }
   0x8   :  { %813 = vmatprep.subr.bf16.mxu0 %v1272_v8  ;;  %899 = vmatprep.subr.bf16.mxu1 %v1274_v9  ;;  %v1292_v21 = vld [vmem:[%s1956_s1 + $0xac] ss:$16 sps:$4 sm:$0xff]   ;;  %v1294_v22 = vld [vmem:[%s1956_s1 + $0xa0] ss:$16 sps:$4 sm:$0xff]   ;;  %v1295_v23 = vld [vmem:[%s1956_s1 + $0xa8] ss:$16 sps:$4 sm:$0xff]  }
   0x9   :  { %v1296_v24 = vld [vmem:[%s1956_s1 + $0xc4] ss:$16 sps:$4 sm:$0xff]   ;;  %v1298_v25 = vld [vmem:[%s1956_s1 + $0xcc] ss:$16 sps:$4 sm:$0xff]   ;;  %v1300_v26 = vld [vmem:[%s1956_s1 + $0xc0] ss:$16 sps:$4 sm:$0xff]  }
   0xa   :  { %v1301_v27 = vld [vmem:[%s1956_s1 + $0xc8] ss:$16 sps:$4 sm:$0xff]   ;;  %v1302_v28 = vld [vmem:[%s1956_s1 + $0xe4] ss:$16 sps:$4 sm:$0xff]   ;;  %v1304_v29 = vld [vmem:[%s1956_s1 + $0xec] ss:$16 sps:$4 sm:$0xff]  }
   0xb   :  { %814 = vmatpush1.bf16.msra.mxu0 %v1276_v10  ;;  %900 = vmatpush1.bf16.msra.mxu1 %v1277_v11  ;;  %v1306_v30 = vld [vmem:[%s1956_s1 + $0xe0] ss:$16 sps:$4 sm:$0xff]   ;;  %v1307_v31 = vld [vmem:[%s1956_s1 + $0xe8] ss:$16 sps:$4 sm:$0xff]   ;;  %v1308_v32 = vld [vmem:[%s1956_s1 + $0x104] ss:$16 sps:$4 sm:$0xff]  }
   0xc   :  { %815 = vmatprep.subr.bf16.mxu0 %v1278_v12  ;;  %901 = vmatprep.subr.bf16.mxu1 %v1280_v13  ;;  %v1310_v33 = vld [vmem:[%s1956_s1 + $0x10c] ss:$16 sps:$4 sm:$0xff]   ;;  %v1312_v34 = vld [vmem:[%s1956_s1 + $0x100] ss:$16 sps:$4 sm:$0xff]   ;;  %v1313_v35 = vld [vmem:[%s1956_s1 + $0x108] ss:$16 sps:$4 sm:$0xff]  }
   0xd   :  { %v1314_v36 = vld [vmem:[%s1956_s1 + $0x124] ss:$16 sps:$4 sm:$0xff]   ;;  %v1316_v37 = vld [vmem:[%s1956_s1 + $0x12c] ss:$16 sps:$4 sm:$0xff]   ;;  %v1318_v38 = vld [vmem:[%s1956_s1 + $0x120] ss:$16 sps:$4 sm:$0xff]  }
   0xe   :  { %v1319_v39 = vld [vmem:[%s1956_s1 + $0x128] ss:$16 sps:$4 sm:$0xff]   ;;  %v1320_v40 = vld [vmem:[%s1956_s1 + $0x144] ss:$16 sps:$4 sm:$0xff]   ;;  %v1322_v41 = vld [vmem:[%s1956_s1 + $0x14c] ss:$16 sps:$4 sm:$0xff]  }
   0xf   :  { %816 = vmatpush1.bf16.msra.mxu0 %v1282_v14  ;;  %902 = vmatpush1.bf16.msra.mxu1 %v1283_v15  ;;  %v1324_v42 = vld [vmem:[%s1956_s1 + $0x140] ss:$16 sps:$4 sm:$0xff]   ;;  %v1325_v43 = vld [vmem:[%s1956_s1 + $0x148] ss:$16 sps:$4 sm:$0xff]   ;;  %v1326_v44 = vld [vmem:[%s1956_s1 + $0x164] ss:$16 sps:$4 sm:$0xff]  }
  0x10   :  { %817 = vmatprep.subr.bf16.mxu0 %v1284_v16  ;;  %903 = vmatprep.subr.bf16.mxu1 %v1286_v17  ;;  %v1328_v45 = vld [vmem:[%s1956_s1 + $0x16c] ss:$16 sps:$4 sm:$0xff]   ;;  %v1330_v46 = vld [vmem:[%s1956_s1 + $0x160] ss:$16 sps:$4 sm:$0xff]   ;;  %v1331_v47 = vld [vmem:[%s1956_s1 + $0x168] ss:$16 sps:$4 sm:$0xff]  }
  0x11   :  { %v1358_v48 = vld [vmem:[%s1957_s0 + $0x4] ss:$16 sps:$4 sm:$0xff]   ;;  %v1334_v50 = vld [vmem:[%s1956_s1 + $0x18c] ss:$16 sps:$4 sm:$0xff]   ;;  %v1336_v51 = vld [vmem:[%s1956_s1 + $0x180] ss:$16 sps:$4 sm:$0xff]  }
  0x12   :  { %v1332_v49 = vld [vmem:[%s1956_s1 + $0x184] ss:$16 sps:$4 sm:$0xff]   ;;  %841 = vmatprep.mubr.bf16.mxu0 %v1358_v48  ;;  %927 = vmatprep.mubr.bf16.mxu1 %v1358_v48  ;;  %v1337_v52 = vld [vmem:[%s1956_s1 + $0x188] ss:$16 sps:$4 sm:$0xff]   ;;  %v1340_v54 = vld [vmem:[%s1956_s1 + $0x1ac] ss:$16 sps:$4 sm:$0xff]  }
  0x13   :  { %818 = vmatpush1.bf16.msra.mxu0 %v1288_v18  ;;  %904 = vmatpush1.bf16.msra.mxu1 %v1289_v19  ;;  %v1338_v53 = vld [vmem:[%s1956_s1 + $0x1a4] ss:$16 sps:$4 sm:$0xff]   ;;  %v1342_v55 = vld [vmem:[%s1956_s1 + $0x1a0] ss:$16 sps:$4 sm:$0xff]   ;;  %v1343_v56 = vld [vmem:[%s1956_s1 + $0x1a8] ss:$16 sps:$4 sm:$0xff]  }
  0x14   :  { %819 = vmatprep.subr.bf16.mxu0 %v1290_v20  ;;  %905 = vmatprep.subr.bf16.mxu1 %v1292_v21  ;;  %v1344_v57 = vld [vmem:[%s1956_s1 + $0x1c4] ss:$16 sps:$4 sm:$0xff]   ;;  %v1346_v58 = vld [vmem:[%s1956_s1 + $0x1cc] ss:$16 sps:$4 sm:$0xff]   ;;  %v1348_v59 = vld [vmem:[%s1956_s1 + $0x1c0] ss:$16 sps:$4 sm:$0xff]  }
  0x15   :  { %v1349_v60 = vld [vmem:[%s1956_s1 + $0x1c8] ss:$16 sps:$4 sm:$0xff]   ;;  %v1350_v61 = vld [vmem:[%s1956_s1 + $0x1e4] ss:$16 sps:$4 sm:$0xff]   ;;  %v1352_v62 = vld [vmem:[%s1956_s1 + $0x1ec] ss:$16 sps:$4 sm:$0xff]  }
  0x16   :  { %v1354_v63 = vld [vmem:[%s1956_s1 + $0x1e0] ss:$16 sps:$4 sm:$0xff]   ;;  %v1355_v0 = vld [vmem:[%s1956_s1 + $0x1e8] ss:$16 sps:$4 sm:$0xff]   ;;  %v1361_v1 = vld [vmem:[%s1956_s1 + $0x204] ss:$16 sps:$4 sm:$0xff]  }
  0x17   :  { %820 = vmatpush1.bf16.msra.mxu0 %v1294_v22  ;;  %906 = vmatpush1.bf16.msra.mxu1 %v1295_v23  ;;  %v1364_v2 = vld [vmem:[%s1956_s1 + $0x20c] ss:$16 sps:$4 sm:$0xff]   ;;  %v1356_v3 = vld [vmem:[%s1957_s0] ss:$16 sps:$4 sm:$0xff]   ;;  %v1362_v5 = vld [vmem:[%s1956_s1 + $0x208] ss:$16 sps:$4 sm:$0xff]  }
  0x18   :  { %821 = vmatprep.subr.bf16.mxu0 %v1296_v24  ;;  %907 = vmatprep.subr.bf16.mxu1 %v1298_v25  ;;  %v1359_v4 = vld [vmem:[%s1956_s1 + $0x200] ss:$16 sps:$4 sm:$0xff]   ;;  %v1367_v6 = vld [vmem:[%s1956_s1 + $0x224] ss:$16 sps:$4 sm:$0xff]   ;;  %v1370_v7 = vld [vmem:[%s1956_s1 + $0x22c] ss:$16 sps:$4 sm:$0xff]  }
  0x19   :  { %v1365_v8 = vld [vmem:[%s1956_s1 + $0x220] ss:$16 sps:$4 sm:$0xff]   ;;  %v1368_v9 = vld [vmem:[%s1956_s1 + $0x228] ss:$16 sps:$4 sm:$0xff]   ;;  %v1373_v10 = vld [vmem:[%s1956_s1 + $0x244] ss:$16 sps:$4 sm:$0xff]  }
  0x1a   :  { %v1376_v11 = vld [vmem:[%s1956_s1 + $0x24c] ss:$16 sps:$4 sm:$0xff]   ;;  %v1371_v12 = vld [vmem:[%s1956_s1 + $0x240] ss:$16 sps:$4 sm:$0xff]   ;;  %v1374_v13 = vld [vmem:[%s1956_s1 + $0x248] ss:$16 sps:$4 sm:$0xff]  }
  0x1b   :  { %822 = vmatpush1.bf16.msra.mxu0 %v1300_v26  ;;  %908 = vmatpush1.bf16.msra.mxu1 %v1301_v27  ;;  %v1379_v14 = vld [vmem:[%s1956_s1 + $0x264] ss:$16 sps:$4 sm:$0xff]   ;;  %v1382_v15 = vld [vmem:[%s1956_s1 + $0x26c] ss:$16 sps:$4 sm:$0xff]   ;;  %v1377_v16 = vld [vmem:[%s1956_s1 + $0x260] ss:$16 sps:$4 sm:$0xff]  }
  0x1c   :  { %823 = vmatprep.subr.bf16.mxu0 %v1302_v28  ;;  %909 = vmatprep.subr.bf16.mxu1 %v1304_v29  ;;  %v1380_v17 = vld [vmem:[%s1956_s1 + $0x268] ss:$16 sps:$4 sm:$0xff]   ;;  %v1385_v18 = vld [vmem:[%s1956_s1 + $0x284] ss:$16 sps:$4 sm:$0xff]   ;;  %v1388_v19 = vld [vmem:[%s1956_s1 + $0x28c] ss:$16 sps:$4 sm:$0xff]  }
  0x1d   :  { %v1383_v20 = vld [vmem:[%s1956_s1 + $0x280] ss:$16 sps:$4 sm:$0xff]   ;;  %v1386_v21 = vld [vmem:[%s1956_s1 + $0x288] ss:$16 sps:$4 sm:$0xff]   ;;  %v1391_v22 = vld [vmem:[%s1956_s1 + $0x2a4] ss:$16 sps:$4 sm:$0xff]  }
  0x1e   :  { %v1394_v23 = vld [vmem:[%s1956_s1 + $0x2ac] ss:$16 sps:$4 sm:$0xff]   ;;  %v1389_v24 = vld [vmem:[%s1956_s1 + $0x2a0] ss:$16 sps:$4 sm:$0xff]   ;;  %v1392_v25 = vld [vmem:[%s1956_s1 + $0x2a8] ss:$16 sps:$4 sm:$0xff]  }
  0x1f   :  { %824 = vmatpush1.bf16.msra.mxu0 %v1306_v30  ;;  %910 = vmatpush1.bf16.msra.mxu1 %v1307_v31  ;;  %v1397_v26 = vld [vmem:[%s1956_s1 + $0x2c4] ss:$16 sps:$4 sm:$0xff]   ;;  %v1400_v27 = vld [vmem:[%s1956_s1 + $0x2cc] ss:$16 sps:$4 sm:$0xff]   ;;  %v1395_v29 = vld [vmem:[%s1956_s1 + $0x2c0] ss:$16 sps:$4 sm:$0xff]  }
  0x20   :  { %825 = vmatprep.subr.bf16.mxu0 %v1308_v32  ;;  %911 = vmatprep.subr.bf16.mxu1 %v1310_v33  ;;  %v1457_v28 = vld [vmem:[%s1957_s0 + $0xc] ss:$16 sps:$4 sm:$0xff]   ;;  %v1398_v30 = vld [vmem:[%s1956_s1 + $0x2c8] ss:$16 sps:$4 sm:$0xff]   ;;  %v1403_v31 = vld [vmem:[%s1956_s1 + $0x2e4] ss:$16 sps:$4 sm:$0xff]  }
  0x21   :  { %v1406_v32 = vld [vmem:[%s1956_s1 + $0x2ec] ss:$16 sps:$4 sm:$0xff]   ;;  %v1401_v33 = vld [vmem:[%s1956_s1 + $0x2e0] ss:$16 sps:$4 sm:$0xff]  }
  0x22   :  { %v1430_v48 = vld [vmem:[%s1956_s1 + $0x36c] ss:$16 sps:$4 sm:$0xff]  }
  0x23   :  { %826 = vmatpush1.bf16.msra.mxu0 %v1312_v34  ;;  %912 = vmatpush1.bf16.msra.mxu1 %v1313_v35  ;;  %v1404_v34 = vld [vmem:[%s1956_s1 + $0x2e8] ss:$16 sps:$4 sm:$0xff]   ;;  %v1409_v35 = vld [vmem:[%s1956_s1 + $0x304] ss:$16 sps:$4 sm:$0xff]  }
  0x24   :  { %827 = vmatprep.subr.bf16.mxu0 %v1314_v36  ;;  %913 = vmatprep.subr.bf16.mxu1 %v1316_v37  ;;  %v1412_v36 = vld [vmem:[%s1956_s1 + $0x30c] ss:$16 sps:$4 sm:$0xff]   ;;  %v1407_v37 = vld [vmem:[%s1956_s1 + $0x300] ss:$16 sps:$4 sm:$0xff]  }
  0x27   :  { %828 = vmatpush1.bf16.msra.mxu0 %v1318_v38  ;;  %914 = vmatpush1.bf16.msra.mxu1 %v1319_v39  ;;  %v1410_v38 = vld [vmem:[%s1956_s1 + $0x308] ss:$16 sps:$4 sm:$0xff]   ;;  %v1415_v39 = vld [vmem:[%s1956_s1 + $0x324] ss:$16 sps:$4 sm:$0xff]  }
  0x28   :  { %829 = vmatprep.subr.bf16.mxu0 %v1320_v40  ;;  %915 = vmatprep.subr.bf16.mxu1 %v1322_v41  ;;  %v1418_v40 = vld [vmem:[%s1956_s1 + $0x32c] ss:$16 sps:$4 sm:$0xff]   ;;  %v1413_v41 = vld [vmem:[%s1956_s1 + $0x320] ss:$16 sps:$4 sm:$0xff]  }
  0x2b   :  { %830 = vmatpush1.bf16.msra.mxu0 %v1324_v42  ;;  %916 = vmatpush1.bf16.msra.mxu1 %v1325_v43  ;;  %v1416_v42 = vld [vmem:[%s1956_s1 + $0x328] ss:$16 sps:$4 sm:$0xff]   ;;  %v1421_v43 = vld [vmem:[%s1956_s1 + $0x344] ss:$16 sps:$4 sm:$0xff]  }
  0x2c   :  { %831 = vmatprep.subr.bf16.mxu0 %v1326_v44  ;;  %917 = vmatprep.subr.bf16.mxu1 %v1328_v45  ;;  %v1424_v44 = vld [vmem:[%s1956_s1 + $0x34c] ss:$16 sps:$4 sm:$0xff]   ;;  %v1419_v45 = vld [vmem:[%s1956_s1 + $0x340] ss:$16 sps:$4 sm:$0xff]  }
  0x2f   :  { %832 = vmatpush1.bf16.msra.mxu0 %v1330_v46  ;;  %918 = vmatpush1.bf16.msra.mxu1 %v1331_v47  ;;  %v1422_v46 = vld [vmem:[%s1956_s1 + $0x348] ss:$16 sps:$4 sm:$0xff]   ;;  %v1427_v47 = vld [vmem:[%s1956_s1 + $0x364] ss:$16 sps:$4 sm:$0xff]  }
  0x30   :  { %833 = vmatprep.subr.bf16.mxu0 %v1332_v49  ;;  %919 = vmatprep.subr.bf16.mxu1 %v1334_v50  ;;  %v1425_v49 = vld [vmem:[%s1956_s1 + $0x360] ss:$16 sps:$4 sm:$0xff]   ;;  %v1428_v50 = vld [vmem:[%s1956_s1 + $0x368] ss:$16 sps:$4 sm:$0xff]  }
  0x33   :  { %834 = vmatpush1.bf16.msra.mxu0 %v1336_v51  ;;  %920 = vmatpush1.bf16.msra.mxu1 %v1337_v52  ;;  %v1433_v51 = vld [vmem:[%s1956_s1 + $0x384] ss:$16 sps:$4 sm:$0xff]   ;;  %v1436_v52 = vld [vmem:[%s1956_s1 + $0x38c] ss:$16 sps:$4 sm:$0xff]  }
  0x34   :  { %835 = vmatprep.subr.bf16.mxu0 %v1338_v53  ;;  %921 = vmatprep.subr.bf16.mxu1 %v1340_v54  ;;  %v1431_v53 = vld [vmem:[%s1956_s1 + $0x380] ss:$16 sps:$4 sm:$0xff]   ;;  %v1434_v54 = vld [vmem:[%s1956_s1 + $0x388] ss:$16 sps:$4 sm:$0xff]  }
  0x37   :  { %836 = vmatpush1.bf16.msra.mxu0 %v1342_v55  ;;  %922 = vmatpush1.bf16.msra.mxu1 %v1343_v56  ;;  %v1439_v55 = vld [vmem:[%s1956_s1 + $0x3a4] ss:$16 sps:$4 sm:$0xff]   ;;  %v1442_v56 = vld [vmem:[%s1956_s1 + $0x3ac] ss:$16 sps:$4 sm:$0xff]  }
  0x38   :  { %837 = vmatprep.subr.bf16.mxu0 %v1344_v57  ;;  %923 = vmatprep.subr.bf16.mxu1 %v1346_v58  ;;  %v1437_v57 = vld [vmem:[%s1956_s1 + $0x3a0] ss:$16 sps:$4 sm:$0xff]   ;;  %v1440_v58 = vld [vmem:[%s1956_s1 + $0x3a8] ss:$16 sps:$4 sm:$0xff]  }
  0x3b   :  { %838 = vmatpush1.bf16.msra.mxu0 %v1348_v59  ;;  %924 = vmatpush1.bf16.msra.mxu1 %v1349_v60  ;;  %v1445_v59 = vld [vmem:[%s1956_s1 + $0x3c4] ss:$16 sps:$4 sm:$0xff]   ;;  %v1448_v60 = vld [vmem:[%s1956_s1 + $0x3cc] ss:$16 sps:$4 sm:$0xff]  }
  0x3c   :  { %839 = vmatprep.subr.bf16.mxu0 %v1350_v61  ;;  %925 = vmatprep.subr.bf16.mxu1 %v1352_v62  ;;  %v1443_v61 = vld [vmem:[%s1956_s1 + $0x3c0] ss:$16 sps:$4 sm:$0xff]   ;;  %v1446_v62 = vld [vmem:[%s1956_s1 + $0x3c8] ss:$16 sps:$4 sm:$0xff]  }
  0x3f   :  { %840 = vmatpush1.bf16.msra.mxu0 %v1354_v63  ;;  %926 = vmatpush1.bf16.msra.mxu1 %v1355_v0  ;;  %v1451_v63 = vld [vmem:[%s1956_s1 + $0x3e4] ss:$16 sps:$4 sm:$0xff]   ;;  %v1454_v0 = vld [vmem:[%s1956_s1 + $0x3ec] ss:$16 sps:$4 sm:$0xff]  }
  0x40   :  { %852 = vmatprep.subr.bf16.mxu0 %v1361_v1  ;;  %938 = vmatprep.subr.bf16.mxu1 %v1364_v2  ;;  %v1449_v1 = vld [vmem:[%s1956_s1 + $0x3e0] ss:$16 sps:$4 sm:$0xff]   ;;  %v1452_v2 = vld [vmem:[%s1956_s1 + $0x3e8] ss:$16 sps:$4 sm:$0xff]  }
  0x42   :  { %842 = vmatmul.mubr.bf16.vlgmr.msra.gmra.mrb[0].mxu0 %v1356_v3  ;;  %928 = vmatmul.mubr.bf16.vlgmr.msra.gmra.mrb[0].mxu1 %v1356_v3  ;;  %v1455_v3 = vld [vmem:[%s1957_s0 + $0x8] ss:$16 sps:$4 sm:$0xff]  }
  0x43   :  { %853 = vmatpush1.bf16.msra.mxu0 %v1359_v4  ;;  %939 = vmatpush1.bf16.msra.mxu1 %v1362_v5 }
  0x44   :  { %854 = vmatprep.subr.bf16.mxu0 %v1367_v6  ;;  %940 = vmatprep.subr.bf16.mxu1 %v1370_v7 }
  0x45   :  { %884 = vmatprep.mubr.bf16.mxu0 %v1457_v28  ;;  %970 = vmatprep.mubr.bf16.mxu1 %v1457_v28 }
  0x47   :  { %855 = vmatpush1.bf16.msra.mxu0 %v1365_v8  ;;  %941 = vmatpush1.bf16.msra.mxu1 %v1368_v9 }
  0x48   :  { %856 = vmatprep.subr.bf16.mxu0 %v1373_v10  ;;  %942 = vmatprep.subr.bf16.mxu1 %v1376_v11 }
  0x4b   :  { %857 = vmatpush1.bf16.msra.mxu0 %v1371_v12  ;;  %943 = vmatpush1.bf16.msra.mxu1 %v1374_v13 }
  0x4c   :  { %858 = vmatprep.subr.bf16.mxu0 %v1379_v14  ;;  %944 = vmatprep.subr.bf16.mxu1 %v1382_v15 }
  0x4f   :  { %859 = vmatpush1.bf16.msra.mxu0 %v1377_v16  ;;  %945 = vmatpush1.bf16.msra.mxu1 %v1380_v17 }
  0x50   :  { %860 = vmatprep.subr.bf16.mxu0 %v1385_v18  ;;  %946 = vmatprep.subr.bf16.mxu1 %v1388_v19 }
  0x53   :  { %861 = vmatpush1.bf16.msra.mxu0 %v1383_v20  ;;  %947 = vmatpush1.bf16.msra.mxu1 %v1386_v21 }
  0x54   :  { %862 = vmatprep.subr.bf16.mxu0 %v1391_v22  ;;  %948 = vmatprep.subr.bf16.mxu1 %v1394_v23 }
  0x57   :  { %863 = vmatpush1.bf16.msra.mxu0 %v1389_v24  ;;  %949 = vmatpush1.bf16.msra.mxu1 %v1392_v25 }
  0x58   :  { %864 = vmatprep.subr.bf16.mxu0 %v1397_v26  ;;  %950 = vmatprep.subr.bf16.mxu1 %v1400_v27 }
  0x5b   :  { %865 = vmatpush1.bf16.msra.mxu0 %v1395_v29  ;;  %951 = vmatpush1.bf16.msra.mxu1 %v1398_v30 }
  0x5c   :  { %866 = vmatprep.subr.bf16.mxu0 %v1403_v31  ;;  %952 = vmatprep.subr.bf16.mxu1 %v1406_v32  ;;  %v1462_v32 = vmov 0  }
  0x5d   :  { %1258 = vset.pattern.permute.xlu0 %v1462_v32  ;;  %1259 = vset.pattern.permute.xlu1 %v1462_v32 }
  0x5f   :  { %867 = vmatpush1.bf16.msra.mxu0 %v1401_v33  ;;  %953 = vmatpush1.bf16.msra.mxu1 %v1404_v34 }
  0x60   :  { %868 = vmatprep.subr.bf16.mxu0 %v1409_v35  ;;  %954 = vmatprep.subr.bf16.mxu1 %v1412_v36 }
  0x63   :  { %869 = vmatpush1.bf16.msra.mxu0 %v1407_v37  ;;  %955 = vmatpush1.bf16.msra.mxu1 %v1410_v38 }
  0x64   :  { %870 = vmatprep.subr.bf16.mxu0 %v1415_v39  ;;  %956 = vmatprep.subr.bf16.mxu1 %v1418_v40 }
  0x67   :  { %871 = vmatpush1.bf16.msra.mxu0 %v1413_v41  ;;  %957 = vmatpush1.bf16.msra.mxu1 %v1416_v42 }
  0x68   :  { %872 = vmatprep.subr.bf16.mxu0 %v1421_v43  ;;  %958 = vmatprep.subr.bf16.mxu1 %v1424_v44 }
  0x6b   :  { %873 = vmatpush1.bf16.msra.mxu0 %v1419_v45  ;;  %959 = vmatpush1.bf16.msra.mxu1 %v1422_v46 }
  0x6c   :  { %874 = vmatprep.subr.bf16.mxu0 %v1427_v47  ;;  %960 = vmatprep.subr.bf16.mxu1 %v1430_v48 }
  0x6f   :  { %875 = vmatpush1.bf16.msra.mxu0 %v1425_v49  ;;  %961 = vmatpush1.bf16.msra.mxu1 %v1428_v50  ;;  %v1019_v49 = vld [vmem:[%s1958_s2] sm:$0xff] }
  0x70   :  { %876 = vmatprep.subr.bf16.mxu0 %v1433_v51  ;;  %962 = vmatprep.subr.bf16.mxu1 %v1436_v52  ;;  %v1020_v52 = vld [vmem:[%s1958_s2 + $0x8] sm:$0xff] }
  0x73   :  { %877 = vmatpush1.bf16.msra.mxu0 %v1431_v53  ;;  %963 = vmatpush1.bf16.msra.mxu1 %v1434_v54 }
  0x74   :  { %878 = vmatprep.subr.bf16.mxu0 %v1439_v55  ;;  %964 = vmatprep.subr.bf16.mxu1 %v1442_v56  ;;  %v1027_v56 = vld [vmem:[%s1959_s3] sm:$0xff] }
  0x77   :  { %879 = vmatpush1.bf16.msra.mxu0 %v1437_v57  ;;  %965 = vmatpush1.bf16.msra.mxu1 %v1440_v58 }
  0x78   :  { %880 = vmatprep.subr.bf16.mxu0 %v1445_v59  ;;  %966 = vmatprep.subr.bf16.mxu1 %v1448_v60  ;;  %v1028_v59 = vld [vmem:[%s1959_s3 + $0x8] sm:$0xff] }
  0x7b   :  { %881 = vmatpush1.bf16.msra.mxu0 %v1443_v61  ;;  %967 = vmatpush1.bf16.msra.mxu1 %v1446_v62 }
  0x7c   :  { %882 = vmatprep.subr.bf16.mxu0 %v1451_v63  ;;  %968 = vmatprep.subr.bf16.mxu1 %v1454_v0 }
  0x7f   :  { %883 = vmatpush1.bf16.msra.mxu0 %v1449_v1  ;;  %969 = vmatpush1.bf16.msra.mxu1 %v1452_v2 }
  0x82   :  { %885 = vmatmul.mubr.bf16.vlgmr.msra.gmra.mrb[0].mxu0 %v1455_v3  ;;  %971 = vmatmul.mubr.bf16.vlgmr.msra.gmra.mrb[0].mxu1 %v1455_v3 }
 0x155   :  { %v1884_v4 = vpop.f32.mrb[0].mxu0  ;;  %v1886_v5 = vpop.f32.mrb[0].mxu1 }
 0x156   :  { %v993_v6 = vmul.f32 %v1884_v4, %v1884_v4  ;;  %v1890_v7 = vpop.f32.mrb[1].mxu0  ;;  %v1892_v8 = vpop.f32.mrb[1].mxu1  ;;  %v995_v19 = vmul.f32 %v1886_v5, %v1886_v5 }
 0x157   :  { %v981_v9 = vadd.f32 %v1890_v7, %v1884_v4  ;;  %v994_v10 = vmul.f32 %v1890_v7, %v1890_v7  ;;  %v1898_v11 = vpop.f32.mrb[2].mxu0  ;;  %v1900_v12 = vpop.f32.mrb[2].mxu1  ;;  %v996_v25 = vmul.f32 %v1892_v8, %v1892_v8 }
 0x158   :  { %v997_v13 = vmul.f32 %v1898_v11, %v1898_v11  ;;  %v1904_v14 = vpop.f32.mrb[3].mxu0  ;;  %v1906_v15 = vpop.f32.mrb[3].mxu1  ;;  %v999_v21 = vmul.f32 %v1900_v12, %v1900_v12 }
 0x159   :  { %v986_v16 = vadd.f32 %v1904_v14, %v1898_v11  ;;  %v998_v17 = vmul.f32 %v1904_v14, %v1904_v14  ;;  %v982_v18 = vadd.f32 %v981_v9, %v1886_v5  ;;  %v1001_v20 = vadd.f32 %v994_v10, %v993_v6 }
 0x15a   :  { %v1000_v27 = vmul.f32 %v1906_v15, %v1906_v15 }
 0x15b   :  { %v1006_v22 = vadd.f32 %v998_v17, %v997_v13  ;;  %v983_v23 = vadd.f32 %v982_v18, %v1892_v8  ;;  %v987_v24 = vadd.f32 %v986_v16, %v1900_v12  ;;  %v1002_v26 = vadd.f32 %v1001_v20, %v995_v19 }
 0x15d   :  { %984 = vadd.xlane.f32.xlu0 %v983_v23  ;;  %v988_v28 = vadd.f32 %v987_v24, %v1906_v15  ;;  %v1007_v29 = vadd.f32 %v1006_v22, %v999_v21  ;;  %v1003_v30 = vadd.f32 %v1002_v26, %v996_v25 }
 0x15f   :  { %v1008_v31 = vadd.f32 %v1007_v29, %v1000_v27  ;;  %1004 = vadd.xlane.f32.xlu1 %v1003_v30 }
 0x161   :  { %989 = vadd.xlane.f32.xlu0 %v988_v28 }
 0x163   :  { %1009 = vadd.xlane.f32.xlu1 %v1008_v31 }
 0x1ea   :  { %v985_v33 = vpop.xlane.xlu0 %984 }
 0x1eb   :  { %v991_v34 = vmul.f32 0.001953125, %v985_v33 }
 0x1ec   :  { %v1005_v36 = vpop.xlane.xlu1 %1004 }
 0x1ed   :  { %v1013_v35 = vmul.f32 %v991_v34, %v991_v34  ;;  %v1011_v37 = vmul.f32 0.001953125, %v1005_v36 }
 0x1ee   :  { %v990_v38 = vpop.xlane.xlu0 %989 }
 0x1ef   :  { %v992_v39 = vmul.f32 0.001953125, %v990_v38  ;;  %v1015_v40 = vsub.f32 %v1011_v37, %v1013_v35 }
 0x1f0   :  { %v1010_v42 = vpop.xlane.xlu1 %1009 }
 0x1f1   :  { %v1014_v41 = vmul.f32 %v992_v39, %v992_v39  ;;  %v1017_v43 = vmax.f32 %v1015_v40, 0.0  ;;  %v1012_v44 = vmul.f32 0.001953125, %v1010_v42 }
 0x1f3   :  { %v1021_v45 = vadd.f32 1e-05, %v1017_v43  ;;  %v1016_v46 = vsub.f32 %v1012_v44, %v1014_v41 }
 0x1f5   :  { %1458 = vrsqrt.f32 %v1021_v45  ;;  %v1018_v47 = vmax.f32 %v1016_v46, 0.0 }
 0x1f7   :  { %v1022_v48 = vadd.f32 1e-05, %v1018_v47 }
 0x1f9   :  { %1460 = vrsqrt.f32 %v1022_v48 }
 0x1ff   :  { %v1459_v50 = vpop.eup %1458 }
 0x200   :  { %v1025_v51 = vmul.f32 %v1459_v50, %v1019_v49 }
 0x202   :  { %1035 = vperm.xlu0 %1258, %v1025_v51   ;;  %v1029_v55 = vmul.f32 %v1025_v51, %v991_v34 }
 0x203   :  { %v1461_v53 = vpop.eup %1460 }
 0x204   :  { %v1026_v54 = vmul.f32 %v1461_v53, %v1020_v52  ;;  %v1031_v57 = vsub.f32 %v1027_v56, %v1029_v55 }
 0x206   :  { %1040 = vperm.xlu1 %1259, %v1026_v54   ;;  %v1030_v58 = vmul.f32 %v1026_v54, %v992_v39 }
 0x208   :  { %v1032_v60 = vsub.f32 %v1028_v59, %v1030_v58 }
 0x20a   :  { %1053 = vperm.xlu1 %1259, %v1031_v57  }
 0x20e   :  { %1058 = vperm.xlu1 %1259, %v1032_v60  }
 0x281   :  { %v1036_v61 = vpop.permute.xlu0 %1035 }
 0x282   :  { %v1043_v63 = vmul.f32 %v1036_v61, %v1884_v4  ;;  %v1044_v0 = vmul.f32 %v1036_v61, %v1890_v7  ;;  %v1045_v1 = vmul.f32 %v1036_v61, %v1886_v5  ;;  %v1046_v2 = vmul.f32 %v1036_v61, %v1892_v8 }
 0x285   :  { %v1041_v62 = vpop.permute.xlu1 %1040 }
 0x286   :  { %v1047_v16 = vmul.f32 %v1041_v62, %v1898_v11  ;;  %v1048_v17 = vmul.f32 %v1041_v62, %v1904_v14  ;;  %v1049_v4 = vmul.f32 %v1041_v62, %v1900_v12  ;;  %v1050_v7 = vmul.f32 %v1041_v62, %v1906_v15 }
 0x289   :  { %v1054_v3 = vpop.permute.xlu1 %1053 }
 0x28a   :  { %v1061_v6 = vadd.f32 %v1054_v3, %v1043_v63  ;;  %v1062_v9 = vadd.f32 %v1054_v3, %v1044_v0  ;;  %v1063_v10 = vadd.f32 %v1054_v3, %v1045_v1  ;;  %v1064_v13 = vadd.f32 %v1054_v3, %v1046_v2 }
 0x28c   :  { %v1069_v18 = vmax.f32 %v1061_v6, 0.0  ;;  %v1070_v19 = vmax.f32 %v1062_v9, 0.0  ;;  %v1071_v20 = vmax.f32 %v1063_v10, 0.0  ;;  %v1072_v21 = vmax.f32 %v1064_v13, 0.0 }
 0x28d   :  { %v1059_v5 = vpop.permute.xlu1 %1058 }
 0x28e   :  { %v1245_v22 = vpack.c.bf16 %v1070_v19, %v1069_v18  ;;  %v1246_v8 = vpack.c.bf16 %v1072_v21, %v1071_v20  ;;  %v1065_v23 = vadd.f32 %v1059_v5, %v1047_v16  ;;  %v1066_v24 = vadd.f32 %v1059_v5, %v1048_v17 }
 0x28f   :  { %v1067_v25 = vadd.f32 %v1059_v5, %v1049_v4  ;;  %v1068_v26 = vadd.f32 %v1059_v5, %v1050_v7 }
 0x290   :  { %1101 = vst [vmem:[%s1960_s4] sm:$0xff] %v1245_v22  ;;  %1102 = vst [vmem:[%s1960_s4 + $0x8] sm:$0xff] %v1246_v8  ;;  %v1073_v11 = vmax.f32 %v1065_v23, 0.0  ;;  %v1074_v14 = vmax.f32 %v1066_v24, 0.0 }
 0x291   :  { %v1075_v12 = vmax.f32 %v1067_v25, 0.0  ;;  %v1076_v27 = vmax.f32 %v1068_v26, 0.0 }
 0x292   :  { %v1247_v15 = vpack.c.bf16 %v1074_v14, %v1073_v11 }
 0x293   :  { %v1248_v28 = vpack.c.bf16 %v1076_v27, %v1075_v12 }
 0x294   :  { %1103 = vst [vmem:[%s1960_s4 + $0x10] sm:$0xff] %v1247_v15 }
 0x295   :  { %1104 = vst [vmem:[%s1960_s4 + $0x18] sm:$0xff] %v1248_v28 }

// kernel: generator_forward.8
= control target key start
LH: loop header
LB: loop body
LE: loop exit
PB: predicated region body
PF: predicated region fallthrough
CT: control target
= control target key end

     0   :  { %s3291_s1 = inlined_call_operand.vmem [shape: bf16[256,2048], index: 1, kind: input, shape index: {}]   ;;  %s3292_s0 = inlined_call_operand.vmem [shape: bf16[8,256], index: 0, kind: input, shape index: {}]   ;;  %s3293_s2 = inlined_call_operand.vmem [shape: f32[8,1], index: 2, kind: input, shape index: {}]   ;;  %s3294_s3 = inlined_call_operand.vmem [shape: f32[8,1], index: 3, kind: input, shape index: {}]   ;;  %s3295_s4 = inlined_call_operand.vmem [shape: bf16[8,2048], index: 4, kind: output, shape index: {}]  }
   0x1   :  { %v18_v0 = vld [vmem:[%s3291_s1] sm:$0xff]  ;;  %v19_v2 = vld [vmem:[%s3291_s1 + $0x8] sm:$0xff] }
   0x2   :  { %v26_v1 = vld [vmem:[%s3291_s1 + $0x40] sm:$0xff]  ;;  %v27_v5 = vld [vmem:[%s3291_s1 + $0x48] sm:$0xff] }
   0x3   :  { %v2088_v3 = vcombine.high %v18_v0, %v26_v1  ;;  %v2087_v4 = vcombine.low %v18_v0, %v26_v1  ;;  %v34_v6 = vld [vmem:[%s3291_s1 + $0x80] sm:$0xff]  ;;  %v2090_v8 = vcombine.high %v19_v2, %v27_v5  ;;  %v2089_v9 = vcombine.low %v19_v2, %v27_v5  ;;  %v35_v11 = vld [vmem:[%s3291_s1 + $0x88] sm:$0xff] }
   0x4   :  { %v42_v7 = vld [vmem:[%s3291_s1 + $0xc0] sm:$0xff]  ;;  %v43_v12 = vld [vmem:[%s3291_s1 + $0xc8] sm:$0xff] }
   0x5   :  { %v2104_v10 = vcombine.high %v34_v6, %v42_v7  ;;  %v50_v13 = vld [vmem:[%s3291_s1 + $0x100] sm:$0xff]  ;;  %1561 = vmatprep.subr.bf16.mxu0 %v2088_v3  ;;  %v2106_v14 = vcombine.high %v35_v11, %v43_v12  ;;  %v51_v16 = vld [vmem:[%s3291_s1 + $0x108] sm:$0xff]  ;;  %1602 = vmatprep.subr.bf16.mxu1 %v2090_v8  ;;  %v2103_v18 = vcombine.low %v34_v6, %v42_v7 }
   0x6   :  { %v58_v15 = vld [vmem:[%s3291_s1 + $0x140] sm:$0xff]  ;;  %v59_v17 = vld [vmem:[%s3291_s1 + $0x148] sm:$0xff]  ;;  %1562 = vmatpush1.bf16.msra.mxu0 %v2087_v4  ;;  %1603 = vmatpush1.bf16.msra.mxu1 %v2089_v9  ;;  %v2105_v19 = vcombine.low %v35_v11, %v43_v12 }
   0x7   :  { %1563 = vmatprep.subr.bf16.mxu0 %v2104_v10  ;;  %v2120_v20 = vcombine.high %v50_v13, %v58_v15  ;;  %1604 = vmatprep.subr.bf16.mxu1 %v2106_v14  ;;  %v2122_v21 = vcombine.high %v51_v16, %v59_v17  ;;  %v66_v22 = vld [vmem:[%s3291_s1 + $0x180] sm:$0xff]  ;;  %v67_v24 = vld [vmem:[%s3291_s1 + $0x188] sm:$0xff]  ;;  %v2119_v26 = vcombine.low %v50_v13, %v58_v15 }
   0x8   :  { %v74_v23 = vld [vmem:[%s3291_s1 + $0x1c0] sm:$0xff]  ;;  %v75_v25 = vld [vmem:[%s3291_s1 + $0x1c8] sm:$0xff]  ;;  %v2121_v27 = vcombine.low %v51_v16, %v59_v17 }
   0x9   :  { %v2136_v28 = vcombine.high %v66_v22, %v74_v23  ;;  %v2138_v29 = vcombine.high %v67_v24, %v75_v25  ;;  %v82_v30 = vld [vmem:[%s3291_s1 + $0x200] sm:$0xff]  ;;  %v83_v32 = vld [vmem:[%s3291_s1 + $0x208] sm:$0xff]  ;;  %v2135_v34 = vcombine.low %v66_v22, %v74_v23  ;;  %v2137_v35 = vcombine.low %v67_v24, %v75_v25 }
   0xa   :  { %1564 = vmatpush1.bf16.msra.mxu0 %v2103_v18  ;;  %1605 = vmatpush1.bf16.msra.mxu1 %v2105_v19  ;;  %v90_v31 = vld [vmem:[%s3291_s1 + $0x240] sm:$0xff]  ;;  %v91_v33 = vld [vmem:[%s3291_s1 + $0x248] sm:$0xff] }
   0xb   :  { %1565 = vmatprep.subr.bf16.mxu0 %v2120_v20  ;;  %1606 = vmatprep.subr.bf16.mxu1 %v2122_v21  ;;  %v2152_v36 = vcombine.high %v82_v30, %v90_v31  ;;  %v2154_v37 = vcombine.high %v83_v32, %v91_v33  ;;  %v98_v38 = vld [vmem:[%s3291_s1 + $0x280] sm:$0xff]  ;;  %v99_v40 = vld [vmem:[%s3291_s1 + $0x288] sm:$0xff]  ;;  %v2151_v42 = vcombine.low %v82_v30, %v90_v31 }
   0xc   :  { %v106_v39 = vld [vmem:[%s3291_s1 + $0x2c0] sm:$0xff]  ;;  %v107_v41 = vld [vmem:[%s3291_s1 + $0x2c8] sm:$0xff]  ;;  %v2153_v43 = vcombine.low %v83_v32, %v91_v33 }
   0xd   :  { %v2168_v44 = vcombine.high %v98_v38, %v106_v39  ;;  %v2170_v45 = vcombine.high %v99_v40, %v107_v41  ;;  %v114_v46 = vld [vmem:[%s3291_s1 + $0x300] sm:$0xff]  ;;  %v115_v48 = vld [vmem:[%s3291_s1 + $0x308] sm:$0xff]  ;;  %v2167_v50 = vcombine.low %v98_v38, %v106_v39  ;;  %v2169_v51 = vcombine.low %v99_v40, %v107_v41 }
   0xe   :  { %1566 = vmatpush1.bf16.msra.mxu0 %v2119_v26  ;;  %1607 = vmatpush1.bf16.msra.mxu1 %v2121_v27  ;;  %v122_v47 = vld [vmem:[%s3291_s1 + $0x340] sm:$0xff]  ;;  %v123_v49 = vld [vmem:[%s3291_s1 + $0x348] sm:$0xff] }
   0xf   :  { %1567 = vmatprep.subr.bf16.mxu0 %v2136_v28  ;;  %1608 = vmatprep.subr.bf16.mxu1 %v2138_v29  ;;  %v2184_v52 = vcombine.high %v114_v46, %v122_v47  ;;  %v2479_v53 = vld [vmem:[%s3292_s0] sm:$0xff]  ;;  %v2186_v54 = vcombine.high %v115_v48, %v123_v49  ;;  %v131_v58 = vld [vmem:[%s3291_s1 + $0x388] sm:$0xff]  ;;  %v2183_v60 = vcombine.low %v114_v46, %v122_v47 }
  0x10   :  { %v130_v55 = vld [vmem:[%s3291_s1 + $0x380] sm:$0xff]  ;;  %v2489_v57 = vcombine.high %v2479_v53, %v2479_v53  ;;  %v139_v59 = vld [vmem:[%s3291_s1 + $0x3c8] sm:$0xff]  ;;  %v2185_v61 = vcombine.low %v115_v48, %v123_v49 }
  0x11   :  { %v138_v56 = vld [vmem:[%s3291_s1 + $0x3c0] sm:$0xff]  ;;  %v2202_v63 = vcombine.high %v131_v58, %v139_v59  ;;  %v147_v2 = vld [vmem:[%s3291_s1 + $0x408] sm:$0xff]  ;;  %v2201_v5 = vcombine.low %v131_v58, %v139_v59 }
  0x12   :  { %1568 = vmatpush1.bf16.msra.mxu0 %v2135_v34  ;;  %1609 = vmatpush1.bf16.msra.mxu1 %v2137_v35  ;;  %v2200_v62 = vcombine.high %v130_v55, %v138_v56  ;;  %v146_v0 = vld [vmem:[%s3291_s1 + $0x400] sm:$0xff]  ;;  %v155_v3 = vld [vmem:[%s3291_s1 + $0x448] sm:$0xff]  ;;  %v2199_v4 = vcombine.low %v130_v55, %v138_v56 }
  0x13   :  { %1569 = vmatprep.subr.bf16.mxu0 %v2152_v36  ;;  %1610 = vmatprep.subr.bf16.mxu1 %v2154_v37  ;;  %v154_v1 = vld [vmem:[%s3291_s1 + $0x440] sm:$0xff]  ;;  %v2218_v7 = vcombine.high %v147_v2, %v155_v3  ;;  %v163_v10 = vld [vmem:[%s3291_s1 + $0x488] sm:$0xff]  ;;  %v2217_v13 = vcombine.low %v147_v2, %v155_v3  ;;  %v20_v2 = vld [vmem:[%s3291_s1 + $0x10] sm:$0xff] }
  0x14   :  { %1593 = vmatprep.mubr.bf16.mxu0 %v2489_v57  ;;  %1634 = vmatprep.mubr.bf16.mxu1 %v2489_v57  ;;  %v2216_v6 = vcombine.high %v146_v0, %v154_v1  ;;  %v162_v8 = vld [vmem:[%s3291_s1 + $0x480] sm:$0xff]  ;;  %v171_v11 = vld [vmem:[%s3291_s1 + $0x4c8] sm:$0xff]  ;;  %v2215_v12 = vcombine.low %v146_v0, %v154_v1  ;;  %v28_v3 = vld [vmem:[%s3291_s1 + $0x50] sm:$0xff] }
  0x15   :  { %v170_v9 = vld [vmem:[%s3291_s1 + $0x4c0] sm:$0xff]  ;;  %v2234_v15 = vcombine.high %v163_v10, %v171_v11  ;;  %v179_v18 = vld [vmem:[%s3291_s1 + $0x508] sm:$0xff]  ;;  %v2233_v21 = vcombine.low %v163_v10, %v171_v11  ;;  %v36_v10 = vld [vmem:[%s3291_s1 + $0x90] sm:$0xff] }
  0x16   :  { %1570 = vmatpush1.bf16.msra.mxu0 %v2151_v42  ;;  %1611 = vmatpush1.bf16.msra.mxu1 %v2153_v43  ;;  %v2232_v14 = vcombine.high %v162_v8, %v170_v9  ;;  %v178_v16 = vld [vmem:[%s3291_s1 + $0x500] sm:$0xff]  ;;  %v187_v19 = vld [vmem:[%s3291_s1 + $0x548] sm:$0xff]  ;;  %v2231_v20 = vcombine.low %v162_v8, %v170_v9  ;;  %v2092_v8 = vcombine.high %v20_v2, %v28_v3  ;;  %v44_v11 = vld [vmem:[%s3291_s1 + $0xd0] sm:$0xff] }
  0x17   :  { %1571 = vmatprep.subr.bf16.mxu0 %v2168_v44  ;;  %1612 = vmatprep.subr.bf16.mxu1 %v2170_v45  ;;  %v186_v17 = vld [vmem:[%s3291_s1 + $0x540] sm:$0xff]  ;;  %v2250_v23 = vcombine.high %v179_v18, %v187_v19  ;;  %v195_v26 = vld [vmem:[%s3291_s1 + $0x588] sm:$0xff]  ;;  %v2249_v29 = vcombine.low %v179_v18, %v187_v19  ;;  %v60_v19 = vld [vmem:[%s3291_s1 + $0x150] sm:$0xff] }
  0x18   :  { %v2248_v22 = vcombine.high %v178_v16, %v186_v17  ;;  %v194_v24 = vld [vmem:[%s3291_s1 + $0x580] sm:$0xff]  ;;  %v203_v27 = vld [vmem:[%s3291_s1 + $0x5c8] sm:$0xff]  ;;  %v2247_v28 = vcombine.low %v178_v16, %v186_v17  ;;  %v2108_v17 = vcombine.high %v36_v10, %v44_v11 }
  0x19   :  { %v202_v25 = vld [vmem:[%s3291_s1 + $0x5c0] sm:$0xff]  ;;  %v2266_v31 = vcombine.high %v195_v26, %v203_v27  ;;  %v211_v34 = vld [vmem:[%s3291_s1 + $0x608] sm:$0xff]  ;;  %v2265_v37 = vcombine.low %v195_v26, %v203_v27  ;;  %v68_v26 = vld [vmem:[%s3291_s1 + $0x190] sm:$0xff] }
  0x1a   :  { %1572 = vmatpush1.bf16.msra.mxu0 %v2167_v50  ;;  %1613 = vmatpush1.bf16.msra.mxu1 %v2169_v51  ;;  %v2264_v30 = vcombine.high %v194_v24, %v202_v25  ;;  %v210_v32 = vld [vmem:[%s3291_s1 + $0x600] sm:$0xff]  ;;  %v219_v35 = vld [vmem:[%s3291_s1 + $0x648] sm:$0xff]  ;;  %v2263_v36 = vcombine.low %v194_v24, %v202_v25  ;;  %v76_v27 = vld [vmem:[%s3291_s1 + $0x1d0] sm:$0xff] }
  0x1b   :  { %1573 = vmatprep.subr.bf16.mxu0 %v2184_v52  ;;  %1614 = vmatprep.subr.bf16.mxu1 %v2186_v54  ;;  %v218_v33 = vld [vmem:[%s3291_s1 + $0x640] sm:$0xff]  ;;  %v2282_v39 = vcombine.high %v211_v34, %v219_v35  ;;  %v227_v42 = vld [vmem:[%s3291_s1 + $0x688] sm:$0xff]  ;;  %v2281_v45 = vcombine.low %v211_v34, %v219_v35  ;;  %v84_v34 = vld [vmem:[%s3291_s1 + $0x210] sm:$0xff] }
  0x1c   :  { %v2280_v38 = vcombine.high %v210_v32, %v218_v33  ;;  %v226_v40 = vld [vmem:[%s3291_s1 + $0x680] sm:$0xff]  ;;  %v235_v43 = vld [vmem:[%s3291_s1 + $0x6c8] sm:$0xff]  ;;  %v2279_v44 = vcombine.low %v210_v32, %v218_v33  ;;  %v2140_v32 = vcombine.high %v68_v26, %v76_v27  ;;  %v92_v35 = vld [vmem:[%s3291_s1 + $0x250] sm:$0xff] }
  0x1d   :  { %v234_v41 = vld [vmem:[%s3291_s1 + $0x6c0] sm:$0xff]  ;;  %v2298_v47 = vcombine.high %v227_v42, %v235_v43  ;;  %v243_v50 = vld [vmem:[%s3291_s1 + $0x708] sm:$0xff]  ;;  %v2297_v54 = vcombine.low %v227_v42, %v235_v43  ;;  %v100_v42 = vld [vmem:[%s3291_s1 + $0x290] sm:$0xff] }
  0x1e   :  { %1574 = vmatpush1.bf16.msra.mxu0 %v2183_v60  ;;  %1615 = vmatpush1.bf16.msra.mxu1 %v2185_v61  ;;  %v2296_v46 = vcombine.high %v226_v40, %v234_v41  ;;  %v242_v48 = vld [vmem:[%s3291_s1 + $0x700] sm:$0xff]  ;;  %v251_v51 = vld [vmem:[%s3291_s1 + $0x748] sm:$0xff]  ;;  %v2295_v52 = vcombine.low %v226_v40, %v234_v41  ;;  %v2156_v40 = vcombine.high %v84_v34, %v92_v35  ;;  %v108_v43 = vld [vmem:[%s3291_s1 + $0x2d0] sm:$0xff] }
  0x1f   :  { %1575 = vmatprep.subr.bf16.mxu0 %v2200_v62  ;;  %1616 = vmatprep.subr.bf16.mxu1 %v2202_v63  ;;  %v250_v49 = vld [vmem:[%s3291_s1 + $0x740] sm:$0xff]  ;;  %v2314_v56 = vcombine.high %v243_v50, %v251_v51  ;;  %v259_v60 = vld [vmem:[%s3291_s1 + $0x788] sm:$0xff]  ;;  %v2313_v63 = vcombine.low %v243_v50, %v251_v51  ;;  %v116_v50 = vld [vmem:[%s3291_s1 + $0x310] sm:$0xff] }
  0x20   :  { %v2312_v55 = vcombine.high %v242_v48, %v250_v49  ;;  %v258_v58 = vld [vmem:[%s3291_s1 + $0x780] sm:$0xff]  ;;  %v267_v61 = vld [vmem:[%s3291_s1 + $0x7c8] sm:$0xff]  ;;  %v2311_v62 = vcombine.low %v242_v48, %v250_v49  ;;  %v2172_v48 = vcombine.high %v100_v42, %v108_v43  ;;  %v124_v51 = vld [vmem:[%s3291_s1 + $0x350] sm:$0xff] }
  0x21   :  { %v266_v59 = vld [vmem:[%s3291_s1 + $0x7c0] sm:$0xff]  ;;  %v2330_v1 = vcombine.high %v259_v60, %v267_v61 }
  0x22   :  { %1576 = vmatpush1.bf16.msra.mxu0 %v2199_v4  ;;  %1617 = vmatpush1.bf16.msra.mxu1 %v2201_v5  ;;  %v2328_v0 = vcombine.high %v258_v58, %v266_v59  ;;  %v21_v4 = vld [vmem:[%s3291_s1 + $0x18] sm:$0xff] }
  0x23   :  { %1577 = vmatprep.subr.bf16.mxu0 %v2216_v6  ;;  %1618 = vmatprep.subr.bf16.mxu1 %v2218_v7  ;;  %v29_v5 = vld [vmem:[%s3291_s1 + $0x58] sm:$0xff]  ;;  %v2327_v6 = vcombine.low %v258_v58, %v266_v59  ;;  %v2329_v7 = vcombine.low %v259_v60, %v267_v61  ;;  %v2188_v58 = vcombine.high %v116_v50, %v124_v51  ;;  %v132_v60 = vld [vmem:[%s3291_s1 + $0x390] sm:$0xff] }
  0x24   :  { %v2094_v9 = vcombine.high %v21_v4, %v29_v5  ;;  %v2093_v16 = vcombine.low %v21_v4, %v29_v5  ;;  %v140_v61 = vld [vmem:[%s3291_s1 + $0x3d0] sm:$0xff] }
  0x25   :  { %v148_v4 = vld [vmem:[%s3291_s1 + $0x410] sm:$0xff] }
  0x26   :  { %1578 = vmatpush1.bf16.msra.mxu0 %v2215_v12  ;;  %1619 = vmatpush1.bf16.msra.mxu1 %v2217_v13  ;;  %v2615_v12 = vcombine.low %v2479_v53, %v2479_v53  ;;  %v37_v13 = vld [vmem:[%s3291_s1 + $0x98] sm:$0xff]  ;;  %v52_v53 = vld [vmem:[%s3291_s1 + $0x110] sm:$0xff] }
  0x27   :  { %1579 = vmatprep.subr.bf16.mxu0 %v2232_v14  ;;  %1620 = vmatprep.subr.bf16.mxu1 %v2234_v15  ;;  %v45_v14 = vld [vmem:[%s3291_s1 + $0xd8] sm:$0xff]  ;;  %v2091_v15 = vcombine.low %v20_v2, %v28_v3  ;;  %v2124_v24 = vcombine.high %v52_v53, %v60_v19  ;;  %v2204_v2 = vcombine.high %v132_v60, %v140_v61  ;;  %v156_v5 = vld [vmem:[%s3291_s1 + $0x450] sm:$0xff] }
  0x28   :  { %v2110_v18 = vcombine.high %v37_v13, %v45_v14 }
  0x2a   :  { %1580 = vmatpush1.bf16.msra.mxu0 %v2231_v20  ;;  %1621 = vmatpush1.bf16.msra.mxu1 %v2233_v21  ;;  %v53_v20 = vld [vmem:[%s3291_s1 + $0x118] sm:$0xff] }
  0x2b   :  { %1581 = vmatprep.subr.bf16.mxu0 %v2248_v22  ;;  %1622 = vmatprep.subr.bf16.mxu1 %v2250_v23  ;;  %v61_v21 = vld [vmem:[%s3291_s1 + $0x158] sm:$0xff]  ;;  %v2107_v22 = vcombine.low %v36_v10, %v44_v11  ;;  %v2109_v23 = vcombine.low %v37_v13, %v45_v14  ;;  %v2220_v10 = vcombine.high %v148_v4, %v156_v5  ;;  %v164_v13 = vld [vmem:[%s3291_s1 + $0x490] sm:$0xff] }
  0x2c   :  { %v2126_v25 = vcombine.high %v53_v20, %v61_v21  ;;  %v172_v14 = vld [vmem:[%s3291_s1 + $0x4d0] sm:$0xff] }
  0x2e   :  { %1582 = vmatpush1.bf16.msra.mxu0 %v2247_v28  ;;  %1623 = vmatpush1.bf16.msra.mxu1 %v2249_v29  ;;  %v69_v28 = vld [vmem:[%s3291_s1 + $0x198] sm:$0xff] }
  0x2f   :  { %1583 = vmatprep.subr.bf16.mxu0 %v2264_v30  ;;  %1624 = vmatprep.subr.bf16.mxu1 %v2266_v31  ;;  %v77_v29 = vld [vmem:[%s3291_s1 + $0x1d8] sm:$0xff]  ;;  %v2123_v30 = vcombine.low %v52_v53, %v60_v19  ;;  %v2125_v31 = vcombine.low %v53_v20, %v61_v21  ;;  %v2236_v53 = vcombine.high %v164_v13, %v172_v14  ;;  %v180_v20 = vld [vmem:[%s3291_s1 + $0x510] sm:$0xff] }
  0x30   :  { %v2142_v33 = vcombine.high %v69_v28, %v77_v29  ;;  %v188_v21 = vld [vmem:[%s3291_s1 + $0x550] sm:$0xff] }
  0x32   :  { %1584 = vmatpush1.bf16.msra.mxu0 %v2263_v36  ;;  %1625 = vmatpush1.bf16.msra.mxu1 %v2265_v37  ;;  %v85_v36 = vld [vmem:[%s3291_s1 + $0x218] sm:$0xff] }
  0x33   :  { %1585 = vmatprep.subr.bf16.mxu0 %v2280_v38  ;;  %1626 = vmatprep.subr.bf16.mxu1 %v2282_v39  ;;  %v93_v37 = vld [vmem:[%s3291_s1 + $0x258] sm:$0xff]  ;;  %v2139_v38 = vcombine.low %v68_v26, %v76_v27  ;;  %v2141_v39 = vcombine.low %v69_v28, %v77_v29  ;;  %v2252_v26 = vcombine.high %v180_v20, %v188_v21  ;;  %v196_v28 = vld [vmem:[%s3291_s1 + $0x590] sm:$0xff] }
  0x34   :  { %v2158_v41 = vcombine.high %v85_v36, %v93_v37  ;;  %v204_v29 = vld [vmem:[%s3291_s1 + $0x5d0] sm:$0xff] }
  0x36   :  { %1586 = vmatpush1.bf16.msra.mxu0 %v2279_v44  ;;  %1627 = vmatpush1.bf16.msra.mxu1 %v2281_v45  ;;  %v101_v44 = vld [vmem:[%s3291_s1 + $0x298] sm:$0xff] }
  0x37   :  { %1587 = vmatprep.subr.bf16.mxu0 %v2296_v46  ;;  %1628 = vmatprep.subr.bf16.mxu1 %v2298_v47  ;;  %v109_v45 = vld [vmem:[%s3291_s1 + $0x2d8] sm:$0xff]  ;;  %v2155_v46 = vcombine.low %v84_v34, %v92_v35  ;;  %v2157_v47 = vcombine.low %v85_v36, %v93_v37  ;;  %v2268_v34 = vcombine.high %v196_v28, %v204_v29  ;;  %v212_v36 = vld [vmem:[%s3291_s1 + $0x610] sm:$0xff] }
  0x38   :  { %v2174_v49 = vcombine.high %v101_v44, %v109_v45  ;;  %v220_v37 = vld [vmem:[%s3291_s1 + $0x650] sm:$0xff] }
  0x3a   :  { %1588 = vmatpush1.bf16.msra.mxu0 %v2295_v52  ;;  %1629 = vmatpush1.bf16.msra.mxu1 %v2297_v54  ;;  %v117_v52 = vld [vmem:[%s3291_s1 + $0x318] sm:$0xff] }
  0x3b   :  { %1589 = vmatprep.subr.bf16.mxu0 %v2312_v55  ;;  %1630 = vmatprep.subr.bf16.mxu1 %v2314_v56  ;;  %v125_v54 = vld [vmem:[%s3291_s1 + $0x358] sm:$0xff]  ;;  %v2171_v55 = vcombine.low %v100_v42, %v108_v43  ;;  %v2173_v56 = vcombine.low %v101_v44, %v109_v45  ;;  %v2284_v42 = vcombine.high %v212_v36, %v220_v37  ;;  %v228_v44 = vld [vmem:[%s3291_s1 + $0x690] sm:$0xff] }
  0x3c   :  { %v2190_v59 = vcombine.high %v117_v52, %v125_v54  ;;  %v236_v45 = vld [vmem:[%s3291_s1 + $0x6d0] sm:$0xff] }
  0x3e   :  { %1590 = vmatpush1.bf16.msra.mxu0 %v2311_v62  ;;  %1631 = vmatpush1.bf16.msra.mxu1 %v2313_v63  ;;  %v133_v62 = vld [vmem:[%s3291_s1 + $0x398] sm:$0xff] }
  0x3f   :  { %1591 = vmatprep.subr.bf16.mxu0 %v2328_v0  ;;  %1632 = vmatprep.subr.bf16.mxu1 %v2330_v1  ;;  %v141_v63 = vld [vmem:[%s3291_s1 + $0x3d8] sm:$0xff]  ;;  %v2187_v0 = vcombine.low %v116_v50, %v124_v51  ;;  %v2189_v1 = vcombine.low %v117_v52, %v125_v54  ;;  %v2300_v50 = vcombine.high %v228_v44, %v236_v45  ;;  %v244_v52 = vld [vmem:[%s3291_s1 + $0x710] sm:$0xff] }
  0x40   :  { %v2206_v3 = vcombine.high %v133_v62, %v141_v63  ;;  %v252_v54 = vld [vmem:[%s3291_s1 + $0x750] sm:$0xff] }
  0x42   :  { %1592 = vmatpush1.bf16.msra.mxu0 %v2327_v6  ;;  %1633 = vmatpush1.bf16.msra.mxu1 %v2329_v7  ;;  %v149_v6 = vld [vmem:[%s3291_s1 + $0x418] sm:$0xff] }
  0x43   :  { %1643 = vmatprep.subr.bf16.mxu0 %v2092_v8  ;;  %1684 = vmatprep.subr.bf16.mxu1 %v2094_v9  ;;  %v157_v7 = vld [vmem:[%s3291_s1 + $0x458] sm:$0xff]  ;;  %v2203_v8 = vcombine.low %v132_v60, %v140_v61  ;;  %v2205_v9 = vcombine.low %v133_v62, %v141_v63  ;;  %v2316_v60 = vcombine.high %v244_v52, %v252_v54  ;;  %v260_v62 = vld [vmem:[%s3291_s1 + $0x790] sm:$0xff] }
  0x44   :  { %v2222_v11 = vcombine.high %v149_v6, %v157_v7  ;;  %v268_v63 = vld [vmem:[%s3291_s1 + $0x7d0] sm:$0xff] }
  0x45   :  { %1594 = vmatmul.mubr.bf16.vlgmr.msra.gmra.mrb[0].mxu0 %v2615_v12  ;;  %1635 = vmatmul.mubr.bf16.vlgmr.msra.gmra.mrb[0].mxu1 %v2615_v12 }
  0x46   :  { %1644 = vmatpush1.bf16.msra.mxu0 %v2091_v15  ;;  %1685 = vmatpush1.bf16.msra.mxu1 %v2093_v16  ;;  %v165_v15 = vld [vmem:[%s3291_s1 + $0x498] sm:$0xff] }
  0x47   :  { %1645 = vmatprep.subr.bf16.mxu0 %v2108_v17  ;;  %1686 = vmatprep.subr.bf16.mxu1 %v2110_v18  ;;  %v173_v16 = vld [vmem:[%s3291_s1 + $0x4d8] sm:$0xff]  ;;  %v2219_v17 = vcombine.low %v148_v4, %v156_v5  ;;  %v2221_v18 = vcombine.low %v149_v6, %v157_v7  ;;  %v2332_v4 = vcombine.high %v260_v62, %v268_v63  ;;  %v22_v6 = vld [vmem:[%s3291_s1 + $0x20] sm:$0xff] }
  0x48   :  { %1675 = vmatprep.mubr.bf16.mxu0 %v2489_v57  ;;  %1716 = vmatprep.mubr.bf16.mxu1 %v2489_v57  ;;  %v2238_v19 = vcombine.high %v165_v15, %v173_v16  ;;  %v30_v7 = vld [vmem:[%s3291_s1 + $0x60] sm:$0xff] }
  0x4a   :  { %1646 = vmatpush1.bf16.msra.mxu0 %v2107_v22  ;;  %1687 = vmatpush1.bf16.msra.mxu1 %v2109_v23  ;;  %v181_v22 = vld [vmem:[%s3291_s1 + $0x518] sm:$0xff] }
  0x4b   :  { %1647 = vmatprep.subr.bf16.mxu0 %v2124_v24  ;;  %1688 = vmatprep.subr.bf16.mxu1 %v2126_v25  ;;  %v189_v23 = vld [vmem:[%s3291_s1 + $0x558] sm:$0xff]  ;;  %v2235_v24 = vcombine.low %v164_v13, %v172_v14  ;;  %v2237_v25 = vcombine.low %v165_v15, %v173_v16  ;;  %v2096_v13 = vcombine.high %v22_v6, %v30_v7  ;;  %v38_v15 = vld [vmem:[%s3291_s1 + $0xa0] sm:$0xff] }
  0x4c   :  { %v2254_v27 = vcombine.high %v181_v22, %v189_v23  ;;  %v46_v16 = vld [vmem:[%s3291_s1 + $0xe0] sm:$0xff] }
  0x4e   :  { %1648 = vmatpush1.bf16.msra.mxu0 %v2123_v30  ;;  %1689 = vmatpush1.bf16.msra.mxu1 %v2125_v31  ;;  %v197_v30 = vld [vmem:[%s3291_s1 + $0x598] sm:$0xff] }
  0x4f   :  { %1649 = vmatprep.subr.bf16.mxu0 %v2140_v32  ;;  %1690 = vmatprep.subr.bf16.mxu1 %v2142_v33  ;;  %v205_v31 = vld [vmem:[%s3291_s1 + $0x5d8] sm:$0xff]  ;;  %v2251_v32 = vcombine.low %v180_v20, %v188_v21  ;;  %v2253_v33 = vcombine.low %v181_v22, %v189_v23  ;;  %v2112_v20 = vcombine.high %v38_v15, %v46_v16  ;;  %v54_v22 = vld [vmem:[%s3291_s1 + $0x120] sm:$0xff] }
  0x50   :  { %v2270_v35 = vcombine.high %v197_v30, %v205_v31  ;;  %v62_v23 = vld [vmem:[%s3291_s1 + $0x160] sm:$0xff] }
  0x52   :  { %1650 = vmatpush1.bf16.msra.mxu0 %v2139_v38  ;;  %1691 = vmatpush1.bf16.msra.mxu1 %v2141_v39  ;;  %v213_v38 = vld [vmem:[%s3291_s1 + $0x618] sm:$0xff] }
  0x53   :  { %1651 = vmatprep.subr.bf16.mxu0 %v2156_v40  ;;  %1692 = vmatprep.subr.bf16.mxu1 %v2158_v41  ;;  %v221_v39 = vld [vmem:[%s3291_s1 + $0x658] sm:$0xff]  ;;  %v2267_v40 = vcombine.low %v196_v28, %v204_v29  ;;  %v2269_v41 = vcombine.low %v197_v30, %v205_v31  ;;  %v2128_v28 = vcombine.high %v54_v22, %v62_v23  ;;  %v70_v30 = vld [vmem:[%s3291_s1 + $0x1a0] sm:$0xff] }
  0x54   :  { %v2286_v43 = vcombine.high %v213_v38, %v221_v39  ;;  %v78_v31 = vld [vmem:[%s3291_s1 + $0x1e0] sm:$0xff] }
  0x56   :  { %1652 = vmatpush1.bf16.msra.mxu0 %v2155_v46  ;;  %1693 = vmatpush1.bf16.msra.mxu1 %v2157_v47  ;;  %v229_v46 = vld [vmem:[%s3291_s1 + $0x698] sm:$0xff] }
  0x57   :  { %1653 = vmatprep.subr.bf16.mxu0 %v2172_v48  ;;  %1694 = vmatprep.subr.bf16.mxu1 %v2174_v49  ;;  %v237_v47 = vld [vmem:[%s3291_s1 + $0x6d8] sm:$0xff]  ;;  %v2283_v48 = vcombine.low %v212_v36, %v220_v37  ;;  %v2285_v49 = vcombine.low %v213_v38, %v221_v39  ;;  %v2144_v36 = vcombine.high %v70_v30, %v78_v31  ;;  %v86_v38 = vld [vmem:[%s3291_s1 + $0x220] sm:$0xff] }
  0x58   :  { %v2302_v51 = vcombine.high %v229_v46, %v237_v47  ;;  %v94_v39 = vld [vmem:[%s3291_s1 + $0x260] sm:$0xff] }
  0x5a   :  { %1654 = vmatpush1.bf16.msra.mxu0 %v2171_v55  ;;  %1695 = vmatpush1.bf16.msra.mxu1 %v2173_v56  ;;  %v245_v55 = vld [vmem:[%s3291_s1 + $0x718] sm:$0xff] }
  0x5b   :  { %1655 = vmatprep.subr.bf16.mxu0 %v2188_v58  ;;  %1696 = vmatprep.subr.bf16.mxu1 %v2190_v59  ;;  %v253_v56 = vld [vmem:[%s3291_s1 + $0x758] sm:$0xff]  ;;  %v2299_v58 = vcombine.low %v228_v44, %v236_v45  ;;  %v2301_v59 = vcombine.low %v229_v46, %v237_v47  ;;  %v2160_v44 = vcombine.high %v86_v38, %v94_v39  ;;  %v102_v46 = vld [vmem:[%s3291_s1 + $0x2a0] sm:$0xff] }
  0x5c   :  { %v2318_v61 = vcombine.high %v245_v55, %v253_v56  ;;  %v110_v47 = vld [vmem:[%s3291_s1 + $0x2e0] sm:$0xff] }
  0x5e   :  { %1656 = vmatpush1.bf16.msra.mxu0 %v2187_v0  ;;  %1697 = vmatpush1.bf16.msra.mxu1 %v2189_v1  ;;  %v261_v0 = vld [vmem:[%s3291_s1 + $0x798] sm:$0xff] }
  0x5f   :  { %1657 = vmatprep.subr.bf16.mxu0 %v2204_v2  ;;  %1698 = vmatprep.subr.bf16.mxu1 %v2206_v3  ;;  %v269_v1 = vld [vmem:[%s3291_s1 + $0x7d8] sm:$0xff]  ;;  %v2315_v2 = vcombine.low %v244_v52, %v252_v54  ;;  %v2317_v3 = vcombine.low %v245_v55, %v253_v56  ;;  %v2176_v52 = vcombine.high %v102_v46, %v110_v47  ;;  %v118_v55 = vld [vmem:[%s3291_s1 + $0x320] sm:$0xff] }
  0x60   :  { %v2334_v5 = vcombine.high %v261_v0, %v269_v1  ;;  %v126_v56 = vld [vmem:[%s3291_s1 + $0x360] sm:$0xff] }
  0x62   :  { %1658 = vmatpush1.bf16.msra.mxu0 %v2203_v8  ;;  %1699 = vmatpush1.bf16.msra.mxu1 %v2205_v9  ;;  %v23_v8 = vld [vmem:[%s3291_s1 + $0x28] sm:$0xff] }
  0x63   :  { %1659 = vmatprep.subr.bf16.mxu0 %v2220_v10  ;;  %1700 = vmatprep.subr.bf16.mxu1 %v2222_v11  ;;  %v31_v9 = vld [vmem:[%s3291_s1 + $0x68] sm:$0xff]  ;;  %v2331_v10 = vcombine.low %v260_v62, %v268_v63  ;;  %v2333_v11 = vcombine.low %v261_v0, %v269_v1  ;;  %v2192_v62 = vcombine.high %v118_v55, %v126_v56  ;;  %v134_v0 = vld [vmem:[%s3291_s1 + $0x3a0] sm:$0xff] }
  0x64   :  { %v2098_v14 = vcombine.high %v23_v8, %v31_v9  ;;  %v142_v1 = vld [vmem:[%s3291_s1 + $0x3e0] sm:$0xff] }
  0x66   :  { %1660 = vmatpush1.bf16.msra.mxu0 %v2219_v17  ;;  %1701 = vmatpush1.bf16.msra.mxu1 %v2221_v18  ;;  %v39_v17 = vld [vmem:[%s3291_s1 + $0xa8] sm:$0xff] }
  0x67   :  { %1661 = vmatprep.subr.bf16.mxu0 %v2236_v53  ;;  %1702 = vmatprep.subr.bf16.mxu1 %v2238_v19  ;;  %v47_v18 = vld [vmem:[%s3291_s1 + $0xe8] sm:$0xff]  ;;  %v2095_v53 = vcombine.low %v22_v6, %v30_v7  ;;  %v2097_v19 = vcombine.low %v23_v8, %v31_v9  ;;  %v2208_v6 = vcombine.high %v134_v0, %v142_v1  ;;  %v150_v8 = vld [vmem:[%s3291_s1 + $0x420] sm:$0xff] }
  0x68   :  { %v2114_v21 = vcombine.high %v39_v17, %v47_v18  ;;  %v158_v9 = vld [vmem:[%s3291_s1 + $0x460] sm:$0xff] }
  0x6a   :  { %1662 = vmatpush1.bf16.msra.mxu0 %v2235_v24  ;;  %1703 = vmatpush1.bf16.msra.mxu1 %v2237_v25  ;;  %v55_v24 = vld [vmem:[%s3291_s1 + $0x128] sm:$0xff] }
  0x6b   :  { %1663 = vmatprep.subr.bf16.mxu0 %v2252_v26  ;;  %1704 = vmatprep.subr.bf16.mxu1 %v2254_v27  ;;  %v63_v25 = vld [vmem:[%s3291_s1 + $0x168] sm:$0xff]  ;;  %v2111_v26 = vcombine.low %v38_v15, %v46_v16  ;;  %v2113_v27 = vcombine.low %v39_v17, %v47_v18  ;;  %v2224_v15 = vcombine.high %v150_v8, %v158_v9  ;;  %v166_v17 = vld [vmem:[%s3291_s1 + $0x4a0] sm:$0xff] }
  0x6c   :  { %v2130_v29 = vcombine.high %v55_v24, %v63_v25  ;;  %v174_v18 = vld [vmem:[%s3291_s1 + $0x4e0] sm:$0xff] }
  0x6e   :  { %1664 = vmatpush1.bf16.msra.mxu0 %v2251_v32  ;;  %1705 = vmatpush1.bf16.msra.mxu1 %v2253_v33  ;;  %v71_v32 = vld [vmem:[%s3291_s1 + $0x1a8] sm:$0xff] }
  0x6f   :  { %1665 = vmatprep.subr.bf16.mxu0 %v2268_v34  ;;  %1706 = vmatprep.subr.bf16.mxu1 %v2270_v35  ;;  %v79_v33 = vld [vmem:[%s3291_s1 + $0x1e8] sm:$0xff]  ;;  %v2127_v34 = vcombine.low %v54_v22, %v62_v23  ;;  %v2129_v35 = vcombine.low %v55_v24, %v63_v25  ;;  %v2240_v22 = vcombine.high %v166_v17, %v174_v18  ;;  %v182_v24 = vld [vmem:[%s3291_s1 + $0x520] sm:$0xff] }
  0x70   :  { %v2146_v37 = vcombine.high %v71_v32, %v79_v33  ;;  %v190_v25 = vld [vmem:[%s3291_s1 + $0x560] sm:$0xff] }
  0x72   :  { %1666 = vmatpush1.bf16.msra.mxu0 %v2267_v40  ;;  %1707 = vmatpush1.bf16.msra.mxu1 %v2269_v41  ;;  %v87_v40 = vld [vmem:[%s3291_s1 + $0x228] sm:$0xff] }
  0x73   :  { %1667 = vmatprep.subr.bf16.mxu0 %v2284_v42  ;;  %1708 = vmatprep.subr.bf16.mxu1 %v2286_v43  ;;  %v95_v41 = vld [vmem:[%s3291_s1 + $0x268] sm:$0xff]  ;;  %v2143_v42 = vcombine.low %v70_v30, %v78_v31  ;;  %v2145_v43 = vcombine.low %v71_v32, %v79_v33  ;;  %v2256_v30 = vcombine.high %v182_v24, %v190_v25  ;;  %v198_v32 = vld [vmem:[%s3291_s1 + $0x5a0] sm:$0xff] }
  0x74   :  { %v2162_v45 = vcombine.high %v87_v40, %v95_v41  ;;  %v206_v33 = vld [vmem:[%s3291_s1 + $0x5e0] sm:$0xff] }
  0x76   :  { %1668 = vmatpush1.bf16.msra.mxu0 %v2283_v48  ;;  %1709 = vmatpush1.bf16.msra.mxu1 %v2285_v49  ;;  %v103_v48 = vld [vmem:[%s3291_s1 + $0x2a8] sm:$0xff] }
  0x77   :  { %1669 = vmatprep.subr.bf16.mxu0 %v2300_v50  ;;  %1710 = vmatprep.subr.bf16.mxu1 %v2302_v51  ;;  %v111_v49 = vld [vmem:[%s3291_s1 + $0x2e8] sm:$0xff]  ;;  %v2159_v50 = vcombine.low %v86_v38, %v94_v39  ;;  %v2161_v51 = vcombine.low %v87_v40, %v95_v41  ;;  %v2272_v38 = vcombine.high %v198_v32, %v206_v33  ;;  %v214_v40 = vld [vmem:[%s3291_s1 + $0x620] sm:$0xff] }
  0x78   :  { %v2178_v54 = vcombine.high %v103_v48, %v111_v49  ;;  %v222_v41 = vld [vmem:[%s3291_s1 + $0x660] sm:$0xff] }
  0x7a   :  { %1670 = vmatpush1.bf16.msra.mxu0 %v2299_v58  ;;  %1711 = vmatpush1.bf16.msra.mxu1 %v2301_v59  ;;  %v119_v58 = vld [vmem:[%s3291_s1 + $0x328] sm:$0xff] }
  0x7b   :  { %1671 = vmatprep.subr.bf16.mxu0 %v2316_v60  ;;  %1712 = vmatprep.subr.bf16.mxu1 %v2318_v61  ;;  %v127_v59 = vld [vmem:[%s3291_s1 + $0x368] sm:$0xff]  ;;  %v2175_v60 = vcombine.low %v102_v46, %v110_v47  ;;  %v2177_v61 = vcombine.low %v103_v48, %v111_v49  ;;  %v2288_v46 = vcombine.high %v214_v40, %v222_v41  ;;  %v230_v48 = vld [vmem:[%s3291_s1 + $0x6a0] sm:$0xff] }
  0x7c   :  { %v2194_v63 = vcombine.high %v119_v58, %v127_v59  ;;  %v238_v49 = vld [vmem:[%s3291_s1 + $0x6e0] sm:$0xff] }
  0x7e   :  { %1672 = vmatpush1.bf16.msra.mxu0 %v2315_v2  ;;  %1713 = vmatpush1.bf16.msra.mxu1 %v2317_v3  ;;  %v135_v2 = vld [vmem:[%s3291_s1 + $0x3a8] sm:$0xff] }
  0x7f   :  { %1673 = vmatprep.subr.bf16.mxu0 %v2332_v4  ;;  %1714 = vmatprep.subr.bf16.mxu1 %v2334_v5  ;;  %v143_v3 = vld [vmem:[%s3291_s1 + $0x3e8] sm:$0xff]  ;;  %v2191_v4 = vcombine.low %v118_v55, %v126_v56  ;;  %v2193_v5 = vcombine.low %v119_v58, %v127_v59  ;;  %v2304_v55 = vcombine.high %v230_v48, %v238_v49  ;;  %v246_v58 = vld [vmem:[%s3291_s1 + $0x720] sm:$0xff] }
  0x80   :  { %v2210_v7 = vcombine.high %v135_v2, %v143_v3  ;;  %v254_v59 = vld [vmem:[%s3291_s1 + $0x760] sm:$0xff] }
  0x82   :  { %1674 = vmatpush1.bf16.msra.mxu0 %v2331_v10  ;;  %1715 = vmatpush1.bf16.msra.mxu1 %v2333_v11  ;;  %v151_v10 = vld [vmem:[%s3291_s1 + $0x428] sm:$0xff] }
  0x83   :  { %1725 = vmatprep.subr.bf16.mxu0 %v2096_v13  ;;  %1766 = vmatprep.subr.bf16.mxu1 %v2098_v14  ;;  %v159_v11 = vld [vmem:[%s3291_s1 + $0x468] sm:$0xff]  ;;  %v2207_v13 = vcombine.low %v134_v0, %v142_v1  ;;  %v2209_v14 = vcombine.low %v135_v2, %v143_v3  ;;  %v2320_v0 = vcombine.high %v246_v58, %v254_v59  ;;  %v262_v2 = vld [vmem:[%s3291_s1 + $0x7a0] sm:$0xff] }
  0x84   :  { %v2226_v16 = vcombine.high %v151_v10, %v159_v11  ;;  %v270_v3 = vld [vmem:[%s3291_s1 + $0x7e0] sm:$0xff] }
  0x85   :  { %1676 = vmatmul.mubr.bf16.vlgmr.msra.gmra.mrb[4].mxu0 %v2615_v12  ;;  %1717 = vmatmul.mubr.bf16.vlgmr.msra.gmra.mrb[4].mxu1 %v2615_v12 }
  0x86   :  { %1726 = vmatpush1.bf16.msra.mxu0 %v2095_v53  ;;  %1767 = vmatpush1.bf16.msra.mxu1 %v2097_v19  ;;  %v167_v53 = vld [vmem:[%s3291_s1 + $0x4a8] sm:$0xff] }
  0x87   :  { %1727 = vmatprep.subr.bf16.mxu0 %v2112_v20  ;;  %1768 = vmatprep.subr.bf16.mxu1 %v2114_v21  ;;  %v175_v19 = vld [vmem:[%s3291_s1 + $0x4e8] sm:$0xff]  ;;  %v2223_v20 = vcombine.low %v150_v8, %v158_v9  ;;  %v2225_v21 = vcombine.low %v151_v10, %v159_v11  ;;  %v2336_v8 = vcombine.high %v262_v2, %v270_v3  ;;  %v24_v10 = vld [vmem:[%s3291_s1 + $0x30] sm:$0xff] }
  0x88   :  { %1757 = vmatprep.mubr.bf16.mxu0 %v2489_v57  ;;  %1798 = vmatprep.mubr.bf16.mxu1 %v2489_v57  ;;  %v2242_v23 = vcombine.high %v167_v53, %v175_v19  ;;  %v32_v11 = vld [vmem:[%s3291_s1 + $0x70] sm:$0xff] }
  0x8a   :  { %1728 = vmatpush1.bf16.msra.mxu0 %v2111_v26  ;;  %1769 = vmatpush1.bf16.msra.mxu1 %v2113_v27  ;;  %v183_v26 = vld [vmem:[%s3291_s1 + $0x528] sm:$0xff] }
  0x8b   :  { %1729 = vmatprep.subr.bf16.mxu0 %v2128_v28  ;;  %1770 = vmatprep.subr.bf16.mxu1 %v2130_v29  ;;  %v191_v27 = vld [vmem:[%s3291_s1 + $0x568] sm:$0xff]  ;;  %v2239_v28 = vcombine.low %v166_v17, %v174_v18  ;;  %v2241_v29 = vcombine.low %v167_v53, %v175_v19  ;;  %v2100_v17 = vcombine.high %v24_v10, %v32_v11  ;;  %v40_v53 = vld [vmem:[%s3291_s1 + $0xb0] sm:$0xff] }
  0x8c   :  { %v2258_v31 = vcombine.high %v183_v26, %v191_v27  ;;  %v48_v19 = vld [vmem:[%s3291_s1 + $0xf0] sm:$0xff] }
  0x8e   :  { %1730 = vmatpush1.bf16.msra.mxu0 %v2127_v34  ;;  %1771 = vmatpush1.bf16.msra.mxu1 %v2129_v35  ;;  %v199_v34 = vld [vmem:[%s3291_s1 + $0x5a8] sm:$0xff] }
  0x8f   :  { %1731 = vmatprep.subr.bf16.mxu0 %v2144_v36  ;;  %1772 = vmatprep.subr.bf16.mxu1 %v2146_v37  ;;  %v207_v35 = vld [vmem:[%s3291_s1 + $0x5e8] sm:$0xff]  ;;  %v2255_v36 = vcombine.low %v182_v24, %v190_v25  ;;  %v2257_v37 = vcombine.low %v183_v26, %v191_v27  ;;  %v2116_v24 = vcombine.high %v40_v53, %v48_v19  ;;  %v56_v26 = vld [vmem:[%s3291_s1 + $0x130] sm:$0xff] }
  0x90   :  { %v2274_v39 = vcombine.high %v199_v34, %v207_v35  ;;  %v64_v27 = vld [vmem:[%s3291_s1 + $0x170] sm:$0xff] }
  0x92   :  { %1732 = vmatpush1.bf16.msra.mxu0 %v2143_v42  ;;  %1773 = vmatpush1.bf16.msra.mxu1 %v2145_v43  ;;  %v215_v42 = vld [vmem:[%s3291_s1 + $0x628] sm:$0xff] }
  0x93   :  { %1733 = vmatprep.subr.bf16.mxu0 %v2160_v44  ;;  %1774 = vmatprep.subr.bf16.mxu1 %v2162_v45  ;;  %v223_v43 = vld [vmem:[%s3291_s1 + $0x668] sm:$0xff]  ;;  %v2271_v44 = vcombine.low %v198_v32, %v206_v33  ;;  %v2273_v45 = vcombine.low %v199_v34, %v207_v35  ;;  %v2132_v32 = vcombine.high %v56_v26, %v64_v27  ;;  %v72_v34 = vld [vmem:[%s3291_s1 + $0x1b0] sm:$0xff] }
  0x94   :  { %v2290_v47 = vcombine.high %v215_v42, %v223_v43  ;;  %v80_v35 = vld [vmem:[%s3291_s1 + $0x1f0] sm:$0xff] }
  0x96   :  { %1734 = vmatpush1.bf16.msra.mxu0 %v2159_v50  ;;  %1775 = vmatpush1.bf16.msra.mxu1 %v2161_v51  ;;  %v231_v50 = vld [vmem:[%s3291_s1 + $0x6a8] sm:$0xff] }
  0x97   :  { %1735 = vmatprep.subr.bf16.mxu0 %v2176_v52  ;;  %1776 = vmatprep.subr.bf16.mxu1 %v2178_v54  ;;  %v239_v51 = vld [vmem:[%s3291_s1 + $0x6e8] sm:$0xff]  ;;  %v2287_v52 = vcombine.low %v214_v40, %v222_v41  ;;  %v2289_v54 = vcombine.low %v215_v42, %v223_v43  ;;  %v2148_v40 = vcombine.high %v72_v34, %v80_v35  ;;  %v88_v42 = vld [vmem:[%s3291_s1 + $0x230] sm:$0xff] }
  0x98   :  { %v2306_v56 = vcombine.high %v231_v50, %v239_v51  ;;  %v96_v43 = vld [vmem:[%s3291_s1 + $0x270] sm:$0xff] }
  0x9a   :  { %1736 = vmatpush1.bf16.msra.mxu0 %v2175_v60  ;;  %1777 = vmatpush1.bf16.msra.mxu1 %v2177_v61  ;;  %v247_v60 = vld [vmem:[%s3291_s1 + $0x728] sm:$0xff] }
  0x9b   :  { %1737 = vmatprep.subr.bf16.mxu0 %v2192_v62  ;;  %1778 = vmatprep.subr.bf16.mxu1 %v2194_v63  ;;  %v255_v61 = vld [vmem:[%s3291_s1 + $0x768] sm:$0xff]  ;;  %v2303_v62 = vcombine.low %v230_v48, %v238_v49  ;;  %v2305_v63 = vcombine.low %v231_v50, %v239_v51  ;;  %v104_v49 = vld [vmem:[%s3291_s1 + $0x2b0] sm:$0xff]  ;;  %v105_v51 = vld [vmem:[%s3291_s1 + $0x2b8] sm:$0xff] }
  0x9c   :  { %v2322_v1 = vcombine.high %v247_v60, %v255_v61  ;;  %v112_v50 = vld [vmem:[%s3291_s1 + $0x2f0] sm:$0xff] }
  0x9e   :  { %1738 = vmatpush1.bf16.msra.mxu0 %v2191_v4  ;;  %1779 = vmatpush1.bf16.msra.mxu1 %v2193_v5  ;;  %v263_v4 = vld [vmem:[%s3291_s1 + $0x7a8] sm:$0xff] }
  0x9f   :  { %1739 = vmatprep.subr.bf16.mxu0 %v2208_v6  ;;  %1780 = vmatprep.subr.bf16.mxu1 %v2210_v7  ;;  %v271_v5 = vld [vmem:[%s3291_s1 + $0x7e8] sm:$0xff]  ;;  %v2319_v6 = vcombine.low %v246_v58, %v254_v59  ;;  %v2321_v7 = vcombine.low %v247_v60, %v255_v61  ;;  %v120_v59 = vld [vmem:[%s3291_s1 + $0x330] sm:$0xff]  ;;  %v121_v61 = vld [vmem:[%s3291_s1 + $0x338] sm:$0xff] }
  0xa0   :  { %v2338_v9 = vcombine.high %v263_v4, %v271_v5  ;;  %v128_v60 = vld [vmem:[%s3291_s1 + $0x370] sm:$0xff] }
  0xa2   :  { %1740 = vmatpush1.bf16.msra.mxu0 %v2207_v13  ;;  %1781 = vmatpush1.bf16.msra.mxu1 %v2209_v14  ;;  %v25_v13 = vld [vmem:[%s3291_s1 + $0x38] sm:$0xff] }
  0xa3   :  { %1741 = vmatprep.subr.bf16.mxu0 %v2224_v15  ;;  %1782 = vmatprep.subr.bf16.mxu1 %v2226_v16  ;;  %v33_v14 = vld [vmem:[%s3291_s1 + $0x78] sm:$0xff]  ;;  %v2335_v15 = vcombine.low %v262_v2, %v270_v3  ;;  %v2337_v16 = vcombine.low %v263_v4, %v271_v5  ;;  %v136_v3 = vld [vmem:[%s3291_s1 + $0x3b0] sm:$0xff] }
  0xa4   :  { %v2102_v18 = vcombine.high %v25_v13, %v33_v14  ;;  %v144_v4 = vld [vmem:[%s3291_s1 + $0x3f0] sm:$0xff]  ;;  %v137_v5 = vld [vmem:[%s3291_s1 + $0x3b8] sm:$0xff] }
  0xa6   :  { %1742 = vmatpush1.bf16.msra.mxu0 %v2223_v20  ;;  %1783 = vmatpush1.bf16.msra.mxu1 %v2225_v21  ;;  %v41_v20 = vld [vmem:[%s3291_s1 + $0xb8] sm:$0xff] }
  0xa7   :  { %1743 = vmatprep.subr.bf16.mxu0 %v2240_v22  ;;  %1784 = vmatprep.subr.bf16.mxu1 %v2242_v23  ;;  %v49_v21 = vld [vmem:[%s3291_s1 + $0xf8] sm:$0xff]  ;;  %v2099_v22 = vcombine.low %v24_v10, %v32_v11  ;;  %v2101_v23 = vcombine.low %v25_v13, %v33_v14  ;;  %v152_v11 = vld [vmem:[%s3291_s1 + $0x430] sm:$0xff] }
  0xa8   :  { %v2118_v25 = vcombine.high %v41_v20, %v49_v21  ;;  %v160_v13 = vld [vmem:[%s3291_s1 + $0x470] sm:$0xff]  ;;  %v153_v14 = vld [vmem:[%s3291_s1 + $0x438] sm:$0xff] }
  0xaa   :  { %1744 = vmatpush1.bf16.msra.mxu0 %v2239_v28  ;;  %1785 = vmatpush1.bf16.msra.mxu1 %v2241_v29  ;;  %v57_v28 = vld [vmem:[%s3291_s1 + $0x138] sm:$0xff] }
  0xab   :  { %1745 = vmatprep.subr.bf16.mxu0 %v2256_v30  ;;  %1786 = vmatprep.subr.bf16.mxu1 %v2258_v31  ;;  %v65_v29 = vld [vmem:[%s3291_s1 + $0x178] sm:$0xff]  ;;  %v2115_v30 = vcombine.low %v40_v53, %v48_v19  ;;  %v2117_v31 = vcombine.low %v41_v20, %v49_v21  ;;  %v168_v19 = vld [vmem:[%s3291_s1 + $0x4b0] sm:$0xff] }
  0xac   :  { %v2134_v33 = vcombine.high %v57_v28, %v65_v29  ;;  %v176_v20 = vld [vmem:[%s3291_s1 + $0x4f0] sm:$0xff]  ;;  %v169_v21 = vld [vmem:[%s3291_s1 + $0x4b8] sm:$0xff] }
  0xae   :  { %1746 = vmatpush1.bf16.msra.mxu0 %v2255_v36  ;;  %1787 = vmatpush1.bf16.msra.mxu1 %v2257_v37  ;;  %v73_v36 = vld [vmem:[%s3291_s1 + $0x1b8] sm:$0xff] }
  0xaf   :  { %1747 = vmatprep.subr.bf16.mxu0 %v2272_v38  ;;  %1788 = vmatprep.subr.bf16.mxu1 %v2274_v39  ;;  %v81_v37 = vld [vmem:[%s3291_s1 + $0x1f8] sm:$0xff]  ;;  %v2131_v38 = vcombine.low %v56_v26, %v64_v27  ;;  %v2133_v39 = vcombine.low %v57_v28, %v65_v29  ;;  %v184_v27 = vld [vmem:[%s3291_s1 + $0x530] sm:$0xff] }
  0xb0   :  { %v2150_v41 = vcombine.high %v73_v36, %v81_v37  ;;  %v192_v28 = vld [vmem:[%s3291_s1 + $0x570] sm:$0xff]  ;;  %v185_v29 = vld [vmem:[%s3291_s1 + $0x538] sm:$0xff] }
  0xb2   :  { %1748 = vmatpush1.bf16.msra.mxu0 %v2271_v44  ;;  %1789 = vmatpush1.bf16.msra.mxu1 %v2273_v45  ;;  %v97_v44 = vld [vmem:[%s3291_s1 + $0x278] sm:$0xff]  ;;  %v2147_v45 = vcombine.low %v72_v34, %v80_v35  ;;  %v200_v35 = vld [vmem:[%s3291_s1 + $0x5b0] sm:$0xff] }
  0xb3   :  { %1749 = vmatprep.subr.bf16.mxu0 %v2288_v46  ;;  %1790 = vmatprep.subr.bf16.mxu1 %v2290_v47  ;;  %v2149_v46 = vcombine.low %v73_v36, %v81_v37  ;;  %v2164_v47 = vcombine.high %v88_v42, %v96_v43  ;;  %v208_v36 = vld [vmem:[%s3291_s1 + $0x5f0] sm:$0xff]  ;;  %v201_v37 = vld [vmem:[%s3291_s1 + $0x5b8] sm:$0xff] }
  0xb6   :  { %1750 = vmatpush1.bf16.msra.mxu0 %v2287_v52  ;;  %1791 = vmatpush1.bf16.msra.mxu1 %v2289_v54  ;;  %v113_v52 = vld [vmem:[%s3291_s1 + $0x2f8] sm:$0xff]  ;;  %v2163_v54 = vcombine.low %v88_v42, %v96_v43  ;;  %v216_v43 = vld [vmem:[%s3291_s1 + $0x630] sm:$0xff] }
  0xb7   :  { %1751 = vmatprep.subr.bf16.mxu0 %v2304_v55  ;;  %1792 = vmatprep.subr.bf16.mxu1 %v2306_v56  ;;  %v2180_v56 = vcombine.high %v104_v49, %v112_v50  ;;  %v2182_v58 = vcombine.high %v105_v51, %v113_v52 }
  0xba   :  { %1752 = vmatpush1.bf16.msra.mxu0 %v2303_v62  ;;  %1793 = vmatpush1.bf16.msra.mxu1 %v2305_v63  ;;  %v129_v62 = vld [vmem:[%s3291_s1 + $0x378] sm:$0xff]  ;;  %v2179_v63 = vcombine.low %v104_v49, %v112_v50  ;;  %v232_v50 = vld [vmem:[%s3291_s1 + $0x6b0] sm:$0xff] }
  0xbb   :  { %1753 = vmatprep.subr.bf16.mxu0 %v2320_v0  ;;  %1794 = vmatprep.subr.bf16.mxu1 %v2322_v1  ;;  %v2181_v0 = vcombine.low %v105_v51, %v113_v52  ;;  %v2196_v1 = vcombine.high %v120_v59, %v128_v60  ;;  %v2198_v2 = vcombine.high %v121_v61, %v129_v62  ;;  %v240_v51 = vld [vmem:[%s3291_s1 + $0x6f0] sm:$0xff]  ;;  %v233_v52 = vld [vmem:[%s3291_s1 + $0x6b8] sm:$0xff] }
  0xbe   :  { %1754 = vmatpush1.bf16.msra.mxu0 %v2319_v6  ;;  %1795 = vmatpush1.bf16.msra.mxu1 %v2321_v7  ;;  %v145_v6 = vld [vmem:[%s3291_s1 + $0x3f8] sm:$0xff]  ;;  %v2195_v7 = vcombine.low %v120_v59, %v128_v60  ;;  %v248_v60 = vld [vmem:[%s3291_s1 + $0x730] sm:$0xff] }
  0xbf   :  { %1755 = vmatprep.subr.bf16.mxu0 %v2336_v8  ;;  %1796 = vmatprep.subr.bf16.mxu1 %v2338_v9  ;;  %v2197_v8 = vcombine.low %v121_v61, %v129_v62  ;;  %v2212_v9 = vcombine.high %v136_v3, %v144_v4  ;;  %v2214_v10 = vcombine.high %v137_v5, %v145_v6  ;;  %v256_v61 = vld [vmem:[%s3291_s1 + $0x770] sm:$0xff]  ;;  %v249_v62 = vld [vmem:[%s3291_s1 + $0x738] sm:$0xff] }
  0xc2   :  { %1756 = vmatpush1.bf16.msra.mxu0 %v2335_v15  ;;  %1797 = vmatpush1.bf16.msra.mxu1 %v2337_v16  ;;  %v161_v15 = vld [vmem:[%s3291_s1 + $0x478] sm:$0xff]  ;;  %v2211_v16 = vcombine.low %v136_v3, %v144_v4  ;;  %v264_v4 = vld [vmem:[%s3291_s1 + $0x7b0] sm:$0xff] }
  0xc3   :  { %1807 = vmatprep.subr.bf16.mxu0 %v2100_v17  ;;  %1848 = vmatprep.subr.bf16.mxu1 %v2102_v18  ;;  %v2213_v17 = vcombine.low %v137_v5, %v145_v6  ;;  %v2228_v18 = vcombine.high %v152_v11, %v160_v13  ;;  %v2230_v53 = vcombine.high %v153_v14, %v161_v15  ;;  %v272_v5 = vld [vmem:[%s3291_s1 + $0x7f0] sm:$0xff]  ;;  %v265_v6 = vld [vmem:[%s3291_s1 + $0x7b8] sm:$0xff] }
  0xc5   :  { %1758 = vmatmul.mubr.bf16.vlgmr.msra.gmra.mrb[8].mxu0 %v2615_v12  ;;  %1799 = vmatmul.mubr.bf16.vlgmr.msra.gmra.mrb[8].mxu1 %v2615_v12 }
  0xc6   :  { %1808 = vmatpush1.bf16.msra.mxu0 %v2099_v22  ;;  %1849 = vmatpush1.bf16.msra.mxu1 %v2101_v23  ;;  %v177_v22 = vld [vmem:[%s3291_s1 + $0x4f8] sm:$0xff]  ;;  %v2227_v23 = vcombine.low %v152_v11, %v160_v13  ;;  %v2339_v13 = vcombine.low %v264_v4, %v272_v5 }
  0xc7   :  { %1809 = vmatprep.subr.bf16.mxu0 %v2116_v24  ;;  %1850 = vmatprep.subr.bf16.mxu1 %v2118_v25  ;;  %v2229_v24 = vcombine.low %v153_v14, %v161_v15  ;;  %v2244_v25 = vcombine.high %v168_v19, %v176_v20  ;;  %v2246_v26 = vcombine.high %v169_v21, %v177_v22 }
  0xc8   :  { %1839 = vmatprep.mubr.bf16.mxu0 %v2489_v57  ;;  %1880 = vmatprep.mubr.bf16.mxu1 %v2489_v57  ;;  %v89_v57 = vld [vmem:[%s3291_s1 + $0x238] sm:$0xff] }
  0xc9   :  { %v2166_v48 = vcombine.high %v89_v57, %v97_v44  ;;  %v2165_v55 = vcombine.low %v89_v57, %v97_v44  ;;  %v224_v57 = vld [vmem:[%s3291_s1 + $0x670] sm:$0xff]  ;;  %v217_v44 = vld [vmem:[%s3291_s1 + $0x638] sm:$0xff] }
  0xca   :  { %1810 = vmatpush1.bf16.msra.mxu0 %v2115_v30  ;;  %1851 = vmatpush1.bf16.msra.mxu1 %v2117_v31  ;;  %v193_v30 = vld [vmem:[%s3291_s1 + $0x578] sm:$0xff]  ;;  %v2243_v31 = vcombine.low %v168_v19, %v176_v20 }
  0xcb   :  { %1811 = vmatprep.subr.bf16.mxu0 %v2132_v32  ;;  %1852 = vmatprep.subr.bf16.mxu1 %v2134_v33  ;;  %v2245_v32 = vcombine.low %v169_v21, %v177_v22  ;;  %v2260_v33 = vcombine.high %v184_v27, %v192_v28  ;;  %v2262_v34 = vcombine.high %v185_v29, %v193_v30 }
  0xce   :  { %1812 = vmatpush1.bf16.msra.mxu0 %v2131_v38  ;;  %1853 = vmatpush1.bf16.msra.mxu1 %v2133_v39  ;;  %v209_v38 = vld [vmem:[%s3291_s1 + $0x5f8] sm:$0xff]  ;;  %v2259_v39 = vcombine.low %v184_v27, %v192_v28 }
  0xcf   :  { %1813 = vmatprep.subr.bf16.mxu0 %v2148_v40  ;;  %1854 = vmatprep.subr.bf16.mxu1 %v2150_v41  ;;  %v2261_v40 = vcombine.low %v185_v29, %v193_v30  ;;  %v2276_v41 = vcombine.high %v200_v35, %v208_v36  ;;  %v2278_v42 = vcombine.high %v201_v37, %v209_v38 }
  0xd2   :  { %1814 = vmatpush1.bf16.msra.mxu0 %v2147_v45  ;;  %1855 = vmatpush1.bf16.msra.mxu1 %v2149_v46  ;;  %v225_v45 = vld [vmem:[%s3291_s1 + $0x678] sm:$0xff]  ;;  %v2275_v46 = vcombine.low %v200_v35, %v208_v36 }
  0xd3   :  { %1815 = vmatprep.subr.bf16.mxu0 %v2164_v47  ;;  %1856 = vmatprep.subr.bf16.mxu1 %v2166_v48  ;;  %v2277_v47 = vcombine.low %v201_v37, %v209_v38  ;;  %v2292_v48 = vcombine.high %v216_v43, %v224_v57  ;;  %v2294_v49 = vcombine.high %v217_v44, %v225_v45 }
  0xd6   :  { %1816 = vmatpush1.bf16.msra.mxu0 %v2163_v54  ;;  %1857 = vmatpush1.bf16.msra.mxu1 %v2165_v55  ;;  %v241_v54 = vld [vmem:[%s3291_s1 + $0x6f8] sm:$0xff]  ;;  %v2291_v55 = vcombine.low %v216_v43, %v224_v57 }
  0xd7   :  { %1817 = vmatprep.subr.bf16.mxu0 %v2180_v56  ;;  %1858 = vmatprep.subr.bf16.mxu1 %v2182_v58  ;;  %v2293_v56 = vcombine.low %v217_v44, %v225_v45  ;;  %v2308_v58 = vcombine.high %v232_v50, %v240_v51  ;;  %v2310_v59 = vcombine.high %v233_v52, %v241_v54 }
  0xda   :  { %1818 = vmatpush1.bf16.msra.mxu0 %v2179_v63  ;;  %1859 = vmatpush1.bf16.msra.mxu1 %v2181_v0  ;;  %v257_v63 = vld [vmem:[%s3291_s1 + $0x778] sm:$0xff]  ;;  %v2307_v0 = vcombine.low %v232_v50, %v240_v51 }
  0xdb   :  { %1819 = vmatprep.subr.bf16.mxu0 %v2196_v1  ;;  %1860 = vmatprep.subr.bf16.mxu1 %v2198_v2  ;;  %v2309_v1 = vcombine.low %v233_v52, %v241_v54  ;;  %v2324_v2 = vcombine.high %v248_v60, %v256_v61  ;;  %v2326_v3 = vcombine.high %v249_v62, %v257_v63 }
  0xde   :  { %1820 = vmatpush1.bf16.msra.mxu0 %v2195_v7  ;;  %1861 = vmatpush1.bf16.msra.mxu1 %v2197_v8  ;;  %v273_v7 = vld [vmem:[%s3291_s1 + $0x7f8] sm:$0xff]  ;;  %v2323_v8 = vcombine.low %v248_v60, %v256_v61 }
  0xdf   :  { %1821 = vmatprep.subr.bf16.mxu0 %v2212_v9  ;;  %1862 = vmatprep.subr.bf16.mxu1 %v2214_v10  ;;  %v2325_v9 = vcombine.low %v249_v62, %v257_v63  ;;  %v2340_v10 = vcombine.high %v264_v4, %v272_v5  ;;  %v2342_v11 = vcombine.high %v265_v6, %v273_v7 }
  0xe0   :  { %v2341_v14 = vcombine.low %v265_v6, %v273_v7 }
  0xe2   :  { %1822 = vmatpush1.bf16.msra.mxu0 %v2211_v16  ;;  %1863 = vmatpush1.bf16.msra.mxu1 %v2213_v17 }
  0xe3   :  { %1823 = vmatprep.subr.bf16.mxu0 %v2228_v18  ;;  %1864 = vmatprep.subr.bf16.mxu1 %v2230_v53 }
  0xe6   :  { %1824 = vmatpush1.bf16.msra.mxu0 %v2227_v23  ;;  %1865 = vmatpush1.bf16.msra.mxu1 %v2229_v24 }
  0xe7   :  { %1825 = vmatprep.subr.bf16.mxu0 %v2244_v25  ;;  %1866 = vmatprep.subr.bf16.mxu1 %v2246_v26 }
  0xea   :  { %1826 = vmatpush1.bf16.msra.mxu0 %v2243_v31  ;;  %1867 = vmatpush1.bf16.msra.mxu1 %v2245_v32 }
  0xeb   :  { %1827 = vmatprep.subr.bf16.mxu0 %v2260_v33  ;;  %1868 = vmatprep.subr.bf16.mxu1 %v2262_v34 }
  0xee   :  { %1828 = vmatpush1.bf16.msra.mxu0 %v2259_v39  ;;  %1869 = vmatpush1.bf16.msra.mxu1 %v2261_v40 }
  0xef   :  { %1829 = vmatprep.subr.bf16.mxu0 %v2276_v41  ;;  %1870 = vmatprep.subr.bf16.mxu1 %v2278_v42 }
  0xf2   :  { %1830 = vmatpush1.bf16.msra.mxu0 %v2275_v46  ;;  %1871 = vmatpush1.bf16.msra.mxu1 %v2277_v47 }
  0xf3   :  { %1831 = vmatprep.subr.bf16.mxu0 %v2292_v48  ;;  %1872 = vmatprep.subr.bf16.mxu1 %v2294_v49 }
  0xf6   :  { %1832 = vmatpush1.bf16.msra.mxu0 %v2291_v55  ;;  %1873 = vmatpush1.bf16.msra.mxu1 %v2293_v56 }
  0xf7   :  { %1833 = vmatprep.subr.bf16.mxu0 %v2308_v58  ;;  %1874 = vmatprep.subr.bf16.mxu1 %v2310_v59 }
  0xfa   :  { %1834 = vmatpush1.bf16.msra.mxu0 %v2307_v0  ;;  %1875 = vmatpush1.bf16.msra.mxu1 %v2309_v1 }
  0xfb   :  { %1835 = vmatprep.subr.bf16.mxu0 %v2324_v2  ;;  %1876 = vmatprep.subr.bf16.mxu1 %v2326_v3 }
  0xfe   :  { %1836 = vmatpush1.bf16.msra.mxu0 %v2323_v8  ;;  %1877 = vmatpush1.bf16.msra.mxu1 %v2325_v9 }
  0xff   :  { %1837 = vmatprep.subr.bf16.mxu0 %v2340_v10  ;;  %1878 = vmatprep.subr.bf16.mxu1 %v2342_v11 }
 0x102   :  { %1838 = vmatpush1.bf16.msra.mxu0 %v2339_v13  ;;  %1879 = vmatpush1.bf16.msra.mxu1 %v2341_v14 }
 0x105   :  { %1840 = vmatmul.mubr.bf16.vlgmr.msra.gmra.mrb[12].mxu0 %v2615_v12  ;;  %1881 = vmatmul.mubr.bf16.vlgmr.msra.gmra.mrb[12].mxu1 %v2615_v12 }
 0x118   :  { %v3189_v15 = vpop.f32.mrb[0].mxu0  ;;  %v3195_v18 = vpop.f32.mrb[0].mxu1 }
 0x119   :  { %v1907_v16 = vmul.f32 %v3189_v15, %v3189_v15  ;;  %v3193_v17 = vpop.f32.mrb[1].mxu0  ;;  %v1909_v21 = vmul.f32 %v3195_v18, %v3195_v18  ;;  %v3203_v12 = vpop.f32.mrb[1].mxu1 }
 0x11a   :  { %v1889_v53 = vadd.f32 %v3193_v17, %v3189_v15  ;;  %v1908_v19 = vmul.f32 %v3193_v17, %v3193_v17  ;;  %v1599_v20 = vpop.f32.mrb[2].mxu0  ;;  %v1640_v23 = vpop.f32.mrb[2].mxu1  ;;  %v1910_v26 = vmul.f32 %v3203_v12, %v3203_v12 }
 0x11b   :  { %v1600_v22 = vpop.f32.mrb[3].mxu0  ;;  %v1641_v27 = vpop.f32.mrb[3].mxu1 }
 0x11c   :  { %v1923_v24 = vadd.f32 %v1908_v19, %v1907_v16  ;;  %v1890_v25 = vadd.f32 %v1889_v53, %v3195_v18 }
 0x11e   :  { %v1924_v28 = vadd.f32 %v1923_v24, %v1909_v21  ;;  %v1891_v29 = vadd.f32 %v1890_v25, %v3203_v12 }
 0x120   :  { %v1925_v30 = vadd.f32 %v1924_v28, %v1910_v26 }
 0x158   :  { %v3209_v31 = vpop.f32.mrb[4].mxu0  ;;  %v3216_v35 = vpop.f32.mrb[4].mxu1 }
 0x159   :  { %v1892_v32 = vadd.f32 %v1891_v29, %v3209_v31  ;;  %v1911_v33 = vmul.f32 %v3209_v31, %v3209_v31  ;;  %v3214_v34 = vpop.f32.mrb[5].mxu0  ;;  %v3220_v38 = vpop.f32.mrb[5].mxu1  ;;  %v1913_v41 = vmul.f32 %v3216_v35, %v3216_v35 }
 0x15a   :  { %v1912_v36 = vmul.f32 %v3214_v34, %v3214_v34  ;;  %v1681_v37 = vpop.f32.mrb[6].mxu0  ;;  %v1722_v43 = vpop.f32.mrb[6].mxu1  ;;  %v1914_v46 = vmul.f32 %v3220_v38, %v3220_v38 }
 0x15b   :  { %v1926_v39 = vadd.f32 %v1925_v30, %v1911_v33  ;;  %v1893_v40 = vadd.f32 %v1892_v32, %v3214_v34  ;;  %v1682_v42 = vpop.f32.mrb[7].mxu0  ;;  %v1723_v57 = vpop.f32.mrb[7].mxu1  ;;  %v2366_v32 = vmov 0  }
 0x15c   :  { %2360 = vset.pattern.permute.xlu1 %v2366_v32  ;;  %2361 = vset.pattern.permute.xlu0 %v2366_v32  ;;  %v1944_v57 = vld [vmem:[%s3293_s2] sm:$0xff] }
 0x15d   :  { %v1927_v44 = vadd.f32 %v1926_v39, %v1912_v36  ;;  %v1894_v45 = vadd.f32 %v1893_v40, %v3216_v35 }
 0x15f   :  { %v1928_v47 = vadd.f32 %v1927_v44, %v1913_v41  ;;  %v1895_v48 = vadd.f32 %v1894_v45, %v3220_v38 }
 0x161   :  { %v1929_v49 = vadd.f32 %v1928_v47, %v1914_v46  ;;  %v1948_v46 = vld [vmem:[%s3294_s3] sm:$0xff] }
 0x198   :  { %v3229_v50 = vpop.f32.mrb[8].mxu0  ;;  %v3236_v55 = vpop.f32.mrb[8].mxu1 }
 0x199   :  { %v1896_v51 = vadd.f32 %v1895_v48, %v3229_v50  ;;  %v1915_v52 = vmul.f32 %v3229_v50, %v3229_v50  ;;  %v3234_v54 = vpop.f32.mrb[9].mxu0  ;;  %v3240_v59 = vpop.f32.mrb[9].mxu1  ;;  %v1917_v62 = vmul.f32 %v3236_v55, %v3236_v55 }
 0x19a   :  { %v1916_v56 = vmul.f32 %v3234_v54, %v3234_v54  ;;  %v1763_v58 = vpop.f32.mrb[10].mxu0  ;;  %v1804_v0 = vpop.f32.mrb[10].mxu1  ;;  %v1918_v4 = vmul.f32 %v3240_v59, %v3240_v59 }
 0x19b   :  { %v1930_v60 = vadd.f32 %v1929_v49, %v1915_v52  ;;  %v1897_v61 = vadd.f32 %v1896_v51, %v3234_v54  ;;  %v1764_v63 = vpop.f32.mrb[11].mxu0  ;;  %v1805_v1 = vpop.f32.mrb[11].mxu1 }
 0x19d   :  { %v1931_v2 = vadd.f32 %v1930_v60, %v1916_v56  ;;  %v1898_v3 = vadd.f32 %v1897_v61, %v3236_v55 }
 0x19f   :  { %v1932_v5 = vadd.f32 %v1931_v2, %v1917_v62  ;;  %v1899_v6 = vadd.f32 %v1898_v3, %v3240_v59 }
 0x1a1   :  { %v1933_v7 = vadd.f32 %v1932_v5, %v1918_v4 }
 0x1d8   :  { %v1841_v8 = vpop.f32.mrb[12].mxu0  ;;  %v1882_v13 = vpop.f32.mrb[12].mxu1 }
 0x1d9   :  { %v1900_v9 = vadd.f32 %v1899_v6, %v1841_v8  ;;  %v1919_v10 = vmul.f32 %v1841_v8, %v1841_v8  ;;  %v1843_v11 = vpop.f32.mrb[13].mxu0  ;;  %v1884_v53 = vpop.f32.mrb[13].mxu1  ;;  %v1921_v21 = vmul.f32 %v1882_v13, %v1882_v13 }
 0x1da   :  { %v1920_v14 = vmul.f32 %v1843_v11, %v1843_v11  ;;  %v1845_v16 = vpop.f32.mrb[14].mxu0  ;;  %v1886_v23 = vpop.f32.mrb[14].mxu1  ;;  %v1922_v28 = vmul.f32 %v1884_v53, %v1884_v53 }
 0x1db   :  { %v1934_v19 = vadd.f32 %v1933_v7, %v1919_v10  ;;  %v1901_v20 = vadd.f32 %v1900_v9, %v1843_v11  ;;  %v1846_v22 = vpop.f32.mrb[15].mxu0  ;;  %v1887_v24 = vpop.f32.mrb[15].mxu1 }
 0x1dd   :  { %v1902_v25 = vadd.f32 %v1901_v20, %v1882_v13  ;;  %v1935_v26 = vadd.f32 %v1934_v19, %v1920_v14 }
 0x1df   :  { %v1903_v27 = vadd.f32 %v1902_v25, %v1884_v53  ;;  %v1936_v29 = vadd.f32 %v1935_v26, %v1921_v21 }
 0x1e1   :  { %1904 = vadd.xlane.f32.xlu0 %v1903_v27  ;;  %v1937_v30 = vadd.f32 %v1936_v29, %v1922_v28 }
 0x1e5   :  { %1938 = vadd.xlane.f32.xlu0 %v1937_v30 }
 0x26e   :  { %v1905_v33 = vpop.xlane.xlu0 %1904 }
 0x26f   :  { %v1906_v36 = vmul.f32 0.00048828125, %v1905_v33 }
 0x271   :  { %v1941_v39 = vmul.f32 %v1906_v36, %v1906_v36 }
 0x272   :  { %v1939_v37 = vpop.xlane.xlu0 %1938 }
 0x273   :  { %v1940_v40 = vmul.f32 0.00048828125, %v1939_v37 }
 0x275   :  { %v1942_v41 = vsub.f32 %v1940_v40, %v1941_v39 }
 0x277   :  { %v1943_v42 = vmax.f32 %v1942_v41, 0.0 }
 0x279   :  { %v1945_v43 = vadd.f32 1e-05, %v1943_v42 }
 0x27b   :  { %2364 = vrsqrt.f32 %v1945_v43 }
 0x285   :  { %v2365_v44 = vpop.eup %2364 }
 0x286   :  { %v1947_v45 = vmul.f32 %v2365_v44, %v1944_v57 }
 0x288   :  { %1953 = vperm.xlu1 %2360, %v1947_v45   ;;  %v1949_v47 = vmul.f32 %v1947_v45, %v1906_v36 }
 0x28a   :  { %v1950_v48 = vsub.f32 %v1948_v46, %v1949_v47 }
 0x28c   :  { %1974 = vperm.xlu1 %2360, %v1950_v48  }
 0x307   :  { %v1954_v49 = vpop.permute.xlu1 %1953 }
 0x308   :  { %v1956_v51 = vmul.f32 %v1954_v49, %v3189_v15  ;;  %v1957_v52 = vmul.f32 %v1954_v49, %v3193_v17  ;;  %v1958_v56 = vmul.f32 %v1954_v49, %v3195_v18  ;;  %v1959_v58 = vmul.f32 %v1954_v49, %v3203_v12 }
 0x309   :  { %v1960_v60 = vmul.f32 %v1954_v49, %v3209_v31  ;;  %v1961_v61 = vmul.f32 %v1954_v49, %v3214_v34  ;;  %v1962_v62 = vmul.f32 %v1954_v49, %v3216_v35  ;;  %v1963_v63 = vmul.f32 %v1954_v49, %v3220_v38 }
 0x30a   :  { %v1964_v0 = vmul.f32 %v1954_v49, %v3229_v50  ;;  %v1965_v1 = vmul.f32 %v1954_v49, %v3234_v54  ;;  %v1966_v15 = vmul.f32 %v1954_v49, %v3236_v55  ;;  %v1967_v17 = vmul.f32 %v1954_v49, %v3240_v59 }
 0x30b   :  { %v1968_v2 = vmul.f32 %v1954_v49, %v1841_v8  ;;  %v1969_v18 = vmul.f32 %v1954_v49, %v1843_v11  ;;  %v1970_v3 = vmul.f32 %v1954_v49, %v1882_v13  ;;  %v1971_v12 = vmul.f32 %v1954_v49, %v1884_v53  ;;  %v1975_v4 = vpop.permute.xlu1 %1974 }
 0x30c   :  { %v1977_v31 = vadd.f32 %v1975_v4, %v1956_v51  ;;  %v1978_v5 = vadd.f32 %v1975_v4, %v1957_v52  ;;  %v1979_v34 = vadd.f32 %v1975_v4, %v1958_v56  ;;  %v1980_v6 = vadd.f32 %v1975_v4, %v1959_v58 }
 0x30d   :  { %v1981_v35 = vadd.f32 %v1975_v4, %v1960_v60  ;;  %v1982_v7 = vadd.f32 %v1975_v4, %v1961_v61  ;;  %v1983_v38 = vadd.f32 %v1975_v4, %v1962_v62  ;;  %v1984_v9 = vadd.f32 %v1975_v4, %v1963_v63 }
 0x30e   :  { %v1985_v50 = vadd.f32 %v1975_v4, %v1964_v0  ;;  %v1986_v10 = vadd.f32 %v1975_v4, %v1965_v1  ;;  %v1987_v54 = vadd.f32 %v1975_v4, %v1966_v15  ;;  %v1988_v14 = vadd.f32 %v1975_v4, %v1967_v17 }
 0x30f   :  { %v1989_v55 = vadd.f32 %v1975_v4, %v1968_v2  ;;  %v1990_v16 = vadd.f32 %v1975_v4, %v1969_v18  ;;  %v1991_v59 = vadd.f32 %v1975_v4, %v1970_v3  ;;  %v1992_v8 = vadd.f32 %v1975_v4, %v1971_v12 }
 0x310   :  { %v1993_v11 = vmax.f32 %v1977_v31, 0.0  ;;  %v1994_v13 = vmax.f32 %v1978_v5, 0.0  ;;  %v1995_v53 = vmax.f32 %v1979_v34, 0.0  ;;  %v1996_v19 = vmax.f32 %v1980_v6, 0.0 }
 0x311   :  { %v1997_v20 = vmax.f32 %v1981_v35, 0.0  ;;  %v1998_v21 = vmax.f32 %v1982_v7, 0.0  ;;  %v1999_v22 = vmax.f32 %v1983_v38, 0.0  ;;  %v2000_v23 = vmax.f32 %v1984_v9, 0.0 }
 0x312   :  { %v2001_v24 = vmax.f32 %v1985_v50, 0.0  ;;  %v2002_v25 = vmax.f32 %v1986_v10, 0.0  ;;  %v2003_v26 = vmax.f32 %v1987_v54, 0.0  ;;  %v2004_v27 = vmax.f32 %v1988_v14, 0.0 }
 0x313   :  { %v2005_v28 = vmax.f32 %v1989_v55, 0.0  ;;  %v2006_v29 = vmax.f32 %v1990_v16, 0.0  ;;  %v2007_v30 = vmax.f32 %v1991_v59, 0.0  ;;  %v2008_v32 = vmax.f32 %v1992_v8, 0.0 }
 0x314   :  { %v2351_v33 = vpack.c.bf16 %v1994_v13, %v1993_v11  ;;  %v2352_v36 = vpack.c.bf16 %v1996_v19, %v1995_v53  ;;  %v2353_v37 = vpack.c.bf16 %v1998_v21, %v1997_v20  ;;  %v2354_v39 = vpack.c.bf16 %v2000_v23, %v1999_v22 }
 0x315   :  { %v2355_v40 = vpack.c.bf16 %v2002_v25, %v2001_v24  ;;  %v2356_v41 = vpack.c.bf16 %v2004_v27, %v2003_v26  ;;  %v2357_v42 = vpack.c.bf16 %v2006_v29, %v2005_v28  ;;  %v2358_v43 = vpack.c.bf16 %v2008_v32, %v2007_v30 }
 0x316   :  { %2073 = vst [vmem:[%s3295_s4] sm:$0xff] %v2351_v33  ;;  %2074 = vst [vmem:[%s3295_s4 + $0x8] sm:$0xff] %v2352_v36 }
 0x317   :  { %2075 = vst [vmem:[%s3295_s4 + $0x10] sm:$0xff] %v2353_v37  ;;  %2076 = vst [vmem:[%s3295_s4 + $0x18] sm:$0xff] %v2354_v39 }
 0x318   :  { %2077 = vst [vmem:[%s3295_s4 + $0x20] sm:$0xff] %v2355_v40  ;;  %2078 = vst [vmem:[%s3295_s4 + $0x28] sm:$0xff] %v2356_v41 }
 0x319   :  { %2079 = vst [vmem:[%s3295_s4 + $0x30] sm:$0xff] %v2357_v42  ;;  %2080 = vst [vmem:[%s3295_s4 + $0x38] sm:$0xff] %v2358_v43 }

// kernel: generator_forward.9
= control target key start
LH: loop header
LB: loop body
LE: loop exit
PB: predicated region body
PF: predicated region fallthrough
CT: control target
= control target key end

     0   :  { %v5183_v3 = vmov 0   ;;  %s7082_s1 = inlined_call_operand.vmem [shape: bf16[128,8192], index: 1, kind: input, shape index: {}]   ;;  %s7083_s0 = inlined_call_operand.vmem [shape: bf16[8,128], index: 0, kind: input, shape index: {}]   ;;  %s7084_s2 = inlined_call_operand.vmem [shape: f32[8,1], index: 2, kind: input, shape index: {}]   ;;  %s7085_s3 = inlined_call_operand.vmem [shape: f32[8,8192], index: 3, kind: output, shape index: {}]  }
   0x1   :  { %v16_v0 = vld [vmem:[%s7082_s1] sm:$0xff]  ;;  %v17_v2 = vld [vmem:[%s7082_s1 + $0x8] sm:$0xff]  ;;  %3126 = vmatprep.mubr.bf16.mxu0 %v5183_v3  ;;  %3167 = vmatprep.mubr.bf16.mxu1 %v5183_v3  ;;  %v18_v63 = vld [vmem:[%s7082_s1 + $0x10] sm:$0xff] }
   0x2   :  { %v48_v1 = vld [vmem:[%s7082_s1 + $0x100] sm:$0xff]  ;;  %v49_v5 = vld [vmem:[%s7082_s1 + $0x108] sm:$0xff]  ;;  %5051 = vset.pattern.permute.xlu0 %v5183_v3 }
   0x3   :  { %v4539_v4 = vcombine.high %v16_v0, %v48_v1  ;;  %v4538_v6 = vcombine.low %v16_v0, %v48_v1  ;;  %v80_v7 = vld [vmem:[%s7082_s1 + $0x200] sm:$0xff]  ;;  %v4541_v9 = vcombine.high %v17_v2, %v49_v5  ;;  %v4540_v10 = vcombine.low %v17_v2, %v49_v5  ;;  %v81_v12 = vld [vmem:[%s7082_s1 + $0x208] sm:$0xff]  ;;  %v50_v0 = vld [vmem:[%s7082_s1 + $0x110] sm:$0xff] }
   0x4   :  { %v112_v8 = vld [vmem:[%s7082_s1 + $0x300] sm:$0xff]  ;;  %v113_v13 = vld [vmem:[%s7082_s1 + $0x308] sm:$0xff]  ;;  %v19_v1 = vld [vmem:[%s7082_s1 + $0x18] sm:$0xff] }
   0x5   :  { %v4603_v11 = vcombine.high %v80_v7, %v112_v8  ;;  %v144_v14 = vld [vmem:[%s7082_s1 + $0x400] sm:$0xff]  ;;  %3094 = vmatprep.subr.bf16.mxu0 %v4539_v4  ;;  %v4605_v15 = vcombine.high %v81_v12, %v113_v13  ;;  %v145_v17 = vld [vmem:[%s7082_s1 + $0x408] sm:$0xff]  ;;  %3135 = vmatprep.subr.bf16.mxu1 %v4541_v9  ;;  %v4602_v19 = vcombine.low %v80_v7, %v112_v8  ;;  %v51_v2 = vld [vmem:[%s7082_s1 + $0x118] sm:$0xff] }
   0x6   :  { %v176_v16 = vld [vmem:[%s7082_s1 + $0x500] sm:$0xff]  ;;  %v177_v18 = vld [vmem:[%s7082_s1 + $0x508] sm:$0xff]  ;;  %3095 = vmatpush1.bf16.msra.mxu0 %v4538_v6  ;;  %3136 = vmatpush1.bf16.msra.mxu1 %v4540_v10  ;;  %v4604_v20 = vcombine.low %v81_v12, %v113_v13  ;;  %v4543_v6 = vcombine.high %v18_v63, %v50_v0  ;;  %v4545_v7 = vcombine.high %v19_v1, %v51_v2  ;;  %v82_v8 = vld [vmem:[%s7082_s1 + $0x210] sm:$0xff] }
   0x7   :  { %3096 = vmatprep.subr.bf16.mxu0 %v4603_v11  ;;  %v4667_v21 = vcombine.high %v144_v14, %v176_v16  ;;  %3137 = vmatprep.subr.bf16.mxu1 %v4605_v15  ;;  %v4669_v22 = vcombine.high %v145_v17, %v177_v18  ;;  %v208_v23 = vld [vmem:[%s7082_s1 + $0x600] sm:$0xff]  ;;  %v209_v25 = vld [vmem:[%s7082_s1 + $0x608] sm:$0xff]  ;;  %v4666_v27 = vcombine.low %v144_v14, %v176_v16  ;;  %v114_v9 = vld [vmem:[%s7082_s1 + $0x310] sm:$0xff] }
   0x8   :  { %v240_v24 = vld [vmem:[%s7082_s1 + $0x700] sm:$0xff]  ;;  %v241_v26 = vld [vmem:[%s7082_s1 + $0x708] sm:$0xff]  ;;  %v4668_v28 = vcombine.low %v145_v17, %v177_v18  ;;  %v83_v10 = vld [vmem:[%s7082_s1 + $0x218] sm:$0xff]  ;;  %v4542_v13 = vcombine.low %v18_v63, %v50_v0  ;;  %v4544_v14 = vcombine.low %v19_v1, %v51_v2  ;;  %v4607_v15 = vcombine.high %v82_v8, %v114_v9 }
   0x9   :  { %v4731_v29 = vcombine.high %v208_v23, %v240_v24  ;;  %v4733_v30 = vcombine.high %v209_v25, %v241_v26  ;;  %v272_v31 = vld [vmem:[%s7082_s1 + $0x800] sm:$0xff]  ;;  %v273_v33 = vld [vmem:[%s7082_s1 + $0x808] sm:$0xff]  ;;  %v4730_v35 = vcombine.low %v208_v23, %v240_v24  ;;  %v4732_v36 = vcombine.low %v209_v25, %v241_v26  ;;  %v115_v11 = vld [vmem:[%s7082_s1 + $0x318] sm:$0xff] }
   0xa   :  { %3097 = vmatpush1.bf16.msra.mxu0 %v4602_v19  ;;  %3138 = vmatpush1.bf16.msra.mxu1 %v4604_v20  ;;  %v304_v32 = vld [vmem:[%s7082_s1 + $0x900] sm:$0xff]  ;;  %v305_v34 = vld [vmem:[%s7082_s1 + $0x908] sm:$0xff]  ;;  %v4609_v16 = vcombine.high %v83_v10, %v115_v11  ;;  %v146_v17 = vld [vmem:[%s7082_s1 + $0x410] sm:$0xff] }
   0xb   :  { %3098 = vmatprep.subr.bf16.mxu0 %v4667_v21  ;;  %3139 = vmatprep.subr.bf16.mxu1 %v4669_v22  ;;  %v4795_v37 = vcombine.high %v272_v31, %v304_v32  ;;  %v4797_v38 = vcombine.high %v273_v33, %v305_v34  ;;  %v336_v39 = vld [vmem:[%s7082_s1 + $0xa00] sm:$0xff]  ;;  %v337_v41 = vld [vmem:[%s7082_s1 + $0xa08] sm:$0xff]  ;;  %v4794_v43 = vcombine.low %v272_v31, %v304_v32  ;;  %v178_v18 = vld [vmem:[%s7082_s1 + $0x510] sm:$0xff] }
   0xc   :  { %v368_v40 = vld [vmem:[%s7082_s1 + $0xb00] sm:$0xff]  ;;  %v369_v42 = vld [vmem:[%s7082_s1 + $0xb08] sm:$0xff]  ;;  %v4796_v44 = vcombine.low %v273_v33, %v305_v34  ;;  %v147_v19 = vld [vmem:[%s7082_s1 + $0x418] sm:$0xff]  ;;  %v4606_v21 = vcombine.low %v82_v8, %v114_v9  ;;  %v4608_v22 = vcombine.low %v83_v10, %v115_v11  ;;  %v4671_v23 = vcombine.high %v146_v17, %v178_v18 }
   0xd   :  { %v4859_v45 = vcombine.high %v336_v39, %v368_v40  ;;  %v4861_v46 = vcombine.high %v337_v41, %v369_v42  ;;  %v400_v47 = vld [vmem:[%s7082_s1 + $0xc00] sm:$0xff]  ;;  %v401_v49 = vld [vmem:[%s7082_s1 + $0xc08] sm:$0xff]  ;;  %v4858_v51 = vcombine.low %v336_v39, %v368_v40  ;;  %v4860_v52 = vcombine.low %v337_v41, %v369_v42  ;;  %v179_v20 = vld [vmem:[%s7082_s1 + $0x518] sm:$0xff] }
   0xe   :  { %3099 = vmatpush1.bf16.msra.mxu0 %v4666_v27  ;;  %3140 = vmatpush1.bf16.msra.mxu1 %v4668_v28  ;;  %v432_v48 = vld [vmem:[%s7082_s1 + $0xd00] sm:$0xff]  ;;  %v433_v50 = vld [vmem:[%s7082_s1 + $0xd08] sm:$0xff]  ;;  %v4673_v24 = vcombine.high %v147_v19, %v179_v20  ;;  %v210_v25 = vld [vmem:[%s7082_s1 + $0x610] sm:$0xff]  ;;  %v4672_v31 = vcombine.low %v147_v19, %v179_v20 }
   0xf   :  { %3100 = vmatprep.subr.bf16.mxu0 %v4731_v29  ;;  %3141 = vmatprep.subr.bf16.mxu1 %v4733_v30  ;;  %v4923_v53 = vcombine.high %v400_v47, %v432_v48  ;;  %v4925_v54 = vcombine.high %v401_v49, %v433_v50  ;;  %v464_v55 = vld [vmem:[%s7082_s1 + $0xe00] sm:$0xff]  ;;  %v465_v57 = vld [vmem:[%s7082_s1 + $0xe08] sm:$0xff]  ;;  %v4922_v59 = vcombine.low %v400_v47, %v432_v48  ;;  %v242_v26 = vld [vmem:[%s7082_s1 + $0x710] sm:$0xff] }
  0x10   :  { %v496_v56 = vld [vmem:[%s7082_s1 + $0xf00] sm:$0xff]  ;;  %v497_v58 = vld [vmem:[%s7082_s1 + $0xf08] sm:$0xff]  ;;  %v4924_v60 = vcombine.low %v401_v49, %v433_v50  ;;  %v211_v27 = vld [vmem:[%s7082_s1 + $0x618] sm:$0xff]  ;;  %v4670_v29 = vcombine.low %v146_v17, %v178_v18  ;;  %v4735_v32 = vcombine.high %v210_v25, %v242_v26 }
  0x11   :  { %v4987_v61 = vcombine.high %v464_v55, %v496_v56  ;;  %v4989_v62 = vcombine.high %v465_v57, %v497_v58  ;;  %v4986_v4 = vcombine.low %v464_v55, %v496_v56  ;;  %v4988_v5 = vcombine.low %v465_v57, %v497_v58  ;;  %v5330_v12 = vld [vmem:[%s7083_s0] sm:$0xf]  ;;  %v243_v28 = vld [vmem:[%s7082_s1 + $0x718] sm:$0xff]  ;;  %v274_v34 = vld [vmem:[%s7082_s1 + $0x810] sm:$0xff] }
  0x12   :  { %3101 = vmatpush1.bf16.msra.mxu0 %v4730_v35  ;;  %3142 = vmatpush1.bf16.msra.mxu1 %v4732_v36  ;;  %v528_v30 = vld [vmem:[%s7084_s2] sm:$0xff]  ;;  %v4737_v33 = vcombine.high %v211_v27, %v243_v28  ;;  %v306_v35 = vld [vmem:[%s7082_s1 + $0x910] sm:$0xff]  ;;  %v275_v36 = vld [vmem:[%s7082_s1 + $0x818] sm:$0xff]  ;;  %v4736_v39 = vcombine.low %v211_v27, %v243_v28 }
  0x13   :  { %3102 = vmatprep.subr.bf16.mxu0 %v4795_v37  ;;  %3143 = vmatprep.subr.bf16.mxu1 %v4797_v38  ;;  %v307_v37 = vld [vmem:[%s7082_s1 + $0x918] sm:$0xff]  ;;  %v4734_v38 = vcombine.low %v210_v25, %v242_v26  ;;  %v4799_v40 = vcombine.high %v274_v34, %v306_v35  ;;  %v338_v42 = vld [vmem:[%s7082_s1 + $0xa10] sm:$0xff]  ;;  %v20_v2 = vld [vmem:[%s7082_s1 + $0x20] sm:$0xff] }
  0x14   :  { %531 = vperm.xlu0 %5051, %v528_v30   ;;  %v4801_v41 = vcombine.high %v275_v36, %v307_v37  ;;  %v4800_v47 = vcombine.low %v275_v36, %v307_v37  ;;  %v402_v50 = vld [vmem:[%s7082_s1 + $0xc10] sm:$0xff]  ;;  %v84_v11 = vld [vmem:[%s7082_s1 + $0x220] sm:$0xff]  ;;  %v213_v30 = vld [vmem:[%s7082_s1 + $0x628] sm:$0xff] }
  0x15   :  { %v466_v58 = vld [vmem:[%s7082_s1 + $0xe10] sm:$0xff]  ;;  %v148_v20 = vld [vmem:[%s7082_s1 + $0x420] sm:$0xff] }
  0x16   :  { %3103 = vmatpush1.bf16.msra.mxu0 %v4794_v43  ;;  %3144 = vmatpush1.bf16.msra.mxu1 %v4796_v44  ;;  %v370_v43 = vld [vmem:[%s7082_s1 + $0xb10] sm:$0xff]  ;;  %v339_v44 = vld [vmem:[%s7082_s1 + $0xa18] sm:$0xff]  ;;  %v212_v28 = vld [vmem:[%s7082_s1 + $0x620] sm:$0xff] }
  0x17   :  { %3104 = vmatprep.subr.bf16.mxu0 %v4859_v45  ;;  %3145 = vmatprep.subr.bf16.mxu1 %v4861_v46  ;;  %v371_v45 = vld [vmem:[%s7082_s1 + $0xb18] sm:$0xff]  ;;  %v4798_v46 = vcombine.low %v274_v34, %v306_v35  ;;  %v4863_v48 = vcombine.high %v338_v42, %v370_v43  ;;  %v276_v36 = vld [vmem:[%s7082_s1 + $0x820] sm:$0xff] }
  0x18   :  { %v4865_v49 = vcombine.high %v339_v44, %v371_v45  ;;  %v4864_v55 = vcombine.low %v339_v44, %v371_v45  ;;  %v308_v37 = vld [vmem:[%s7082_s1 + $0x920] sm:$0xff] }
  0x19   :  { %v340_v44 = vld [vmem:[%s7082_s1 + $0xa20] sm:$0xff] }
  0x1a   :  { %3105 = vmatpush1.bf16.msra.mxu0 %v4858_v51  ;;  %3146 = vmatpush1.bf16.msra.mxu1 %v4860_v52  ;;  %v434_v51 = vld [vmem:[%s7082_s1 + $0xd10] sm:$0xff]  ;;  %v403_v52 = vld [vmem:[%s7082_s1 + $0xc18] sm:$0xff]  ;;  %v372_v45 = vld [vmem:[%s7082_s1 + $0xb20] sm:$0xff] }
  0x1b   :  { %3106 = vmatprep.subr.bf16.mxu0 %v4923_v53  ;;  %3147 = vmatprep.subr.bf16.mxu1 %v4925_v54  ;;  %v435_v53 = vld [vmem:[%s7082_s1 + $0xd18] sm:$0xff]  ;;  %v4862_v54 = vcombine.low %v338_v42, %v370_v43  ;;  %v4927_v56 = vcombine.high %v402_v50, %v434_v51  ;;  %v4803_v42 = vcombine.high %v276_v36, %v308_v37 }
  0x1c   :  { %v4929_v57 = vcombine.high %v403_v52, %v435_v53  ;;  %v4928_v63 = vcombine.low %v403_v52, %v435_v53  ;;  %v404_v52 = vld [vmem:[%s7082_s1 + $0xc20] sm:$0xff] }
  0x1d   :  { %v436_v53 = vld [vmem:[%s7082_s1 + $0xd20] sm:$0xff] }
  0x1e   :  { %3107 = vmatpush1.bf16.msra.mxu0 %v4922_v59  ;;  %3148 = vmatpush1.bf16.msra.mxu1 %v4924_v60  ;;  %v498_v59 = vld [vmem:[%s7082_s1 + $0xf10] sm:$0xff]  ;;  %v467_v60 = vld [vmem:[%s7082_s1 + $0xe18] sm:$0xff] }
  0x1f   :  { %3108 = vmatprep.subr.bf16.mxu0 %v4987_v61  ;;  %3149 = vmatprep.subr.bf16.mxu1 %v4989_v62  ;;  %v499_v61 = vld [vmem:[%s7082_s1 + $0xf18] sm:$0xff]  ;;  %v4926_v62 = vcombine.low %v402_v50, %v434_v51  ;;  %v4991_v0 = vcombine.high %v466_v58, %v498_v59  ;;  %v4867_v50 = vcombine.high %v340_v44, %v372_v45 }
  0x20   :  { %v4993_v1 = vcombine.high %v467_v60, %v499_v61  ;;  %v4992_v8 = vcombine.low %v467_v60, %v499_v61  ;;  %v468_v60 = vld [vmem:[%s7082_s1 + $0xe20] sm:$0xff] }
  0x21   :  { %v500_v61 = vld [vmem:[%s7082_s1 + $0xf20] sm:$0xff] }
  0x22   :  { %3109 = vmatpush1.bf16.msra.mxu0 %v4986_v4  ;;  %3150 = vmatpush1.bf16.msra.mxu1 %v4988_v5  ;;  %v52_v4 = vld [vmem:[%s7082_s1 + $0x120] sm:$0xff]  ;;  %v21_v5 = vld [vmem:[%s7082_s1 + $0x28] sm:$0xff] }
  0x23   :  { %3176 = vmatprep.subr.bf16.mxu0 %v4543_v6  ;;  %3217 = vmatprep.subr.bf16.mxu1 %v4545_v7  ;;  %v53_v6 = vld [vmem:[%s7082_s1 + $0x128] sm:$0xff]  ;;  %v4990_v7 = vcombine.low %v466_v58, %v498_v59  ;;  %v4547_v9 = vcombine.high %v20_v2, %v52_v4  ;;  %v4931_v58 = vcombine.high %v404_v52, %v436_v53 }
  0x24   :  { %v4549_v10 = vcombine.high %v21_v5, %v53_v6  ;;  %v4548_v17 = vcombine.low %v21_v5, %v53_v6  ;;  %v22_v5 = vld [vmem:[%s7082_s1 + $0x30] sm:$0xff] }
  0x25   :  { %3127 = vmatmul.mubr.bf16.vlgmr.msra.gmra.mrb[0].mxu0 %v5330_v12  ;;  %3168 = vmatmul.mubr.bf16.vlgmr.msra.gmra.mrb[0].mxu1 %v5330_v12  ;;  %v54_v6 = vld [vmem:[%s7082_s1 + $0x130] sm:$0xff] }
  0x26   :  { %3177 = vmatpush1.bf16.msra.mxu0 %v4542_v13  ;;  %3218 = vmatpush1.bf16.msra.mxu1 %v4544_v14  ;;  %v116_v13 = vld [vmem:[%s7082_s1 + $0x320] sm:$0xff]  ;;  %v85_v14 = vld [vmem:[%s7082_s1 + $0x228] sm:$0xff] }
  0x27   :  { %3178 = vmatprep.subr.bf16.mxu0 %v4607_v15  ;;  %3219 = vmatprep.subr.bf16.mxu1 %v4609_v16  ;;  %v117_v15 = vld [vmem:[%s7082_s1 + $0x328] sm:$0xff]  ;;  %v4546_v16 = vcombine.low %v20_v2, %v52_v4  ;;  %v4611_v18 = vcombine.high %v84_v11, %v116_v13  ;;  %v4995_v2 = vcombine.high %v468_v60, %v500_v61 }
  0x28   :  { %3208 = vmatprep.mubr.bf16.mxu0 %v5183_v3  ;;  %3249 = vmatprep.mubr.bf16.mxu1 %v5183_v3  ;;  %v4613_v19 = vcombine.high %v85_v14, %v117_v15  ;;  %v4612_v25 = vcombine.low %v85_v14, %v117_v15  ;;  %v86_v14 = vld [vmem:[%s7082_s1 + $0x230] sm:$0xff] }
  0x29   :  { %v118_v15 = vld [vmem:[%s7082_s1 + $0x330] sm:$0xff] }
  0x2a   :  { %3179 = vmatpush1.bf16.msra.mxu0 %v4606_v21  ;;  %3220 = vmatpush1.bf16.msra.mxu1 %v4608_v22  ;;  %v180_v21 = vld [vmem:[%s7082_s1 + $0x520] sm:$0xff]  ;;  %v149_v22 = vld [vmem:[%s7082_s1 + $0x428] sm:$0xff] }
  0x2b   :  { %3180 = vmatprep.subr.bf16.mxu0 %v4671_v23  ;;  %3221 = vmatprep.subr.bf16.mxu1 %v4673_v24  ;;  %v181_v23 = vld [vmem:[%s7082_s1 + $0x528] sm:$0xff]  ;;  %v4610_v24 = vcombine.low %v84_v11, %v116_v13  ;;  %v4675_v26 = vcombine.high %v148_v20, %v180_v21  ;;  %v4551_v11 = vcombine.high %v22_v5, %v54_v6 }
  0x2c   :  { %v4677_v27 = vcombine.high %v149_v22, %v181_v23 }
  0x2e   :  { %3181 = vmatpush1.bf16.msra.mxu0 %v4670_v29  ;;  %3222 = vmatpush1.bf16.msra.mxu1 %v4672_v31  ;;  %v244_v29 = vld [vmem:[%s7082_s1 + $0x720] sm:$0xff]  ;;  %v245_v31 = vld [vmem:[%s7082_s1 + $0x728] sm:$0xff] }
  0x2f   :  { %3182 = vmatprep.subr.bf16.mxu0 %v4735_v32  ;;  %3223 = vmatprep.subr.bf16.mxu1 %v4737_v33  ;;  %v4674_v32 = vcombine.low %v148_v20, %v180_v21  ;;  %v4676_v33 = vcombine.low %v149_v22, %v181_v23  ;;  %v4739_v34 = vcombine.high %v212_v28, %v244_v29  ;;  %v150_v22 = vld [vmem:[%s7082_s1 + $0x430] sm:$0xff] }
  0x30   :  { %v4741_v35 = vcombine.high %v213_v30, %v245_v31  ;;  %v4615_v20 = vcombine.high %v86_v14, %v118_v15  ;;  %v182_v23 = vld [vmem:[%s7082_s1 + $0x530] sm:$0xff] }
  0x32   :  { %3183 = vmatpush1.bf16.msra.mxu0 %v4734_v38  ;;  %3224 = vmatpush1.bf16.msra.mxu1 %v4736_v39  ;;  %v277_v38 = vld [vmem:[%s7082_s1 + $0x828] sm:$0xff] }
  0x33   :  { %3184 = vmatprep.subr.bf16.mxu0 %v4799_v40  ;;  %3225 = vmatprep.subr.bf16.mxu1 %v4801_v41  ;;  %v309_v39 = vld [vmem:[%s7082_s1 + $0x928] sm:$0xff]  ;;  %v4738_v40 = vcombine.low %v212_v28, %v244_v29  ;;  %v4740_v41 = vcombine.low %v213_v30, %v245_v31  ;;  %v4679_v28 = vcombine.high %v150_v22, %v182_v23  ;;  %v214_v30 = vld [vmem:[%s7082_s1 + $0x630] sm:$0xff] }
  0x34   :  { %v4805_v43 = vcombine.high %v277_v38, %v309_v39  ;;  %v246_v31 = vld [vmem:[%s7082_s1 + $0x730] sm:$0xff] }
  0x36   :  { %3185 = vmatpush1.bf16.msra.mxu0 %v4798_v46  ;;  %3226 = vmatpush1.bf16.msra.mxu1 %v4800_v47  ;;  %v341_v46 = vld [vmem:[%s7082_s1 + $0xa28] sm:$0xff] }
  0x37   :  { %3186 = vmatprep.subr.bf16.mxu0 %v4863_v48  ;;  %3227 = vmatprep.subr.bf16.mxu1 %v4865_v49  ;;  %v373_v47 = vld [vmem:[%s7082_s1 + $0xb28] sm:$0xff]  ;;  %v4802_v48 = vcombine.low %v276_v36, %v308_v37  ;;  %v4804_v49 = vcombine.low %v277_v38, %v309_v39  ;;  %v4743_v36 = vcombine.high %v214_v30, %v246_v31  ;;  %v278_v38 = vld [vmem:[%s7082_s1 + $0x830] sm:$0xff] }
  0x38   :  { %v4869_v51 = vcombine.high %v341_v46, %v373_v47  ;;  %v310_v39 = vld [vmem:[%s7082_s1 + $0x930] sm:$0xff] }
  0x3a   :  { %3187 = vmatpush1.bf16.msra.mxu0 %v4862_v54  ;;  %3228 = vmatpush1.bf16.msra.mxu1 %v4864_v55  ;;  %v405_v54 = vld [vmem:[%s7082_s1 + $0xc28] sm:$0xff] }
  0x3b   :  { %3188 = vmatprep.subr.bf16.mxu0 %v4927_v56  ;;  %3229 = vmatprep.subr.bf16.mxu1 %v4929_v57  ;;  %v437_v55 = vld [vmem:[%s7082_s1 + $0xd28] sm:$0xff]  ;;  %v4866_v56 = vcombine.low %v340_v44, %v372_v45  ;;  %v4868_v57 = vcombine.low %v341_v46, %v373_v47  ;;  %v4807_v44 = vcombine.high %v278_v38, %v310_v39  ;;  %v342_v46 = vld [vmem:[%s7082_s1 + $0xa30] sm:$0xff] }
  0x3c   :  { %v4933_v59 = vcombine.high %v405_v54, %v437_v55  ;;  %v374_v47 = vld [vmem:[%s7082_s1 + $0xb30] sm:$0xff] }
  0x3e   :  { %3189 = vmatpush1.bf16.msra.mxu0 %v4926_v62  ;;  %3230 = vmatpush1.bf16.msra.mxu1 %v4928_v63  ;;  %v469_v62 = vld [vmem:[%s7082_s1 + $0xe28] sm:$0xff] }
  0x3f   :  { %3190 = vmatprep.subr.bf16.mxu0 %v4991_v0  ;;  %3231 = vmatprep.subr.bf16.mxu1 %v4993_v1  ;;  %v501_v63 = vld [vmem:[%s7082_s1 + $0xf28] sm:$0xff]  ;;  %v4930_v0 = vcombine.low %v404_v52, %v436_v53  ;;  %v4932_v1 = vcombine.low %v405_v54, %v437_v55  ;;  %v4871_v52 = vcombine.high %v342_v46, %v374_v47  ;;  %v406_v54 = vld [vmem:[%s7082_s1 + $0xc30] sm:$0xff] }
  0x40   :  { %v4997_v4 = vcombine.high %v469_v62, %v501_v63  ;;  %v438_v55 = vld [vmem:[%s7082_s1 + $0xd30] sm:$0xff] }
  0x42   :  { %3191 = vmatpush1.bf16.msra.mxu0 %v4990_v7  ;;  %3232 = vmatpush1.bf16.msra.mxu1 %v4992_v8  ;;  %v23_v7 = vld [vmem:[%s7082_s1 + $0x38] sm:$0xff] }
  0x43   :  { %3258 = vmatprep.subr.bf16.mxu0 %v4547_v9  ;;  %3299 = vmatprep.subr.bf16.mxu1 %v4549_v10  ;;  %v55_v8 = vld [vmem:[%s7082_s1 + $0x138] sm:$0xff]  ;;  %v4994_v9 = vcombine.low %v468_v60, %v500_v61  ;;  %v4996_v10 = vcombine.low %v469_v62, %v501_v63  ;;  %v4935_v60 = vcombine.high %v406_v54, %v438_v55  ;;  %v470_v62 = vld [vmem:[%s7082_s1 + $0xe30] sm:$0xff] }
  0x44   :  { %v4553_v13 = vcombine.high %v23_v7, %v55_v8  ;;  %v502_v63 = vld [vmem:[%s7082_s1 + $0xf30] sm:$0xff] }
  0x45   :  { %3209 = vmatmul.mubr.bf16.vlgmr.msra.gmra.mrb[4].mxu0 %v5330_v12  ;;  %3250 = vmatmul.mubr.bf16.vlgmr.msra.gmra.mrb[4].mxu1 %v5330_v12 }
  0x46   :  { %3259 = vmatpush1.bf16.msra.mxu0 %v4546_v16  ;;  %3300 = vmatpush1.bf16.msra.mxu1 %v4548_v17  ;;  %v87_v16 = vld [vmem:[%s7082_s1 + $0x238] sm:$0xff] }
  0x47   :  { %3260 = vmatprep.subr.bf16.mxu0 %v4611_v18  ;;  %3301 = vmatprep.subr.bf16.mxu1 %v4613_v19  ;;  %v119_v17 = vld [vmem:[%s7082_s1 + $0x338] sm:$0xff]  ;;  %v4550_v18 = vcombine.low %v22_v5, %v54_v6  ;;  %v4552_v19 = vcombine.low %v23_v7, %v55_v8  ;;  %v4999_v5 = vcombine.high %v470_v62, %v502_v63  ;;  %v24_v7 = vld [vmem:[%s7082_s1 + $0x40] sm:$0xff] }
  0x48   :  { %3290 = vmatprep.mubr.bf16.mxu0 %v5183_v3  ;;  %3331 = vmatprep.mubr.bf16.mxu1 %v5183_v3  ;;  %v4617_v21 = vcombine.high %v87_v16, %v119_v17  ;;  %v56_v8 = vld [vmem:[%s7082_s1 + $0x140] sm:$0xff] }
  0x4a   :  { %3261 = vmatpush1.bf16.msra.mxu0 %v4610_v24  ;;  %3302 = vmatpush1.bf16.msra.mxu1 %v4612_v25  ;;  %v151_v24 = vld [vmem:[%s7082_s1 + $0x438] sm:$0xff] }
  0x4b   :  { %3262 = vmatprep.subr.bf16.mxu0 %v4675_v26  ;;  %3303 = vmatprep.subr.bf16.mxu1 %v4677_v27  ;;  %v183_v25 = vld [vmem:[%s7082_s1 + $0x538] sm:$0xff]  ;;  %v4614_v26 = vcombine.low %v86_v14, %v118_v15  ;;  %v4616_v27 = vcombine.low %v87_v16, %v119_v17  ;;  %v4555_v14 = vcombine.high %v24_v7, %v56_v8  ;;  %v88_v16 = vld [vmem:[%s7082_s1 + $0x240] sm:$0xff] }
  0x4c   :  { %v4681_v29 = vcombine.high %v151_v24, %v183_v25  ;;  %v120_v17 = vld [vmem:[%s7082_s1 + $0x340] sm:$0xff] }
  0x4e   :  { %3263 = vmatpush1.bf16.msra.mxu0 %v4674_v32  ;;  %3304 = vmatpush1.bf16.msra.mxu1 %v4676_v33  ;;  %v215_v32 = vld [vmem:[%s7082_s1 + $0x638] sm:$0xff] }
  0x4f   :  { %3264 = vmatprep.subr.bf16.mxu0 %v4739_v34  ;;  %3305 = vmatprep.subr.bf16.mxu1 %v4741_v35  ;;  %v247_v33 = vld [vmem:[%s7082_s1 + $0x738] sm:$0xff]  ;;  %v4678_v34 = vcombine.low %v150_v22, %v182_v23  ;;  %v4680_v35 = vcombine.low %v151_v24, %v183_v25  ;;  %v4619_v22 = vcombine.high %v88_v16, %v120_v17  ;;  %v152_v24 = vld [vmem:[%s7082_s1 + $0x440] sm:$0xff] }
  0x50   :  { %v4745_v37 = vcombine.high %v215_v32, %v247_v33  ;;  %v184_v25 = vld [vmem:[%s7082_s1 + $0x540] sm:$0xff] }
  0x52   :  { %3265 = vmatpush1.bf16.msra.mxu0 %v4738_v40  ;;  %3306 = vmatpush1.bf16.msra.mxu1 %v4740_v41  ;;  %v279_v40 = vld [vmem:[%s7082_s1 + $0x838] sm:$0xff] }
  0x53   :  { %3266 = vmatprep.subr.bf16.mxu0 %v4803_v42  ;;  %3307 = vmatprep.subr.bf16.mxu1 %v4805_v43  ;;  %v311_v41 = vld [vmem:[%s7082_s1 + $0x938] sm:$0xff]  ;;  %v4742_v42 = vcombine.low %v214_v30, %v246_v31  ;;  %v4744_v43 = vcombine.low %v215_v32, %v247_v33  ;;  %v4683_v30 = vcombine.high %v152_v24, %v184_v25  ;;  %v216_v32 = vld [vmem:[%s7082_s1 + $0x640] sm:$0xff] }
  0x54   :  { %v4809_v45 = vcombine.high %v279_v40, %v311_v41  ;;  %v248_v33 = vld [vmem:[%s7082_s1 + $0x740] sm:$0xff] }
  0x56   :  { %3267 = vmatpush1.bf16.msra.mxu0 %v4802_v48  ;;  %3308 = vmatpush1.bf16.msra.mxu1 %v4804_v49  ;;  %v343_v48 = vld [vmem:[%s7082_s1 + $0xa38] sm:$0xff] }
  0x57   :  { %3268 = vmatprep.subr.bf16.mxu0 %v4867_v50  ;;  %3309 = vmatprep.subr.bf16.mxu1 %v4869_v51  ;;  %v375_v49 = vld [vmem:[%s7082_s1 + $0xb38] sm:$0xff]  ;;  %v4806_v50 = vcombine.low %v278_v38, %v310_v39  ;;  %v4808_v51 = vcombine.low %v279_v40, %v311_v41  ;;  %v4747_v38 = vcombine.high %v216_v32, %v248_v33  ;;  %v280_v40 = vld [vmem:[%s7082_s1 + $0x840] sm:$0xff] }
  0x58   :  { %v4873_v53 = vcombine.high %v343_v48, %v375_v49  ;;  %v312_v41 = vld [vmem:[%s7082_s1 + $0x940] sm:$0xff] }
  0x5a   :  { %3269 = vmatpush1.bf16.msra.mxu0 %v4866_v56  ;;  %3310 = vmatpush1.bf16.msra.mxu1 %v4868_v57  ;;  %v407_v56 = vld [vmem:[%s7082_s1 + $0xc38] sm:$0xff] }
  0x5b   :  { %3270 = vmatprep.subr.bf16.mxu0 %v4931_v58  ;;  %3311 = vmatprep.subr.bf16.mxu1 %v4933_v59  ;;  %v439_v57 = vld [vmem:[%s7082_s1 + $0xd38] sm:$0xff]  ;;  %v4870_v58 = vcombine.low %v342_v46, %v374_v47  ;;  %v4872_v59 = vcombine.low %v343_v48, %v375_v49  ;;  %v4811_v46 = vcombine.high %v280_v40, %v312_v41  ;;  %v344_v48 = vld [vmem:[%s7082_s1 + $0xa40] sm:$0xff] }
  0x5c   :  { %v4937_v61 = vcombine.high %v407_v56, %v439_v57  ;;  %v376_v49 = vld [vmem:[%s7082_s1 + $0xb40] sm:$0xff] }
  0x5e   :  { %3271 = vmatpush1.bf16.msra.mxu0 %v4930_v0  ;;  %3312 = vmatpush1.bf16.msra.mxu1 %v4932_v1  ;;  %v471_v0 = vld [vmem:[%s7082_s1 + $0xe38] sm:$0xff] }
  0x5f   :  { %3272 = vmatprep.subr.bf16.mxu0 %v4995_v2  ;;  %3313 = vmatprep.subr.bf16.mxu1 %v4997_v4  ;;  %v503_v1 = vld [vmem:[%s7082_s1 + $0xf38] sm:$0xff]  ;;  %v4934_v2 = vcombine.low %v406_v54, %v438_v55  ;;  %v4936_v4 = vcombine.low %v407_v56, %v439_v57  ;;  %v4875_v54 = vcombine.high %v344_v48, %v376_v49  ;;  %v408_v56 = vld [vmem:[%s7082_s1 + $0xc40] sm:$0xff] }
  0x60   :  { %v5001_v6 = vcombine.high %v471_v0, %v503_v1  ;;  %v440_v57 = vld [vmem:[%s7082_s1 + $0xd40] sm:$0xff] }
  0x62   :  { %3273 = vmatpush1.bf16.msra.mxu0 %v4994_v9  ;;  %3314 = vmatpush1.bf16.msra.mxu1 %v4996_v10  ;;  %v25_v9 = vld [vmem:[%s7082_s1 + $0x48] sm:$0xff] }
  0x63   :  { %3340 = vmatprep.subr.bf16.mxu0 %v4551_v11  ;;  %3381 = vmatprep.subr.bf16.mxu1 %v4553_v13  ;;  %v57_v10 = vld [vmem:[%s7082_s1 + $0x148] sm:$0xff]  ;;  %v4998_v11 = vcombine.low %v470_v62, %v502_v63  ;;  %v5000_v13 = vcombine.low %v471_v0, %v503_v1  ;;  %v4939_v62 = vcombine.high %v408_v56, %v440_v57  ;;  %v472_v0 = vld [vmem:[%s7082_s1 + $0xe40] sm:$0xff] }
  0x64   :  { %v4557_v15 = vcombine.high %v25_v9, %v57_v10  ;;  %v504_v1 = vld [vmem:[%s7082_s1 + $0xf40] sm:$0xff] }
  0x65   :  { %3291 = vmatmul.mubr.bf16.vlgmr.msra.gmra.mrb[8].mxu0 %v5330_v12  ;;  %3332 = vmatmul.mubr.bf16.vlgmr.msra.gmra.mrb[8].mxu1 %v5330_v12 }
  0x66   :  { %3341 = vmatpush1.bf16.msra.mxu0 %v4550_v18  ;;  %3382 = vmatpush1.bf16.msra.mxu1 %v4552_v19  ;;  %v89_v18 = vld [vmem:[%s7082_s1 + $0x248] sm:$0xff] }
  0x67   :  { %3342 = vmatprep.subr.bf16.mxu0 %v4615_v20  ;;  %3383 = vmatprep.subr.bf16.mxu1 %v4617_v21  ;;  %v121_v19 = vld [vmem:[%s7082_s1 + $0x348] sm:$0xff]  ;;  %v4554_v20 = vcombine.low %v24_v7, %v56_v8  ;;  %v4556_v21 = vcombine.low %v25_v9, %v57_v10  ;;  %v5003_v7 = vcombine.high %v472_v0, %v504_v1  ;;  %v26_v9 = vld [vmem:[%s7082_s1 + $0x50] sm:$0xff] }
  0x68   :  { %3372 = vmatprep.mubr.bf16.mxu0 %v5183_v3  ;;  %3413 = vmatprep.mubr.bf16.mxu1 %v5183_v3  ;;  %v4621_v23 = vcombine.high %v89_v18, %v121_v19  ;;  %v58_v10 = vld [vmem:[%s7082_s1 + $0x150] sm:$0xff] }
  0x6a   :  { %3343 = vmatpush1.bf16.msra.mxu0 %v4614_v26  ;;  %3384 = vmatpush1.bf16.msra.mxu1 %v4616_v27  ;;  %v153_v26 = vld [vmem:[%s7082_s1 + $0x448] sm:$0xff] }
  0x6b   :  { %3344 = vmatprep.subr.bf16.mxu0 %v4679_v28  ;;  %3385 = vmatprep.subr.bf16.mxu1 %v4681_v29  ;;  %v185_v27 = vld [vmem:[%s7082_s1 + $0x548] sm:$0xff]  ;;  %v4618_v28 = vcombine.low %v88_v16, %v120_v17  ;;  %v4620_v29 = vcombine.low %v89_v18, %v121_v19  ;;  %v4559_v16 = vcombine.high %v26_v9, %v58_v10  ;;  %v90_v18 = vld [vmem:[%s7082_s1 + $0x250] sm:$0xff] }
  0x6c   :  { %v4685_v31 = vcombine.high %v153_v26, %v185_v27  ;;  %v122_v19 = vld [vmem:[%s7082_s1 + $0x350] sm:$0xff] }
  0x6e   :  { %3345 = vmatpush1.bf16.msra.mxu0 %v4678_v34  ;;  %3386 = vmatpush1.bf16.msra.mxu1 %v4680_v35  ;;  %v217_v34 = vld [vmem:[%s7082_s1 + $0x648] sm:$0xff] }
  0x6f   :  { %3346 = vmatprep.subr.bf16.mxu0 %v4743_v36  ;;  %3387 = vmatprep.subr.bf16.mxu1 %v4745_v37  ;;  %v249_v35 = vld [vmem:[%s7082_s1 + $0x748] sm:$0xff]  ;;  %v4682_v36 = vcombine.low %v152_v24, %v184_v25  ;;  %v4684_v37 = vcombine.low %v153_v26, %v185_v27  ;;  %v4623_v24 = vcombine.high %v90_v18, %v122_v19  ;;  %v154_v26 = vld [vmem:[%s7082_s1 + $0x450] sm:$0xff] }
  0x70   :  { %v4749_v39 = vcombine.high %v217_v34, %v249_v35  ;;  %v186_v27 = vld [vmem:[%s7082_s1 + $0x550] sm:$0xff] }
  0x72   :  { %3347 = vmatpush1.bf16.msra.mxu0 %v4742_v42  ;;  %3388 = vmatpush1.bf16.msra.mxu1 %v4744_v43  ;;  %v281_v42 = vld [vmem:[%s7082_s1 + $0x848] sm:$0xff] }
  0x73   :  { %3348 = vmatprep.subr.bf16.mxu0 %v4807_v44  ;;  %3389 = vmatprep.subr.bf16.mxu1 %v4809_v45  ;;  %v313_v43 = vld [vmem:[%s7082_s1 + $0x948] sm:$0xff]  ;;  %v4746_v44 = vcombine.low %v216_v32, %v248_v33  ;;  %v4748_v45 = vcombine.low %v217_v34, %v249_v35  ;;  %v4687_v32 = vcombine.high %v154_v26, %v186_v27  ;;  %v218_v34 = vld [vmem:[%s7082_s1 + $0x650] sm:$0xff] }
  0x74   :  { %v4813_v47 = vcombine.high %v281_v42, %v313_v43  ;;  %v250_v35 = vld [vmem:[%s7082_s1 + $0x750] sm:$0xff] }
  0x76   :  { %3349 = vmatpush1.bf16.msra.mxu0 %v4806_v50  ;;  %3390 = vmatpush1.bf16.msra.mxu1 %v4808_v51  ;;  %v345_v50 = vld [vmem:[%s7082_s1 + $0xa48] sm:$0xff] }
  0x77   :  { %3350 = vmatprep.subr.bf16.mxu0 %v4871_v52  ;;  %3391 = vmatprep.subr.bf16.mxu1 %v4873_v53  ;;  %v377_v51 = vld [vmem:[%s7082_s1 + $0xb48] sm:$0xff]  ;;  %v4810_v52 = vcombine.low %v280_v40, %v312_v41  ;;  %v4812_v53 = vcombine.low %v281_v42, %v313_v43  ;;  %v282_v41 = vld [vmem:[%s7082_s1 + $0x850] sm:$0xff]  ;;  %v283_v43 = vld [vmem:[%s7082_s1 + $0x858] sm:$0xff] }
  0x78   :  { %v4877_v55 = vcombine.high %v345_v50, %v377_v51  ;;  %v314_v42 = vld [vmem:[%s7082_s1 + $0x950] sm:$0xff] }
  0x7a   :  { %3351 = vmatpush1.bf16.msra.mxu0 %v4870_v58  ;;  %3392 = vmatpush1.bf16.msra.mxu1 %v4872_v59  ;;  %v409_v58 = vld [vmem:[%s7082_s1 + $0xc48] sm:$0xff] }
  0x7b   :  { %3352 = vmatprep.subr.bf16.mxu0 %v4935_v60  ;;  %3393 = vmatprep.subr.bf16.mxu1 %v4937_v61  ;;  %v441_v59 = vld [vmem:[%s7082_s1 + $0xd48] sm:$0xff]  ;;  %v4874_v60 = vcombine.low %v344_v48, %v376_v49  ;;  %v4876_v61 = vcombine.low %v345_v50, %v377_v51  ;;  %v346_v49 = vld [vmem:[%s7082_s1 + $0xa50] sm:$0xff]  ;;  %v347_v51 = vld [vmem:[%s7082_s1 + $0xa58] sm:$0xff] }
  0x7c   :  { %v4941_v63 = vcombine.high %v409_v58, %v441_v59  ;;  %v378_v50 = vld [vmem:[%s7082_s1 + $0xb50] sm:$0xff] }
  0x7e   :  { %3353 = vmatpush1.bf16.msra.mxu0 %v4934_v2  ;;  %3394 = vmatpush1.bf16.msra.mxu1 %v4936_v4  ;;  %v473_v2 = vld [vmem:[%s7082_s1 + $0xe48] sm:$0xff] }
  0x7f   :  { %3354 = vmatprep.subr.bf16.mxu0 %v4999_v5  ;;  %3395 = vmatprep.subr.bf16.mxu1 %v5001_v6  ;;  %v505_v4 = vld [vmem:[%s7082_s1 + $0xf48] sm:$0xff]  ;;  %v4938_v5 = vcombine.low %v408_v56, %v440_v57  ;;  %v4940_v6 = vcombine.low %v409_v58, %v441_v59  ;;  %v410_v57 = vld [vmem:[%s7082_s1 + $0xc50] sm:$0xff]  ;;  %v411_v59 = vld [vmem:[%s7082_s1 + $0xc58] sm:$0xff] }
  0x80   :  { %v5005_v8 = vcombine.high %v473_v2, %v505_v4  ;;  %v442_v58 = vld [vmem:[%s7082_s1 + $0xd50] sm:$0xff] }
  0x82   :  { %3355 = vmatpush1.bf16.msra.mxu0 %v4998_v11  ;;  %3396 = vmatpush1.bf16.msra.mxu1 %v5000_v13  ;;  %v27_v11 = vld [vmem:[%s7082_s1 + $0x58] sm:$0xff] }
  0x83   :  { %3422 = vmatprep.subr.bf16.mxu0 %v4555_v14  ;;  %3463 = vmatprep.subr.bf16.mxu1 %v4557_v15  ;;  %v59_v13 = vld [vmem:[%s7082_s1 + $0x158] sm:$0xff]  ;;  %v5002_v14 = vcombine.low %v472_v0, %v504_v1  ;;  %v5004_v15 = vcombine.low %v473_v2, %v505_v4  ;;  %v474_v1 = vld [vmem:[%s7082_s1 + $0xe50] sm:$0xff] }
  0x84   :  { %v4561_v17 = vcombine.high %v27_v11, %v59_v13  ;;  %v506_v2 = vld [vmem:[%s7082_s1 + $0xf50] sm:$0xff]  ;;  %v475_v4 = vld [vmem:[%s7082_s1 + $0xe58] sm:$0xff] }
  0x85   :  { %3373 = vmatmul.mubr.bf16.vlgmr.msra.gmra.mrb[12].mxu0 %v5330_v12  ;;  %3414 = vmatmul.mubr.bf16.vlgmr.msra.gmra.mrb[12].mxu1 %v5330_v12 }
  0x86   :  { %3423 = vmatpush1.bf16.msra.mxu0 %v4554_v20  ;;  %3464 = vmatpush1.bf16.msra.mxu1 %v4556_v21  ;;  %v91_v20 = vld [vmem:[%s7082_s1 + $0x258] sm:$0xff] }
  0x87   :  { %3424 = vmatprep.subr.bf16.mxu0 %v4619_v22  ;;  %3465 = vmatprep.subr.bf16.mxu1 %v4621_v23  ;;  %v123_v21 = vld [vmem:[%s7082_s1 + $0x358] sm:$0xff]  ;;  %v4558_v22 = vcombine.low %v26_v9, %v58_v10  ;;  %v4560_v23 = vcombine.low %v27_v11, %v59_v13  ;;  %v28_v10 = vld [vmem:[%s7082_s1 + $0x60] sm:$0xff]  ;;  %v29_v13 = vld [vmem:[%s7082_s1 + $0x68] sm:$0xff] }
  0x88   :  { %3454 = vmatprep.mubr.bf16.mxu0 %v5183_v3  ;;  %3495 = vmatprep.mubr.bf16.mxu1 %v5183_v3  ;;  %v4625_v25 = vcombine.high %v91_v20, %v123_v21  ;;  %v60_v11 = vld [vmem:[%s7082_s1 + $0x160] sm:$0xff] }
  0x8a   :  { %3425 = vmatpush1.bf16.msra.mxu0 %v4618_v28  ;;  %3466 = vmatpush1.bf16.msra.mxu1 %v4620_v29  ;;  %v155_v28 = vld [vmem:[%s7082_s1 + $0x458] sm:$0xff] }
  0x8b   :  { %3426 = vmatprep.subr.bf16.mxu0 %v4683_v30  ;;  %3467 = vmatprep.subr.bf16.mxu1 %v4685_v31  ;;  %v187_v29 = vld [vmem:[%s7082_s1 + $0x558] sm:$0xff]  ;;  %v4622_v30 = vcombine.low %v90_v18, %v122_v19  ;;  %v4624_v31 = vcombine.low %v91_v20, %v123_v21  ;;  %v92_v19 = vld [vmem:[%s7082_s1 + $0x260] sm:$0xff]  ;;  %v93_v21 = vld [vmem:[%s7082_s1 + $0x268] sm:$0xff] }
  0x8c   :  { %v4689_v33 = vcombine.high %v155_v28, %v187_v29  ;;  %v124_v20 = vld [vmem:[%s7082_s1 + $0x360] sm:$0xff] }
  0x8e   :  { %3427 = vmatpush1.bf16.msra.mxu0 %v4682_v36  ;;  %3468 = vmatpush1.bf16.msra.mxu1 %v4684_v37  ;;  %v251_v36 = vld [vmem:[%s7082_s1 + $0x758] sm:$0xff]  ;;  %v4686_v37 = vcombine.low %v154_v26, %v186_v27  ;;  %v156_v27 = vld [vmem:[%s7082_s1 + $0x460] sm:$0xff] }
  0x8f   :  { %3428 = vmatprep.subr.bf16.mxu0 %v4747_v38  ;;  %3469 = vmatprep.subr.bf16.mxu1 %v4749_v39  ;;  %v4688_v38 = vcombine.low %v155_v28, %v187_v29  ;;  %v4751_v39 = vcombine.high %v218_v34, %v250_v35  ;;  %v188_v28 = vld [vmem:[%s7082_s1 + $0x560] sm:$0xff] }
  0x90   :  { %v5844_v29 = vld [vmem:[%s7083_s0] sm:$0xf] }
  0x92   :  { %3429 = vmatpush1.bf16.msra.mxu0 %v4746_v44  ;;  %3470 = vmatpush1.bf16.msra.mxu1 %v4748_v45  ;;  %v315_v44 = vld [vmem:[%s7082_s1 + $0x958] sm:$0xff]  ;;  %v4750_v45 = vcombine.low %v218_v34, %v250_v35  ;;  %v4691_v34 = vcombine.high %v156_v27, %v188_v28 }
  0x93   :  { %3430 = vmatprep.subr.bf16.mxu0 %v4811_v46  ;;  %3471 = vmatprep.subr.bf16.mxu1 %v4813_v47  ;;  %v4815_v47 = vcombine.high %v282_v41, %v314_v42  ;;  %v4817_v48 = vcombine.high %v283_v43, %v315_v44 }
  0x96   :  { %3431 = vmatpush1.bf16.msra.mxu0 %v4810_v52  ;;  %3472 = vmatpush1.bf16.msra.mxu1 %v4812_v53  ;;  %v379_v52 = vld [vmem:[%s7082_s1 + $0xb58] sm:$0xff]  ;;  %v4814_v53 = vcombine.low %v282_v41, %v314_v42 }
  0x97   :  { %3432 = vmatprep.subr.bf16.mxu0 %v4875_v54  ;;  %3473 = vmatprep.subr.bf16.mxu1 %v4877_v55  ;;  %v4816_v54 = vcombine.low %v283_v43, %v315_v44  ;;  %v4879_v55 = vcombine.high %v346_v49, %v378_v50  ;;  %v4881_v56 = vcombine.high %v347_v51, %v379_v52  ;;  %v284_v43 = vld [vmem:[%s7082_s1 + $0x860] sm:$0xff] }
  0x98   :  { %v316_v44 = vld [vmem:[%s7082_s1 + $0x960] sm:$0xff] }
  0x9a   :  { %3433 = vmatpush1.bf16.msra.mxu0 %v4874_v60  ;;  %3474 = vmatpush1.bf16.msra.mxu1 %v4876_v61  ;;  %v443_v60 = vld [vmem:[%s7082_s1 + $0xd58] sm:$0xff]  ;;  %v4878_v61 = vcombine.low %v346_v49, %v378_v50  ;;  %v4819_v49 = vcombine.high %v284_v43, %v316_v44 }
  0x9b   :  { %3434 = vmatprep.subr.bf16.mxu0 %v4939_v62  ;;  %3475 = vmatprep.subr.bf16.mxu1 %v4941_v63  ;;  %v4880_v62 = vcombine.low %v347_v51, %v379_v52  ;;  %v4943_v63 = vcombine.high %v410_v57, %v442_v58  ;;  %v4945_v0 = vcombine.high %v411_v59, %v443_v60  ;;  %v348_v51 = vld [vmem:[%s7082_s1 + $0xa60] sm:$0xff] }
  0x9c   :  { %v380_v52 = vld [vmem:[%s7082_s1 + $0xb60] sm:$0xff] }
  0x9e   :  { %3435 = vmatpush1.bf16.msra.mxu0 %v4938_v5  ;;  %3476 = vmatpush1.bf16.msra.mxu1 %v4940_v6  ;;  %v507_v5 = vld [vmem:[%s7082_s1 + $0xf58] sm:$0xff]  ;;  %v4942_v6 = vcombine.low %v410_v57, %v442_v58  ;;  %v4883_v57 = vcombine.high %v348_v51, %v380_v52 }
  0x9f   :  { %3436 = vmatprep.subr.bf16.mxu0 %v5003_v7  ;;  %3477 = vmatprep.subr.bf16.mxu1 %v5005_v8  ;;  %v4944_v7 = vcombine.low %v411_v59, %v443_v60  ;;  %v5007_v8 = vcombine.high %v474_v1, %v506_v2  ;;  %v5009_v9 = vcombine.high %v475_v4, %v507_v5  ;;  %v412_v59 = vld [vmem:[%s7082_s1 + $0xc60] sm:$0xff] }
  0xa0   :  { %v444_v60 = vld [vmem:[%s7082_s1 + $0xd60] sm:$0xff] }
  0xa2   :  { %3437 = vmatpush1.bf16.msra.mxu0 %v5002_v14  ;;  %3478 = vmatpush1.bf16.msra.mxu1 %v5004_v15  ;;  %v61_v14 = vld [vmem:[%s7082_s1 + $0x168] sm:$0xff]  ;;  %v5006_v15 = vcombine.low %v474_v1, %v506_v2  ;;  %v4947_v1 = vcombine.high %v412_v59, %v444_v60 }
  0xa3   :  { %3504 = vmatprep.subr.bf16.mxu0 %v4559_v16  ;;  %3545 = vmatprep.subr.bf16.mxu1 %v4561_v17  ;;  %v5008_v16 = vcombine.low %v475_v4, %v507_v5  ;;  %v4563_v17 = vcombine.high %v28_v10, %v60_v11  ;;  %v4565_v18 = vcombine.high %v29_v13, %v61_v14  ;;  %v476_v4 = vld [vmem:[%s7082_s1 + $0xe60] sm:$0xff] }
  0xa4   :  { %v508_v5 = vld [vmem:[%s7082_s1 + $0xf60] sm:$0xff] }
  0xa5   :  { %3455 = vmatmul.mubr.bf16.vlgmr.msra.gmra.mrb[16].mxu0 %v5330_v12  ;;  %3496 = vmatmul.mubr.bf16.vlgmr.msra.gmra.mrb[16].mxu1 %v5330_v12  ;;  %v219_v12 = vld [vmem:[%s7082_s1 + $0x658] sm:$0xff] }
  0xa6   :  { %3505 = vmatpush1.bf16.msra.mxu0 %v4558_v22  ;;  %3546 = vmatpush1.bf16.msra.mxu1 %v4560_v23  ;;  %v4753_v40 = vcombine.high %v219_v12, %v251_v36  ;;  %v4752_v46 = vcombine.low %v219_v12, %v251_v36  ;;  %v125_v22 = vld [vmem:[%s7082_s1 + $0x368] sm:$0xff]  ;;  %v4562_v23 = vcombine.low %v28_v10, %v60_v11  ;;  %v220_v12 = vld [vmem:[%s7082_s1 + $0x660] sm:$0xff] }
  0xa7   :  { %3506 = vmatprep.subr.bf16.mxu0 %v4623_v24  ;;  %3547 = vmatprep.subr.bf16.mxu1 %v4625_v25  ;;  %v4564_v24 = vcombine.low %v29_v13, %v61_v14  ;;  %v4627_v25 = vcombine.high %v92_v19, %v124_v20  ;;  %v4629_v26 = vcombine.high %v93_v21, %v125_v22  ;;  %v252_v36 = vld [vmem:[%s7082_s1 + $0x760] sm:$0xff]  ;;  %v30_v13 = vld [vmem:[%s7082_s1 + $0x70] sm:$0xff] }
  0xa8   :  { %3536 = vmatprep.mubr.bf16.mxu0 %v5183_v3  ;;  %3577 = vmatprep.mubr.bf16.mxu1 %v5183_v3  ;;  %v4755_v41 = vcombine.high %v220_v12, %v252_v36  ;;  %v5011_v10 = vcombine.high %v476_v4, %v508_v5  ;;  %v62_v14 = vld [vmem:[%s7082_s1 + $0x170] sm:$0xff] }
  0xaa   :  { %3507 = vmatpush1.bf16.msra.mxu0 %v4622_v30  ;;  %3548 = vmatpush1.bf16.msra.mxu1 %v4624_v31  ;;  %v157_v30 = vld [vmem:[%s7082_s1 + $0x468] sm:$0xff] }
  0xab   :  { %3508 = vmatprep.subr.bf16.mxu0 %v4687_v32  ;;  %3549 = vmatprep.subr.bf16.mxu1 %v4689_v33  ;;  %v189_v31 = vld [vmem:[%s7082_s1 + $0x568] sm:$0xff]  ;;  %v4626_v32 = vcombine.low %v92_v19, %v124_v20  ;;  %v4628_v33 = vcombine.low %v93_v21, %v125_v22  ;;  %v4567_v19 = vcombine.high %v30_v13, %v62_v14  ;;  %v94_v21 = vld [vmem:[%s7082_s1 + $0x270] sm:$0xff] }
  0xac   :  { %v4693_v35 = vcombine.high %v157_v30, %v189_v31  ;;  %v126_v22 = vld [vmem:[%s7082_s1 + $0x370] sm:$0xff] }
  0xae   :  { %3509 = vmatpush1.bf16.msra.mxu0 %v4686_v37  ;;  %3550 = vmatpush1.bf16.msra.mxu1 %v4688_v38  ;;  %v221_v37 = vld [vmem:[%s7082_s1 + $0x668] sm:$0xff] }
  0xaf   :  { %3510 = vmatprep.subr.bf16.mxu0 %v4751_v39  ;;  %3551 = vmatprep.subr.bf16.mxu1 %v4753_v40  ;;  %v253_v38 = vld [vmem:[%s7082_s1 + $0x768] sm:$0xff]  ;;  %v4690_v39 = vcombine.low %v156_v27, %v188_v28  ;;  %v4692_v40 = vcombine.low %v157_v30, %v189_v31  ;;  %v4631_v27 = vcombine.high %v94_v21, %v126_v22  ;;  %v158_v30 = vld [vmem:[%s7082_s1 + $0x470] sm:$0xff] }
  0xb0   :  { %v4757_v42 = vcombine.high %v221_v37, %v253_v38  ;;  %v190_v31 = vld [vmem:[%s7082_s1 + $0x570] sm:$0xff] }
  0xb2   :  { %3511 = vmatpush1.bf16.msra.mxu0 %v4750_v45  ;;  %3552 = vmatpush1.bf16.msra.mxu1 %v4752_v46  ;;  %v285_v45 = vld [vmem:[%s7082_s1 + $0x868] sm:$0xff] }
  0xb3   :  { %3512 = vmatprep.subr.bf16.mxu0 %v4815_v47  ;;  %3553 = vmatprep.subr.bf16.mxu1 %v4817_v48  ;;  %v317_v46 = vld [vmem:[%s7082_s1 + $0x968] sm:$0xff]  ;;  %v4754_v47 = vcombine.low %v220_v12, %v252_v36  ;;  %v4756_v48 = vcombine.low %v221_v37, %v253_v38  ;;  %v4695_v12 = vcombine.high %v158_v30, %v190_v31  ;;  %v222_v37 = vld [vmem:[%s7082_s1 + $0x670] sm:$0xff] }
  0xb4   :  { %v4821_v50 = vcombine.high %v285_v45, %v317_v46  ;;  %v254_v38 = vld [vmem:[%s7082_s1 + $0x770] sm:$0xff] }
  0xb6   :  { %3513 = vmatpush1.bf16.msra.mxu0 %v4814_v53  ;;  %3554 = vmatpush1.bf16.msra.mxu1 %v4816_v54  ;;  %v349_v53 = vld [vmem:[%s7082_s1 + $0xa68] sm:$0xff] }
  0xb7   :  { %3514 = vmatprep.subr.bf16.mxu0 %v4879_v55  ;;  %3555 = vmatprep.subr.bf16.mxu1 %v4881_v56  ;;  %v381_v54 = vld [vmem:[%s7082_s1 + $0xb68] sm:$0xff]  ;;  %v4818_v55 = vcombine.low %v284_v43, %v316_v44  ;;  %v4820_v56 = vcombine.low %v285_v45, %v317_v46  ;;  %v4759_v43 = vcombine.high %v222_v37, %v254_v38  ;;  %v286_v45 = vld [vmem:[%s7082_s1 + $0x870] sm:$0xff] }
  0xb8   :  { %v4885_v58 = vcombine.high %v349_v53, %v381_v54  ;;  %v318_v46 = vld [vmem:[%s7082_s1 + $0x970] sm:$0xff] }
  0xba   :  { %3515 = vmatpush1.bf16.msra.mxu0 %v4878_v61  ;;  %3556 = vmatpush1.bf16.msra.mxu1 %v4880_v62  ;;  %v413_v61 = vld [vmem:[%s7082_s1 + $0xc68] sm:$0xff] }
  0xbb   :  { %3516 = vmatprep.subr.bf16.mxu0 %v4943_v63  ;;  %3557 = vmatprep.subr.bf16.mxu1 %v4945_v0  ;;  %v445_v62 = vld [vmem:[%s7082_s1 + $0xd68] sm:$0xff]  ;;  %v4882_v63 = vcombine.low %v348_v51, %v380_v52  ;;  %v4884_v0 = vcombine.low %v349_v53, %v381_v54  ;;  %v4823_v51 = vcombine.high %v286_v45, %v318_v46  ;;  %v350_v53 = vld [vmem:[%s7082_s1 + $0xa70] sm:$0xff] }
  0xbc   :  { %v4949_v2 = vcombine.high %v413_v61, %v445_v62  ;;  %v382_v54 = vld [vmem:[%s7082_s1 + $0xb70] sm:$0xff] }
  0xbe   :  { %3517 = vmatpush1.bf16.msra.mxu0 %v4942_v6  ;;  %3558 = vmatpush1.bf16.msra.mxu1 %v4944_v7  ;;  %v477_v6 = vld [vmem:[%s7082_s1 + $0xe68] sm:$0xff] }
  0xbf   :  { %3518 = vmatprep.subr.bf16.mxu0 %v5007_v8  ;;  %3559 = vmatprep.subr.bf16.mxu1 %v5009_v9  ;;  %v509_v7 = vld [vmem:[%s7082_s1 + $0xf68] sm:$0xff]  ;;  %v4946_v8 = vcombine.low %v412_v59, %v444_v60  ;;  %v4948_v9 = vcombine.low %v413_v61, %v445_v62  ;;  %v4887_v59 = vcombine.high %v350_v53, %v382_v54  ;;  %v414_v61 = vld [vmem:[%s7082_s1 + $0xc70] sm:$0xff] }
  0xc0   :  { %v5013_v11 = vcombine.high %v477_v6, %v509_v7  ;;  %v446_v62 = vld [vmem:[%s7082_s1 + $0xd70] sm:$0xff] }
  0xc2   :  { %3519 = vmatpush1.bf16.msra.mxu0 %v5006_v15  ;;  %3560 = vmatpush1.bf16.msra.mxu1 %v5008_v16  ;;  %v31_v15 = vld [vmem:[%s7082_s1 + $0x78] sm:$0xff] }
  0xc3   :  { %3586 = vmatprep.subr.bf16.mxu0 %v4563_v17  ;;  %3627 = vmatprep.subr.bf16.mxu1 %v4565_v18  ;;  %v63_v16 = vld [vmem:[%s7082_s1 + $0x178] sm:$0xff]  ;;  %v5010_v17 = vcombine.low %v476_v4, %v508_v5  ;;  %v5012_v18 = vcombine.low %v477_v6, %v509_v7  ;;  %v4951_v5 = vcombine.high %v414_v61, %v446_v62 }
  0xc4   :  { %v4569_v20 = vcombine.high %v31_v15, %v63_v16 }
  0xc5   :  { %3537 = vmatmul.mubr.bf16.vlgmr.msra.gmra.mrb[20].mxu0 %v5844_v29  ;;  %3578 = vmatmul.mubr.bf16.vlgmr.msra.gmra.mrb[20].mxu1 %v5844_v29 }
  0xc6   :  { %3587 = vmatpush1.bf16.msra.mxu0 %v4562_v23  ;;  %3628 = vmatpush1.bf16.msra.mxu1 %v4564_v24  ;;  %v95_v23 = vld [vmem:[%s7082_s1 + $0x278] sm:$0xff] }
  0xc7   :  { %3588 = vmatprep.subr.bf16.mxu0 %v4627_v25  ;;  %3629 = vmatprep.subr.bf16.mxu1 %v4629_v26  ;;  %v127_v24 = vld [vmem:[%s7082_s1 + $0x378] sm:$0xff]  ;;  %v4566_v25 = vcombine.low %v30_v13, %v62_v14  ;;  %v4568_v26 = vcombine.low %v31_v15, %v63_v16 }
  0xc8   :  { %3618 = vmatprep.mubr.bf16.mxu0 %v5183_v3  ;;  %3659 = vmatprep.mubr.bf16.mxu1 %v5183_v3  ;;  %v4633_v28 = vcombine.high %v95_v23, %v127_v24  ;;  %v479_v14 = vld [vmem:[%s7082_s1 + $0xe78] sm:$0xff] }
  0xc9   :  { %v511_v15 = vld [vmem:[%s7082_s1 + $0xf78] sm:$0xff] }
  0xca   :  { %3589 = vmatpush1.bf16.msra.mxu0 %v4626_v32  ;;  %3630 = vmatpush1.bf16.msra.mxu1 %v4628_v33  ;;  %v159_v32 = vld [vmem:[%s7082_s1 + $0x478] sm:$0xff] }
  0xcb   :  { %3590 = vmatprep.subr.bf16.mxu0 %v4691_v34  ;;  %3631 = vmatprep.subr.bf16.mxu1 %v4693_v35  ;;  %v191_v33 = vld [vmem:[%s7082_s1 + $0x578] sm:$0xff]  ;;  %v4630_v34 = vcombine.low %v94_v21, %v126_v22  ;;  %v4632_v35 = vcombine.low %v95_v23, %v127_v24 }
  0xcc   :  { %v4697_v36 = vcombine.high %v159_v32, %v191_v33 }
  0xce   :  { %3591 = vmatpush1.bf16.msra.mxu0 %v4690_v39  ;;  %3632 = vmatpush1.bf16.msra.mxu1 %v4692_v40  ;;  %v223_v39 = vld [vmem:[%s7082_s1 + $0x678] sm:$0xff] }
  0xcf   :  { %3592 = vmatprep.subr.bf16.mxu0 %v4755_v41  ;;  %3633 = vmatprep.subr.bf16.mxu1 %v4757_v42  ;;  %v255_v40 = vld [vmem:[%s7082_s1 + $0x778] sm:$0xff]  ;;  %v4694_v41 = vcombine.low %v158_v30, %v190_v31  ;;  %v4696_v42 = vcombine.low %v159_v32, %v191_v33  ;;  %v64_v30 = vld [vmem:[%s7082_s1 + $0x180] sm:$0xff]  ;;  %v33_v31 = vld [vmem:[%s7082_s1 + $0x88] sm:$0xff] }
  0xd0   :  { %v4761_v44 = vcombine.high %v223_v39, %v255_v40  ;;  %v65_v32 = vld [vmem:[%s7082_s1 + $0x188] sm:$0xff] }
  0xd2   :  { %3593 = vmatpush1.bf16.msra.mxu0 %v4754_v47  ;;  %3634 = vmatpush1.bf16.msra.mxu1 %v4756_v48  ;;  %v287_v47 = vld [vmem:[%s7082_s1 + $0x878] sm:$0xff] }
  0xd3   :  { %3594 = vmatprep.subr.bf16.mxu0 %v4819_v49  ;;  %3635 = vmatprep.subr.bf16.mxu1 %v4821_v50  ;;  %v319_v48 = vld [vmem:[%s7082_s1 + $0x978] sm:$0xff]  ;;  %v4758_v49 = vcombine.low %v222_v37, %v254_v38  ;;  %v4760_v50 = vcombine.low %v223_v39, %v255_v40  ;;  %v128_v37 = vld [vmem:[%s7082_s1 + $0x380] sm:$0xff]  ;;  %v97_v38 = vld [vmem:[%s7082_s1 + $0x288] sm:$0xff] }
  0xd4   :  { %v4825_v52 = vcombine.high %v287_v47, %v319_v48  ;;  %v129_v39 = vld [vmem:[%s7082_s1 + $0x388] sm:$0xff] }
  0xd6   :  { %3595 = vmatpush1.bf16.msra.mxu0 %v4818_v55  ;;  %3636 = vmatpush1.bf16.msra.mxu1 %v4820_v56  ;;  %v351_v55 = vld [vmem:[%s7082_s1 + $0xa78] sm:$0xff] }
  0xd7   :  { %3596 = vmatprep.subr.bf16.mxu0 %v4883_v57  ;;  %3637 = vmatprep.subr.bf16.mxu1 %v4885_v58  ;;  %v383_v56 = vld [vmem:[%s7082_s1 + $0xb78] sm:$0xff]  ;;  %v4822_v57 = vcombine.low %v286_v45, %v318_v46  ;;  %v4824_v58 = vcombine.low %v287_v47, %v319_v48  ;;  %v192_v45 = vld [vmem:[%s7082_s1 + $0x580] sm:$0xff]  ;;  %v161_v47 = vld [vmem:[%s7082_s1 + $0x488] sm:$0xff] }
  0xd8   :  { %v4889_v60 = vcombine.high %v351_v55, %v383_v56  ;;  %v4888_v4 = vcombine.low %v351_v55, %v383_v56  ;;  %v193_v48 = vld [vmem:[%s7082_s1 + $0x588] sm:$0xff]  ;;  %v224_v56 = vld [vmem:[%s7082_s1 + $0x680] sm:$0xff] }
  0xd9   :  { %v4701_v55 = vcombine.high %v161_v47, %v193_v48 }
  0xda   :  { %3597 = vmatpush1.bf16.msra.mxu0 %v4882_v63  ;;  %3638 = vmatpush1.bf16.msra.mxu1 %v4884_v0  ;;  %v415_v63 = vld [vmem:[%s7082_s1 + $0xc78] sm:$0xff] }
  0xdb   :  { %3598 = vmatprep.subr.bf16.mxu0 %v4947_v1  ;;  %3639 = vmatprep.subr.bf16.mxu1 %v4949_v2  ;;  %v447_v0 = vld [vmem:[%s7082_s1 + $0xd78] sm:$0xff]  ;;  %v6004_v1 = vpop.permute.xlu0 %531  ;;  %v4886_v2 = vcombine.low %v350_v53, %v382_v54 }
  0xdc   :  { %v4953_v7 = vcombine.high %v415_v63, %v447_v0  ;;  %v4952_v24 = vcombine.low %v415_v63, %v447_v0  ;;  %v288_v0 = vld [vmem:[%s7082_s1 + $0x880] sm:$0xff] }
  0xde   :  { %3599 = vmatpush1.bf16.msra.mxu0 %v4946_v8  ;;  %3640 = vmatpush1.bf16.msra.mxu1 %v4948_v9  ;;  %v478_v8 = vld [vmem:[%s7082_s1 + $0xe70] sm:$0xff] }
  0xdf   :  { %3600 = vmatprep.subr.bf16.mxu0 %v5011_v10  ;;  %3641 = vmatprep.subr.bf16.mxu1 %v5013_v11  ;;  %v510_v9 = vld [vmem:[%s7082_s1 + $0xf70] sm:$0xff] }
  0xe0   :  { %v5014_v33 = vcombine.low %v478_v8, %v510_v9 }
  0xe2   :  { %3601 = vmatpush1.bf16.msra.mxu0 %v5010_v17  ;;  %3642 = vmatpush1.bf16.msra.mxu1 %v5012_v18 }
  0xe3   :  { %3668 = vmatprep.subr.bf16.mxu0 %v4567_v19  ;;  %3709 = vmatprep.subr.bf16.mxu1 %v4569_v20  ;;  %v4950_v20 = vcombine.low %v414_v61, %v446_v62  ;;  %v4700_v61 = vcombine.low %v161_v47, %v193_v48  ;;  %v34_v47 = vld [vmem:[%s7082_s1 + $0x90] sm:$0xff] }
  0xe4   :  { %v66_v48 = vld [vmem:[%s7082_s1 + $0x190] sm:$0xff] }
  0xe5   :  { %3619 = vmatmul.mubr.bf16.vlgmr.msra.gmra.mrb[24].mxu0 %v5844_v29  ;;  %3660 = vmatmul.mubr.bf16.vlgmr.msra.gmra.mrb[24].mxu1 %v5844_v29 }
  0xe6   :  { %3669 = vmatpush1.bf16.msra.mxu0 %v4566_v25  ;;  %3710 = vmatpush1.bf16.msra.mxu1 %v4568_v26  ;;  %v5015_v25 = vcombine.high %v478_v8, %v510_v9 }
  0xe7   :  { %3670 = vmatprep.subr.bf16.mxu0 %v4631_v27  ;;  %3711 = vmatprep.subr.bf16.mxu1 %v4633_v28  ;;  %v5017_v27 = vcombine.high %v479_v14, %v511_v15  ;;  %v32_v28 = vld [vmem:[%s7082_s1 + $0x80] sm:$0xff] }
  0xe8   :  { %3700 = vmatprep.mubr.bf16.mxu0 %v5183_v3  ;;  %3741 = vmatprep.mubr.bf16.mxu1 %v5183_v3  ;;  %v4570_v40 = vcombine.low %v32_v28, %v64_v30 }
  0xea   :  { %3671 = vmatpush1.bf16.msra.mxu0 %v4630_v34  ;;  %3712 = vmatpush1.bf16.msra.mxu1 %v4632_v35  ;;  %v5016_v34 = vcombine.low %v479_v14, %v511_v15  ;;  %v4571_v35 = vcombine.high %v32_v28, %v64_v30  ;;  %v385_v14 = vld [vmem:[%s7082_s1 + $0xb88] sm:$0xff]  ;;  %v480_v28 = vld [vmem:[%s7082_s1 + $0xe80] sm:$0xff] }
  0xeb   :  { %3672 = vmatprep.subr.bf16.mxu0 %v4695_v12  ;;  %3713 = vmatprep.subr.bf16.mxu1 %v4697_v36  ;;  %v4573_v12 = vcombine.high %v33_v31, %v65_v32  ;;  %v96_v36 = vld [vmem:[%s7082_s1 + $0x280] sm:$0xff] }
  0xec   :  { %v512_v30 = vld [vmem:[%s7082_s1 + $0xf80] sm:$0xff] }
  0xee   :  { %3673 = vmatpush1.bf16.msra.mxu0 %v4694_v41  ;;  %3714 = vmatpush1.bf16.msra.mxu1 %v4696_v42  ;;  %v4572_v41 = vcombine.low %v33_v31, %v65_v32  ;;  %v4635_v42 = vcombine.high %v96_v36, %v128_v37 }
  0xef   :  { %3674 = vmatprep.subr.bf16.mxu0 %v4759_v43  ;;  %3715 = vmatprep.subr.bf16.mxu1 %v4761_v44  ;;  %v4637_v43 = vcombine.high %v97_v38, %v129_v39  ;;  %v160_v44 = vld [vmem:[%s7082_s1 + $0x480] sm:$0xff] }
  0xf0   :  { %v4699_v53 = vcombine.high %v160_v44, %v192_v45 }
  0xf2   :  { %3675 = vmatpush1.bf16.msra.mxu0 %v4758_v49  ;;  %3716 = vmatpush1.bf16.msra.mxu1 %v4760_v50  ;;  %v4634_v50 = vcombine.low %v96_v36, %v128_v37 }
  0xf3   :  { %3676 = vmatprep.subr.bf16.mxu0 %v4823_v51  ;;  %3717 = vmatprep.subr.bf16.mxu1 %v4825_v52  ;;  %v4636_v52 = vcombine.low %v97_v38, %v129_v39 }
  0xf6   :  { %3677 = vmatpush1.bf16.msra.mxu0 %v4822_v57  ;;  %3718 = vmatpush1.bf16.msra.mxu1 %v4824_v58  ;;  %v256_v57 = vld [vmem:[%s7082_s1 + $0x780] sm:$0xff]  ;;  %v225_v58 = vld [vmem:[%s7082_s1 + $0x688] sm:$0xff] }
  0xf7   :  { %3678 = vmatprep.subr.bf16.mxu0 %v4887_v59  ;;  %3719 = vmatprep.subr.bf16.mxu1 %v4889_v60  ;;  %v257_v59 = vld [vmem:[%s7082_s1 + $0x788] sm:$0xff]  ;;  %v4698_v60 = vcombine.low %v160_v44, %v192_v45  ;;  %v4763_v62 = vcombine.high %v224_v56, %v256_v57  ;;  %v5019_v44 = vcombine.high %v480_v28, %v512_v30 }
  0xf8   :  { %v3128_v6 = vpop.f32.mrb[0].mxu0  ;;  %v3169_v10 = vpop.f32.mrb[0].mxu1  ;;  %v4765_v63 = vcombine.high %v225_v58, %v257_v59 }
  0xf9   :  { %v3129_v11 = vadd.f32 %v3128_v6, %v6004_v1  ;;  %v3130_v13 = vpop.f32.mrb[1].mxu0  ;;  %v3170_v16 = vadd.f32 %v3169_v10, %v6004_v1  ;;  %v3171_v18 = vpop.f32.mrb[1].mxu1  ;;  %v4762_v6 = vcombine.low %v224_v56, %v256_v57  ;;  %v352_v10 = vld [vmem:[%s7082_s1 + $0xa80] sm:$0xff]  ;;  %v130_v56 = vld [vmem:[%s7082_s1 + $0x390] sm:$0xff]  ;;  %v99_v57 = vld [vmem:[%s7082_s1 + $0x298] sm:$0xff] }
  0xfa   :  { %v3131_v17 = vadd.f32 %v3130_v13, %v6004_v1  ;;  %v3132_v19 = vpop.f32.mrb[2].mxu0  ;;  %3679 = vmatpush1.bf16.msra.mxu0 %v4886_v2  ;;  %v3172_v21 = vadd.f32 %v3171_v18, %v6004_v1  ;;  %v3173_v22 = vpop.f32.mrb[2].mxu1  ;;  %3720 = vmatpush1.bf16.msra.mxu1 %v4888_v4  ;;  %v320_v2 = vld [vmem:[%s7082_s1 + $0x980] sm:$0xff]  ;;  %v289_v4 = vld [vmem:[%s7082_s1 + $0x888] sm:$0xff] }
  0xfb   :  { %5052 = vtanh.f32 %v3129_v11  ;;  %v3133_v23 = vpop.f32.mrb[3].mxu0  ;;  %3680 = vmatprep.subr.bf16.mxu0 %v4951_v5  ;;  %v3174_v26 = vpop.f32.mrb[3].mxu1  ;;  %3721 = vmatprep.subr.bf16.mxu1 %v4953_v7  ;;  %v321_v5 = vld [vmem:[%s7082_s1 + $0x988] sm:$0xff]  ;;  %v4764_v7 = vcombine.low %v225_v58, %v257_v59  ;;  %v4827_v8 = vcombine.high %v288_v0, %v320_v2  ;;  %v384_v11 = vld [vmem:[%s7082_s1 + $0xb80] sm:$0xff]  ;;  %v4826_v15 = vcombine.low %v288_v0, %v320_v2  ;;  %v131_v58 = vld [vmem:[%s7082_s1 + $0x398] sm:$0xff] }
  0xfc   :  { %5054 = vtanh.f32 %v3170_v16  ;;  %v4829_v9 = vcombine.high %v289_v4, %v321_v5  ;;  %v353_v13 = vld [vmem:[%s7082_s1 + $0xa88] sm:$0xff]  ;;  %v4828_v16 = vcombine.low %v289_v4, %v321_v5  ;;  %v416_v19 = vld [vmem:[%s7082_s1 + $0xc80] sm:$0xff]  ;;  %v4890_v23 = vcombine.low %v352_v10, %v384_v11  ;;  %v194_v0 = vld [vmem:[%s7082_s1 + $0x590] sm:$0xff] }
  0xfd   :  { %5056 = vtanh.f32 %v3131_v17  ;;  %v4891_v17 = vcombine.high %v352_v10, %v384_v11  ;;  %v4893_v18 = vcombine.high %v353_v13, %v385_v14  ;;  %v449_v22 = vld [vmem:[%s7082_s1 + $0xd88] sm:$0xff]  ;;  %v4574_v59 = vcombine.low %v34_v47, %v66_v48  ;;  %v163_v4 = vld [vmem:[%s7082_s1 + $0x498] sm:$0xff] }
  0xfe   :  { %5058 = vtanh.f32 %v3172_v21  ;;  %3681 = vmatpush1.bf16.msra.mxu0 %v4950_v20  ;;  %3722 = vmatpush1.bf16.msra.mxu1 %v4952_v24  ;;  %v448_v20 = vld [vmem:[%s7082_s1 + $0xd80] sm:$0xff]  ;;  %v417_v21 = vld [vmem:[%s7082_s1 + $0xc88] sm:$0xff]  ;;  %v4892_v24 = vcombine.low %v353_v13, %v385_v14  ;;  %v195_v5 = vld [vmem:[%s7082_s1 + $0x598] sm:$0xff] }
  0xff   :  { %3682 = vmatprep.subr.bf16.mxu0 %v5015_v25  ;;  %3723 = vmatprep.subr.bf16.mxu1 %v5017_v27  ;;  %v4955_v25 = vcombine.high %v416_v19, %v448_v20  ;;  %v4957_v27 = vcombine.high %v417_v21, %v449_v22  ;;  %v4954_v39 = vcombine.low %v416_v19, %v448_v20  ;;  %v226_v14 = vld [vmem:[%s7082_s1 + $0x690] sm:$0xff] }
 0x100   :  { %v4705_v13 = vcombine.high %v163_v4, %v195_v5  ;;  %v4704_v19 = vcombine.low %v163_v4, %v195_v5  ;;  %v36_v4 = vld [vmem:[%s7082_s1 + $0xa0] sm:$0xff] }
 0x101   :  { %v68_v5 = vld [vmem:[%s7082_s1 + $0x1a0] sm:$0xff] }
 0x102   :  { %3683 = vmatpush1.bf16.msra.mxu0 %v5014_v33  ;;  %3724 = vmatpush1.bf16.msra.mxu1 %v5016_v34  ;;  %v481_v34 = vld [vmem:[%s7082_s1 + $0xe88] sm:$0xff] }
 0x103   :  { %3750 = vmatprep.subr.bf16.mxu0 %v4571_v35  ;;  %3791 = vmatprep.subr.bf16.mxu1 %v4573_v12  ;;  %v513_v35 = vld [vmem:[%s7082_s1 + $0xf88] sm:$0xff] }
 0x105   :  { %v5053_v46 = vpop.eup %5052  ;;  %3701 = vmatmul.mubr.bf16.vlgmr.msra.gmra.mrb[28].mxu0 %v5844_v29  ;;  %3742 = vmatmul.mubr.bf16.vlgmr.msra.gmra.mrb[28].mxu1 %v5844_v29 }
 0x106   :  { %v5055_v49 = vpop.eup %5054  ;;  %4470 = vst [vmem:[%s7085_s3] sm:$0xff] %v5053_v46  ;;  %3751 = vmatpush1.bf16.msra.mxu0 %v4570_v40  ;;  %3792 = vmatpush1.bf16.msra.mxu1 %v4572_v41  ;;  %v5021_v46 = vcombine.high %v481_v34, %v513_v35 }
 0x107   :  { %v5057_v51 = vpop.eup %5056  ;;  %4472 = vst [vmem:[%s7085_s3 + $0x10] sm:$0xff] %v5055_v49  ;;  %3752 = vmatprep.subr.bf16.mxu0 %v4635_v42  ;;  %3793 = vmatprep.subr.bf16.mxu1 %v4637_v43  ;;  %v4956_v43 = vcombine.low %v417_v21, %v449_v22  ;;  %v35_v49 = vld [vmem:[%s7082_s1 + $0x98] sm:$0xff]  ;;  %v290_v22 = vld [vmem:[%s7082_s1 + $0x890] sm:$0xff] }
 0x108   :  { %v5059_v54 = vpop.eup %5058  ;;  %4471 = vst [vmem:[%s7085_s3 + $0x8] sm:$0xff] %v5057_v51  ;;  %3782 = vmatprep.mubr.bf16.mxu0 %v5183_v3  ;;  %3823 = vmatprep.mubr.bf16.mxu1 %v5183_v3  ;;  %v5018_v51 = vcombine.low %v480_v28, %v512_v30 }
 0x109   :  { %4473 = vst [vmem:[%s7085_s3 + $0x18] sm:$0xff] %v5059_v54 }
 0x10a   :  { %3753 = vmatpush1.bf16.msra.mxu0 %v4634_v50  ;;  %3794 = vmatpush1.bf16.msra.mxu1 %v4636_v52  ;;  %v67_v50 = vld [vmem:[%s7082_s1 + $0x198] sm:$0xff]  ;;  %v5020_v52 = vcombine.low %v481_v34, %v513_v35 }
 0x10b   :  { %3754 = vmatprep.subr.bf16.mxu0 %v4699_v53  ;;  %3795 = vmatprep.subr.bf16.mxu1 %v4701_v55  ;;  %v4575_v53 = vcombine.high %v34_v47, %v66_v48  ;;  %v4577_v54 = vcombine.high %v35_v49, %v67_v50  ;;  %v98_v55 = vld [vmem:[%s7082_s1 + $0x290] sm:$0xff]  ;;  %v387_v34 = vld [vmem:[%s7082_s1 + $0xb98] sm:$0xff] }
 0x10c   :  { %v482_v47 = vld [vmem:[%s7082_s1 + $0xe90] sm:$0xff] }
 0x10d   :  { %v514_v48 = vld [vmem:[%s7082_s1 + $0xf90] sm:$0xff] }
 0x10e   :  { %3755 = vmatpush1.bf16.msra.mxu0 %v4698_v60  ;;  %3796 = vmatpush1.bf16.msra.mxu1 %v4700_v61  ;;  %v4576_v60 = vcombine.low %v35_v49, %v67_v50  ;;  %v4639_v61 = vcombine.high %v98_v55, %v130_v56 }
 0x10f   :  { %3756 = vmatprep.subr.bf16.mxu0 %v4763_v62  ;;  %3797 = vmatprep.subr.bf16.mxu1 %v4765_v63  ;;  %v4641_v62 = vcombine.high %v99_v57, %v131_v58  ;;  %v162_v63 = vld [vmem:[%s7082_s1 + $0x490] sm:$0xff] }
 0x110   :  { %v4703_v10 = vcombine.high %v162_v63, %v194_v0 }
 0x112   :  { %3757 = vmatpush1.bf16.msra.mxu0 %v4762_v6  ;;  %3798 = vmatpush1.bf16.msra.mxu1 %v4764_v7  ;;  %v4638_v7 = vcombine.low %v98_v55, %v130_v56 }
 0x113   :  { %3758 = vmatprep.subr.bf16.mxu0 %v4827_v8  ;;  %3799 = vmatprep.subr.bf16.mxu1 %v4829_v9  ;;  %v4640_v9 = vcombine.low %v99_v57, %v131_v58 }
 0x116   :  { %3759 = vmatpush1.bf16.msra.mxu0 %v4826_v15  ;;  %3800 = vmatpush1.bf16.msra.mxu1 %v4828_v16  ;;  %v258_v15 = vld [vmem:[%s7082_s1 + $0x790] sm:$0xff]  ;;  %v227_v16 = vld [vmem:[%s7082_s1 + $0x698] sm:$0xff] }
 0x117   :  { %3760 = vmatprep.subr.bf16.mxu0 %v4891_v17  ;;  %3801 = vmatprep.subr.bf16.mxu1 %v4893_v18  ;;  %v259_v17 = vld [vmem:[%s7082_s1 + $0x798] sm:$0xff]  ;;  %v4702_v18 = vcombine.low %v162_v63, %v194_v0  ;;  %v4767_v20 = vcombine.high %v226_v14, %v258_v15  ;;  %v5023_v63 = vcombine.high %v482_v47, %v514_v48 }
 0x118   :  { %v3210_v26 = vpop.f32.mrb[4].mxu0  ;;  %v3251_v32 = vpop.f32.mrb[4].mxu1  ;;  %v4769_v21 = vcombine.high %v227_v16, %v259_v17 }
 0x119   :  { %v3211_v31 = vadd.f32 %v3210_v26, %v6004_v1  ;;  %v3212_v33 = vpop.f32.mrb[5].mxu0  ;;  %v3252_v12 = vadd.f32 %v3251_v32, %v6004_v1  ;;  %v3253_v37 = vpop.f32.mrb[5].mxu1  ;;  %v4766_v26 = vcombine.low %v226_v14, %v258_v15  ;;  %v386_v32 = vld [vmem:[%s7082_s1 + $0xb90] sm:$0xff]  ;;  %v132_v14 = vld [vmem:[%s7082_s1 + $0x3a0] sm:$0xff]  ;;  %v101_v15 = vld [vmem:[%s7082_s1 + $0x2a8] sm:$0xff] }
 0x11a   :  { %v3213_v36 = vadd.f32 %v3212_v33, %v6004_v1  ;;  %v3214_v38 = vpop.f32.mrb[6].mxu0  ;;  %3761 = vmatpush1.bf16.msra.mxu0 %v4890_v23  ;;  %v3254_v40 = vadd.f32 %v3253_v37, %v6004_v1  ;;  %v3255_v41 = vpop.f32.mrb[6].mxu1  ;;  %3802 = vmatpush1.bf16.msra.mxu1 %v4892_v24  ;;  %v322_v23 = vld [vmem:[%s7082_s1 + $0x990] sm:$0xff]  ;;  %v291_v24 = vld [vmem:[%s7082_s1 + $0x898] sm:$0xff] }
 0x11b   :  { %5060 = vtanh.f32 %v3211_v31  ;;  %v3215_v42 = vpop.f32.mrb[7].mxu0  ;;  %3762 = vmatprep.subr.bf16.mxu0 %v4955_v25  ;;  %v3256_v45 = vpop.f32.mrb[7].mxu1  ;;  %3803 = vmatprep.subr.bf16.mxu1 %v4957_v27  ;;  %v323_v25 = vld [vmem:[%s7082_s1 + $0x998] sm:$0xff]  ;;  %v4768_v27 = vcombine.low %v227_v16, %v259_v17  ;;  %v4831_v28 = vcombine.high %v290_v22, %v322_v23  ;;  %v354_v31 = vld [vmem:[%s7082_s1 + $0xa90] sm:$0xff]  ;;  %v4830_v35 = vcombine.low %v290_v22, %v322_v23  ;;  %v133_v16 = vld [vmem:[%s7082_s1 + $0x3a8] sm:$0xff] }
 0x11c   :  { %5062 = vtanh.f32 %v3252_v12  ;;  %v4833_v30 = vcombine.high %v291_v24, %v323_v25  ;;  %v355_v33 = vld [vmem:[%s7082_s1 + $0xa98] sm:$0xff]  ;;  %v4832_v12 = vcombine.low %v291_v24, %v323_v25  ;;  %v418_v38 = vld [vmem:[%s7082_s1 + $0xc90] sm:$0xff]  ;;  %v4894_v42 = vcombine.low %v354_v31, %v386_v32  ;;  %v196_v22 = vld [vmem:[%s7082_s1 + $0x5a0] sm:$0xff] }
 0x11d   :  { %5064 = vtanh.f32 %v3213_v36  ;;  %v4895_v36 = vcombine.high %v354_v31, %v386_v32  ;;  %v4897_v37 = vcombine.high %v355_v33, %v387_v34  ;;  %v451_v41 = vld [vmem:[%s7082_s1 + $0xd98] sm:$0xff]  ;;  %v4578_v17 = vcombine.low %v36_v4, %v68_v5  ;;  %v165_v24 = vld [vmem:[%s7082_s1 + $0x4a8] sm:$0xff] }
 0x11e   :  { %5066 = vtanh.f32 %v3254_v40  ;;  %3763 = vmatpush1.bf16.msra.mxu0 %v4954_v39  ;;  %3804 = vmatpush1.bf16.msra.mxu1 %v4956_v43  ;;  %v450_v39 = vld [vmem:[%s7082_s1 + $0xd90] sm:$0xff]  ;;  %v419_v40 = vld [vmem:[%s7082_s1 + $0xc98] sm:$0xff]  ;;  %v4896_v43 = vcombine.low %v355_v33, %v387_v34  ;;  %v197_v25 = vld [vmem:[%s7082_s1 + $0x5a8] sm:$0xff] }
 0x11f   :  { %3764 = vmatprep.subr.bf16.mxu0 %v5019_v44  ;;  %3805 = vmatprep.subr.bf16.mxu1 %v5021_v46  ;;  %v4959_v44 = vcombine.high %v418_v38, %v450_v39  ;;  %v4961_v46 = vcombine.high %v419_v40, %v451_v41  ;;  %v4958_v58 = vcombine.low %v418_v38, %v450_v39  ;;  %v260_v34 = vld [vmem:[%s7082_s1 + $0x7a0] sm:$0xff] }
 0x120   :  { %v4709_v33 = vcombine.high %v165_v24, %v197_v25 }
 0x122   :  { %3765 = vmatpush1.bf16.msra.mxu0 %v5018_v51  ;;  %3806 = vmatpush1.bf16.msra.mxu1 %v5020_v52  ;;  %v483_v52 = vld [vmem:[%s7082_s1 + $0xe98] sm:$0xff] }
 0x123   :  { %3832 = vmatprep.subr.bf16.mxu0 %v4575_v53  ;;  %3873 = vmatprep.subr.bf16.mxu1 %v4577_v54  ;;  %v515_v53 = vld [vmem:[%s7082_s1 + $0xf98] sm:$0xff] }
 0x125   :  { %v5061_v2 = vpop.eup %5060  ;;  %3783 = vmatmul.mubr.bf16.vlgmr.msra.gmra.mrb[32].mxu0 %v5844_v29  ;;  %3824 = vmatmul.mubr.bf16.vlgmr.msra.gmra.mrb[32].mxu1 %v5844_v29 }
 0x126   :  { %v5063_v6 = vpop.eup %5062  ;;  %4474 = vst [vmem:[%s7085_s3 + $0x20] sm:$0xff] %v5061_v2  ;;  %3833 = vmatpush1.bf16.msra.mxu0 %v4574_v59  ;;  %3874 = vmatpush1.bf16.msra.mxu1 %v4576_v60  ;;  %v5025_v2 = vcombine.high %v483_v52, %v515_v53 }
 0x127   :  { %v5065_v8 = vpop.eup %5064  ;;  %4476 = vst [vmem:[%s7085_s3 + $0x30] sm:$0xff] %v5063_v6  ;;  %3834 = vmatprep.subr.bf16.mxu0 %v4639_v61  ;;  %3875 = vmatprep.subr.bf16.mxu1 %v4641_v62  ;;  %v4960_v62 = vcombine.low %v419_v40, %v451_v41  ;;  %v37_v6 = vld [vmem:[%s7082_s1 + $0xa8] sm:$0xff]  ;;  %v292_v40 = vld [vmem:[%s7082_s1 + $0x8a0] sm:$0xff] }
 0x128   :  { %v5067_v11 = vpop.eup %5066  ;;  %4475 = vst [vmem:[%s7085_s3 + $0x28] sm:$0xff] %v5065_v8  ;;  %3864 = vmatprep.mubr.bf16.mxu0 %v5183_v3  ;;  %3905 = vmatprep.mubr.bf16.mxu1 %v5183_v3  ;;  %v5022_v8 = vcombine.low %v482_v47, %v514_v48  ;;  %v324_v41 = vld [vmem:[%s7082_s1 + $0x9a0] sm:$0xff] }
 0x129   :  { %4477 = vst [vmem:[%s7085_s3 + $0x38] sm:$0xff] %v5067_v11  ;;  %v356_v48 = vld [vmem:[%s7082_s1 + $0xaa0] sm:$0xff] }
 0x12a   :  { %3835 = vmatpush1.bf16.msra.mxu0 %v4638_v7  ;;  %3876 = vmatpush1.bf16.msra.mxu1 %v4640_v9  ;;  %v69_v7 = vld [vmem:[%s7082_s1 + $0x1a8] sm:$0xff]  ;;  %v5024_v9 = vcombine.low %v483_v52, %v515_v53  ;;  %v4834_v52 = vcombine.low %v292_v40, %v324_v41 }
 0x12b   :  { %3836 = vmatprep.subr.bf16.mxu0 %v4703_v10  ;;  %3877 = vmatprep.subr.bf16.mxu1 %v4705_v13  ;;  %v4579_v10 = vcombine.high %v36_v4, %v68_v5  ;;  %v4581_v11 = vcombine.high %v37_v6, %v69_v7  ;;  %v100_v13 = vld [vmem:[%s7082_s1 + $0x2a0] sm:$0xff] }
 0x12c   :  { %v516_v4 = vld [vmem:[%s7082_s1 + $0xfa0] sm:$0xff] }
 0x12e   :  { %3837 = vmatpush1.bf16.msra.mxu0 %v4702_v18  ;;  %3878 = vmatpush1.bf16.msra.mxu1 %v4704_v19  ;;  %v4580_v18 = vcombine.low %v37_v6, %v69_v7  ;;  %v4643_v19 = vcombine.high %v100_v13, %v132_v14 }
 0x12f   :  { %3838 = vmatprep.subr.bf16.mxu0 %v4767_v20  ;;  %3879 = vmatprep.subr.bf16.mxu1 %v4769_v21  ;;  %v4645_v20 = vcombine.high %v101_v15, %v133_v16  ;;  %v164_v21 = vld [vmem:[%s7082_s1 + $0x4a0] sm:$0xff] }
 0x130   :  { %v4707_v31 = vcombine.high %v164_v21, %v196_v22 }
 0x132   :  { %3839 = vmatpush1.bf16.msra.mxu0 %v4766_v26  ;;  %3880 = vmatpush1.bf16.msra.mxu1 %v4768_v27  ;;  %v4642_v27 = vcombine.low %v100_v13, %v132_v14 }
 0x133   :  { %3840 = vmatprep.subr.bf16.mxu0 %v4831_v28  ;;  %3881 = vmatprep.subr.bf16.mxu1 %v4833_v30  ;;  %v4644_v30 = vcombine.low %v101_v15, %v133_v16 }
 0x136   :  { %3841 = vmatpush1.bf16.msra.mxu0 %v4830_v35  ;;  %3882 = vmatpush1.bf16.msra.mxu1 %v4832_v12  ;;  %v229_v35 = vld [vmem:[%s7082_s1 + $0x6a8] sm:$0xff] }
 0x137   :  { %3842 = vmatprep.subr.bf16.mxu0 %v4895_v36  ;;  %3883 = vmatprep.subr.bf16.mxu1 %v4897_v37  ;;  %v261_v12 = vld [vmem:[%s7082_s1 + $0x7a8] sm:$0xff]  ;;  %v4706_v36 = vcombine.low %v164_v21, %v196_v22  ;;  %v4708_v37 = vcombine.low %v165_v24, %v197_v25  ;;  %v70_v24 = vld [vmem:[%s7082_s1 + $0x1b0] sm:$0xff]  ;;  %v39_v25 = vld [vmem:[%s7082_s1 + $0xb8] sm:$0xff] }
 0x138   :  { %v3292_v45 = vpop.f32.mrb[8].mxu0  ;;  %v3333_v50 = vpop.f32.mrb[8].mxu1  ;;  %v4773_v39 = vcombine.high %v229_v35, %v261_v12 }
 0x139   :  { %v3293_v49 = vadd.f32 %v3292_v45, %v6004_v1  ;;  %v3294_v51 = vpop.f32.mrb[9].mxu0  ;;  %v3334_v54 = vadd.f32 %v3333_v50, %v6004_v1  ;;  %v3335_v56 = vpop.f32.mrb[9].mxu1  ;;  %v4772_v45 = vcombine.low %v229_v35, %v261_v12  ;;  %v357_v50 = vld [vmem:[%s7082_s1 + $0xaa8] sm:$0xff] }
 0x13a   :  { %v3295_v55 = vadd.f32 %v3294_v51, %v6004_v1  ;;  %v3296_v57 = vpop.f32.mrb[10].mxu0  ;;  %3843 = vmatpush1.bf16.msra.mxu0 %v4894_v42  ;;  %v3336_v59 = vadd.f32 %v3335_v56, %v6004_v1  ;;  %v3337_v60 = vpop.f32.mrb[10].mxu1  ;;  %3884 = vmatpush1.bf16.msra.mxu1 %v4896_v43  ;;  %v293_v42 = vld [vmem:[%s7082_s1 + $0x8a8] sm:$0xff]  ;;  %v420_v56 = vld [vmem:[%s7082_s1 + $0xca0] sm:$0xff] }
 0x13b   :  { %5068 = vtanh.f32 %v3293_v49  ;;  %v3297_v61 = vpop.f32.mrb[11].mxu0  ;;  %3844 = vmatprep.subr.bf16.mxu0 %v4959_v44  ;;  %v3338_v0 = vpop.f32.mrb[11].mxu1  ;;  %3885 = vmatprep.subr.bf16.mxu1 %v4961_v46  ;;  %v325_v43 = vld [vmem:[%s7082_s1 + $0x9a8] sm:$0xff]  ;;  %v4835_v46 = vcombine.high %v292_v40, %v324_v41  ;;  %v388_v49 = vld [vmem:[%s7082_s1 + $0xba0] sm:$0xff] }
 0x13c   :  { %5070 = vtanh.f32 %v3334_v54  ;;  %v4837_v47 = vcombine.high %v293_v42, %v325_v43  ;;  %v389_v51 = vld [vmem:[%s7082_s1 + $0xba8] sm:$0xff]  ;;  %v4836_v53 = vcombine.low %v293_v42, %v325_v43  ;;  %v4899_v54 = vcombine.high %v356_v48, %v388_v49  ;;  %v452_v57 = vld [vmem:[%s7082_s1 + $0xda0] sm:$0xff]  ;;  %v167_v42 = vld [vmem:[%s7082_s1 + $0x4b8] sm:$0xff] }
 0x13d   :  { %5072 = vtanh.f32 %v3295_v55  ;;  %v4901_v55 = vcombine.high %v357_v50, %v389_v51  ;;  %v4898_v60 = vcombine.low %v356_v48, %v388_v49  ;;  %v4900_v61 = vcombine.low %v357_v50, %v389_v51  ;;  %v6403_v41 = vld [vmem:[%s7083_s0] sm:$0xf]  ;;  %v199_v43 = vld [vmem:[%s7082_s1 + $0x5b8] sm:$0xff]  ;;  %v230_v51 = vld [vmem:[%s7082_s1 + $0x6b0] sm:$0xff] }
 0x13e   :  { %5074 = vtanh.f32 %v3336_v59  ;;  %3845 = vmatpush1.bf16.msra.mxu0 %v4958_v58  ;;  %3886 = vmatpush1.bf16.msra.mxu1 %v4960_v62  ;;  %v421_v58 = vld [vmem:[%s7082_s1 + $0xca8] sm:$0xff]  ;;  %v4963_v62 = vcombine.high %v420_v56, %v452_v57  ;;  %v4962_v15 = vcombine.low %v420_v56, %v452_v57  ;;  %v4713_v50 = vcombine.high %v167_v42, %v199_v43 }
 0x13f   :  { %3846 = vmatprep.subr.bf16.mxu0 %v5023_v63  ;;  %3887 = vmatprep.subr.bf16.mxu1 %v5025_v2  ;;  %v453_v59 = vld [vmem:[%s7082_s1 + $0xda8] sm:$0xff]  ;;  %v484_v2 = vld [vmem:[%s7082_s1 + $0xea0] sm:$0xff]  ;;  %v4712_v56 = vcombine.low %v167_v42, %v199_v43 }
 0x140   :  { %v4965_v0 = vcombine.high %v421_v58, %v453_v59  ;;  %v40_v42 = vld [vmem:[%s7082_s1 + $0xc0] sm:$0xff] }
 0x141   :  { %v72_v43 = vld [vmem:[%s7082_s1 + $0x1c0] sm:$0xff] }
 0x142   :  { %3847 = vmatpush1.bf16.msra.mxu0 %v5022_v8  ;;  %3888 = vmatpush1.bf16.msra.mxu1 %v5024_v9  ;;  %v485_v8 = vld [vmem:[%s7082_s1 + $0xea8] sm:$0xff] }
 0x143   :  { %3914 = vmatprep.subr.bf16.mxu0 %v4579_v10  ;;  %3955 = vmatprep.subr.bf16.mxu1 %v4581_v11  ;;  %v517_v9 = vld [vmem:[%s7082_s1 + $0xfa8] sm:$0xff] }
 0x144   :  { %v5029_v22 = vcombine.high %v485_v8, %v517_v9 }
 0x145   :  { %v5069_v23 = vpop.eup %5068  ;;  %3865 = vmatmul.mubr.bf16.vlgmr.msra.gmra.mrb[36].mxu0 %v5844_v29  ;;  %3906 = vmatmul.mubr.bf16.vlgmr.msra.gmra.mrb[36].mxu1 %v5844_v29  ;;  %v228_v29 = vld [vmem:[%s7082_s1 + $0x6a0] sm:$0xff] }
 0x146   :  { %v5071_v26 = vpop.eup %5070  ;;  %4478 = vst [vmem:[%s7085_s3 + $0x40] sm:$0xff] %v5069_v23  ;;  %3915 = vmatpush1.bf16.msra.mxu0 %v4578_v17  ;;  %3956 = vmatpush1.bf16.msra.mxu1 %v4580_v18  ;;  %v4771_v38 = vcombine.high %v228_v29, %v260_v34  ;;  %v4770_v44 = vcombine.low %v228_v29, %v260_v34  ;;  %v38_v23 = vld [vmem:[%s7082_s1 + $0xb0] sm:$0xff]  ;;  %v103_v29 = vld [vmem:[%s7082_s1 + $0x2b8] sm:$0xff] }
 0x147   :  { %v5073_v28 = vpop.eup %5072  ;;  %4480 = vst [vmem:[%s7085_s3 + $0x50] sm:$0xff] %v5071_v26  ;;  %3916 = vmatprep.subr.bf16.mxu0 %v4643_v19  ;;  %3957 = vmatprep.subr.bf16.mxu1 %v4645_v20  ;;  %v4964_v19 = vcombine.low %v421_v58, %v453_v59  ;;  %v5027_v20 = vcombine.high %v484_v2, %v516_v4  ;;  %v71_v26 = vld [vmem:[%s7082_s1 + $0x1b8] sm:$0xff]  ;;  %v294_v59 = vld [vmem:[%s7082_s1 + $0x8b0] sm:$0xff] }
 0x148   :  { %v5075_v32 = vpop.eup %5074  ;;  %4479 = vst [vmem:[%s7085_s3 + $0x48] sm:$0xff] %v5073_v28  ;;  %3946 = vmatprep.mubr.bf16.mxu0 %v5183_v3  ;;  %3987 = vmatprep.mubr.bf16.mxu1 %v5183_v3  ;;  %v5028_v28 = vcombine.low %v485_v8, %v517_v9  ;;  %v135_v34 = vld [vmem:[%s7082_s1 + $0x3b8] sm:$0xff]  ;;  %v4582_v35 = vcombine.low %v38_v23, %v70_v24 }
 0x149   :  { %4481 = vst [vmem:[%s7085_s3 + $0x58] sm:$0xff] %v5075_v32  ;;  %v102_v32 = vld [vmem:[%s7082_s1 + $0x2b0] sm:$0xff]  ;;  %v4584_v12 = vcombine.low %v39_v25, %v71_v26  ;;  %v391_v8 = vld [vmem:[%s7082_s1 + $0xbb8] sm:$0xff] }
 0x14a   :  { %3917 = vmatpush1.bf16.msra.mxu0 %v4642_v27  ;;  %3958 = vmatpush1.bf16.msra.mxu1 %v4644_v30  ;;  %v5026_v27 = vcombine.low %v484_v2, %v516_v4  ;;  %v4583_v30 = vcombine.high %v38_v23, %v70_v24  ;;  %v486_v23 = vld [vmem:[%s7082_s1 + $0xeb0] sm:$0xff] }
 0x14b   :  { %3918 = vmatprep.subr.bf16.mxu0 %v4707_v31  ;;  %3959 = vmatprep.subr.bf16.mxu1 %v4709_v33  ;;  %v4585_v31 = vcombine.high %v39_v25, %v71_v26  ;;  %v134_v33 = vld [vmem:[%s7082_s1 + $0x3b0] sm:$0xff] }
 0x14c   :  { %v518_v24 = vld [vmem:[%s7082_s1 + $0xfb0] sm:$0xff] }
 0x14e   :  { %3919 = vmatpush1.bf16.msra.mxu0 %v4706_v36  ;;  %3960 = vmatpush1.bf16.msra.mxu1 %v4708_v37  ;;  %v4647_v36 = vcombine.high %v102_v32, %v134_v33  ;;  %v4649_v37 = vcombine.high %v103_v29, %v135_v34 }
 0x14f   :  { %3920 = vmatprep.subr.bf16.mxu0 %v4771_v38  ;;  %3961 = vmatprep.subr.bf16.mxu1 %v4773_v39  ;;  %v166_v38 = vld [vmem:[%s7082_s1 + $0x4b0] sm:$0xff] }
 0x150   :  { %v198_v39 = vld [vmem:[%s7082_s1 + $0x5b0] sm:$0xff] }
 0x151   :  { %v4711_v48 = vcombine.high %v166_v38, %v198_v39 }
 0x152   :  { %3921 = vmatpush1.bf16.msra.mxu0 %v4770_v44  ;;  %3962 = vmatpush1.bf16.msra.mxu1 %v4772_v45  ;;  %v4646_v45 = vcombine.low %v102_v32, %v134_v33 }
 0x153   :  { %3922 = vmatprep.subr.bf16.mxu0 %v4835_v46  ;;  %3963 = vmatprep.subr.bf16.mxu1 %v4837_v47  ;;  %v4648_v47 = vcombine.low %v103_v29, %v135_v34 }
 0x156   :  { %3923 = vmatpush1.bf16.msra.mxu0 %v4834_v52  ;;  %3964 = vmatpush1.bf16.msra.mxu1 %v4836_v53  ;;  %v262_v52 = vld [vmem:[%s7082_s1 + $0x7b0] sm:$0xff]  ;;  %v231_v53 = vld [vmem:[%s7082_s1 + $0x6b8] sm:$0xff] }
 0x157   :  { %3924 = vmatprep.subr.bf16.mxu0 %v4899_v54  ;;  %3965 = vmatprep.subr.bf16.mxu1 %v4901_v55  ;;  %v263_v54 = vld [vmem:[%s7082_s1 + $0x7b8] sm:$0xff]  ;;  %v4710_v55 = vcombine.low %v166_v38, %v198_v39  ;;  %v4775_v57 = vcombine.high %v230_v51, %v262_v52  ;;  %v5031_v38 = vcombine.high %v486_v23, %v518_v24 }
 0x158   :  { %v3374_v63 = vpop.f32.mrb[12].mxu0  ;;  %v3415_v6 = vpop.f32.mrb[12].mxu1  ;;  %v4777_v58 = vcombine.high %v231_v53, %v263_v54 }
 0x159   :  { %v3375_v5 = vadd.f32 %v3374_v63, %v6004_v1  ;;  %v3376_v7 = vpop.f32.mrb[13].mxu0  ;;  %v3416_v10 = vadd.f32 %v3415_v6, %v6004_v1  ;;  %v3417_v13 = vpop.f32.mrb[13].mxu1  ;;  %v4774_v63 = vcombine.low %v230_v51, %v262_v52  ;;  %v390_v6 = vld [vmem:[%s7082_s1 + $0xbb0] sm:$0xff]  ;;  %v136_v51 = vld [vmem:[%s7082_s1 + $0x3c0] sm:$0xff]  ;;  %v105_v52 = vld [vmem:[%s7082_s1 + $0x2c8] sm:$0xff] }
 0x15a   :  { %v3377_v11 = vadd.f32 %v3376_v7, %v6004_v1  ;;  %v3378_v14 = vpop.f32.mrb[14].mxu0  ;;  %3925 = vmatpush1.bf16.msra.mxu0 %v4898_v60  ;;  %v3418_v16 = vadd.f32 %v3417_v13, %v6004_v1  ;;  %v3419_v17 = vpop.f32.mrb[14].mxu1  ;;  %3966 = vmatpush1.bf16.msra.mxu1 %v4900_v61  ;;  %v326_v60 = vld [vmem:[%s7082_s1 + $0x9b0] sm:$0xff]  ;;  %v295_v61 = vld [vmem:[%s7082_s1 + $0x8b8] sm:$0xff] }
 0x15b   :  { %5076 = vtanh.f32 %v3375_v5  ;;  %v3379_v18 = vpop.f32.mrb[15].mxu0  ;;  %3926 = vmatprep.subr.bf16.mxu0 %v4963_v62  ;;  %v3420_v21 = vpop.f32.mrb[15].mxu1  ;;  %3967 = vmatprep.subr.bf16.mxu1 %v4965_v0  ;;  %v327_v62 = vld [vmem:[%s7082_s1 + $0x9b8] sm:$0xff]  ;;  %v4776_v0 = vcombine.low %v231_v53, %v263_v54  ;;  %v4839_v2 = vcombine.high %v294_v59, %v326_v60  ;;  %v358_v5 = vld [vmem:[%s7082_s1 + $0xab0] sm:$0xff]  ;;  %v4838_v9 = vcombine.low %v294_v59, %v326_v60  ;;  %v137_v53 = vld [vmem:[%s7082_s1 + $0x3c8] sm:$0xff] }
 0x15c   :  { %5078 = vtanh.f32 %v3416_v10  ;;  %v4841_v4 = vcombine.high %v295_v61, %v327_v62  ;;  %v359_v7 = vld [vmem:[%s7082_s1 + $0xab8] sm:$0xff]  ;;  %v4840_v10 = vcombine.low %v295_v61, %v327_v62  ;;  %v422_v14 = vld [vmem:[%s7082_s1 + $0xcb0] sm:$0xff]  ;;  %v4902_v18 = vcombine.low %v358_v5, %v390_v6  ;;  %v200_v59 = vld [vmem:[%s7082_s1 + $0x5c0] sm:$0xff] }
 0x15d   :  { %5080 = vtanh.f32 %v3377_v11  ;;  %v4903_v11 = vcombine.high %v358_v5, %v390_v6  ;;  %v4905_v13 = vcombine.high %v359_v7, %v391_v8  ;;  %v455_v17 = vld [vmem:[%s7082_s1 + $0xdb8] sm:$0xff]  ;;  %v4586_v54 = vcombine.low %v40_v42, %v72_v43  ;;  %v169_v61 = vld [vmem:[%s7082_s1 + $0x4c8] sm:$0xff] }
 0x15e   :  { %5082 = vtanh.f32 %v3418_v16  ;;  %3927 = vmatpush1.bf16.msra.mxu0 %v4962_v15  ;;  %3968 = vmatpush1.bf16.msra.mxu1 %v4964_v19  ;;  %v454_v15 = vld [vmem:[%s7082_s1 + $0xdb0] sm:$0xff]  ;;  %v423_v16 = vld [vmem:[%s7082_s1 + $0xcb8] sm:$0xff]  ;;  %v4904_v19 = vcombine.low %v359_v7, %v391_v8  ;;  %v201_v62 = vld [vmem:[%s7082_s1 + $0x5c8] sm:$0xff] }
 0x15f   :  { %3928 = vmatprep.subr.bf16.mxu0 %v5027_v20  ;;  %3969 = vmatprep.subr.bf16.mxu1 %v5029_v22  ;;  %v4967_v20 = vcombine.high %v422_v14, %v454_v15  ;;  %v4969_v22 = vcombine.high %v423_v16, %v455_v17  ;;  %v4966_v34 = vcombine.low %v422_v14, %v454_v15  ;;  %v232_v8 = vld [vmem:[%s7082_s1 + $0x6c0] sm:$0xff] }
 0x160   :  { %v4717_v7 = vcombine.high %v169_v61, %v201_v62  ;;  %v4716_v14 = vcombine.low %v169_v61, %v201_v62  ;;  %v42_v61 = vld [vmem:[%s7082_s1 + $0xd0] sm:$0xff] }
 0x161   :  { %v74_v62 = vld [vmem:[%s7082_s1 + $0x1d0] sm:$0xff] }
 0x162   :  { %3929 = vmatpush1.bf16.msra.mxu0 %v5026_v27  ;;  %3970 = vmatpush1.bf16.msra.mxu1 %v5028_v28  ;;  %v487_v28 = vld [vmem:[%s7082_s1 + $0xeb8] sm:$0xff] }
 0x163   :  { %3996 = vmatprep.subr.bf16.mxu0 %v4583_v30  ;;  %4037 = vmatprep.subr.bf16.mxu1 %v4585_v31  ;;  %v519_v30 = vld [vmem:[%s7082_s1 + $0xfb8] sm:$0xff] }
 0x165   :  { %v5077_v40 = vpop.eup %5076  ;;  %3947 = vmatmul.mubr.bf16.vlgmr.msra.gmra.mrb[40].mxu0 %v6403_v41  ;;  %3988 = vmatmul.mubr.bf16.vlgmr.msra.gmra.mrb[40].mxu1 %v6403_v41 }
 0x166   :  { %v5079_v44 = vpop.eup %5078  ;;  %4482 = vst [vmem:[%s7085_s3 + $0x60] sm:$0xff] %v5077_v40  ;;  %3997 = vmatpush1.bf16.msra.mxu0 %v4582_v35  ;;  %4038 = vmatpush1.bf16.msra.mxu1 %v4584_v12  ;;  %v5033_v40 = vcombine.high %v487_v28, %v519_v30 }
 0x167   :  { %v5081_v46 = vpop.eup %5080  ;;  %4484 = vst [vmem:[%s7085_s3 + $0x70] sm:$0xff] %v5079_v44  ;;  %3998 = vmatprep.subr.bf16.mxu0 %v4647_v36  ;;  %4039 = vmatprep.subr.bf16.mxu1 %v4649_v37  ;;  %v4968_v37 = vcombine.low %v423_v16, %v455_v17  ;;  %v41_v44 = vld [vmem:[%s7082_s1 + $0xc8] sm:$0xff]  ;;  %v296_v17 = vld [vmem:[%s7082_s1 + $0x8c0] sm:$0xff] }
 0x168   :  { %v5083_v49 = vpop.eup %5082  ;;  %4483 = vst [vmem:[%s7085_s3 + $0x68] sm:$0xff] %v5081_v46  ;;  %4028 = vmatprep.mubr.bf16.mxu0 %v5183_v3  ;;  %4069 = vmatprep.mubr.bf16.mxu1 %v5183_v3  ;;  %v5030_v46 = vcombine.low %v486_v23, %v518_v24 }
 0x169   :  { %4485 = vst [vmem:[%s7085_s3 + $0x78] sm:$0xff] %v5083_v49 }
 0x16a   :  { %3999 = vmatpush1.bf16.msra.mxu0 %v4646_v45  ;;  %4040 = vmatpush1.bf16.msra.mxu1 %v4648_v47  ;;  %v73_v45 = vld [vmem:[%s7082_s1 + $0x1c8] sm:$0xff]  ;;  %v5032_v47 = vcombine.low %v487_v28, %v519_v30 }
 0x16b   :  { %4000 = vmatprep.subr.bf16.mxu0 %v4711_v48  ;;  %4041 = vmatprep.subr.bf16.mxu1 %v4713_v50  ;;  %v4587_v48 = vcombine.high %v40_v42, %v72_v43  ;;  %v4589_v49 = vcombine.high %v41_v44, %v73_v45  ;;  %v104_v50 = vld [vmem:[%s7082_s1 + $0x2c0] sm:$0xff]  ;;  %v393_v28 = vld [vmem:[%s7082_s1 + $0xbc8] sm:$0xff] }
 0x16c   :  { %v488_v42 = vld [vmem:[%s7082_s1 + $0xec0] sm:$0xff] }
 0x16d   :  { %v520_v43 = vld [vmem:[%s7082_s1 + $0xfc0] sm:$0xff] }
 0x16e   :  { %4001 = vmatpush1.bf16.msra.mxu0 %v4710_v55  ;;  %4042 = vmatpush1.bf16.msra.mxu1 %v4712_v56  ;;  %v4588_v55 = vcombine.low %v41_v44, %v73_v45  ;;  %v4651_v56 = vcombine.high %v104_v50, %v136_v51 }
 0x16f   :  { %4002 = vmatprep.subr.bf16.mxu0 %v4775_v57  ;;  %4043 = vmatprep.subr.bf16.mxu1 %v4777_v58  ;;  %v4653_v57 = vcombine.high %v105_v52, %v137_v53  ;;  %v168_v58 = vld [vmem:[%s7082_s1 + $0x4c0] sm:$0xff] }
 0x170   :  { %v4715_v5 = vcombine.high %v168_v58, %v200_v59 }
 0x172   :  { %4003 = vmatpush1.bf16.msra.mxu0 %v4774_v63  ;;  %4044 = vmatpush1.bf16.msra.mxu1 %v4776_v0  ;;  %v4650_v0 = vcombine.low %v104_v50, %v136_v51 }
 0x173   :  { %4004 = vmatprep.subr.bf16.mxu0 %v4839_v2  ;;  %4045 = vmatprep.subr.bf16.mxu1 %v4841_v4  ;;  %v4652_v4 = vcombine.low %v105_v52, %v137_v53 }
 0x176   :  { %4005 = vmatpush1.bf16.msra.mxu0 %v4838_v9  ;;  %4046 = vmatpush1.bf16.msra.mxu1 %v4840_v10  ;;  %v264_v9 = vld [vmem:[%s7082_s1 + $0x7c0] sm:$0xff]  ;;  %v233_v10 = vld [vmem:[%s7082_s1 + $0x6c8] sm:$0xff] }
 0x177   :  { %4006 = vmatprep.subr.bf16.mxu0 %v4903_v11  ;;  %4047 = vmatprep.subr.bf16.mxu1 %v4905_v13  ;;  %v265_v11 = vld [vmem:[%s7082_s1 + $0x7c8] sm:$0xff]  ;;  %v4714_v13 = vcombine.low %v168_v58, %v200_v59  ;;  %v4779_v15 = vcombine.high %v232_v8, %v264_v9  ;;  %v5035_v58 = vcombine.high %v488_v42, %v520_v43 }
 0x178   :  { %v3456_v21 = vpop.f32.mrb[16].mxu0  ;;  %v3497_v26 = vpop.f32.mrb[16].mxu1  ;;  %v4781_v16 = vcombine.high %v233_v10, %v265_v11 }
 0x179   :  { %v3457_v25 = vadd.f32 %v3456_v21, %v6004_v1  ;;  %v3458_v27 = vpop.f32.mrb[17].mxu0  ;;  %v3498_v31 = vadd.f32 %v3497_v26, %v6004_v1  ;;  %v3499_v33 = vpop.f32.mrb[17].mxu1  ;;  %v4778_v21 = vcombine.low %v232_v8, %v264_v9  ;;  %v392_v26 = vld [vmem:[%s7082_s1 + $0xbc0] sm:$0xff]  ;;  %v138_v8 = vld [vmem:[%s7082_s1 + $0x3d0] sm:$0xff]  ;;  %v107_v9 = vld [vmem:[%s7082_s1 + $0x2d8] sm:$0xff] }
 0x17a   :  { %v3459_v32 = vadd.f32 %v3458_v27, %v6004_v1  ;;  %v3460_v29 = vpop.f32.mrb[18].mxu0  ;;  %4007 = vmatpush1.bf16.msra.mxu0 %v4902_v18  ;;  %v3500_v35 = vadd.f32 %v3499_v33, %v6004_v1  ;;  %v3501_v12 = vpop.f32.mrb[18].mxu1  ;;  %4048 = vmatpush1.bf16.msra.mxu1 %v4904_v19  ;;  %v328_v18 = vld [vmem:[%s7082_s1 + $0x9c0] sm:$0xff]  ;;  %v297_v19 = vld [vmem:[%s7082_s1 + $0x8c8] sm:$0xff] }
 0x17b   :  { %5084 = vtanh.f32 %v3457_v25  ;;  %v3461_v36 = vpop.f32.mrb[19].mxu0  ;;  %4008 = vmatprep.subr.bf16.mxu0 %v4967_v20  ;;  %v3502_v39 = vpop.f32.mrb[19].mxu1  ;;  %4049 = vmatprep.subr.bf16.mxu1 %v4969_v22  ;;  %v329_v20 = vld [vmem:[%s7082_s1 + $0x9c8] sm:$0xff]  ;;  %v4780_v22 = vcombine.low %v233_v10, %v265_v11  ;;  %v4843_v23 = vcombine.high %v296_v17, %v328_v18  ;;  %v360_v25 = vld [vmem:[%s7082_s1 + $0xac0] sm:$0xff]  ;;  %v4842_v30 = vcombine.low %v296_v17, %v328_v18  ;;  %v139_v10 = vld [vmem:[%s7082_s1 + $0x3d8] sm:$0xff] }
 0x17c   :  { %5086 = vtanh.f32 %v3498_v31  ;;  %v4845_v24 = vcombine.high %v297_v19, %v329_v20  ;;  %v361_v27 = vld [vmem:[%s7082_s1 + $0xac8] sm:$0xff]  ;;  %v4844_v31 = vcombine.low %v297_v19, %v329_v20  ;;  %v424_v29 = vld [vmem:[%s7082_s1 + $0xcc0] sm:$0xff]  ;;  %v4906_v36 = vcombine.low %v360_v25, %v392_v26  ;;  %v202_v17 = vld [vmem:[%s7082_s1 + $0x5d0] sm:$0xff] }
 0x17d   :  { %5088 = vtanh.f32 %v3459_v32  ;;  %v4907_v32 = vcombine.high %v360_v25, %v392_v26  ;;  %v4909_v33 = vcombine.high %v361_v27, %v393_v28  ;;  %v457_v12 = vld [vmem:[%s7082_s1 + $0xdc8] sm:$0xff]  ;;  %v4590_v11 = vcombine.low %v42_v61, %v74_v62  ;;  %v171_v19 = vld [vmem:[%s7082_s1 + $0x4d8] sm:$0xff] }
 0x17e   :  { %5090 = vtanh.f32 %v3500_v35  ;;  %4009 = vmatpush1.bf16.msra.mxu0 %v4966_v34  ;;  %4050 = vmatpush1.bf16.msra.mxu1 %v4968_v37  ;;  %v456_v34 = vld [vmem:[%s7082_s1 + $0xdc0] sm:$0xff]  ;;  %v425_v35 = vld [vmem:[%s7082_s1 + $0xcc8] sm:$0xff]  ;;  %v4908_v37 = vcombine.low %v361_v27, %v393_v28  ;;  %v203_v20 = vld [vmem:[%s7082_s1 + $0x5d8] sm:$0xff] }
 0x17f   :  { %4010 = vmatprep.subr.bf16.mxu0 %v5031_v38  ;;  %4051 = vmatprep.subr.bf16.mxu1 %v5033_v40  ;;  %v4971_v38 = vcombine.high %v424_v29, %v456_v34  ;;  %v4973_v40 = vcombine.high %v425_v35, %v457_v12  ;;  %v4970_v53 = vcombine.low %v424_v29, %v456_v34  ;;  %v234_v28 = vld [vmem:[%s7082_s1 + $0x6d0] sm:$0xff] }
 0x180   :  { %v4721_v27 = vcombine.high %v171_v19, %v203_v20  ;;  %v4720_v29 = vcombine.low %v171_v19, %v203_v20  ;;  %v44_v19 = vld [vmem:[%s7082_s1 + $0xe0] sm:$0xff] }
 0x181   :  { %v76_v20 = vld [vmem:[%s7082_s1 + $0x1e0] sm:$0xff] }
 0x182   :  { %4011 = vmatpush1.bf16.msra.mxu0 %v5030_v46  ;;  %4052 = vmatpush1.bf16.msra.mxu1 %v5032_v47  ;;  %v489_v47 = vld [vmem:[%s7082_s1 + $0xec8] sm:$0xff] }
 0x183   :  { %4078 = vmatprep.subr.bf16.mxu0 %v4587_v48  ;;  %4119 = vmatprep.subr.bf16.mxu1 %v4589_v49  ;;  %v521_v48 = vld [vmem:[%s7082_s1 + $0xfc8] sm:$0xff] }
 0x185   :  { %v5085_v60 = vpop.eup %5084  ;;  %4029 = vmatmul.mubr.bf16.vlgmr.msra.gmra.mrb[44].mxu0 %v6403_v41  ;;  %4070 = vmatmul.mubr.bf16.vlgmr.msra.gmra.mrb[44].mxu1 %v6403_v41 }
 0x186   :  { %v5087_v63 = vpop.eup %5086  ;;  %4486 = vst [vmem:[%s7085_s3 + $0x80] sm:$0xff] %v5085_v60  ;;  %4079 = vmatpush1.bf16.msra.mxu0 %v4586_v54  ;;  %4120 = vmatpush1.bf16.msra.mxu1 %v4588_v55  ;;  %v5037_v60 = vcombine.high %v489_v47, %v521_v48 }
 0x187   :  { %v5089_v2 = vpop.eup %5088  ;;  %4488 = vst [vmem:[%s7085_s3 + $0x90] sm:$0xff] %v5087_v63  ;;  %4080 = vmatprep.subr.bf16.mxu0 %v4651_v56  ;;  %4121 = vmatprep.subr.bf16.mxu1 %v4653_v57  ;;  %v4972_v57 = vcombine.low %v425_v35, %v457_v12  ;;  %v43_v63 = vld [vmem:[%s7082_s1 + $0xd8] sm:$0xff]  ;;  %v298_v12 = vld [vmem:[%s7082_s1 + $0x8d0] sm:$0xff] }
 0x188   :  { %v5091_v6 = vpop.eup %5090  ;;  %4487 = vst [vmem:[%s7085_s3 + $0x88] sm:$0xff] %v5089_v2  ;;  %4110 = vmatprep.mubr.bf16.mxu0 %v5183_v3  ;;  %4151 = vmatprep.mubr.bf16.mxu1 %v5183_v3  ;;  %v5034_v2 = vcombine.low %v488_v42, %v520_v43 }
 0x189   :  { %4489 = vst [vmem:[%s7085_s3 + $0x98] sm:$0xff] %v5091_v6 }
 0x18a   :  { %4081 = vmatpush1.bf16.msra.mxu0 %v4650_v0  ;;  %4122 = vmatpush1.bf16.msra.mxu1 %v4652_v4  ;;  %v75_v0 = vld [vmem:[%s7082_s1 + $0x1d8] sm:$0xff]  ;;  %v5036_v4 = vcombine.low %v489_v47, %v521_v48 }
 0x18b   :  { %4082 = vmatprep.subr.bf16.mxu0 %v4715_v5  ;;  %4123 = vmatprep.subr.bf16.mxu1 %v4717_v7  ;;  %v4591_v5 = vcombine.high %v42_v61, %v74_v62  ;;  %v4593_v6 = vcombine.high %v43_v63, %v75_v0  ;;  %v106_v7 = vld [vmem:[%s7082_s1 + $0x2d0] sm:$0xff]  ;;  %v395_v47 = vld [vmem:[%s7082_s1 + $0xbd8] sm:$0xff] }
 0x18c   :  { %v490_v61 = vld [vmem:[%s7082_s1 + $0xed0] sm:$0xff] }
 0x18d   :  { %v522_v62 = vld [vmem:[%s7082_s1 + $0xfd0] sm:$0xff] }
 0x18e   :  { %4083 = vmatpush1.bf16.msra.mxu0 %v4714_v13  ;;  %4124 = vmatpush1.bf16.msra.mxu1 %v4716_v14  ;;  %v4592_v13 = vcombine.low %v43_v63, %v75_v0  ;;  %v4655_v14 = vcombine.high %v106_v7, %v138_v8 }
 0x18f   :  { %4084 = vmatprep.subr.bf16.mxu0 %v4779_v15  ;;  %4125 = vmatprep.subr.bf16.mxu1 %v4781_v16  ;;  %v4657_v15 = vcombine.high %v107_v9, %v139_v10  ;;  %v170_v16 = vld [vmem:[%s7082_s1 + $0x4d0] sm:$0xff] }
 0x190   :  { %v4719_v25 = vcombine.high %v170_v16, %v202_v17 }
 0x192   :  { %4085 = vmatpush1.bf16.msra.mxu0 %v4778_v21  ;;  %4126 = vmatpush1.bf16.msra.mxu1 %v4780_v22  ;;  %v4654_v22 = vcombine.low %v106_v7, %v138_v8 }
 0x193   :  { %4086 = vmatprep.subr.bf16.mxu0 %v4843_v23  ;;  %4127 = vmatprep.subr.bf16.mxu1 %v4845_v24  ;;  %v4656_v24 = vcombine.low %v107_v9, %v139_v10 }
 0x196   :  { %4087 = vmatpush1.bf16.msra.mxu0 %v4842_v30  ;;  %4128 = vmatpush1.bf16.msra.mxu1 %v4844_v31  ;;  %v266_v30 = vld [vmem:[%s7082_s1 + $0x7d0] sm:$0xff]  ;;  %v235_v31 = vld [vmem:[%s7082_s1 + $0x6d8] sm:$0xff] }
 0x197   :  { %4088 = vmatprep.subr.bf16.mxu0 %v4907_v32  ;;  %4129 = vmatprep.subr.bf16.mxu1 %v4909_v33  ;;  %v267_v32 = vld [vmem:[%s7082_s1 + $0x7d8] sm:$0xff]  ;;  %v4718_v33 = vcombine.low %v170_v16, %v202_v17  ;;  %v4783_v34 = vcombine.high %v234_v28, %v266_v30  ;;  %v5039_v16 = vcombine.high %v490_v61, %v522_v62 }
 0x198   :  { %v3538_v39 = vpop.f32.mrb[20].mxu0  ;;  %v3579_v45 = vpop.f32.mrb[20].mxu1  ;;  %v4785_v35 = vcombine.high %v235_v31, %v267_v32 }
 0x199   :  { %v3539_v44 = vadd.f32 %v3538_v39, %v6004_v1  ;;  %v3540_v46 = vpop.f32.mrb[21].mxu0  ;;  %v3580_v49 = vadd.f32 %v3579_v45, %v6004_v1  ;;  %v3581_v51 = vpop.f32.mrb[21].mxu1  ;;  %v4782_v39 = vcombine.low %v234_v28, %v266_v30  ;;  %v394_v45 = vld [vmem:[%s7082_s1 + $0xbd0] sm:$0xff]  ;;  %v140_v28 = vld [vmem:[%s7082_s1 + $0x3e0] sm:$0xff]  ;;  %v109_v30 = vld [vmem:[%s7082_s1 + $0x2e8] sm:$0xff] }
 0x19a   :  { %v3541_v50 = vadd.f32 %v3540_v46, %v6004_v1  ;;  %v3542_v52 = vpop.f32.mrb[22].mxu0  ;;  %4089 = vmatpush1.bf16.msra.mxu0 %v4906_v36  ;;  %v3582_v54 = vadd.f32 %v3581_v51, %v6004_v1  ;;  %v3583_v55 = vpop.f32.mrb[22].mxu1  ;;  %4130 = vmatpush1.bf16.msra.mxu1 %v4908_v37  ;;  %v330_v36 = vld [vmem:[%s7082_s1 + $0x9d0] sm:$0xff]  ;;  %v299_v37 = vld [vmem:[%s7082_s1 + $0x8d8] sm:$0xff] }
 0x19b   :  { %5092 = vtanh.f32 %v3539_v44  ;;  %v3543_v56 = vpop.f32.mrb[23].mxu0  ;;  %4090 = vmatprep.subr.bf16.mxu0 %v4971_v38  ;;  %v3584_v59 = vpop.f32.mrb[23].mxu1  ;;  %4131 = vmatprep.subr.bf16.mxu1 %v4973_v40  ;;  %v331_v38 = vld [vmem:[%s7082_s1 + $0x9d8] sm:$0xff]  ;;  %v4784_v40 = vcombine.low %v235_v31, %v267_v32  ;;  %v4847_v42 = vcombine.high %v298_v12, %v330_v36  ;;  %v362_v44 = vld [vmem:[%s7082_s1 + $0xad0] sm:$0xff]  ;;  %v4846_v48 = vcombine.low %v298_v12, %v330_v36  ;;  %v141_v31 = vld [vmem:[%s7082_s1 + $0x3e8] sm:$0xff] }
 0x19c   :  { %5094 = vtanh.f32 %v3580_v49  ;;  %v4849_v43 = vcombine.high %v299_v37, %v331_v38  ;;  %v363_v46 = vld [vmem:[%s7082_s1 + $0xad8] sm:$0xff]  ;;  %v4848_v49 = vcombine.low %v299_v37, %v331_v38  ;;  %v426_v52 = vld [vmem:[%s7082_s1 + $0xcd0] sm:$0xff]  ;;  %v4910_v56 = vcombine.low %v362_v44, %v394_v45  ;;  %v204_v12 = vld [vmem:[%s7082_s1 + $0x5e0] sm:$0xff] }
 0x19d   :  { %5096 = vtanh.f32 %v3541_v50  ;;  %v4911_v50 = vcombine.high %v362_v44, %v394_v45  ;;  %v4913_v51 = vcombine.high %v363_v46, %v395_v47  ;;  %v459_v55 = vld [vmem:[%s7082_s1 + $0xdd8] sm:$0xff]  ;;  %v4594_v32 = vcombine.low %v44_v19, %v76_v20  ;;  %v173_v37 = vld [vmem:[%s7082_s1 + $0x4e8] sm:$0xff] }
 0x19e   :  { %5098 = vtanh.f32 %v3582_v54  ;;  %4091 = vmatpush1.bf16.msra.mxu0 %v4970_v53  ;;  %4132 = vmatpush1.bf16.msra.mxu1 %v4972_v57  ;;  %v458_v53 = vld [vmem:[%s7082_s1 + $0xdd0] sm:$0xff]  ;;  %v427_v54 = vld [vmem:[%s7082_s1 + $0xcd8] sm:$0xff]  ;;  %v4912_v57 = vcombine.low %v363_v46, %v395_v47  ;;  %v205_v38 = vld [vmem:[%s7082_s1 + $0x5e8] sm:$0xff] }
 0x19f   :  { %4092 = vmatprep.subr.bf16.mxu0 %v5035_v58  ;;  %4133 = vmatprep.subr.bf16.mxu1 %v5037_v60  ;;  %v4975_v58 = vcombine.high %v426_v52, %v458_v53  ;;  %v4977_v60 = vcombine.high %v427_v54, %v459_v55  ;;  %v4974_v10 = vcombine.low %v426_v52, %v458_v53  ;;  %v236_v47 = vld [vmem:[%s7082_s1 + $0x6e0] sm:$0xff] }
 0x1a0   :  { %v4725_v46 = vcombine.high %v173_v37, %v205_v38  ;;  %v4724_v52 = vcombine.low %v173_v37, %v205_v38  ;;  %v46_v37 = vld [vmem:[%s7082_s1 + $0xf0] sm:$0xff] }
 0x1a1   :  { %v78_v38 = vld [vmem:[%s7082_s1 + $0x1f0] sm:$0xff] }
 0x1a2   :  { %4093 = vmatpush1.bf16.msra.mxu0 %v5034_v2  ;;  %4134 = vmatpush1.bf16.msra.mxu1 %v5036_v4  ;;  %v491_v4 = vld [vmem:[%s7082_s1 + $0xed8] sm:$0xff] }
 0x1a3   :  { %4160 = vmatprep.subr.bf16.mxu0 %v4591_v5  ;;  %4201 = vmatprep.subr.bf16.mxu1 %v4593_v6  ;;  %v523_v5 = vld [vmem:[%s7082_s1 + $0xfd8] sm:$0xff] }
 0x1a5   :  { %v5093_v18 = vpop.eup %5092  ;;  %4111 = vmatmul.mubr.bf16.vlgmr.msra.gmra.mrb[48].mxu0 %v6403_v41  ;;  %4152 = vmatmul.mubr.bf16.vlgmr.msra.gmra.mrb[48].mxu1 %v6403_v41 }
 0x1a6   :  { %v5095_v21 = vpop.eup %5094  ;;  %4490 = vst [vmem:[%s7085_s3 + $0xa0] sm:$0xff] %v5093_v18  ;;  %4161 = vmatpush1.bf16.msra.mxu0 %v4590_v11  ;;  %4202 = vmatpush1.bf16.msra.mxu1 %v4592_v13  ;;  %v5041_v18 = vcombine.high %v491_v4, %v523_v5 }
 0x1a7   :  { %v5097_v23 = vpop.eup %5096  ;;  %4492 = vst [vmem:[%s7085_s3 + $0xb0] sm:$0xff] %v5095_v21  ;;  %4162 = vmatprep.subr.bf16.mxu0 %v4655_v14  ;;  %4203 = vmatprep.subr.bf16.mxu1 %v4657_v15  ;;  %v4976_v15 = vcombine.low %v427_v54, %v459_v55  ;;  %v45_v21 = vld [vmem:[%s7082_s1 + $0xe8] sm:$0xff]  ;;  %v300_v55 = vld [vmem:[%s7082_s1 + $0x8e0] sm:$0xff] }
 0x1a8   :  { %v5099_v26 = vpop.eup %5098  ;;  %4491 = vst [vmem:[%s7085_s3 + $0xa8] sm:$0xff] %v5097_v23  ;;  %4192 = vmatprep.mubr.bf16.mxu0 %v5183_v3  ;;  %4233 = vmatprep.mubr.bf16.mxu1 %v5183_v3  ;;  %v5038_v23 = vcombine.low %v490_v61, %v522_v62 }
 0x1a9   :  { %4493 = vst [vmem:[%s7085_s3 + $0xb8] sm:$0xff] %v5099_v26 }
 0x1aa   :  { %4163 = vmatpush1.bf16.msra.mxu0 %v4654_v22  ;;  %4204 = vmatpush1.bf16.msra.mxu1 %v4656_v24  ;;  %v77_v22 = vld [vmem:[%s7082_s1 + $0x1e8] sm:$0xff]  ;;  %v5040_v24 = vcombine.low %v491_v4, %v523_v5 }
 0x1ab   :  { %4164 = vmatprep.subr.bf16.mxu0 %v4719_v25  ;;  %4205 = vmatprep.subr.bf16.mxu1 %v4721_v27  ;;  %v4595_v25 = vcombine.high %v44_v19, %v76_v20  ;;  %v4597_v26 = vcombine.high %v45_v21, %v77_v22  ;;  %v108_v27 = vld [vmem:[%s7082_s1 + $0x2e0] sm:$0xff]  ;;  %v397_v4 = vld [vmem:[%s7082_s1 + $0xbe8] sm:$0xff] }
 0x1ac   :  { %v492_v19 = vld [vmem:[%s7082_s1 + $0xee0] sm:$0xff] }
 0x1ad   :  { %v524_v20 = vld [vmem:[%s7082_s1 + $0xfe0] sm:$0xff] }
 0x1ae   :  { %4165 = vmatpush1.bf16.msra.mxu0 %v4718_v33  ;;  %4206 = vmatpush1.bf16.msra.mxu1 %v4720_v29  ;;  %v4596_v33 = vcombine.low %v45_v21, %v77_v22  ;;  %v4659_v29 = vcombine.high %v108_v27, %v140_v28 }
 0x1af   :  { %4166 = vmatprep.subr.bf16.mxu0 %v4783_v34  ;;  %4207 = vmatprep.subr.bf16.mxu1 %v4785_v35  ;;  %v4661_v34 = vcombine.high %v109_v30, %v141_v31  ;;  %v172_v35 = vld [vmem:[%s7082_s1 + $0x4e0] sm:$0xff] }
 0x1b0   :  { %v4723_v44 = vcombine.high %v172_v35, %v204_v12 }
 0x1b2   :  { %4167 = vmatpush1.bf16.msra.mxu0 %v4782_v39  ;;  %4208 = vmatpush1.bf16.msra.mxu1 %v4784_v40  ;;  %v4658_v40 = vcombine.low %v108_v27, %v140_v28 }
 0x1b3   :  { %4168 = vmatprep.subr.bf16.mxu0 %v4847_v42  ;;  %4209 = vmatprep.subr.bf16.mxu1 %v4849_v43  ;;  %v4660_v43 = vcombine.low %v109_v30, %v141_v31 }
 0x1b6   :  { %4169 = vmatpush1.bf16.msra.mxu0 %v4846_v48  ;;  %4210 = vmatpush1.bf16.msra.mxu1 %v4848_v49  ;;  %v268_v48 = vld [vmem:[%s7082_s1 + $0x7e0] sm:$0xff]  ;;  %v237_v49 = vld [vmem:[%s7082_s1 + $0x6e8] sm:$0xff] }
 0x1b7   :  { %4170 = vmatprep.subr.bf16.mxu0 %v4911_v50  ;;  %4211 = vmatprep.subr.bf16.mxu1 %v4913_v51  ;;  %v269_v50 = vld [vmem:[%s7082_s1 + $0x7e8] sm:$0xff]  ;;  %v4722_v51 = vcombine.low %v172_v35, %v204_v12  ;;  %v4787_v53 = vcombine.high %v236_v47, %v268_v48  ;;  %v5043_v35 = vcombine.high %v492_v19, %v524_v20 }
 0x1b8   :  { %v3620_v59 = vpop.f32.mrb[24].mxu0  ;;  %v3661_v0 = vpop.f32.mrb[24].mxu1  ;;  %v4789_v54 = vcombine.high %v237_v49, %v269_v50 }
 0x1b9   :  { %v3621_v63 = vadd.f32 %v3620_v59, %v6004_v1  ;;  %v3622_v2 = vpop.f32.mrb[25].mxu0  ;;  %v3662_v6 = vadd.f32 %v3661_v0, %v6004_v1  ;;  %v3663_v8 = vpop.f32.mrb[25].mxu1  ;;  %v4786_v59 = vcombine.low %v236_v47, %v268_v48  ;;  %v396_v0 = vld [vmem:[%s7082_s1 + $0xbe0] sm:$0xff]  ;;  %v142_v47 = vld [vmem:[%s7082_s1 + $0x3f0] sm:$0xff]  ;;  %v111_v48 = vld [vmem:[%s7082_s1 + $0x2f8] sm:$0xff] }
 0x1ba   :  { %v3623_v7 = vadd.f32 %v3622_v2, %v6004_v1  ;;  %v3624_v9 = vpop.f32.mrb[26].mxu0  ;;  %4171 = vmatpush1.bf16.msra.mxu0 %v4910_v56  ;;  %v3664_v11 = vadd.f32 %v3663_v8, %v6004_v1  ;;  %v3665_v13 = vpop.f32.mrb[26].mxu1  ;;  %4212 = vmatpush1.bf16.msra.mxu1 %v4912_v57  ;;  %v332_v56 = vld [vmem:[%s7082_s1 + $0x9e0] sm:$0xff]  ;;  %v301_v57 = vld [vmem:[%s7082_s1 + $0x8e8] sm:$0xff] }
 0x1bb   :  { %5100 = vtanh.f32 %v3621_v63  ;;  %v3625_v14 = vpop.f32.mrb[27].mxu0  ;;  %4172 = vmatprep.subr.bf16.mxu0 %v4975_v58  ;;  %v3666_v17 = vpop.f32.mrb[27].mxu1  ;;  %4213 = vmatprep.subr.bf16.mxu1 %v4977_v60  ;;  %v333_v58 = vld [vmem:[%s7082_s1 + $0x9e8] sm:$0xff]  ;;  %v4788_v60 = vcombine.low %v237_v49, %v269_v50  ;;  %v4851_v61 = vcombine.high %v300_v55, %v332_v56  ;;  %v364_v63 = vld [vmem:[%s7082_s1 + $0xae0] sm:$0xff]  ;;  %v4850_v5 = vcombine.low %v300_v55, %v332_v56  ;;  %v143_v49 = vld [vmem:[%s7082_s1 + $0x3f8] sm:$0xff] }
 0x1bc   :  { %5102 = vtanh.f32 %v3662_v6  ;;  %v4853_v62 = vcombine.high %v301_v57, %v333_v58  ;;  %v365_v2 = vld [vmem:[%s7082_s1 + $0xae8] sm:$0xff]  ;;  %v4852_v6 = vcombine.low %v301_v57, %v333_v58  ;;  %v428_v9 = vld [vmem:[%s7082_s1 + $0xce0] sm:$0xff]  ;;  %v4914_v14 = vcombine.low %v364_v63, %v396_v0  ;;  %v206_v55 = vld [vmem:[%s7082_s1 + $0x5f0] sm:$0xff] }
 0x1bd   :  { %5104 = vtanh.f32 %v3623_v7  ;;  %v4915_v7 = vcombine.high %v364_v63, %v396_v0  ;;  %v4917_v8 = vcombine.high %v365_v2, %v397_v4  ;;  %v461_v13 = vld [vmem:[%s7082_s1 + $0xde8] sm:$0xff]  ;;  %v4598_v50 = vcombine.low %v46_v37, %v78_v38  ;;  %v175_v57 = vld [vmem:[%s7082_s1 + $0x4f8] sm:$0xff] }
 0x1be   :  { %5106 = vtanh.f32 %v3664_v11  ;;  %4173 = vmatpush1.bf16.msra.mxu0 %v4974_v10  ;;  %4214 = vmatpush1.bf16.msra.mxu1 %v4976_v15  ;;  %v460_v10 = vld [vmem:[%s7082_s1 + $0xde0] sm:$0xff]  ;;  %v429_v11 = vld [vmem:[%s7082_s1 + $0xce8] sm:$0xff]  ;;  %v4916_v15 = vcombine.low %v365_v2, %v397_v4  ;;  %v207_v58 = vld [vmem:[%s7082_s1 + $0x5f8] sm:$0xff] }
 0x1bf   :  { %4174 = vmatprep.subr.bf16.mxu0 %v5039_v16  ;;  %4215 = vmatprep.subr.bf16.mxu1 %v5041_v18  ;;  %v4979_v16 = vcombine.high %v428_v9, %v460_v10  ;;  %v4981_v18 = vcombine.high %v429_v11, %v461_v13  ;;  %v4978_v31 = vcombine.low %v428_v9, %v460_v10  ;;  %v270_v4 = vld [vmem:[%s7082_s1 + $0x7f0] sm:$0xff] }
 0x1c0   :  { %v4729_v2 = vcombine.high %v175_v57, %v207_v58 }
 0x1c2   :  { %4175 = vmatpush1.bf16.msra.mxu0 %v5038_v23  ;;  %4216 = vmatpush1.bf16.msra.mxu1 %v5040_v24  ;;  %v493_v24 = vld [vmem:[%s7082_s1 + $0xee8] sm:$0xff] }
 0x1c3   :  { %4242 = vmatprep.subr.bf16.mxu0 %v4595_v25  ;;  %4283 = vmatprep.subr.bf16.mxu1 %v4597_v26  ;;  %v525_v25 = vld [vmem:[%s7082_s1 + $0xfe8] sm:$0xff] }
 0x1c5   :  { %v5101_v36 = vpop.eup %5100  ;;  %4193 = vmatmul.mubr.bf16.vlgmr.msra.gmra.mrb[52].mxu0 %v6403_v41  ;;  %4234 = vmatmul.mubr.bf16.vlgmr.msra.gmra.mrb[52].mxu1 %v6403_v41 }
 0x1c6   :  { %v5103_v39 = vpop.eup %5102  ;;  %4494 = vst [vmem:[%s7085_s3 + $0xc0] sm:$0xff] %v5101_v36  ;;  %4243 = vmatpush1.bf16.msra.mxu0 %v4594_v32  ;;  %4284 = vmatpush1.bf16.msra.mxu1 %v4596_v33  ;;  %v5045_v36 = vcombine.high %v493_v24, %v525_v25 }
 0x1c7   :  { %v5105_v42 = vpop.eup %5104  ;;  %4496 = vst [vmem:[%s7085_s3 + $0xd0] sm:$0xff] %v5103_v39  ;;  %4244 = vmatprep.subr.bf16.mxu0 %v4659_v29  ;;  %4285 = vmatprep.subr.bf16.mxu1 %v4661_v34  ;;  %v4980_v34 = vcombine.low %v429_v11, %v461_v13  ;;  %v47_v39 = vld [vmem:[%s7082_s1 + $0xf8] sm:$0xff]  ;;  %v302_v11 = vld [vmem:[%s7082_s1 + $0x8f0] sm:$0xff] }
 0x1c8   :  { %v5107_v45 = vpop.eup %5106  ;;  %4495 = vst [vmem:[%s7085_s3 + $0xc8] sm:$0xff] %v5105_v42  ;;  %4274 = vmatprep.mubr.bf16.mxu0 %v5183_v3  ;;  %4315 = vmatprep.mubr.bf16.mxu1 %v5183_v3  ;;  %v5042_v42 = vcombine.low %v492_v19, %v524_v20  ;;  %v334_v13 = vld [vmem:[%s7082_s1 + $0x9f0] sm:$0xff] }
 0x1c9   :  { %4497 = vst [vmem:[%s7085_s3 + $0xd8] sm:$0xff] %v5107_v45  ;;  %v366_v19 = vld [vmem:[%s7082_s1 + $0xaf0] sm:$0xff] }
 0x1ca   :  { %4245 = vmatpush1.bf16.msra.mxu0 %v4658_v40  ;;  %4286 = vmatpush1.bf16.msra.mxu1 %v4660_v43  ;;  %v79_v40 = vld [vmem:[%s7082_s1 + $0x1f8] sm:$0xff]  ;;  %v5044_v43 = vcombine.low %v493_v24, %v525_v25  ;;  %v398_v20 = vld [vmem:[%s7082_s1 + $0xbf0] sm:$0xff] }
 0x1cb   :  { %4246 = vmatprep.subr.bf16.mxu0 %v4723_v44  ;;  %4287 = vmatprep.subr.bf16.mxu1 %v4725_v46  ;;  %v4599_v44 = vcombine.high %v46_v37, %v78_v38  ;;  %v4601_v45 = vcombine.high %v47_v39, %v79_v40  ;;  %v110_v46 = vld [vmem:[%s7082_s1 + $0x2f0] sm:$0xff]  ;;  %v4919_v25 = vcombine.high %v366_v19, %v398_v20 }
 0x1ce   :  { %4247 = vmatpush1.bf16.msra.mxu0 %v4722_v51  ;;  %4288 = vmatpush1.bf16.msra.mxu1 %v4724_v52  ;;  %v4600_v51 = vcombine.low %v47_v39, %v79_v40  ;;  %v4663_v52 = vcombine.high %v110_v46, %v142_v47  ;;  %v495_v40 = vld [vmem:[%s7082_s1 + $0xef8] sm:$0xff] }
 0x1cf   :  { %4248 = vmatprep.subr.bf16.mxu0 %v4787_v53  ;;  %4289 = vmatprep.subr.bf16.mxu1 %v4789_v54  ;;  %v4665_v53 = vcombine.high %v111_v48, %v143_v49  ;;  %v174_v54 = vld [vmem:[%s7082_s1 + $0x4f0] sm:$0xff] }
 0x1d0   :  { %v4727_v63 = vcombine.high %v174_v54, %v206_v55 }
 0x1d2   :  { %4249 = vmatpush1.bf16.msra.mxu0 %v4786_v59  ;;  %4290 = vmatpush1.bf16.msra.mxu1 %v4788_v60  ;;  %v4662_v60 = vcombine.low %v110_v46, %v142_v47 }
 0x1d3   :  { %4250 = vmatprep.subr.bf16.mxu0 %v4851_v61  ;;  %4291 = vmatprep.subr.bf16.mxu1 %v4853_v62  ;;  %v4664_v62 = vcombine.low %v111_v48, %v143_v49 }
 0x1d6   :  { %4251 = vmatpush1.bf16.msra.mxu0 %v4850_v5  ;;  %4292 = vmatpush1.bf16.msra.mxu1 %v4852_v6  ;;  %v239_v5 = vld [vmem:[%s7082_s1 + $0x6f8] sm:$0xff] }
 0x1d7   :  { %4252 = vmatprep.subr.bf16.mxu0 %v4915_v7  ;;  %4293 = vmatprep.subr.bf16.mxu1 %v4917_v8  ;;  %v271_v6 = vld [vmem:[%s7082_s1 + $0x7f8] sm:$0xff]  ;;  %v4726_v7 = vcombine.low %v174_v54, %v206_v55  ;;  %v4728_v8 = vcombine.low %v175_v57, %v207_v58  ;;  %v5182_v58 = vld [vmem:[%s7083_s0] sm:$0xf] }
 0x1d8   :  { %v3702_v17 = vpop.f32.mrb[28].mxu0  ;;  %v3743_v22 = vpop.f32.mrb[28].mxu1  ;;  %v4793_v10 = vcombine.high %v239_v5, %v271_v6 }
 0x1d9   :  { %v3703_v21 = vadd.f32 %v3702_v17, %v6004_v1  ;;  %v3704_v23 = vpop.f32.mrb[29].mxu0  ;;  %v3744_v26 = vadd.f32 %v3743_v22, %v6004_v1  ;;  %v3745_v28 = vpop.f32.mrb[29].mxu1  ;;  %v4855_v17 = vcombine.high %v302_v11, %v334_v13  ;;  %v399_v22 = vld [vmem:[%s7082_s1 + $0xbf8] sm:$0xff] }
 0x1da   :  { %v3705_v27 = vadd.f32 %v3704_v23, %v6004_v1  ;;  %v3706_v30 = vpop.f32.mrb[30].mxu0  ;;  %4253 = vmatpush1.bf16.msra.mxu0 %v4914_v14  ;;  %v3746_v32 = vadd.f32 %v3745_v28, %v6004_v1  ;;  %v3747_v33 = vpop.f32.mrb[30].mxu1  ;;  %4294 = vmatpush1.bf16.msra.mxu1 %v4916_v15  ;;  %v335_v14 = vld [vmem:[%s7082_s1 + $0x9f8] sm:$0xff]  ;;  %v4854_v23 = vcombine.low %v302_v11, %v334_v13  ;;  %v462_v28 = vld [vmem:[%s7082_s1 + $0xdf0] sm:$0xff] }
 0x1db   :  { %5108 = vtanh.f32 %v3703_v21  ;;  %v3707_v29 = vpop.f32.mrb[31].mxu0  ;;  %4254 = vmatprep.subr.bf16.mxu0 %v4979_v16  ;;  %v3748_v12 = vpop.f32.mrb[31].mxu1  ;;  %4295 = vmatprep.subr.bf16.mxu1 %v4981_v18  ;;  %v4792_v16 = vcombine.low %v239_v5, %v271_v6  ;;  %v367_v21 = vld [vmem:[%s7082_s1 + $0xaf8] sm:$0xff] }
 0x1dc   :  { %5110 = vtanh.f32 %v3744_v26  ;;  %v4921_v26 = vcombine.high %v367_v21, %v399_v22  ;;  %v431_v30 = vld [vmem:[%s7082_s1 + $0xcf8] sm:$0xff]  ;;  %v4920_v33 = vcombine.low %v367_v21, %v399_v22  ;;  %v494_v12 = vld [vmem:[%s7082_s1 + $0xef0] sm:$0xff] }
 0x1dd   :  { %5112 = vtanh.f32 %v3705_v27  ;;  %v430_v27 = vld [vmem:[%s7082_s1 + $0xcf0] sm:$0xff] }
 0x1de   :  { %5114 = vtanh.f32 %v3746_v32  ;;  %4255 = vmatpush1.bf16.msra.mxu0 %v4978_v31  ;;  %4296 = vmatpush1.bf16.msra.mxu1 %v4980_v34  ;;  %v463_v31 = vld [vmem:[%s7082_s1 + $0xdf8] sm:$0xff]  ;;  %v4918_v32 = vcombine.low %v366_v19, %v398_v20  ;;  %v4983_v29 = vcombine.high %v430_v27, %v462_v28  ;;  %v4982_v47 = vcombine.low %v430_v27, %v462_v28 }
 0x1df   :  { %4256 = vmatprep.subr.bf16.mxu0 %v5043_v35  ;;  %4297 = vmatprep.subr.bf16.mxu1 %v5045_v36  ;;  %v4985_v35 = vcombine.high %v431_v30, %v463_v31  ;;  %v526_v36 = vld [vmem:[%s7082_s1 + $0xff0] sm:$0xff] }
 0x1e0   :  { %v5046_v55 = vcombine.low %v494_v12, %v526_v36 }
 0x1e2   :  { %4257 = vmatpush1.bf16.msra.mxu0 %v5042_v42  ;;  %4298 = vmatpush1.bf16.msra.mxu1 %v5044_v43  ;;  %v527_v42 = vld [vmem:[%s7082_s1 + $0xff8] sm:$0xff] }
 0x1e3   :  { %4324 = vmatprep.subr.bf16.mxu0 %v4599_v44  ;;  %4365 = vmatprep.subr.bf16.mxu1 %v4601_v45  ;;  %v5049_v54 = vcombine.high %v495_v40, %v527_v42 }
 0x1e5   :  { %v5109_v56 = vpop.eup %5108  ;;  %4275 = vmatmul.mubr.bf16.vlgmr.msra.gmra.mrb[56].mxu0 %v6403_v41  ;;  %4316 = vmatmul.mubr.bf16.vlgmr.msra.gmra.mrb[56].mxu1 %v6403_v41  ;;  %v238_v41 = vld [vmem:[%s7082_s1 + $0x6f0] sm:$0xff] }
 0x1e6   :  { %v5111_v59 = vpop.eup %5110  ;;  %4498 = vst [vmem:[%s7085_s3 + $0xe0] sm:$0xff] %v5109_v56  ;;  %4325 = vmatpush1.bf16.msra.mxu0 %v4598_v50  ;;  %4366 = vmatpush1.bf16.msra.mxu1 %v4600_v51  ;;  %v4791_v9 = vcombine.high %v238_v41, %v270_v4  ;;  %v4790_v15 = vcombine.low %v238_v41, %v270_v4 }
 0x1e7   :  { %v5113_v61 = vpop.eup %5112  ;;  %4500 = vst [vmem:[%s7085_s3 + $0xf0] sm:$0xff] %v5111_v59  ;;  %4326 = vmatprep.subr.bf16.mxu0 %v4663_v52  ;;  %4367 = vmatprep.subr.bf16.mxu1 %v4665_v53  ;;  %v4984_v51 = vcombine.low %v431_v30, %v463_v31  ;;  %v5047_v52 = vcombine.high %v494_v12, %v526_v36 }
 0x1e8   :  { %v5115_v0 = vpop.eup %5114  ;;  %4499 = vst [vmem:[%s7085_s3 + $0xe8] sm:$0xff] %v5113_v61  ;;  %4356 = vmatprep.mubr.bf16.mxu0 %v5183_v3  ;;  %4397 = vmatprep.mubr.bf16.mxu1 %v5183_v3  ;;  %v303_v3 = vld [vmem:[%s7082_s1 + $0x8f8] sm:$0xff]  ;;  %v5048_v56 = vcombine.low %v495_v40, %v527_v42 }
 0x1e9   :  { %4501 = vst [vmem:[%s7085_s3 + $0xf8] sm:$0xff] %v5115_v0  ;;  %v4857_v18 = vcombine.high %v303_v3, %v335_v14  ;;  %v4856_v24 = vcombine.low %v303_v3, %v335_v14 }
 0x1ea   :  { %4327 = vmatpush1.bf16.msra.mxu0 %v4662_v60  ;;  %4368 = vmatpush1.bf16.msra.mxu1 %v4664_v62 }
 0x1eb   :  { %4328 = vmatprep.subr.bf16.mxu0 %v4727_v63  ;;  %4369 = vmatprep.subr.bf16.mxu1 %v4729_v2 }
 0x1ee   :  { %4329 = vmatpush1.bf16.msra.mxu0 %v4726_v7  ;;  %4370 = vmatpush1.bf16.msra.mxu1 %v4728_v8 }
 0x1ef   :  { %4330 = vmatprep.subr.bf16.mxu0 %v4791_v9  ;;  %4371 = vmatprep.subr.bf16.mxu1 %v4793_v10 }
 0x1f2   :  { %4331 = vmatpush1.bf16.msra.mxu0 %v4790_v15  ;;  %4372 = vmatpush1.bf16.msra.mxu1 %v4792_v16 }
 0x1f3   :  { %4332 = vmatprep.subr.bf16.mxu0 %v4855_v17  ;;  %4373 = vmatprep.subr.bf16.mxu1 %v4857_v18 }
 0x1f6   :  { %4333 = vmatpush1.bf16.msra.mxu0 %v4854_v23  ;;  %4374 = vmatpush1.bf16.msra.mxu1 %v4856_v24 }
 0x1f7   :  { %4334 = vmatprep.subr.bf16.mxu0 %v4919_v25  ;;  %4375 = vmatprep.subr.bf16.mxu1 %v4921_v26 }
 0x1f8   :  { %v3784_v34 = vpop.f32.mrb[32].mxu0  ;;  %v3825_v38 = vpop.f32.mrb[32].mxu1 }
 0x1f9   :  { %v3785_v37 = vadd.f32 %v3784_v34, %v6004_v1  ;;  %v3786_v39 = vpop.f32.mrb[33].mxu0  ;;  %v3826_v43 = vadd.f32 %v3825_v38, %v6004_v1  ;;  %v3827_v45 = vpop.f32.mrb[33].mxu1 }
 0x1fa   :  { %v3787_v44 = vadd.f32 %v3786_v39, %v6004_v1  ;;  %v3788_v46 = vpop.f32.mrb[34].mxu0  ;;  %4335 = vmatpush1.bf16.msra.mxu0 %v4918_v32  ;;  %v3828_v48 = vadd.f32 %v3827_v45, %v6004_v1  ;;  %v3829_v49 = vpop.f32.mrb[34].mxu1  ;;  %4376 = vmatpush1.bf16.msra.mxu1 %v4920_v33 }
 0x1fb   :  { %5116 = vtanh.f32 %v3785_v37  ;;  %v3789_v50 = vpop.f32.mrb[35].mxu0  ;;  %4336 = vmatprep.subr.bf16.mxu0 %v4983_v29  ;;  %v3830_v53 = vpop.f32.mrb[35].mxu1  ;;  %4377 = vmatprep.subr.bf16.mxu1 %v4985_v35 }
 0x1fc   :  { %5118 = vtanh.f32 %v3826_v43 }
 0x1fd   :  { %5120 = vtanh.f32 %v3787_v44 }
 0x1fe   :  { %5122 = vtanh.f32 %v3828_v48  ;;  %4337 = vmatpush1.bf16.msra.mxu0 %v4982_v47  ;;  %4378 = vmatpush1.bf16.msra.mxu1 %v4984_v51 }
 0x1ff   :  { %4338 = vmatprep.subr.bf16.mxu0 %v5047_v52  ;;  %4379 = vmatprep.subr.bf16.mxu1 %v5049_v54 }
 0x202   :  { %4339 = vmatpush1.bf16.msra.mxu0 %v5046_v55  ;;  %4380 = vmatpush1.bf16.msra.mxu1 %v5048_v56 }
 0x205   :  { %v5117_v57 = vpop.eup %5116  ;;  %4357 = vmatmul.mubr.bf16.vlgmr.msra.gmra.mrb[60].mxu0 %v5182_v58  ;;  %4398 = vmatmul.mubr.bf16.vlgmr.msra.gmra.mrb[60].mxu1 %v5182_v58 }
 0x206   :  { %v5119_v59 = vpop.eup %5118  ;;  %4502 = vst [vmem:[%s7085_s3 + $0x100] sm:$0xff] %v5117_v57 }
 0x207   :  { %v5121_v60 = vpop.eup %5120  ;;  %4504 = vst [vmem:[%s7085_s3 + $0x110] sm:$0xff] %v5119_v59 }
 0x208   :  { %v5123_v61 = vpop.eup %5122  ;;  %4503 = vst [vmem:[%s7085_s3 + $0x108] sm:$0xff] %v5121_v60 }
 0x209   :  { %4505 = vst [vmem:[%s7085_s3 + $0x118] sm:$0xff] %v5123_v61 }
 0x218   :  { %v3866_v62 = vpop.f32.mrb[36].mxu0  ;;  %v3907_v0 = vpop.f32.mrb[36].mxu1 }
 0x219   :  { %v3867_v63 = vadd.f32 %v3866_v62, %v6004_v1  ;;  %v3868_v2 = vpop.f32.mrb[37].mxu0  ;;  %v3908_v41 = vadd.f32 %v3907_v0, %v6004_v1  ;;  %v3909_v5 = vpop.f32.mrb[37].mxu1 }
 0x21a   :  { %v3869_v4 = vadd.f32 %v3868_v2, %v6004_v1  ;;  %v3870_v6 = vpop.f32.mrb[38].mxu0  ;;  %v3910_v7 = vadd.f32 %v3909_v5, %v6004_v1  ;;  %v3911_v8 = vpop.f32.mrb[38].mxu1 }
 0x21b   :  { %5124 = vtanh.f32 %v3867_v63  ;;  %v3871_v9 = vpop.f32.mrb[39].mxu0  ;;  %v3912_v10 = vpop.f32.mrb[39].mxu1 }
 0x21c   :  { %5126 = vtanh.f32 %v3908_v41 }
 0x21d   :  { %5128 = vtanh.f32 %v3869_v4 }
 0x21e   :  { %5130 = vtanh.f32 %v3910_v7 }
 0x225   :  { %v5125_v11 = vpop.eup %5124 }
 0x226   :  { %v5127_v13 = vpop.eup %5126  ;;  %4506 = vst [vmem:[%s7085_s3 + $0x120] sm:$0xff] %v5125_v11 }
 0x227   :  { %v5129_v3 = vpop.eup %5128  ;;  %4508 = vst [vmem:[%s7085_s3 + $0x130] sm:$0xff] %v5127_v13 }
 0x228   :  { %v5131_v14 = vpop.eup %5130  ;;  %4507 = vst [vmem:[%s7085_s3 + $0x128] sm:$0xff] %v5129_v3 }
 0x229   :  { %4509 = vst [vmem:[%s7085_s3 + $0x138] sm:$0xff] %v5131_v14 }
 0x238   :  { %v3948_v15 = vpop.f32.mrb[40].mxu0  ;;  %v3989_v17 = vpop.f32.mrb[40].mxu1 }
 0x239   :  { %v3949_v16 = vadd.f32 %v3948_v15, %v6004_v1  ;;  %v3950_v18 = vpop.f32.mrb[41].mxu0  ;;  %v3990_v19 = vadd.f32 %v3989_v17, %v6004_v1  ;;  %v3991_v21 = vpop.f32.mrb[41].mxu1 }
 0x23a   :  { %v3951_v20 = vadd.f32 %v3950_v18, %v6004_v1  ;;  %v3952_v22 = vpop.f32.mrb[42].mxu0  ;;  %v3992_v23 = vadd.f32 %v3991_v21, %v6004_v1  ;;  %v3993_v24 = vpop.f32.mrb[42].mxu1 }
 0x23b   :  { %5132 = vtanh.f32 %v3949_v16  ;;  %v3953_v25 = vpop.f32.mrb[43].mxu0  ;;  %v3994_v26 = vpop.f32.mrb[43].mxu1 }
 0x23c   :  { %5134 = vtanh.f32 %v3990_v19 }
 0x23d   :  { %5136 = vtanh.f32 %v3951_v20 }
 0x23e   :  { %5138 = vtanh.f32 %v3992_v23 }
 0x245   :  { %v5133_v27 = vpop.eup %5132 }
 0x246   :  { %v5135_v28 = vpop.eup %5134  ;;  %4510 = vst [vmem:[%s7085_s3 + $0x140] sm:$0xff] %v5133_v27 }
 0x247   :  { %v5137_v30 = vpop.eup %5136  ;;  %4512 = vst [vmem:[%s7085_s3 + $0x150] sm:$0xff] %v5135_v28 }
 0x248   :  { %v5139_v31 = vpop.eup %5138  ;;  %4511 = vst [vmem:[%s7085_s3 + $0x148] sm:$0xff] %v5137_v30 }
 0x249   :  { %4513 = vst [vmem:[%s7085_s3 + $0x158] sm:$0xff] %v5139_v31 }
 0x258   :  { %v4030_v32 = vpop.f32.mrb[44].mxu0  ;;  %v4071_v29 = vpop.f32.mrb[44].mxu1 }
 0x259   :  { %v4031_v33 = vadd.f32 %v4030_v32, %v6004_v1  ;;  %v4032_v34 = vpop.f32.mrb[45].mxu0  ;;  %v4072_v35 = vadd.f32 %v4071_v29, %v6004_v1  ;;  %v4073_v36 = vpop.f32.mrb[45].mxu1 }
 0x25a   :  { %v4033_v12 = vadd.f32 %v4032_v34, %v6004_v1  ;;  %v4034_v37 = vpop.f32.mrb[46].mxu0  ;;  %v4074_v38 = vadd.f32 %v4073_v36, %v6004_v1  ;;  %v4075_v39 = vpop.f32.mrb[46].mxu1 }
 0x25b   :  { %5140 = vtanh.f32 %v4031_v33  ;;  %v4035_v40 = vpop.f32.mrb[47].mxu0  ;;  %v4076_v42 = vpop.f32.mrb[47].mxu1 }
 0x25c   :  { %5142 = vtanh.f32 %v4072_v35 }
 0x25d   :  { %5144 = vtanh.f32 %v4033_v12 }
 0x25e   :  { %5146 = vtanh.f32 %v4074_v38 }
 0x265   :  { %v5141_v43 = vpop.eup %5140 }
 0x266   :  { %v5143_v44 = vpop.eup %5142  ;;  %4514 = vst [vmem:[%s7085_s3 + $0x160] sm:$0xff] %v5141_v43 }
 0x267   :  { %v5145_v45 = vpop.eup %5144  ;;  %4516 = vst [vmem:[%s7085_s3 + $0x170] sm:$0xff] %v5143_v44 }
 0x268   :  { %v5147_v46 = vpop.eup %5146  ;;  %4515 = vst [vmem:[%s7085_s3 + $0x168] sm:$0xff] %v5145_v45 }
 0x269   :  { %4517 = vst [vmem:[%s7085_s3 + $0x178] sm:$0xff] %v5147_v46 }
 0x278   :  { %v4112_v47 = vpop.f32.mrb[48].mxu0  ;;  %v4153_v49 = vpop.f32.mrb[48].mxu1 }
 0x279   :  { %v4113_v48 = vadd.f32 %v4112_v47, %v6004_v1  ;;  %v4114_v50 = vpop.f32.mrb[49].mxu0  ;;  %v4154_v51 = vadd.f32 %v4153_v49, %v6004_v1  ;;  %v4155_v53 = vpop.f32.mrb[49].mxu1 }
 0x27a   :  { %v4115_v52 = vadd.f32 %v4114_v50, %v6004_v1  ;;  %v4116_v54 = vpop.f32.mrb[50].mxu0  ;;  %v4156_v55 = vadd.f32 %v4155_v53, %v6004_v1  ;;  %v4157_v56 = vpop.f32.mrb[50].mxu1 }
 0x27b   :  { %5148 = vtanh.f32 %v4113_v48  ;;  %v4117_v57 = vpop.f32.mrb[51].mxu0  ;;  %v4158_v58 = vpop.f32.mrb[51].mxu1 }
 0x27c   :  { %5150 = vtanh.f32 %v4154_v51 }
 0x27d   :  { %5152 = vtanh.f32 %v4115_v52 }
 0x27e   :  { %5154 = vtanh.f32 %v4156_v55 }
 0x285   :  { %v5149_v59 = vpop.eup %5148 }
 0x286   :  { %v5151_v60 = vpop.eup %5150  ;;  %4518 = vst [vmem:[%s7085_s3 + $0x180] sm:$0xff] %v5149_v59 }
 0x287   :  { %v5153_v61 = vpop.eup %5152  ;;  %4520 = vst [vmem:[%s7085_s3 + $0x190] sm:$0xff] %v5151_v60 }
 0x288   :  { %v5155_v62 = vpop.eup %5154  ;;  %4519 = vst [vmem:[%s7085_s3 + $0x188] sm:$0xff] %v5153_v61 }
 0x289   :  { %4521 = vst [vmem:[%s7085_s3 + $0x198] sm:$0xff] %v5155_v62 }
 0x298   :  { %v4194_v63 = vpop.f32.mrb[52].mxu0  ;;  %v4235_v2 = vpop.f32.mrb[52].mxu1 }
 0x299   :  { %v4195_v0 = vadd.f32 %v4194_v63, %v6004_v1  ;;  %v4196_v41 = vpop.f32.mrb[53].mxu0  ;;  %v4236_v4 = vadd.f32 %v4235_v2, %v6004_v1  ;;  %v4237_v6 = vpop.f32.mrb[53].mxu1 }
 0x29a   :  { %v4197_v5 = vadd.f32 %v4196_v41, %v6004_v1  ;;  %v4198_v7 = vpop.f32.mrb[54].mxu0  ;;  %v4238_v8 = vadd.f32 %v4237_v6, %v6004_v1  ;;  %v4239_v9 = vpop.f32.mrb[54].mxu1 }
 0x29b   :  { %5156 = vtanh.f32 %v4195_v0  ;;  %v4199_v10 = vpop.f32.mrb[55].mxu0  ;;  %v4240_v11 = vpop.f32.mrb[55].mxu1 }
 0x29c   :  { %5158 = vtanh.f32 %v4236_v4 }
 0x29d   :  { %5160 = vtanh.f32 %v4197_v5 }
 0x29e   :  { %5162 = vtanh.f32 %v4238_v8 }
 0x2a5   :  { %v5157_v13 = vpop.eup %5156 }
 0x2a6   :  { %v5159_v3 = vpop.eup %5158  ;;  %4522 = vst [vmem:[%s7085_s3 + $0x1a0] sm:$0xff] %v5157_v13 }
 0x2a7   :  { %v5161_v14 = vpop.eup %5160  ;;  %4524 = vst [vmem:[%s7085_s3 + $0x1b0] sm:$0xff] %v5159_v3 }
 0x2a8   :  { %v5163_v15 = vpop.eup %5162  ;;  %4523 = vst [vmem:[%s7085_s3 + $0x1a8] sm:$0xff] %v5161_v14 }
 0x2a9   :  { %4525 = vst [vmem:[%s7085_s3 + $0x1b8] sm:$0xff] %v5163_v15 }
 0x2b8   :  { %v4276_v16 = vpop.f32.mrb[56].mxu0  ;;  %v4317_v18 = vpop.f32.mrb[56].mxu1 }
 0x2b9   :  { %v4277_v17 = vadd.f32 %v4276_v16, %v6004_v1  ;;  %v4278_v19 = vpop.f32.mrb[57].mxu0  ;;  %v4318_v20 = vadd.f32 %v4317_v18, %v6004_v1  ;;  %v4319_v22 = vpop.f32.mrb[57].mxu1 }
 0x2ba   :  { %v4279_v21 = vadd.f32 %v4278_v19, %v6004_v1  ;;  %v4280_v23 = vpop.f32.mrb[58].mxu0  ;;  %v4320_v24 = vadd.f32 %v4319_v22, %v6004_v1  ;;  %v4321_v25 = vpop.f32.mrb[58].mxu1 }
 0x2bb   :  { %5164 = vtanh.f32 %v4277_v17  ;;  %v4281_v26 = vpop.f32.mrb[59].mxu0  ;;  %v4322_v27 = vpop.f32.mrb[59].mxu1 }
 0x2bc   :  { %5166 = vtanh.f32 %v4318_v20 }
 0x2bd   :  { %5168 = vtanh.f32 %v4279_v21 }
 0x2be   :  { %5170 = vtanh.f32 %v4320_v24 }
 0x2c5   :  { %v5165_v28 = vpop.eup %5164 }
 0x2c6   :  { %v5167_v30 = vpop.eup %5166  ;;  %4526 = vst [vmem:[%s7085_s3 + $0x1c0] sm:$0xff] %v5165_v28 }
 0x2c7   :  { %v5169_v31 = vpop.eup %5168  ;;  %4528 = vst [vmem:[%s7085_s3 + $0x1d0] sm:$0xff] %v5167_v30 }
 0x2c8   :  { %v5171_v32 = vpop.eup %5170  ;;  %4527 = vst [vmem:[%s7085_s3 + $0x1c8] sm:$0xff] %v5169_v31 }
 0x2c9   :  { %4529 = vst [vmem:[%s7085_s3 + $0x1d8] sm:$0xff] %v5171_v32 }
 0x2d8   :  { %v4358_v33 = vpop.f32.mrb[60].mxu0  ;;  %v4399_v34 = vpop.f32.mrb[60].mxu1 }
 0x2d9   :  { %v4359_v29 = vadd.f32 %v4358_v33, %v6004_v1  ;;  %v4360_v35 = vpop.f32.mrb[61].mxu0  ;;  %v4400_v12 = vadd.f32 %v4399_v34, %v6004_v1  ;;  %v4401_v37 = vpop.f32.mrb[61].mxu1 }
 0x2da   :  { %v4361_v36 = vadd.f32 %v4360_v35, %v6004_v1  ;;  %v4362_v38 = vpop.f32.mrb[62].mxu0  ;;  %v4402_v39 = vadd.f32 %v4401_v37, %v6004_v1  ;;  %v4403_v40 = vpop.f32.mrb[62].mxu1 }
 0x2db   :  { %5172 = vtanh.f32 %v4359_v29  ;;  %v4363_v42 = vpop.f32.mrb[63].mxu0  ;;  %v4404_v43 = vpop.f32.mrb[63].mxu1 }
 0x2dc   :  { %5174 = vtanh.f32 %v4400_v12 }
 0x2dd   :  { %5176 = vtanh.f32 %v4361_v36 }
 0x2de   :  { %5178 = vtanh.f32 %v4402_v39 }
 0x2e5   :  { %v5173_v44 = vpop.eup %5172 }
 0x2e6   :  { %v5175_v45 = vpop.eup %5174  ;;  %4530 = vst [vmem:[%s7085_s3 + $0x1e0] sm:$0xff] %v5173_v44 }
 0x2e7   :  { %v5177_v46 = vpop.eup %5176  ;;  %4532 = vst [vmem:[%s7085_s3 + $0x1f0] sm:$0xff] %v5175_v45 }
 0x2e8   :  { %v5179_v47 = vpop.eup %5178  ;;  %4531 = vst [vmem:[%s7085_s3 + $0x1e8] sm:$0xff] %v5177_v46 }
 0x2e9   :  { %4533 = vst [vmem:[%s7085_s3 + $0x1f8] sm:$0xff] %v5179_v47 }

</bundles_post_ra>
